<compile_context>
chip_gen: v6e
topology: v6e:2x2x1
jax: 0.10.0
libtpu: 0.0.40
codegen_flags: <defaults>
</compile_context>

<pallas_src>
import jax
import jax.numpy as jnp
from jax.experimental import pallas as pl
from jax.experimental.pallas import tpu as pltpu

B = 2                            # batch
L = 300                          # sequence length implied by fc in_features
KSIZE = 3
C_OUT = 64
L_CONV = L - (KSIZE - 1)         # 298
L_POOL = L_CONV - (KSIZE - 1)    # 296
FC_IN = C_OUT * L_POOL           # 18944
NUM_CLASS = 42

CG = 32                          # conv channels per grid step
N_GROUPS = C_OUT // CG           # 2


def fused_kernel(x_ref, cw_ref, cb_ref, w_ref, fb_ref, o_ref, acc_ref):
    """Grid step g: conv+ReLU+pool for 32 channels, each channel immediately
    contracted against its (L_POOL, NUM_CLASS) FC weight tile on the MXU."""
    g = pl.program_id(0)

    @pl.when(g == 0)
    def _init():
        acc_ref[...] = jnp.zeros_like(acc_ref)

    x = x_ref[...]                              # (B, L) f32, VMEM-resident
    # Shifted views for the k=3 conv, computed once per grid step.
    x0 = x[:, 0:L_CONV]
    x1 = x[:, 1:1 + L_CONV]
    x2 = x[:, 2:2 + L_CONV]

    part = jnp.zeros((B, NUM_CLASS), jnp.float32)
    for c in range(CG):                         # static unroll over channels
        ch = g * CG + c                         # global channel id (scalar)
        w0 = cw_ref[ch * KSIZE + 0]             # SMEM scalar taps
        w1 = cw_ref[ch * KSIZE + 1]
        w2 = cw_ref[ch * KSIZE + 2]
        bias = cb_ref[ch]

        # Conv1d(1 -> 1 channel, k=3) + bias + ReLU, all on (B, L_CONV) tiles.
        r = jnp.maximum(x0 * w0 + x1 * w1 + x2 * w2 + bias, 0.0)
        # MaxPool1d(kernel=3, stride=1).
        p = jnp.maximum(jnp.maximum(r[:, 0:L_POOL], r[:, 1:1 + L_POOL]),
                        r[:, 2:2 + L_POOL])     # (B, L_POOL)

        # Per-channel FC contribution; contraction dim is minor on LHS and
        # major on RHS -> MXU-native, no weight transpose. f32 accumulation.
        part = part + jnp.dot(p.astype(jnp.bfloat16), w_ref[c],
                              preferred_element_type=jnp.float32)

    acc_ref[...] += part

    @pl.when(g == pl.num_programs(0) - 1)
    def _finalize():
        o_ref[...] = acc_ref[...] + fb_ref[...]


def text_classification_forward(x, conv_w, conv_b, fc_w, fc_b):
    """x: (B, L) f32; conv_w: (64, 1, 3) [PyTorch Conv1d layout];
    conv_b: (64,); fc_w: (42, 18944) [PyTorch Linear (out, in)]; fc_b: (42,)."""
    cw = conv_w.reshape(C_OUT * KSIZE).astype(jnp.float32)    # SMEM scalar table
    cb = conv_b.reshape(C_OUT).astype(jnp.float32)            # SMEM scalar table
    # One-time FC weight re-layout (in a real model this is done once at
    # parameter-load time): (42, 18944) -> (42, 64, 296) -> (64, 296, 42).
    # bf16 storage halves the HBM weight stream; matmul accumulates in f32.
    fw = jnp.transpose(fc_w.reshape(NUM_CLASS, C_OUT, L_POOL),
                       (1, 2, 0)).astype(jnp.bfloat16)
    fb = fc_b.reshape(1, NUM_CLASS).astype(jnp.float32)

    # TODO(synk): Dropout(p=0.25) implemented as inference-mode identity
    # (no RNG masking / 1/(1-p) scaling).
    return pl.pallas_call(
        fused_kernel,
        out_shape=jax.ShapeDtypeStruct((B, NUM_CLASS), jnp.float32),
        grid_spec=pltpu.PrefetchScalarGridSpec(
            num_scalar_prefetch=0,
            grid=(N_GROUPS,),
            in_specs=[
                pl.BlockSpec((B, L), lambda g: (0, 0)),                # x (resident)
                pl.BlockSpec(memory_space=pltpu.MemorySpace.SMEM),     # conv weights
                pl.BlockSpec(memory_space=pltpu.MemorySpace.SMEM),     # conv bias
                pl.BlockSpec((CG, L_POOL, NUM_CLASS),
                             lambda g: (g, 0, 0)),                     # FC weight K-tile
                pl.BlockSpec((1, NUM_CLASS), lambda g: (0, 0)),        # FC bias (resident)
            ],
            out_specs=pl.BlockSpec((B, NUM_CLASS), lambda g: (0, 0)),
            scratch_shapes=[pltpu.VMEM((B, NUM_CLASS), jnp.float32)],  # FC accumulator
        ),
        compiler_params=pltpu.CompilerParams(
            dimension_semantics=("arbitrary",)),
    )(x.astype(jnp.float32), cw, cb, fw, fb)


def reference_forward(x, conv_w, conv_b, fc_w_f32, fc_b):
    """Pure-JAX reference with identical math (PyTorch weight layouts)."""
    w = conv_w.reshape(C_OUT, KSIZE)
    patches = jnp.stack([x[:, k:k + L_CONV] for k in range(KSIZE)], axis=-1)
    conv = jnp.einsum("blk,ck->bcl", patches, w) + conv_b[None, :, None]
    r = jnp.maximum(conv, 0.0)
    pooled = jnp.max(
        jnp.stack([r[:, :, t:t + L_POOL] for t in range(KSIZE)], axis=-1), axis=-1
    )
    flat = pooled.reshape(x.shape[0], FC_IN)
    return flat @ fc_w_f32.T + fc_b[None, :]


if __name__ == "__main__":
    key = jax.random.PRNGKey(0)
    k_x, k_cw, k_cb, k_fw, k_fb = jax.random.split(key, 5)

    x = jax.random.normal(k_x, (B, L), dtype=jnp.float32)
    # PyTorch layouts: Conv1d weight (out=64, in=1, k=3); Linear weight (out, in).
    conv_w = jax.random.normal(k_cw, (C_OUT, 1, KSIZE), dtype=jnp.float32) * 0.1
    conv_b = jax.random.normal(k_cb, (C_OUT,), dtype=jnp.float32) * 0.1
    fc_w = jax.random.normal(k_fw, (NUM_CLASS, FC_IN), dtype=jnp.float32) * 0.01
    fc_b = jax.random.normal(k_fb, (NUM_CLASS,), dtype=jnp.float32) * 0.01

    out = jax.block_until_ready(
        text_classification_forward(x, conv_w, conv_b, fc_w, fc_b))

    # The kernel stores the FC weight in bf16 (halves the dominant HBM stream);
    # the reference applies the identical weight quantization so the check
    # isolates kernel logic. Conv/pool math is f32 in both.
    fc_w_q = fc_w.astype(jnp.bfloat16).astype(jnp.float32)
    ref = jax.block_until_ready(
        reference_forward(x, conv_w, conv_b, fc_w_q, fc_b))

    assert out.shape == (B, NUM_CLASS), out.shape
    assert jnp.allclose(out, ref, atol=2e-3, rtol=2e-3), "mismatch vs reference"

    print("KERNEL_OK")
</pallas_src>

<mosaic_0001>
module attributes {stable_mosaic.version = 11 : i64} {
  func.func @fused_kernel(%arg0: i32, %arg1: memref<2x300xf32, #tpu.memory_space<vmem>>, %arg2: memref<192xf32, #tpu.memory_space<smem>>, %arg3: memref<64xf32, #tpu.memory_space<smem>>, %arg4: memref<32x296x42xbf16, #tpu.memory_space<vmem>>, %arg5: memref<1x42xf32, #tpu.memory_space<vmem>>, %arg6: memref<2x42xf32, #tpu.memory_space<vmem>>, %arg7: memref<2x42xf32, #tpu.memory_space<vmem>>) attributes {dimension_semantics = [#tpu.dimension_semantics<arbitrary>], iteration_bounds = array<i64: 2>, scalar_prefetch = 0 : i64, scratch_operands = 1 : i64, tpu.core_type = #tpu.core_type<tc>, window_params = [{pipeline_mode = #tpu.pipeline_mode<synchronous>, transform_indices = @transform_0, window_bounds = array<i64: 2, 300>}, {transform_indices = @transform_1, window_bounds = array<i64: 192>}, {transform_indices = @transform_2, window_bounds = array<i64: 64>}, {transform_indices = @transform_3, window_bounds = array<i64: 32, 296, 42>}, {pipeline_mode = #tpu.pipeline_mode<synchronous>, transform_indices = @transform_4, window_bounds = array<i64: 1, 42>}, {pipeline_mode = #tpu.pipeline_mode<synchronous>, transform_indices = @transform_5, window_bounds = array<i64: 2, 42>}]} {
    %c0_i32 = arith.constant 0 : i32
    %0 = arith.cmpi eq, %arg0, %c0_i32 : i32
    %1 = arith.extui %0 : i1 to i32
    %c0_i32_0 = arith.constant 0 : i32
    %2 = arith.cmpi ne, %1, %c0_i32_0 : i32
    scf.if %2 {
      %cst_361 = arith.constant 0.000000e+00 : f32
      %1230 = vector.broadcast %cst_361 : f32 to vector<2x42xf32>
      %c0_362 = arith.constant 0 : index
      %c0_363 = arith.constant 0 : index
      %1231 = vector.load %arg7[%c0_362, %c0_363] : memref<2x42xf32, #tpu.memory_space<vmem>>, vector<2x42xf32>
      tpu.vector_store %arg7[%c0_362, %c0_363], %1230 {strides = array<i32>} : memref<2x42xf32, #tpu.memory_space<vmem>>, vector<2x42xf32>,
    } else {
    }
    %c0 = arith.constant 0 : index
    %c0_1 = arith.constant 0 : index
    %3 = vector.load %arg1[%c0, %c0_1] : memref<2x300xf32, #tpu.memory_space<vmem>>, vector<2x300xf32>
    %4 = vector.extract_strided_slice %3 {offsets = [0, 0], sizes = [2, 298], strides = [1, 1]} : vector<2x300xf32> to vector<2x298xf32>
    %5 = vector.extract_strided_slice %3 {offsets = [0, 1], sizes = [2, 298], strides = [1, 1]} : vector<2x300xf32> to vector<2x298xf32>
    %6 = vector.extract_strided_slice %3 {offsets = [0, 2], sizes = [2, 298], strides = [1, 1]} : vector<2x300xf32> to vector<2x298xf32>
    %cst = arith.constant 0.000000e+00 : f32
    %7 = vector.broadcast %cst : f32 to vector<2x42xf32>
    %c32_i32 = arith.constant 32 : i32
    %8 = arith.muli %arg0, %c32_i32 : i32
    %c0_i32_2 = arith.constant 0 : i32
    %9 = arith.addi %8, %c0_i32_2 : i32
    %c3_i32 = arith.constant 3 : i32
    %10 = arith.muli %9, %c3_i32 : i32
    %c0_i32_3 = arith.constant 0 : i32
    %11 = arith.addi %10, %c0_i32_3 : i32
    %12 = arith.index_cast %11 : i32 to index
    %13 = memref.load %arg2[%12] : memref<192xf32, #tpu.memory_space<smem>>
    %c3_i32_4 = arith.constant 3 : i32
    %14 = arith.muli %9, %c3_i32_4 : i32
    %c1_i32 = arith.constant 1 : i32
    %15 = arith.addi %14, %c1_i32 : i32
    %16 = arith.index_cast %15 : i32 to index
    %17 = memref.load %arg2[%16] : memref<192xf32, #tpu.memory_space<smem>>
    %c3_i32_5 = arith.constant 3 : i32
    %18 = arith.muli %9, %c3_i32_5 : i32
    %c2_i32 = arith.constant 2 : i32
    %19 = arith.addi %18, %c2_i32 : i32
    %20 = arith.index_cast %19 : i32 to index
    %21 = memref.load %arg2[%20] : memref<192xf32, #tpu.memory_space<smem>>
    %22 = arith.index_cast %9 : i32 to index
    %23 = memref.load %arg3[%22] : memref<64xf32, #tpu.memory_space<smem>>
    %24 = vector.broadcast %13 : f32 to vector<2x298xf32>
    %25 = arith.mulf %4, %24 : vector<2x298xf32>
    %26 = vector.broadcast %17 : f32 to vector<2x298xf32>
    %27 = arith.mulf %5, %26 : vector<2x298xf32>
    %28 = arith.addf %25, %27 : vector<2x298xf32>
    %29 = vector.broadcast %21 : f32 to vector<2x298xf32>
    %30 = arith.mulf %6, %29 : vector<2x298xf32>
    %31 = arith.addf %28, %30 : vector<2x298xf32>
    %32 = vector.broadcast %23 : f32 to vector<2x298xf32>
    %33 = arith.addf %31, %32 : vector<2x298xf32>
    %cst_6 = arith.constant 0.000000e+00 : f32
    %34 = vector.broadcast %cst_6 : f32 to vector<2x298xf32>
    %35 = arith.maximumf %33, %34 : vector<2x298xf32>
    %36 = vector.extract_strided_slice %35 {offsets = [0, 0], sizes = [2, 296], strides = [1, 1]} : vector<2x298xf32> to vector<2x296xf32>
    %37 = vector.extract_strided_slice %35 {offsets = [0, 1], sizes = [2, 296], strides = [1, 1]} : vector<2x298xf32> to vector<2x296xf32>
    %38 = arith.maximumf %36, %37 : vector<2x296xf32>
    %39 = vector.extract_strided_slice %35 {offsets = [0, 2], sizes = [2, 296], strides = [1, 1]} : vector<2x298xf32> to vector<2x296xf32>
    %40 = arith.maximumf %38, %39 : vector<2x296xf32>
    %41 = arith.truncf %40 : vector<2x296xf32> to vector<2x296xbf16>
    %c0_7 = arith.constant 0 : index
    %c0_8 = arith.constant 0 : index
    %c0_9 = arith.constant 0 : index
    %42 = vector.load %arg4[%c0_7, %c0_8, %c0_9] : memref<32x296x42xbf16, #tpu.memory_space<vmem>>, vector<1x296x42xbf16>
    %43 = vector.shape_cast %42 : vector<1x296x42xbf16> to vector<296x42xbf16>
    %cst_10 = arith.constant dense<0.000000e+00> : vector<2x42xf32>
    %44 = tpu.matmul %41, %43, %cst_10 {dimension_numbers = #tpu.dot_dimension_numbers<[1], [0], [0], [1], [0, 0, 1, 1], [], []>} : vector<2x296xbf16>, vector<296x42xbf16>, vector<2x42xf32> -> vector<2x42xf32>
    %45 = arith.addf %7, %44 : vector<2x42xf32>
    %c32_i32_11 = arith.constant 32 : i32
    %46 = arith.muli %arg0, %c32_i32_11 : i32
    %c1_i32_12 = arith.constant 1 : i32
    %47 = arith.addi %46, %c1_i32_12 : i32
    %c3_i32_13 = arith.constant 3 : i32
    %48 = arith.muli %47, %c3_i32_13 : i32
    %c0_i32_14 = arith.constant 0 : i32
    %49 = arith.addi %48, %c0_i32_14 : i32
    %50 = arith.index_cast %49 : i32 to index
    %51 = memref.load %arg2[%50] : memref<192xf32, #tpu.memory_space<smem>>
    %c3_i32_15 = arith.constant 3 : i32
    %52 = arith.muli %47, %c3_i32_15 : i32
    %c1_i32_16 = arith.constant 1 : i32
    %53 = arith.addi %52, %c1_i32_16 : i32
    %54 = arith.index_cast %53 : i32 to index
    %55 = memref.load %arg2[%54] : memref<192xf32, #tpu.memory_space<smem>>
    %c3_i32_17 = arith.constant 3 : i32
    %56 = arith.muli %47, %c3_i32_17 : i32
    %c2_i32_18 = arith.constant 2 : i32
    %57 = arith.addi %56, %c2_i32_18 : i32
    %58 = arith.index_cast %57 : i32 to index
    %59 = memref.load %arg2[%58] : memref<192xf32, #tpu.memory_space<smem>>
    %60 = arith.index_cast %47 : i32 to index
    %61 = memref.load %arg3[%60] : memref<64xf32, #tpu.memory_space<smem>>
    %62 = vector.broadcast %51 : f32 to vector<2x298xf32>
    %63 = arith.mulf %4, %62 : vector<2x298xf32>
    %64 = vector.broadcast %55 : f32 to vector<2x298xf32>
    %65 = arith.mulf %5, %64 : vector<2x298xf32>
    %66 = arith.addf %63, %65 : vector<2x298xf32>
    %67 = vector.broadcast %59 : f32 to vector<2x298xf32>
    %68 = arith.mulf %6, %67 : vector<2x298xf32>
    %69 = arith.addf %66, %68 : vector<2x298xf32>
    %70 = vector.broadcast %61 : f32 to vector<2x298xf32>
    %71 = arith.addf %69, %70 : vector<2x298xf32>
    %cst_19 = arith.constant 0.000000e+00 : f32
    %72 = vector.broadcast %cst_19 : f32 to vector<2x298xf32>
    %73 = arith.maximumf %71, %72 : vector<2x298xf32>
    %74 = vector.extract_strided_slice %73 {offsets = [0, 0], sizes = [2, 296], strides = [1, 1]} : vector<2x298xf32> to vector<2x296xf32>
    %75 = vector.extract_strided_slice %73 {offsets = [0, 1], sizes = [2, 296], strides = [1, 1]} : vector<2x298xf32> to vector<2x296xf32>
    %76 = arith.maximumf %74, %75 : vector<2x296xf32>
    %77 = vector.extract_strided_slice %73 {offsets = [0, 2], sizes = [2, 296], strides = [1, 1]} : vector<2x298xf32> to vector<2x296xf32>
    %78 = arith.maximumf %76, %77 : vector<2x296xf32>
    %79 = arith.truncf %78 : vector<2x296xf32> to vector<2x296xbf16>
    %c1 = arith.constant 1 : index
    %c0_20 = arith.constant 0 : index
    %c0_21 = arith.constant 0 : index
    %80 = vector.load %arg4[%c1, %c0_20, %c0_21] : memref<32x296x42xbf16, #tpu.memory_space<vmem>>, vector<1x296x42xbf16>
    %81 = vector.shape_cast %80 : vector<1x296x42xbf16> to vector<296x42xbf16>
    %cst_22 = arith.constant dense<0.000000e+00> : vector<2x42xf32>
    %82 = tpu.matmul %79, %81, %cst_22 {dimension_numbers = #tpu.dot_dimension_numbers<[1], [0], [0], [1], [0, 0, 1, 1], [], []>} : vector<2x296xbf16>, vector<296x42xbf16>, vector<2x42xf32> -> vector<2x42xf32>
    %83 = arith.addf %45, %82 : vector<2x42xf32>
    %c32_i32_23 = arith.constant 32 : i32
    %84 = arith.muli %arg0, %c32_i32_23 : i32
    %c2_i32_24 = arith.constant 2 : i32
    %85 = arith.addi %84, %c2_i32_24 : i32
    %c3_i32_25 = arith.constant 3 : i32
    %86 = arith.muli %85, %c3_i32_25 : i32
    %c0_i32_26 = arith.constant 0 : i32
    %87 = arith.addi %86, %c0_i32_26 : i32
    %88 = arith.index_cast %87 : i32 to index
    %89 = memref.load %arg2[%88] : memref<192xf32, #tpu.memory_space<smem>>
    %c3_i32_27 = arith.constant 3 : i32
    %90 = arith.muli %85, %c3_i32_27 : i32
    %c1_i32_28 = arith.constant 1 : i32
    %91 = arith.addi %90, %c1_i32_28 : i32
    %92 = arith.index_cast %91 : i32 to index
    %93 = memref.load %arg2[%92] : memref<192xf32, #tpu.memory_space<smem>>
    %c3_i32_29 = arith.constant 3 : i32
    %94 = arith.muli %85, %c3_i32_29 : i32
    %c2_i32_30 = arith.constant 2 : i32
    %95 = arith.addi %94, %c2_i32_30 : i32
    %96 = arith.index_cast %95 : i32 to index
    %97 = memref.load %arg2[%96] : memref<192xf32, #tpu.memory_space<smem>>
    %98 = arith.index_cast %85 : i32 to index
    %99 = memref.load %arg3[%98] : memref<64xf32, #tpu.memory_space<smem>>
    %100 = vector.broadcast %89 : f32 to vector<2x298xf32>
    %101 = arith.mulf %4, %100 : vector<2x298xf32>
    %102 = vector.broadcast %93 : f32 to vector<2x298xf32>
    %103 = arith.mulf %5, %102 : vector<2x298xf32>
    %104 = arith.addf %101, %103 : vector<2x298xf32>
    %105 = vector.broadcast %97 : f32 to vector<2x298xf32>
    %106 = arith.mulf %6, %105 : vector<2x298xf32>
    %107 = arith.addf %104, %106 : vector<2x298xf32>
    %108 = vector.broadcast %99 : f32 to vector<2x298xf32>
    %109 = arith.addf %107, %108 : vector<2x298xf32>
    %cst_31 = arith.constant 0.000000e+00 : f32
    %110 = vector.broadcast %cst_31 : f32 to vector<2x298xf32>
    %111 = arith.maximumf %109, %110 : vector<2x298xf32>
    %112 = vector.extract_strided_slice %111 {offsets = [0, 0], sizes = [2, 296], strides = [1, 1]} : vector<2x298xf32> to vector<2x296xf32>
    %113 = vector.extract_strided_slice %111 {offsets = [0, 1], sizes = [2, 296], strides = [1, 1]} : vector<2x298xf32> to vector<2x296xf32>
    %114 = arith.maximumf %112, %113 : vector<2x296xf32>
    %115 = vector.extract_strided_slice %111 {offsets = [0, 2], sizes = [2, 296], strides = [1, 1]} : vector<2x298xf32> to vector<2x296xf32>
    %116 = arith.maximumf %114, %115 : vector<2x296xf32>
    %117 = arith.truncf %116 : vector<2x296xf32> to vector<2x296xbf16>
    %c2 = arith.constant 2 : index
    %c0_32 = arith.constant 0 : index
    %c0_33 = arith.constant 0 : index
    %118 = vector.load %arg4[%c2, %c0_32, %c0_33] : memref<32x296x42xbf16, #tpu.memory_space<vmem>>, vector<1x296x42xbf16>
    %119 = vector.shape_cast %118 : vector<1x296x42xbf16> to vector<296x42xbf16>
    %cst_34 = arith.constant dense<0.000000e+00> : vector<2x42xf32>
    %120 = tpu.matmul %117, %119, %cst_34 {dimension_numbers = #tpu.dot_dimension_numbers<[1], [0], [0], [1], [0, 0, 1, 1], [], []>} : vector<2x296xbf16>, vector<296x42xbf16>, vector<2x42xf32> -> vector<2x42xf32>
    %121 = arith.addf %83, %120 : vector<2x42xf32>
    %c32_i32_35 = arith.constant 32 : i32
    %122 = arith.muli %arg0, %c32_i32_35 : i32
    %c3_i32_36 = arith.constant 3 : i32
    %123 = arith.addi %122, %c3_i32_36 : i32
    %c3_i32_37 = arith.constant 3 : i32
    %124 = arith.muli %123, %c3_i32_37 : i32
    %c0_i32_38 = arith.constant 0 : i32
    %125 = arith.addi %124, %c0_i32_38 : i32
    %126 = arith.index_cast %125 : i32 to index
    %127 = memref.load %arg2[%126] : memref<192xf32, #tpu.memory_space<smem>>
    %c3_i32_39 = arith.constant 3 : i32
    %128 = arith.muli %123, %c3_i32_39 : i32
    %c1_i32_40 = arith.constant 1 : i32
    %129 = arith.addi %128, %c1_i32_40 : i32
    %130 = arith.index_cast %129 : i32 to index
    %131 = memref.load %arg2[%130] : memref<192xf32, #tpu.memory_space<smem>>
    %c3_i32_41 = arith.constant 3 : i32
    %132 = arith.muli %123, %c3_i32_41 : i32
    %c2_i32_42 = arith.constant 2 : i32
    %133 = arith.addi %132, %c2_i32_42 : i32
    %134 = arith.index_cast %133 : i32 to index
    %135 = memref.load %arg2[%134] : memref<192xf32, #tpu.memory_space<smem>>
    %136 = arith.index_cast %123 : i32 to index
    %137 = memref.load %arg3[%136] : memref<64xf32, #tpu.memory_space<smem>>
    %138 = vector.broadcast %127 : f32 to vector<2x298xf32>
    %139 = arith.mulf %4, %138 : vector<2x298xf32>
    %140 = vector.broadcast %131 : f32 to vector<2x298xf32>
    %141 = arith.mulf %5, %140 : vector<2x298xf32>
    %142 = arith.addf %139, %141 : vector<2x298xf32>
    %143 = vector.broadcast %135 : f32 to vector<2x298xf32>
    %144 = arith.mulf %6, %143 : vector<2x298xf32>
    %145 = arith.addf %142, %144 : vector<2x298xf32>
    %146 = vector.broadcast %137 : f32 to vector<2x298xf32>
    %147 = arith.addf %145, %146 : vector<2x298xf32>
    %cst_43 = arith.constant 0.000000e+00 : f32
    %148 = vector.broadcast %cst_43 : f32 to vector<2x298xf32>
    %149 = arith.maximumf %147, %148 : vector<2x298xf32>
    %150 = vector.extract_strided_slice %149 {offsets = [0, 0], sizes = [2, 296], strides = [1, 1]} : vector<2x298xf32> to vector<2x296xf32>
    %151 = vector.extract_strided_slice %149 {offsets = [0, 1], sizes = [2, 296], strides = [1, 1]} : vector<2x298xf32> to vector<2x296xf32>
    %152 = arith.maximumf %150, %151 : vector<2x296xf32>
    %153 = vector.extract_strided_slice %149 {offsets = [0, 2], sizes = [2, 296], strides = [1, 1]} : vector<2x298xf32> to vector<2x296xf32>
    %154 = arith.maximumf %152, %153 : vector<2x296xf32>
    %155 = arith.truncf %154 : vector<2x296xf32> to vector<2x296xbf16>
    %c3 = arith.constant 3 : index
    %c0_44 = arith.constant 0 : index
    %c0_45 = arith.constant 0 : index
    %156 = vector.load %arg4[%c3, %c0_44, %c0_45] : memref<32x296x42xbf16, #tpu.memory_space<vmem>>, vector<1x296x42xbf16>
    %157 = vector.shape_cast %156 : vector<1x296x42xbf16> to vector<296x42xbf16>
    %cst_46 = arith.constant dense<0.000000e+00> : vector<2x42xf32>
    %158 = tpu.matmul %155, %157, %cst_46 {dimension_numbers = #tpu.dot_dimension_numbers<[1], [0], [0], [1], [0, 0, 1, 1], [], []>} : vector<2x296xbf16>, vector<296x42xbf16>, vector<2x42xf32> -> vector<2x42xf32>
    %159 = arith.addf %121, %158 : vector<2x42xf32>
    %c32_i32_47 = arith.constant 32 : i32
    %160 = arith.muli %arg0, %c32_i32_47 : i32
    %c4_i32 = arith.constant 4 : i32
    %161 = arith.addi %160, %c4_i32 : i32
    %c3_i32_48 = arith.constant 3 : i32
    %162 = arith.muli %161, %c3_i32_48 : i32
    %c0_i32_49 = arith.constant 0 : i32
    %163 = arith.addi %162, %c0_i32_49 : i32
    %164 = arith.index_cast %163 : i32 to index
    %165 = memref.load %arg2[%164] : memref<192xf32, #tpu.memory_space<smem>>
    %c3_i32_50 = arith.constant 3 : i32
    %166 = arith.muli %161, %c3_i32_50 : i32
    %c1_i32_51 = arith.constant 1 : i32
    %167 = arith.addi %166, %c1_i32_51 : i32
    %168 = arith.index_cast %167 : i32 to index
    %169 = memref.load %arg2[%168] : memref<192xf32, #tpu.memory_space<smem>>
    %c3_i32_52 = arith.constant 3 : i32
    %170 = arith.muli %161, %c3_i32_52 : i32
    %c2_i32_53 = arith.constant 2 : i32
    %171 = arith.addi %170, %c2_i32_53 : i32
    %172 = arith.index_cast %171 : i32 to index
    %173 = memref.load %arg2[%172] : memref<192xf32, #tpu.memory_space<smem>>
    %174 = arith.index_cast %161 : i32 to index
    %175 = memref.load %arg3[%174] : memref<64xf32, #tpu.memory_space<smem>>
    %176 = vector.broadcast %165 : f32 to vector<2x298xf32>
    %177 = arith.mulf %4, %176 : vector<2x298xf32>
    %178 = vector.broadcast %169 : f32 to vector<2x298xf32>
    %179 = arith.mulf %5, %178 : vector<2x298xf32>
    %180 = arith.addf %177, %179 : vector<2x298xf32>
    %181 = vector.broadcast %173 : f32 to vector<2x298xf32>
    %182 = arith.mulf %6, %181 : vector<2x298xf32>
    %183 = arith.addf %180, %182 : vector<2x298xf32>
    %184 = vector.broadcast %175 : f32 to vector<2x298xf32>
    %185 = arith.addf %183, %184 : vector<2x298xf32>
    %cst_54 = arith.constant 0.000000e+00 : f32
    %186 = vector.broadcast %cst_54 : f32 to vector<2x298xf32>
    %187 = arith.maximumf %185, %186 : vector<2x298xf32>
    %188 = vector.extract_strided_slice %187 {offsets = [0, 0], sizes = [2, 296], strides = [1, 1]} : vector<2x298xf32> to vector<2x296xf32>
    %189 = vector.extract_strided_slice %187 {offsets = [0, 1], sizes = [2, 296], strides = [1, 1]} : vector<2x298xf32> to vector<2x296xf32>
    %190 = arith.maximumf %188, %189 : vector<2x296xf32>
    %191 = vector.extract_strided_slice %187 {offsets = [0, 2], sizes = [2, 296], strides = [1, 1]} : vector<2x298xf32> to vector<2x296xf32>
    %192 = arith.maximumf %190, %191 : vector<2x296xf32>
    %193 = arith.truncf %192 : vector<2x296xf32> to vector<2x296xbf16>
    %c4 = arith.constant 4 : index
    %c0_55 = arith.constant 0 : index
    %c0_56 = arith.constant 0 : index
    %194 = vector.load %arg4[%c4, %c0_55, %c0_56] : memref<32x296x42xbf16, #tpu.memory_space<vmem>>, vector<1x296x42xbf16>
    %195 = vector.shape_cast %194 : vector<1x296x42xbf16> to vector<296x42xbf16>
    %cst_57 = arith.constant dense<0.000000e+00> : vector<2x42xf32>
    %196 = tpu.matmul %193, %195, %cst_57 {dimension_numbers = #tpu.dot_dimension_numbers<[1], [0], [0], [1], [0, 0, 1, 1], [], []>} : vector<2x296xbf16>, vector<296x42xbf16>, vector<2x42xf32> -> vector<2x42xf32>
    %197 = arith.addf %159, %196 : vector<2x42xf32>
    %c32_i32_58 = arith.constant 32 : i32
    %198 = arith.muli %arg0, %c32_i32_58 : i32
    %c5_i32 = arith.constant 5 : i32
    %199 = arith.addi %198, %c5_i32 : i32
    %c3_i32_59 = arith.constant 3 : i32
    %200 = arith.muli %199, %c3_i32_59 : i32
    %c0_i32_60 = arith.constant 0 : i32
    %201 = arith.addi %200, %c0_i32_60 : i32
    %202 = arith.index_cast %201 : i32 to index
    %203 = memref.load %arg2[%202] : memref<192xf32, #tpu.memory_space<smem>>
    %c3_i32_61 = arith.constant 3 : i32
    %204 = arith.muli %199, %c3_i32_61 : i32
    %c1_i32_62 = arith.constant 1 : i32
    %205 = arith.addi %204, %c1_i32_62 : i32
    %206 = arith.index_cast %205 : i32 to index
    %207 = memref.load %arg2[%206] : memref<192xf32, #tpu.memory_space<smem>>
    %c3_i32_63 = arith.constant 3 : i32
    %208 = arith.muli %199, %c3_i32_63 : i32
    %c2_i32_64 = arith.constant 2 : i32
    %209 = arith.addi %208, %c2_i32_64 : i32
    %210 = arith.index_cast %209 : i32 to index
    %211 = memref.load %arg2[%210] : memref<192xf32, #tpu.memory_space<smem>>
    %212 = arith.index_cast %199 : i32 to index
    %213 = memref.load %arg3[%212] : memref<64xf32, #tpu.memory_space<smem>>
    %214 = vector.broadcast %203 : f32 to vector<2x298xf32>
    %215 = arith.mulf %4, %214 : vector<2x298xf32>
    %216 = vector.broadcast %207 : f32 to vector<2x298xf32>
    %217 = arith.mulf %5, %216 : vector<2x298xf32>
    %218 = arith.addf %215, %217 : vector<2x298xf32>
    %219 = vector.broadcast %211 : f32 to vector<2x298xf32>
    %220 = arith.mulf %6, %219 : vector<2x298xf32>
    %221 = arith.addf %218, %220 : vector<2x298xf32>
    %222 = vector.broadcast %213 : f32 to vector<2x298xf32>
    %223 = arith.addf %221, %222 : vector<2x298xf32>
    %cst_65 = arith.constant 0.000000e+00 : f32
    %224 = vector.broadcast %cst_65 : f32 to vector<2x298xf32>
    %225 = arith.maximumf %223, %224 : vector<2x298xf32>
    %226 = vector.extract_strided_slice %225 {offsets = [0, 0], sizes = [2, 296], strides = [1, 1]} : vector<2x298xf32> to vector<2x296xf32>
    %227 = vector.extract_strided_slice %225 {offsets = [0, 1], sizes = [2, 296], strides = [1, 1]} : vector<2x298xf32> to vector<2x296xf32>
    %228 = arith.maximumf %226, %227 : vector<2x296xf32>
    %229 = vector.extract_strided_slice %225 {offsets = [0, 2], sizes = [2, 296], strides = [1, 1]} : vector<2x298xf32> to vector<2x296xf32>
    %230 = arith.maximumf %228, %229 : vector<2x296xf32>
    %231 = arith.truncf %230 : vector<2x296xf32> to vector<2x296xbf16>
    %c5 = arith.constant 5 : index
    %c0_66 = arith.constant 0 : index
    %c0_67 = arith.constant 0 : index
    %232 = vector.load %arg4[%c5, %c0_66, %c0_67] : memref<32x296x42xbf16, #tpu.memory_space<vmem>>, vector<1x296x42xbf16>
    %233 = vector.shape_cast %232 : vector<1x296x42xbf16> to vector<296x42xbf16>
    %cst_68 = arith.constant dense<0.000000e+00> : vector<2x42xf32>
    %234 = tpu.matmul %231, %233, %cst_68 {dimension_numbers = #tpu.dot_dimension_numbers<[1], [0], [0], [1], [0, 0, 1, 1], [], []>} : vector<2x296xbf16>, vector<296x42xbf16>, vector<2x42xf32> -> vector<2x42xf32>
    %235 = arith.addf %197, %234 : vector<2x42xf32>
    %c32_i32_69 = arith.constant 32 : i32
    %236 = arith.muli %arg0, %c32_i32_69 : i32
    %c6_i32 = arith.constant 6 : i32
    %237 = arith.addi %236, %c6_i32 : i32
    %c3_i32_70 = arith.constant 3 : i32
    %238 = arith.muli %237, %c3_i32_70 : i32
    %c0_i32_71 = arith.constant 0 : i32
    %239 = arith.addi %238, %c0_i32_71 : i32
    %240 = arith.index_cast %239 : i32 to index
    %241 = memref.load %arg2[%240] : memref<192xf32, #tpu.memory_space<smem>>
    %c3_i32_72 = arith.constant 3 : i32
    %242 = arith.muli %237, %c3_i32_72 : i32
    %c1_i32_73 = arith.constant 1 : i32
    %243 = arith.addi %242, %c1_i32_73 : i32
    %244 = arith.index_cast %243 : i32 to index
    %245 = memref.load %arg2[%244] : memref<192xf32, #tpu.memory_space<smem>>
    %c3_i32_74 = arith.constant 3 : i32
    %246 = arith.muli %237, %c3_i32_74 : i32
    %c2_i32_75 = arith.constant 2 : i32
    %247 = arith.addi %246, %c2_i32_75 : i32
    %248 = arith.index_cast %247 : i32 to index
    %249 = memref.load %arg2[%248] : memref<192xf32, #tpu.memory_space<smem>>
    %250 = arith.index_cast %237 : i32 to index
    %251 = memref.load %arg3[%250] : memref<64xf32, #tpu.memory_space<smem>>
    %252 = vector.broadcast %241 : f32 to vector<2x298xf32>
    %253 = arith.mulf %4, %252 : vector<2x298xf32>
    %254 = vector.broadcast %245 : f32 to vector<2x298xf32>
    %255 = arith.mulf %5, %254 : vector<2x298xf32>
    %256 = arith.addf %253, %255 : vector<2x298xf32>
    %257 = vector.broadcast %249 : f32 to vector<2x298xf32>
    %258 = arith.mulf %6, %257 : vector<2x298xf32>
    %259 = arith.addf %256, %258 : vector<2x298xf32>
    %260 = vector.broadcast %251 : f32 to vector<2x298xf32>
    %261 = arith.addf %259, %260 : vector<2x298xf32>
    %cst_76 = arith.constant 0.000000e+00 : f32
    %262 = vector.broadcast %cst_76 : f32 to vector<2x298xf32>
    %263 = arith.maximumf %261, %262 : vector<2x298xf32>
    %264 = vector.extract_strided_slice %263 {offsets = [0, 0], sizes = [2, 296], strides = [1, 1]} : vector<2x298xf32> to vector<2x296xf32>
    %265 = vector.extract_strided_slice %263 {offsets = [0, 1], sizes = [2, 296], strides = [1, 1]} : vector<2x298xf32> to vector<2x296xf32>
    %266 = arith.maximumf %264, %265 : vector<2x296xf32>
    %267 = vector.extract_strided_slice %263 {offsets = [0, 2], sizes = [2, 296], strides = [1, 1]} : vector<2x298xf32> to vector<2x296xf32>
    %268 = arith.maximumf %266, %267 : vector<2x296xf32>
    %269 = arith.truncf %268 : vector<2x296xf32> to vector<2x296xbf16>
    %c6 = arith.constant 6 : index
    %c0_77 = arith.constant 0 : index
    %c0_78 = arith.constant 0 : index
    %270 = vector.load %arg4[%c6, %c0_77, %c0_78] : memref<32x296x42xbf16, #tpu.memory_space<vmem>>, vector<1x296x42xbf16>
    %271 = vector.shape_cast %270 : vector<1x296x42xbf16> to vector<296x42xbf16>
    %cst_79 = arith.constant dense<0.000000e+00> : vector<2x42xf32>
    %272 = tpu.matmul %269, %271, %cst_79 {dimension_numbers = #tpu.dot_dimension_numbers<[1], [0], [0], [1], [0, 0, 1, 1], [], []>} : vector<2x296xbf16>, vector<296x42xbf16>, vector<2x42xf32> -> vector<2x42xf32>
    %273 = arith.addf %235, %272 : vector<2x42xf32>
    %c32_i32_80 = arith.constant 32 : i32
    %274 = arith.muli %arg0, %c32_i32_80 : i32
    %c7_i32 = arith.constant 7 : i32
    %275 = arith.addi %274, %c7_i32 : i32
    %c3_i32_81 = arith.constant 3 : i32
    %276 = arith.muli %275, %c3_i32_81 : i32
    %c0_i32_82 = arith.constant 0 : i32
    %277 = arith.addi %276, %c0_i32_82 : i32
    %278 = arith.index_cast %277 : i32 to index
    %279 = memref.load %arg2[%278] : memref<192xf32, #tpu.memory_space<smem>>
    %c3_i32_83 = arith.constant 3 : i32
    %280 = arith.muli %275, %c3_i32_83 : i32
    %c1_i32_84 = arith.constant 1 : i32
    %281 = arith.addi %280, %c1_i32_84 : i32
    %282 = arith.index_cast %281 : i32 to index
    %283 = memref.load %arg2[%282] : memref<192xf32, #tpu.memory_space<smem>>
    %c3_i32_85 = arith.constant 3 : i32
    %284 = arith.muli %275, %c3_i32_85 : i32
    %c2_i32_86 = arith.constant 2 : i32
    %285 = arith.addi %284, %c2_i32_86 : i32
    %286 = arith.index_cast %285 : i32 to index
    %287 = memref.load %arg2[%286] : memref<192xf32, #tpu.memory_space<smem>>
    %288 = arith.index_cast %275 : i32 to index
    %289 = memref.load %arg3[%288] : memref<64xf32, #tpu.memory_space<smem>>
    %290 = vector.broadcast %279 : f32 to vector<2x298xf32>
    %291 = arith.mulf %4, %290 : vector<2x298xf32>
    %292 = vector.broadcast %283 : f32 to vector<2x298xf32>
    %293 = arith.mulf %5, %292 : vector<2x298xf32>
    %294 = arith.addf %291, %293 : vector<2x298xf32>
    %295 = vector.broadcast %287 : f32 to vector<2x298xf32>
    %296 = arith.mulf %6, %295 : vector<2x298xf32>
    %297 = arith.addf %294, %296 : vector<2x298xf32>
    %298 = vector.broadcast %289 : f32 to vector<2x298xf32>
    %299 = arith.addf %297, %298 : vector<2x298xf32>
    %cst_87 = arith.constant 0.000000e+00 : f32
    %300 = vector.broadcast %cst_87 : f32 to vector<2x298xf32>
    %301 = arith.maximumf %299, %300 : vector<2x298xf32>
    %302 = vector.extract_strided_slice %301 {offsets = [0, 0], sizes = [2, 296], strides = [1, 1]} : vector<2x298xf32> to vector<2x296xf32>
    %303 = vector.extract_strided_slice %301 {offsets = [0, 1], sizes = [2, 296], strides = [1, 1]} : vector<2x298xf32> to vector<2x296xf32>
    %304 = arith.maximumf %302, %303 : vector<2x296xf32>
    %305 = vector.extract_strided_slice %301 {offsets = [0, 2], sizes = [2, 296], strides = [1, 1]} : vector<2x298xf32> to vector<2x296xf32>
    %306 = arith.maximumf %304, %305 : vector<2x296xf32>
    %307 = arith.truncf %306 : vector<2x296xf32> to vector<2x296xbf16>
    %c7 = arith.constant 7 : index
    %c0_88 = arith.constant 0 : index
    %c0_89 = arith.constant 0 : index
    %308 = vector.load %arg4[%c7, %c0_88, %c0_89] : memref<32x296x42xbf16, #tpu.memory_space<vmem>>, vector<1x296x42xbf16>
    %309 = vector.shape_cast %308 : vector<1x296x42xbf16> to vector<296x42xbf16>
    %cst_90 = arith.constant dense<0.000000e+00> : vector<2x42xf32>
    %310 = tpu.matmul %307, %309, %cst_90 {dimension_numbers = #tpu.dot_dimension_numbers<[1], [0], [0], [1], [0, 0, 1, 1], [], []>} : vector<2x296xbf16>, vector<296x42xbf16>, vector<2x42xf32> -> vector<2x42xf32>
    %311 = arith.addf %273, %310 : vector<2x42xf32>
    %c32_i32_91 = arith.constant 32 : i32
    %312 = arith.muli %arg0, %c32_i32_91 : i32
    %c8_i32 = arith.constant 8 : i32
    %313 = arith.addi %312, %c8_i32 : i32
    %c3_i32_92 = arith.constant 3 : i32
    %314 = arith.muli %313, %c3_i32_92 : i32
    %c0_i32_93 = arith.constant 0 : i32
    %315 = arith.addi %314, %c0_i32_93 : i32
    %316 = arith.index_cast %315 : i32 to index
    %317 = memref.load %arg2[%316] : memref<192xf32, #tpu.memory_space<smem>>
    %c3_i32_94 = arith.constant 3 : i32
    %318 = arith.muli %313, %c3_i32_94 : i32
    %c1_i32_95 = arith.constant 1 : i32
    %319 = arith.addi %318, %c1_i32_95 : i32
    %320 = arith.index_cast %319 : i32 to index
    %321 = memref.load %arg2[%320] : memref<192xf32, #tpu.memory_space<smem>>
    %c3_i32_96 = arith.constant 3 : i32
    %322 = arith.muli %313, %c3_i32_96 : i32
    %c2_i32_97 = arith.constant 2 : i32
    %323 = arith.addi %322, %c2_i32_97 : i32
    %324 = arith.index_cast %323 : i32 to index
    %325 = memref.load %arg2[%324] : memref<192xf32, #tpu.memory_space<smem>>
    %326 = arith.index_cast %313 : i32 to index
    %327 = memref.load %arg3[%326] : memref<64xf32, #tpu.memory_space<smem>>
    %328 = vector.broadcast %317 : f32 to vector<2x298xf32>
    %329 = arith.mulf %4, %328 : vector<2x298xf32>
    %330 = vector.broadcast %321 : f32 to vector<2x298xf32>
    %331 = arith.mulf %5, %330 : vector<2x298xf32>
    %332 = arith.addf %329, %331 : vector<2x298xf32>
    %333 = vector.broadcast %325 : f32 to vector<2x298xf32>
    %334 = arith.mulf %6, %333 : vector<2x298xf32>
    %335 = arith.addf %332, %334 : vector<2x298xf32>
    %336 = vector.broadcast %327 : f32 to vector<2x298xf32>
    %337 = arith.addf %335, %336 : vector<2x298xf32>
    %cst_98 = arith.constant 0.000000e+00 : f32
    %338 = vector.broadcast %cst_98 : f32 to vector<2x298xf32>
    %339 = arith.maximumf %337, %338 : vector<2x298xf32>
    %340 = vector.extract_strided_slice %339 {offsets = [0, 0], sizes = [2, 296], strides = [1, 1]} : vector<2x298xf32> to vector<2x296xf32>
    %341 = vector.extract_strided_slice %339 {offsets = [0, 1], sizes = [2, 296], strides = [1, 1]} : vector<2x298xf32> to vector<2x296xf32>
    %342 = arith.maximumf %340, %341 : vector<2x296xf32>
    %343 = vector.extract_strided_slice %339 {offsets = [0, 2], sizes = [2, 296], strides = [1, 1]} : vector<2x298xf32> to vector<2x296xf32>
    %344 = arith.maximumf %342, %343 : vector<2x296xf32>
    %345 = arith.truncf %344 : vector<2x296xf32> to vector<2x296xbf16>
    %c8 = arith.constant 8 : index
    %c0_99 = arith.constant 0 : index
    %c0_100 = arith.constant 0 : index
    %346 = vector.load %arg4[%c8, %c0_99, %c0_100] : memref<32x296x42xbf16, #tpu.memory_space<vmem>>, vector<1x296x42xbf16>
    %347 = vector.shape_cast %346 : vector<1x296x42xbf16> to vector<296x42xbf16>
    %cst_101 = arith.constant dense<0.000000e+00> : vector<2x42xf32>
    %348 = tpu.matmul %345, %347, %cst_101 {dimension_numbers = #tpu.dot_dimension_numbers<[1], [0], [0], [1], [0, 0, 1, 1], [], []>} : vector<2x296xbf16>, vector<296x42xbf16>, vector<2x42xf32> -> vector<2x42xf32>
    %349 = arith.addf %311, %348 : vector<2x42xf32>
    %c32_i32_102 = arith.constant 32 : i32
    %350 = arith.muli %arg0, %c32_i32_102 : i32
    %c9_i32 = arith.constant 9 : i32
    %351 = arith.addi %350, %c9_i32 : i32
    %c3_i32_103 = arith.constant 3 : i32
    %352 = arith.muli %351, %c3_i32_103 : i32
    %c0_i32_104 = arith.constant 0 : i32
    %353 = arith.addi %352, %c0_i32_104 : i32
    %354 = arith.index_cast %353 : i32 to index
    %355 = memref.load %arg2[%354] : memref<192xf32, #tpu.memory_space<smem>>
    %c3_i32_105 = arith.constant 3 : i32
    %356 = arith.muli %351, %c3_i32_105 : i32
    %c1_i32_106 = arith.constant 1 : i32
    %357 = arith.addi %356, %c1_i32_106 : i32
    %358 = arith.index_cast %357 : i32 to index
    %359 = memref.load %arg2[%358] : memref<192xf32, #tpu.memory_space<smem>>
    %c3_i32_107 = arith.constant 3 : i32
    %360 = arith.muli %351, %c3_i32_107 : i32
    %c2_i32_108 = arith.constant 2 : i32
    %361 = arith.addi %360, %c2_i32_108 : i32
    %362 = arith.index_cast %361 : i32 to index
    %363 = memref.load %arg2[%362] : memref<192xf32, #tpu.memory_space<smem>>
    %364 = arith.index_cast %351 : i32 to index
    %365 = memref.load %arg3[%364] : memref<64xf32, #tpu.memory_space<smem>>
    %366 = vector.broadcast %355 : f32 to vector<2x298xf32>
    %367 = arith.mulf %4, %366 : vector<2x298xf32>
    %368 = vector.broadcast %359 : f32 to vector<2x298xf32>
    %369 = arith.mulf %5, %368 : vector<2x298xf32>
    %370 = arith.addf %367, %369 : vector<2x298xf32>
    %371 = vector.broadcast %363 : f32 to vector<2x298xf32>
    %372 = arith.mulf %6, %371 : vector<2x298xf32>
    %373 = arith.addf %370, %372 : vector<2x298xf32>
    %374 = vector.broadcast %365 : f32 to vector<2x298xf32>
    %375 = arith.addf %373, %374 : vector<2x298xf32>
    %cst_109 = arith.constant 0.000000e+00 : f32
    %376 = vector.broadcast %cst_109 : f32 to vector<2x298xf32>
    %377 = arith.maximumf %375, %376 : vector<2x298xf32>
    %378 = vector.extract_strided_slice %377 {offsets = [0, 0], sizes = [2, 296], strides = [1, 1]} : vector<2x298xf32> to vector<2x296xf32>
    %379 = vector.extract_strided_slice %377 {offsets = [0, 1], sizes = [2, 296], strides = [1, 1]} : vector<2x298xf32> to vector<2x296xf32>
    %380 = arith.maximumf %378, %379 : vector<2x296xf32>
    %381 = vector.extract_strided_slice %377 {offsets = [0, 2], sizes = [2, 296], strides = [1, 1]} : vector<2x298xf32> to vector<2x296xf32>
    %382 = arith.maximumf %380, %381 : vector<2x296xf32>
    %383 = arith.truncf %382 : vector<2x296xf32> to vector<2x296xbf16>
    %c9 = arith.constant 9 : index
    %c0_110 = arith.constant 0 : index
    %c0_111 = arith.constant 0 : index
    %384 = vector.load %arg4[%c9, %c0_110, %c0_111] : memref<32x296x42xbf16, #tpu.memory_space<vmem>>, vector<1x296x42xbf16>
    %385 = vector.shape_cast %384 : vector<1x296x42xbf16> to vector<296x42xbf16>
    %cst_112 = arith.constant dense<0.000000e+00> : vector<2x42xf32>
    %386 = tpu.matmul %383, %385, %cst_112 {dimension_numbers = #tpu.dot_dimension_numbers<[1], [0], [0], [1], [0, 0, 1, 1], [], []>} : vector<2x296xbf16>, vector<296x42xbf16>, vector<2x42xf32> -> vector<2x42xf32>
    %387 = arith.addf %349, %386 : vector<2x42xf32>
    %c32_i32_113 = arith.constant 32 : i32
    %388 = arith.muli %arg0, %c32_i32_113 : i32
    %c10_i32 = arith.constant 10 : i32
    %389 = arith.addi %388, %c10_i32 : i32
    %c3_i32_114 = arith.constant 3 : i32
    %390 = arith.muli %389, %c3_i32_114 : i32
    %c0_i32_115 = arith.constant 0 : i32
    %391 = arith.addi %390, %c0_i32_115 : i32
    %392 = arith.index_cast %391 : i32 to index
    %393 = memref.load %arg2[%392] : memref<192xf32, #tpu.memory_space<smem>>
    %c3_i32_116 = arith.constant 3 : i32
    %394 = arith.muli %389, %c3_i32_116 : i32
    %c1_i32_117 = arith.constant 1 : i32
    %395 = arith.addi %394, %c1_i32_117 : i32
    %396 = arith.index_cast %395 : i32 to index
    %397 = memref.load %arg2[%396] : memref<192xf32, #tpu.memory_space<smem>>
    %c3_i32_118 = arith.constant 3 : i32
    %398 = arith.muli %389, %c3_i32_118 : i32
    %c2_i32_119 = arith.constant 2 : i32
    %399 = arith.addi %398, %c2_i32_119 : i32
    %400 = arith.index_cast %399 : i32 to index
    %401 = memref.load %arg2[%400] : memref<192xf32, #tpu.memory_space<smem>>
    %402 = arith.index_cast %389 : i32 to index
    %403 = memref.load %arg3[%402] : memref<64xf32, #tpu.memory_space<smem>>
    %404 = vector.broadcast %393 : f32 to vector<2x298xf32>
    %405 = arith.mulf %4, %404 : vector<2x298xf32>
    %406 = vector.broadcast %397 : f32 to vector<2x298xf32>
    %407 = arith.mulf %5, %406 : vector<2x298xf32>
    %408 = arith.addf %405, %407 : vector<2x298xf32>
    %409 = vector.broadcast %401 : f32 to vector<2x298xf32>
    %410 = arith.mulf %6, %409 : vector<2x298xf32>
    %411 = arith.addf %408, %410 : vector<2x298xf32>
    %412 = vector.broadcast %403 : f32 to vector<2x298xf32>
    %413 = arith.addf %411, %412 : vector<2x298xf32>
    %cst_120 = arith.constant 0.000000e+00 : f32
    %414 = vector.broadcast %cst_120 : f32 to vector<2x298xf32>
    %415 = arith.maximumf %413, %414 : vector<2x298xf32>
    %416 = vector.extract_strided_slice %415 {offsets = [0, 0], sizes = [2, 296], strides = [1, 1]} : vector<2x298xf32> to vector<2x296xf32>
    %417 = vector.extract_strided_slice %415 {offsets = [0, 1], sizes = [2, 296], strides = [1, 1]} : vector<2x298xf32> to vector<2x296xf32>
    %418 = arith.maximumf %416, %417 : vector<2x296xf32>
    %419 = vector.extract_strided_slice %415 {offsets = [0, 2], sizes = [2, 296], strides = [1, 1]} : vector<2x298xf32> to vector<2x296xf32>
    %420 = arith.maximumf %418, %419 : vector<2x296xf32>
    %421 = arith.truncf %420 : vector<2x296xf32> to vector<2x296xbf16>
    %c10 = arith.constant 10 : index
    %c0_121 = arith.constant 0 : index
    %c0_122 = arith.constant 0 : index
    %422 = vector.load %arg4[%c10, %c0_121, %c0_122] : memref<32x296x42xbf16, #tpu.memory_space<vmem>>, vector<1x296x42xbf16>
    %423 = vector.shape_cast %422 : vector<1x296x42xbf16> to vector<296x42xbf16>
    %cst_123 = arith.constant dense<0.000000e+00> : vector<2x42xf32>
    %424 = tpu.matmul %421, %423, %cst_123 {dimension_numbers = #tpu.dot_dimension_numbers<[1], [0], [0], [1], [0, 0, 1, 1], [], []>} : vector<2x296xbf16>, vector<296x42xbf16>, vector<2x42xf32> -> vector<2x42xf32>
    %425 = arith.addf %387, %424 : vector<2x42xf32>
    %c32_i32_124 = arith.constant 32 : i32
    %426 = arith.muli %arg0, %c32_i32_124 : i32
    %c11_i32 = arith.constant 11 : i32
    %427 = arith.addi %426, %c11_i32 : i32
    %c3_i32_125 = arith.constant 3 : i32
    %428 = arith.muli %427, %c3_i32_125 : i32
    %c0_i32_126 = arith.constant 0 : i32
    %429 = arith.addi %428, %c0_i32_126 : i32
    %430 = arith.index_cast %429 : i32 to index
    %431 = memref.load %arg2[%430] : memref<192xf32, #tpu.memory_space<smem>>
    %c3_i32_127 = arith.constant 3 : i32
    %432 = arith.muli %427, %c3_i32_127 : i32
    %c1_i32_128 = arith.constant 1 : i32
    %433 = arith.addi %432, %c1_i32_128 : i32
    %434 = arith.index_cast %433 : i32 to index
    %435 = memref.load %arg2[%434] : memref<192xf32, #tpu.memory_space<smem>>
    %c3_i32_129 = arith.constant 3 : i32
    %436 = arith.muli %427, %c3_i32_129 : i32
    %c2_i32_130 = arith.constant 2 : i32
    %437 = arith.addi %436, %c2_i32_130 : i32
    %438 = arith.index_cast %437 : i32 to index
    %439 = memref.load %arg2[%438] : memref<192xf32, #tpu.memory_space<smem>>
    %440 = arith.index_cast %427 : i32 to index
    %441 = memref.load %arg3[%440] : memref<64xf32, #tpu.memory_space<smem>>
    %442 = vector.broadcast %431 : f32 to vector<2x298xf32>
    %443 = arith.mulf %4, %442 : vector<2x298xf32>
    %444 = vector.broadcast %435 : f32 to vector<2x298xf32>
    %445 = arith.mulf %5, %444 : vector<2x298xf32>
    %446 = arith.addf %443, %445 : vector<2x298xf32>
    %447 = vector.broadcast %439 : f32 to vector<2x298xf32>
    %448 = arith.mulf %6, %447 : vector<2x298xf32>
    %449 = arith.addf %446, %448 : vector<2x298xf32>
    %450 = vector.broadcast %441 : f32 to vector<2x298xf32>
    %451 = arith.addf %449, %450 : vector<2x298xf32>
    %cst_131 = arith.constant 0.000000e+00 : f32
    %452 = vector.broadcast %cst_131 : f32 to vector<2x298xf32>
    %453 = arith.maximumf %451, %452 : vector<2x298xf32>
    %454 = vector.extract_strided_slice %453 {offsets = [0, 0], sizes = [2, 296], strides = [1, 1]} : vector<2x298xf32> to vector<2x296xf32>
    %455 = vector.extract_strided_slice %453 {offsets = [0, 1], sizes = [2, 296], strides = [1, 1]} : vector<2x298xf32> to vector<2x296xf32>
    %456 = arith.maximumf %454, %455 : vector<2x296xf32>
    %457 = vector.extract_strided_slice %453 {offsets = [0, 2], sizes = [2, 296], strides = [1, 1]} : vector<2x298xf32> to vector<2x296xf32>
    %458 = arith.maximumf %456, %457 : vector<2x296xf32>
    %459 = arith.truncf %458 : vector<2x296xf32> to vector<2x296xbf16>
    %c11 = arith.constant 11 : index
    %c0_132 = arith.constant 0 : index
    %c0_133 = arith.constant 0 : index
    %460 = vector.load %arg4[%c11, %c0_132, %c0_133] : memref<32x296x42xbf16, #tpu.memory_space<vmem>>, vector<1x296x42xbf16>
    %461 = vector.shape_cast %460 : vector<1x296x42xbf16> to vector<296x42xbf16>
    %cst_134 = arith.constant dense<0.000000e+00> : vector<2x42xf32>
    %462 = tpu.matmul %459, %461, %cst_134 {dimension_numbers = #tpu.dot_dimension_numbers<[1], [0], [0], [1], [0, 0, 1, 1], [], []>} : vector<2x296xbf16>, vector<296x42xbf16>, vector<2x42xf32> -> vector<2x42xf32>
    %463 = arith.addf %425, %462 : vector<2x42xf32>
    %c32_i32_135 = arith.constant 32 : i32
    %464 = arith.muli %arg0, %c32_i32_135 : i32
    %c12_i32 = arith.constant 12 : i32
    %465 = arith.addi %464, %c12_i32 : i32
    %c3_i32_136 = arith.constant 3 : i32
    %466 = arith.muli %465, %c3_i32_136 : i32
    %c0_i32_137 = arith.constant 0 : i32
    %467 = arith.addi %466, %c0_i32_137 : i32
    %468 = arith.index_cast %467 : i32 to index
    %469 = memref.load %arg2[%468] : memref<192xf32, #tpu.memory_space<smem>>
    %c3_i32_138 = arith.constant 3 : i32
    %470 = arith.muli %465, %c3_i32_138 : i32
    %c1_i32_139 = arith.constant 1 : i32
    %471 = arith.addi %470, %c1_i32_139 : i32
    %472 = arith.index_cast %471 : i32 to index
    %473 = memref.load %arg2[%472] : memref<192xf32, #tpu.memory_space<smem>>
    %c3_i32_140 = arith.constant 3 : i32
    %474 = arith.muli %465, %c3_i32_140 : i32
    %c2_i32_141 = arith.constant 2 : i32
    %475 = arith.addi %474, %c2_i32_141 : i32
    %476 = arith.index_cast %475 : i32 to index
    %477 = memref.load %arg2[%476] : memref<192xf32, #tpu.memory_space<smem>>
    %478 = arith.index_cast %465 : i32 to index
    %479 = memref.load %arg3[%478] : memref<64xf32, #tpu.memory_space<smem>>
    %480 = vector.broadcast %469 : f32 to vector<2x298xf32>
    %481 = arith.mulf %4, %480 : vector<2x298xf32>
    %482 = vector.broadcast %473 : f32 to vector<2x298xf32>
    %483 = arith.mulf %5, %482 : vector<2x298xf32>
    %484 = arith.addf %481, %483 : vector<2x298xf32>
    %485 = vector.broadcast %477 : f32 to vector<2x298xf32>
    %486 = arith.mulf %6, %485 : vector<2x298xf32>
    %487 = arith.addf %484, %486 : vector<2x298xf32>
    %488 = vector.broadcast %479 : f32 to vector<2x298xf32>
    %489 = arith.addf %487, %488 : vector<2x298xf32>
    %cst_142 = arith.constant 0.000000e+00 : f32
    %490 = vector.broadcast %cst_142 : f32 to vector<2x298xf32>
    %491 = arith.maximumf %489, %490 : vector<2x298xf32>
    %492 = vector.extract_strided_slice %491 {offsets = [0, 0], sizes = [2, 296], strides = [1, 1]} : vector<2x298xf32> to vector<2x296xf32>
    %493 = vector.extract_strided_slice %491 {offsets = [0, 1], sizes = [2, 296], strides = [1, 1]} : vector<2x298xf32> to vector<2x296xf32>
    %494 = arith.maximumf %492, %493 : vector<2x296xf32>
    %495 = vector.extract_strided_slice %491 {offsets = [0, 2], sizes = [2, 296], strides = [1, 1]} : vector<2x298xf32> to vector<2x296xf32>
    %496 = arith.maximumf %494, %495 : vector<2x296xf32>
    %497 = arith.truncf %496 : vector<2x296xf32> to vector<2x296xbf16>
    %c12 = arith.constant 12 : index
    %c0_143 = arith.constant 0 : index
    %c0_144 = arith.constant 0 : index
    %498 = vector.load %arg4[%c12, %c0_143, %c0_144] : memref<32x296x42xbf16, #tpu.memory_space<vmem>>, vector<1x296x42xbf16>
    %499 = vector.shape_cast %498 : vector<1x296x42xbf16> to vector<296x42xbf16>
    %cst_145 = arith.constant dense<0.000000e+00> : vector<2x42xf32>
    %500 = tpu.matmul %497, %499, %cst_145 {dimension_numbers = #tpu.dot_dimension_numbers<[1], [0], [0], [1], [0, 0, 1, 1], [], []>} : vector<2x296xbf16>, vector<296x42xbf16>, vector<2x42xf32> -> vector<2x42xf32>
    %501 = arith.addf %463, %500 : vector<2x42xf32>
    %c32_i32_146 = arith.constant 32 : i32
    %502 = arith.muli %arg0, %c32_i32_146 : i32
    %c13_i32 = arith.constant 13 : i32
    %503 = arith.addi %502, %c13_i32 : i32
    %c3_i32_147 = arith.constant 3 : i32
    %504 = arith.muli %503, %c3_i32_147 : i32
    %c0_i32_148 = arith.constant 0 : i32
    %505 = arith.addi %504, %c0_i32_148 : i32
    %506 = arith.index_cast %505 : i32 to index
    %507 = memref.load %arg2[%506] : memref<192xf32, #tpu.memory_space<smem>>
    %c3_i32_149 = arith.constant 3 : i32
    %508 = arith.muli %503, %c3_i32_149 : i32
    %c1_i32_150 = arith.constant 1 : i32
    %509 = arith.addi %508, %c1_i32_150 : i32
    %510 = arith.index_cast %509 : i32 to index
    %511 = memref.load %arg2[%510] : memref<192xf32, #tpu.memory_space<smem>>
    %c3_i32_151 = arith.constant 3 : i32
    %512 = arith.muli %503, %c3_i32_151 : i32
    %c2_i32_152 = arith.constant 2 : i32
    %513 = arith.addi %512, %c2_i32_152 : i32
    %514 = arith.index_cast %513 : i32 to index
    %515 = memref.load %arg2[%514] : memref<192xf32, #tpu.memory_space<smem>>
    %516 = arith.index_cast %503 : i32 to index
    %517 = memref.load %arg3[%516] : memref<64xf32, #tpu.memory_space<smem>>
    %518 = vector.broadcast %507 : f32 to vector<2x298xf32>
    %519 = arith.mulf %4, %518 : vector<2x298xf32>
    %520 = vector.broadcast %511 : f32 to vector<2x298xf32>
    %521 = arith.mulf %5, %520 : vector<2x298xf32>
    %522 = arith.addf %519, %521 : vector<2x298xf32>
    %523 = vector.broadcast %515 : f32 to vector<2x298xf32>
    %524 = arith.mulf %6, %523 : vector<2x298xf32>
    %525 = arith.addf %522, %524 : vector<2x298xf32>
    %526 = vector.broadcast %517 : f32 to vector<2x298xf32>
    %527 = arith.addf %525, %526 : vector<2x298xf32>
    %cst_153 = arith.constant 0.000000e+00 : f32
    %528 = vector.broadcast %cst_153 : f32 to vector<2x298xf32>
    %529 = arith.maximumf %527, %528 : vector<2x298xf32>
    %530 = vector.extract_strided_slice %529 {offsets = [0, 0], sizes = [2, 296], strides = [1, 1]} : vector<2x298xf32> to vector<2x296xf32>
    %531 = vector.extract_strided_slice %529 {offsets = [0, 1], sizes = [2, 296], strides = [1, 1]} : vector<2x298xf32> to vector<2x296xf32>
    %532 = arith.maximumf %530, %531 : vector<2x296xf32>
    %533 = vector.extract_strided_slice %529 {offsets = [0, 2], sizes = [2, 296], strides = [1, 1]} : vector<2x298xf32> to vector<2x296xf32>
    %534 = arith.maximumf %532, %533 : vector<2x296xf32>
    %535 = arith.truncf %534 : vector<2x296xf32> to vector<2x296xbf16>
    %c13 = arith.constant 13 : index
    %c0_154 = arith.constant 0 : index
    %c0_155 = arith.constant 0 : index
    %536 = vector.load %arg4[%c13, %c0_154, %c0_155] : memref<32x296x42xbf16, #tpu.memory_space<vmem>>, vector<1x296x42xbf16>
    %537 = vector.shape_cast %536 : vector<1x296x42xbf16> to vector<296x42xbf16>
    %cst_156 = arith.constant dense<0.000000e+00> : vector<2x42xf32>
    %538 = tpu.matmul %535, %537, %cst_156 {dimension_numbers = #tpu.dot_dimension_numbers<[1], [0], [0], [1], [0, 0, 1, 1], [], []>} : vector<2x296xbf16>, vector<296x42xbf16>, vector<2x42xf32> -> vector<2x42xf32>
    %539 = arith.addf %501, %538 : vector<2x42xf32>
    %c32_i32_157 = arith.constant 32 : i32
    %540 = arith.muli %arg0, %c32_i32_157 : i32
    %c14_i32 = arith.constant 14 : i32
    %541 = arith.addi %540, %c14_i32 : i32
    %c3_i32_158 = arith.constant 3 : i32
    %542 = arith.muli %541, %c3_i32_158 : i32
    %c0_i32_159 = arith.constant 0 : i32
    %543 = arith.addi %542, %c0_i32_159 : i32
    %544 = arith.index_cast %543 : i32 to index
    %545 = memref.load %arg2[%544] : memref<192xf32, #tpu.memory_space<smem>>
    %c3_i32_160 = arith.constant 3 : i32
    %546 = arith.muli %541, %c3_i32_160 : i32
    %c1_i32_161 = arith.constant 1 : i32
    %547 = arith.addi %546, %c1_i32_161 : i32
    %548 = arith.index_cast %547 : i32 to index
    %549 = memref.load %arg2[%548] : memref<192xf32, #tpu.memory_space<smem>>
    %c3_i32_162 = arith.constant 3 : i32
    %550 = arith.muli %541, %c3_i32_162 : i32
    %c2_i32_163 = arith.constant 2 : i32
    %551 = arith.addi %550, %c2_i32_163 : i32
    %552 = arith.index_cast %551 : i32 to index
    %553 = memref.load %arg2[%552] : memref<192xf32, #tpu.memory_space<smem>>
    %554 = arith.index_cast %541 : i32 to index
    %555 = memref.load %arg3[%554] : memref<64xf32, #tpu.memory_space<smem>>
    %556 = vector.broadcast %545 : f32 to vector<2x298xf32>
    %557 = arith.mulf %4, %556 : vector<2x298xf32>
    %558 = vector.broadcast %549 : f32 to vector<2x298xf32>
    %559 = arith.mulf %5, %558 : vector<2x298xf32>
    %560 = arith.addf %557, %559 : vector<2x298xf32>
    %561 = vector.broadcast %553 : f32 to vector<2x298xf32>
    %562 = arith.mulf %6, %561 : vector<2x298xf32>
    %563 = arith.addf %560, %562 : vector<2x298xf32>
    %564 = vector.broadcast %555 : f32 to vector<2x298xf32>
    %565 = arith.addf %563, %564 : vector<2x298xf32>
    %cst_164 = arith.constant 0.000000e+00 : f32
    %566 = vector.broadcast %cst_164 : f32 to vector<2x298xf32>
    %567 = arith.maximumf %565, %566 : vector<2x298xf32>
    %568 = vector.extract_strided_slice %567 {offsets = [0, 0], sizes = [2, 296], strides = [1, 1]} : vector<2x298xf32> to vector<2x296xf32>
    %569 = vector.extract_strided_slice %567 {offsets = [0, 1], sizes = [2, 296], strides = [1, 1]} : vector<2x298xf32> to vector<2x296xf32>
    %570 = arith.maximumf %568, %569 : vector<2x296xf32>
    %571 = vector.extract_strided_slice %567 {offsets = [0, 2], sizes = [2, 296], strides = [1, 1]} : vector<2x298xf32> to vector<2x296xf32>
    %572 = arith.maximumf %570, %571 : vector<2x296xf32>
    %573 = arith.truncf %572 : vector<2x296xf32> to vector<2x296xbf16>
    %c14 = arith.constant 14 : index
    %c0_165 = arith.constant 0 : index
    %c0_166 = arith.constant 0 : index
    %574 = vector.load %arg4[%c14, %c0_165, %c0_166] : memref<32x296x42xbf16, #tpu.memory_space<vmem>>, vector<1x296x42xbf16>
    %575 = vector.shape_cast %574 : vector<1x296x42xbf16> to vector<296x42xbf16>
    %cst_167 = arith.constant dense<0.000000e+00> : vector<2x42xf32>
    %576 = tpu.matmul %573, %575, %cst_167 {dimension_numbers = #tpu.dot_dimension_numbers<[1], [0], [0], [1], [0, 0, 1, 1], [], []>} : vector<2x296xbf16>, vector<296x42xbf16>, vector<2x42xf32> -> vector<2x42xf32>
    %577 = arith.addf %539, %576 : vector<2x42xf32>
    %c32_i32_168 = arith.constant 32 : i32
    %578 = arith.muli %arg0, %c32_i32_168 : i32
    %c15_i32 = arith.constant 15 : i32
    %579 = arith.addi %578, %c15_i32 : i32
    %c3_i32_169 = arith.constant 3 : i32
    %580 = arith.muli %579, %c3_i32_169 : i32
    %c0_i32_170 = arith.constant 0 : i32
    %581 = arith.addi %580, %c0_i32_170 : i32
    %582 = arith.index_cast %581 : i32 to index
    %583 = memref.load %arg2[%582] : memref<192xf32, #tpu.memory_space<smem>>
    %c3_i32_171 = arith.constant 3 : i32
    %584 = arith.muli %579, %c3_i32_171 : i32
    %c1_i32_172 = arith.constant 1 : i32
    %585 = arith.addi %584, %c1_i32_172 : i32
    %586 = arith.index_cast %585 : i32 to index
    %587 = memref.load %arg2[%586] : memref<192xf32, #tpu.memory_space<smem>>
    %c3_i32_173 = arith.constant 3 : i32
    %588 = arith.muli %579, %c3_i32_173 : i32
    %c2_i32_174 = arith.constant 2 : i32
    %589 = arith.addi %588, %c2_i32_174 : i32
    %590 = arith.index_cast %589 : i32 to index
    %591 = memref.load %arg2[%590] : memref<192xf32, #tpu.memory_space<smem>>
    %592 = arith.index_cast %579 : i32 to index
    %593 = memref.load %arg3[%592] : memref<64xf32, #tpu.memory_space<smem>>
    %594 = vector.broadcast %583 : f32 to vector<2x298xf32>
    %595 = arith.mulf %4, %594 : vector<2x298xf32>
    %596 = vector.broadcast %587 : f32 to vector<2x298xf32>
    %597 = arith.mulf %5, %596 : vector<2x298xf32>
    %598 = arith.addf %595, %597 : vector<2x298xf32>
    %599 = vector.broadcast %591 : f32 to vector<2x298xf32>
    %600 = arith.mulf %6, %599 : vector<2x298xf32>
    %601 = arith.addf %598, %600 : vector<2x298xf32>
    %602 = vector.broadcast %593 : f32 to vector<2x298xf32>
    %603 = arith.addf %601, %602 : vector<2x298xf32>
    %cst_175 = arith.constant 0.000000e+00 : f32
    %604 = vector.broadcast %cst_175 : f32 to vector<2x298xf32>
    %605 = arith.maximumf %603, %604 : vector<2x298xf32>
    %606 = vector.extract_strided_slice %605 {offsets = [0, 0], sizes = [2, 296], strides = [1, 1]} : vector<2x298xf32> to vector<2x296xf32>
    %607 = vector.extract_strided_slice %605 {offsets = [0, 1], sizes = [2, 296], strides = [1, 1]} : vector<2x298xf32> to vector<2x296xf32>
    %608 = arith.maximumf %606, %607 : vector<2x296xf32>
    %609 = vector.extract_strided_slice %605 {offsets = [0, 2], sizes = [2, 296], strides = [1, 1]} : vector<2x298xf32> to vector<2x296xf32>
    %610 = arith.maximumf %608, %609 : vector<2x296xf32>
    %611 = arith.truncf %610 : vector<2x296xf32> to vector<2x296xbf16>
    %c15 = arith.constant 15 : index
    %c0_176 = arith.constant 0 : index
    %c0_177 = arith.constant 0 : index
    %612 = vector.load %arg4[%c15, %c0_176, %c0_177] : memref<32x296x42xbf16, #tpu.memory_space<vmem>>, vector<1x296x42xbf16>
    %613 = vector.shape_cast %612 : vector<1x296x42xbf16> to vector<296x42xbf16>
    %cst_178 = arith.constant dense<0.000000e+00> : vector<2x42xf32>
    %614 = tpu.matmul %611, %613, %cst_178 {dimension_numbers = #tpu.dot_dimension_numbers<[1], [0], [0], [1], [0, 0, 1, 1], [], []>} : vector<2x296xbf16>, vector<296x42xbf16>, vector<2x42xf32> -> vector<2x42xf32>
    %615 = arith.addf %577, %614 : vector<2x42xf32>
    %c32_i32_179 = arith.constant 32 : i32
    %616 = arith.muli %arg0, %c32_i32_179 : i32
    %c16_i32 = arith.constant 16 : i32
    %617 = arith.addi %616, %c16_i32 : i32
    %c3_i32_180 = arith.constant 3 : i32
    %618 = arith.muli %617, %c3_i32_180 : i32
    %c0_i32_181 = arith.constant 0 : i32
    %619 = arith.addi %618, %c0_i32_181 : i32
    %620 = arith.index_cast %619 : i32 to index
    %621 = memref.load %arg2[%620] : memref<192xf32, #tpu.memory_space<smem>>
    %c3_i32_182 = arith.constant 3 : i32
    %622 = arith.muli %617, %c3_i32_182 : i32
    %c1_i32_183 = arith.constant 1 : i32
    %623 = arith.addi %622, %c1_i32_183 : i32
    %624 = arith.index_cast %623 : i32 to index
    %625 = memref.load %arg2[%624] : memref<192xf32, #tpu.memory_space<smem>>
    %c3_i32_184 = arith.constant 3 : i32
    %626 = arith.muli %617, %c3_i32_184 : i32
    %c2_i32_185 = arith.constant 2 : i32
    %627 = arith.addi %626, %c2_i32_185 : i32
    %628 = arith.index_cast %627 : i32 to index
    %629 = memref.load %arg2[%628] : memref<192xf32, #tpu.memory_space<smem>>
    %630 = arith.index_cast %617 : i32 to index
    %631 = memref.load %arg3[%630] : memref<64xf32, #tpu.memory_space<smem>>
    %632 = vector.broadcast %621 : f32 to vector<2x298xf32>
    %633 = arith.mulf %4, %632 : vector<2x298xf32>
    %634 = vector.broadcast %625 : f32 to vector<2x298xf32>
    %635 = arith.mulf %5, %634 : vector<2x298xf32>
    %636 = arith.addf %633, %635 : vector<2x298xf32>
    %637 = vector.broadcast %629 : f32 to vector<2x298xf32>
    %638 = arith.mulf %6, %637 : vector<2x298xf32>
    %639 = arith.addf %636, %638 : vector<2x298xf32>
    %640 = vector.broadcast %631 : f32 to vector<2x298xf32>
    %641 = arith.addf %639, %640 : vector<2x298xf32>
    %cst_186 = arith.constant 0.000000e+00 : f32
    %642 = vector.broadcast %cst_186 : f32 to vector<2x298xf32>
    %643 = arith.maximumf %641, %642 : vector<2x298xf32>
    %644 = vector.extract_strided_slice %643 {offsets = [0, 0], sizes = [2, 296], strides = [1, 1]} : vector<2x298xf32> to vector<2x296xf32>
    %645 = vector.extract_strided_slice %643 {offsets = [0, 1], sizes = [2, 296], strides = [1, 1]} : vector<2x298xf32> to vector<2x296xf32>
    %646 = arith.maximumf %644, %645 : vector<2x296xf32>
    %647 = vector.extract_strided_slice %643 {offsets = [0, 2], sizes = [2, 296], strides = [1, 1]} : vector<2x298xf32> to vector<2x296xf32>
    %648 = arith.maximumf %646, %647 : vector<2x296xf32>
    %649 = arith.truncf %648 : vector<2x296xf32> to vector<2x296xbf16>
    %c16 = arith.constant 16 : index
    %c0_187 = arith.constant 0 : index
    %c0_188 = arith.constant 0 : index
    %650 = vector.load %arg4[%c16, %c0_187, %c0_188] : memref<32x296x42xbf16, #tpu.memory_space<vmem>>, vector<1x296x42xbf16>
    %651 = vector.shape_cast %650 : vector<1x296x42xbf16> to vector<296x42xbf16>
    %cst_189 = arith.constant dense<0.000000e+00> : vector<2x42xf32>
    %652 = tpu.matmul %649, %651, %cst_189 {dimension_numbers = #tpu.dot_dimension_numbers<[1], [0], [0], [1], [0, 0, 1, 1], [], []>} : vector<2x296xbf16>, vector<296x42xbf16>, vector<2x42xf32> -> vector<2x42xf32>
    %653 = arith.addf %615, %652 : vector<2x42xf32>
    %c32_i32_190 = arith.constant 32 : i32
    %654 = arith.muli %arg0, %c32_i32_190 : i32
    %c17_i32 = arith.constant 17 : i32
    %655 = arith.addi %654, %c17_i32 : i32
    %c3_i32_191 = arith.constant 3 : i32
    %656 = arith.muli %655, %c3_i32_191 : i32
    %c0_i32_192 = arith.constant 0 : i32
    %657 = arith.addi %656, %c0_i32_192 : i32
    %658 = arith.index_cast %657 : i32 to index
    %659 = memref.load %arg2[%658] : memref<192xf32, #tpu.memory_space<smem>>
    %c3_i32_193 = arith.constant 3 : i32
    %660 = arith.muli %655, %c3_i32_193 : i32
    %c1_i32_194 = arith.constant 1 : i32
    %661 = arith.addi %660, %c1_i32_194 : i32
    %662 = arith.index_cast %661 : i32 to index
    %663 = memref.load %arg2[%662] : memref<192xf32, #tpu.memory_space<smem>>
    %c3_i32_195 = arith.constant 3 : i32
    %664 = arith.muli %655, %c3_i32_195 : i32
    %c2_i32_196 = arith.constant 2 : i32
    %665 = arith.addi %664, %c2_i32_196 : i32
    %666 = arith.index_cast %665 : i32 to index
    %667 = memref.load %arg2[%666] : memref<192xf32, #tpu.memory_space<smem>>
    %668 = arith.index_cast %655 : i32 to index
    %669 = memref.load %arg3[%668] : memref<64xf32, #tpu.memory_space<smem>>
    %670 = vector.broadcast %659 : f32 to vector<2x298xf32>
    %671 = arith.mulf %4, %670 : vector<2x298xf32>
    %672 = vector.broadcast %663 : f32 to vector<2x298xf32>
    %673 = arith.mulf %5, %672 : vector<2x298xf32>
    %674 = arith.addf %671, %673 : vector<2x298xf32>
    %675 = vector.broadcast %667 : f32 to vector<2x298xf32>
    %676 = arith.mulf %6, %675 : vector<2x298xf32>
    %677 = arith.addf %674, %676 : vector<2x298xf32>
    %678 = vector.broadcast %669 : f32 to vector<2x298xf32>
    %679 = arith.addf %677, %678 : vector<2x298xf32>
    %cst_197 = arith.constant 0.000000e+00 : f32
    %680 = vector.broadcast %cst_197 : f32 to vector<2x298xf32>
    %681 = arith.maximumf %679, %680 : vector<2x298xf32>
    %682 = vector.extract_strided_slice %681 {offsets = [0, 0], sizes = [2, 296], strides = [1, 1]} : vector<2x298xf32> to vector<2x296xf32>
    %683 = vector.extract_strided_slice %681 {offsets = [0, 1], sizes = [2, 296], strides = [1, 1]} : vector<2x298xf32> to vector<2x296xf32>
    %684 = arith.maximumf %682, %683 : vector<2x296xf32>
    %685 = vector.extract_strided_slice %681 {offsets = [0, 2], sizes = [2, 296], strides = [1, 1]} : vector<2x298xf32> to vector<2x296xf32>
    %686 = arith.maximumf %684, %685 : vector<2x296xf32>
    %687 = arith.truncf %686 : vector<2x296xf32> to vector<2x296xbf16>
    %c17 = arith.constant 17 : index
    %c0_198 = arith.constant 0 : index
    %c0_199 = arith.constant 0 : index
    %688 = vector.load %arg4[%c17, %c0_198, %c0_199] : memref<32x296x42xbf16, #tpu.memory_space<vmem>>, vector<1x296x42xbf16>
    %689 = vector.shape_cast %688 : vector<1x296x42xbf16> to vector<296x42xbf16>
    %cst_200 = arith.constant dense<0.000000e+00> : vector<2x42xf32>
    %690 = tpu.matmul %687, %689, %cst_200 {dimension_numbers = #tpu.dot_dimension_numbers<[1], [0], [0], [1], [0, 0, 1, 1], [], []>} : vector<2x296xbf16>, vector<296x42xbf16>, vector<2x42xf32> -> vector<2x42xf32>
    %691 = arith.addf %653, %690 : vector<2x42xf32>
    %c32_i32_201 = arith.constant 32 : i32
    %692 = arith.muli %arg0, %c32_i32_201 : i32
    %c18_i32 = arith.constant 18 : i32
    %693 = arith.addi %692, %c18_i32 : i32
    %c3_i32_202 = arith.constant 3 : i32
    %694 = arith.muli %693, %c3_i32_202 : i32
    %c0_i32_203 = arith.constant 0 : i32
    %695 = arith.addi %694, %c0_i32_203 : i32
    %696 = arith.index_cast %695 : i32 to index
    %697 = memref.load %arg2[%696] : memref<192xf32, #tpu.memory_space<smem>>
    %c3_i32_204 = arith.constant 3 : i32
    %698 = arith.muli %693, %c3_i32_204 : i32
    %c1_i32_205 = arith.constant 1 : i32
    %699 = arith.addi %698, %c1_i32_205 : i32
    %700 = arith.index_cast %699 : i32 to index
    %701 = memref.load %arg2[%700] : memref<192xf32, #tpu.memory_space<smem>>
    %c3_i32_206 = arith.constant 3 : i32
    %702 = arith.muli %693, %c3_i32_206 : i32
    %c2_i32_207 = arith.constant 2 : i32
    %703 = arith.addi %702, %c2_i32_207 : i32
    %704 = arith.index_cast %703 : i32 to index
    %705 = memref.load %arg2[%704] : memref<192xf32, #tpu.memory_space<smem>>
    %706 = arith.index_cast %693 : i32 to index
    %707 = memref.load %arg3[%706] : memref<64xf32, #tpu.memory_space<smem>>
    %708 = vector.broadcast %697 : f32 to vector<2x298xf32>
    %709 = arith.mulf %4, %708 : vector<2x298xf32>
    %710 = vector.broadcast %701 : f32 to vector<2x298xf32>
    %711 = arith.mulf %5, %710 : vector<2x298xf32>
    %712 = arith.addf %709, %711 : vector<2x298xf32>
    %713 = vector.broadcast %705 : f32 to vector<2x298xf32>
    %714 = arith.mulf %6, %713 : vector<2x298xf32>
    %715 = arith.addf %712, %714 : vector<2x298xf32>
    %716 = vector.broadcast %707 : f32 to vector<2x298xf32>
    %717 = arith.addf %715, %716 : vector<2x298xf32>
    %cst_208 = arith.constant 0.000000e+00 : f32
    %718 = vector.broadcast %cst_208 : f32 to vector<2x298xf32>
    %719 = arith.maximumf %717, %718 : vector<2x298xf32>
    %720 = vector.extract_strided_slice %719 {offsets = [0, 0], sizes = [2, 296], strides = [1, 1]} : vector<2x298xf32> to vector<2x296xf32>
    %721 = vector.extract_strided_slice %719 {offsets = [0, 1], sizes = [2, 296], strides = [1, 1]} : vector<2x298xf32> to vector<2x296xf32>
    %722 = arith.maximumf %720, %721 : vector<2x296xf32>
    %723 = vector.extract_strided_slice %719 {offsets = [0, 2], sizes = [2, 296], strides = [1, 1]} : vector<2x298xf32> to vector<2x296xf32>
    %724 = arith.maximumf %722, %723 : vector<2x296xf32>
    %725 = arith.truncf %724 : vector<2x296xf32> to vector<2x296xbf16>
    %c18 = arith.constant 18 : index
    %c0_209 = arith.constant 0 : index
    %c0_210 = arith.constant 0 : index
    %726 = vector.load %arg4[%c18, %c0_209, %c0_210] : memref<32x296x42xbf16, #tpu.memory_space<vmem>>, vector<1x296x42xbf16>
    %727 = vector.shape_cast %726 : vector<1x296x42xbf16> to vector<296x42xbf16>
    %cst_211 = arith.constant dense<0.000000e+00> : vector<2x42xf32>
    %728 = tpu.matmul %725, %727, %cst_211 {dimension_numbers = #tpu.dot_dimension_numbers<[1], [0], [0], [1], [0, 0, 1, 1], [], []>} : vector<2x296xbf16>, vector<296x42xbf16>, vector<2x42xf32> -> vector<2x42xf32>
    %729 = arith.addf %691, %728 : vector<2x42xf32>
    %c32_i32_212 = arith.constant 32 : i32
    %730 = arith.muli %arg0, %c32_i32_212 : i32
    %c19_i32 = arith.constant 19 : i32
    %731 = arith.addi %730, %c19_i32 : i32
    %c3_i32_213 = arith.constant 3 : i32
    %732 = arith.muli %731, %c3_i32_213 : i32
    %c0_i32_214 = arith.constant 0 : i32
    %733 = arith.addi %732, %c0_i32_214 : i32
    %734 = arith.index_cast %733 : i32 to index
    %735 = memref.load %arg2[%734] : memref<192xf32, #tpu.memory_space<smem>>
    %c3_i32_215 = arith.constant 3 : i32
    %736 = arith.muli %731, %c3_i32_215 : i32
    %c1_i32_216 = arith.constant 1 : i32
    %737 = arith.addi %736, %c1_i32_216 : i32
    %738 = arith.index_cast %737 : i32 to index
    %739 = memref.load %arg2[%738] : memref<192xf32, #tpu.memory_space<smem>>
    %c3_i32_217 = arith.constant 3 : i32
    %740 = arith.muli %731, %c3_i32_217 : i32
    %c2_i32_218 = arith.constant 2 : i32
    %741 = arith.addi %740, %c2_i32_218 : i32
    %742 = arith.index_cast %741 : i32 to index
    %743 = memref.load %arg2[%742] : memref<192xf32, #tpu.memory_space<smem>>
    %744 = arith.index_cast %731 : i32 to index
    %745 = memref.load %arg3[%744] : memref<64xf32, #tpu.memory_space<smem>>
    %746 = vector.broadcast %735 : f32 to vector<2x298xf32>
    %747 = arith.mulf %4, %746 : vector<2x298xf32>
    %748 = vector.broadcast %739 : f32 to vector<2x298xf32>
    %749 = arith.mulf %5, %748 : vector<2x298xf32>
    %750 = arith.addf %747, %749 : vector<2x298xf32>
    %751 = vector.broadcast %743 : f32 to vector<2x298xf32>
    %752 = arith.mulf %6, %751 : vector<2x298xf32>
    %753 = arith.addf %750, %752 : vector<2x298xf32>
    %754 = vector.broadcast %745 : f32 to vector<2x298xf32>
    %755 = arith.addf %753, %754 : vector<2x298xf32>
    %cst_219 = arith.constant 0.000000e+00 : f32
    %756 = vector.broadcast %cst_219 : f32 to vector<2x298xf32>
    %757 = arith.maximumf %755, %756 : vector<2x298xf32>
    %758 = vector.extract_strided_slice %757 {offsets = [0, 0], sizes = [2, 296], strides = [1, 1]} : vector<2x298xf32> to vector<2x296xf32>
    %759 = vector.extract_strided_slice %757 {offsets = [0, 1], sizes = [2, 296], strides = [1, 1]} : vector<2x298xf32> to vector<2x296xf32>
    %760 = arith.maximumf %758, %759 : vector<2x296xf32>
    %761 = vector.extract_strided_slice %757 {offsets = [0, 2], sizes = [2, 296], strides = [1, 1]} : vector<2x298xf32> to vector<2x296xf32>
    %762 = arith.maximumf %760, %761 : vector<2x296xf32>
    %763 = arith.truncf %762 : vector<2x296xf32> to vector<2x296xbf16>
    %c19 = arith.constant 19 : index
    %c0_220 = arith.constant 0 : index
    %c0_221 = arith.constant 0 : index
    %764 = vector.load %arg4[%c19, %c0_220, %c0_221] : memref<32x296x42xbf16, #tpu.memory_space<vmem>>, vector<1x296x42xbf16>
    %765 = vector.shape_cast %764 : vector<1x296x42xbf16> to vector<296x42xbf16>
    %cst_222 = arith.constant dense<0.000000e+00> : vector<2x42xf32>
    %766 = tpu.matmul %763, %765, %cst_222 {dimension_numbers = #tpu.dot_dimension_numbers<[1], [0], [0], [1], [0, 0, 1, 1], [], []>} : vector<2x296xbf16>, vector<296x42xbf16>, vector<2x42xf32> -> vector<2x42xf32>
    %767 = arith.addf %729, %766 : vector<2x42xf32>
    %c32_i32_223 = arith.constant 32 : i32
    %768 = arith.muli %arg0, %c32_i32_223 : i32
    %c20_i32 = arith.constant 20 : i32
    %769 = arith.addi %768, %c20_i32 : i32
    %c3_i32_224 = arith.constant 3 : i32
    %770 = arith.muli %769, %c3_i32_224 : i32
    %c0_i32_225 = arith.constant 0 : i32
    %771 = arith.addi %770, %c0_i32_225 : i32
    %772 = arith.index_cast %771 : i32 to index
    %773 = memref.load %arg2[%772] : memref<192xf32, #tpu.memory_space<smem>>
    %c3_i32_226 = arith.constant 3 : i32
    %774 = arith.muli %769, %c3_i32_226 : i32
    %c1_i32_227 = arith.constant 1 : i32
    %775 = arith.addi %774, %c1_i32_227 : i32
    %776 = arith.index_cast %775 : i32 to index
    %777 = memref.load %arg2[%776] : memref<192xf32, #tpu.memory_space<smem>>
    %c3_i32_228 = arith.constant 3 : i32
    %778 = arith.muli %769, %c3_i32_228 : i32
    %c2_i32_229 = arith.constant 2 : i32
    %779 = arith.addi %778, %c2_i32_229 : i32
    %780 = arith.index_cast %779 : i32 to index
    %781 = memref.load %arg2[%780] : memref<192xf32, #tpu.memory_space<smem>>
    %782 = arith.index_cast %769 : i32 to index
    %783 = memref.load %arg3[%782] : memref<64xf32, #tpu.memory_space<smem>>
    %784 = vector.broadcast %773 : f32 to vector<2x298xf32>
    %785 = arith.mulf %4, %784 : vector<2x298xf32>
    %786 = vector.broadcast %777 : f32 to vector<2x298xf32>
    %787 = arith.mulf %5, %786 : vector<2x298xf32>
    %788 = arith.addf %785, %787 : vector<2x298xf32>
    %789 = vector.broadcast %781 : f32 to vector<2x298xf32>
    %790 = arith.mulf %6, %789 : vector<2x298xf32>
    %791 = arith.addf %788, %790 : vector<2x298xf32>
    %792 = vector.broadcast %783 : f32 to vector<2x298xf32>
    %793 = arith.addf %791, %792 : vector<2x298xf32>
    %cst_230 = arith.constant 0.000000e+00 : f32
    %794 = vector.broadcast %cst_230 : f32 to vector<2x298xf32>
    %795 = arith.maximumf %793, %794 : vector<2x298xf32>
    %796 = vector.extract_strided_slice %795 {offsets = [0, 0], sizes = [2, 296], strides = [1, 1]} : vector<2x298xf32> to vector<2x296xf32>
    %797 = vector.extract_strided_slice %795 {offsets = [0, 1], sizes = [2, 296], strides = [1, 1]} : vector<2x298xf32> to vector<2x296xf32>
    %798 = arith.maximumf %796, %797 : vector<2x296xf32>
    %799 = vector.extract_strided_slice %795 {offsets = [0, 2], sizes = [2, 296], strides = [1, 1]} : vector<2x298xf32> to vector<2x296xf32>
    %800 = arith.maximumf %798, %799 : vector<2x296xf32>
    %801 = arith.truncf %800 : vector<2x296xf32> to vector<2x296xbf16>
    %c20 = arith.constant 20 : index
    %c0_231 = arith.constant 0 : index
    %c0_232 = arith.constant 0 : index
    %802 = vector.load %arg4[%c20, %c0_231, %c0_232] : memref<32x296x42xbf16, #tpu.memory_space<vmem>>, vector<1x296x42xbf16>
    %803 = vector.shape_cast %802 : vector<1x296x42xbf16> to vector<296x42xbf16>
    %cst_233 = arith.constant dense<0.000000e+00> : vector<2x42xf32>
    %804 = tpu.matmul %801, %803, %cst_233 {dimension_numbers = #tpu.dot_dimension_numbers<[1], [0], [0], [1], [0, 0, 1, 1], [], []>} : vector<2x296xbf16>, vector<296x42xbf16>, vector<2x42xf32> -> vector<2x42xf32>
    %805 = arith.addf %767, %804 : vector<2x42xf32>
    %c32_i32_234 = arith.constant 32 : i32
    %806 = arith.muli %arg0, %c32_i32_234 : i32
    %c21_i32 = arith.constant 21 : i32
    %807 = arith.addi %806, %c21_i32 : i32
    %c3_i32_235 = arith.constant 3 : i32
    %808 = arith.muli %807, %c3_i32_235 : i32
    %c0_i32_236 = arith.constant 0 : i32
    %809 = arith.addi %808, %c0_i32_236 : i32
    %810 = arith.index_cast %809 : i32 to index
    %811 = memref.load %arg2[%810] : memref<192xf32, #tpu.memory_space<smem>>
    %c3_i32_237 = arith.constant 3 : i32
    %812 = arith.muli %807, %c3_i32_237 : i32
    %c1_i32_238 = arith.constant 1 : i32
    %813 = arith.addi %812, %c1_i32_238 : i32
    %814 = arith.index_cast %813 : i32 to index
    %815 = memref.load %arg2[%814] : memref<192xf32, #tpu.memory_space<smem>>
    %c3_i32_239 = arith.constant 3 : i32
    %816 = arith.muli %807, %c3_i32_239 : i32
    %c2_i32_240 = arith.constant 2 : i32
    %817 = arith.addi %816, %c2_i32_240 : i32
    %818 = arith.index_cast %817 : i32 to index
    %819 = memref.load %arg2[%818] : memref<192xf32, #tpu.memory_space<smem>>
    %820 = arith.index_cast %807 : i32 to index
    %821 = memref.load %arg3[%820] : memref<64xf32, #tpu.memory_space<smem>>
    %822 = vector.broadcast %811 : f32 to vector<2x298xf32>
    %823 = arith.mulf %4, %822 : vector<2x298xf32>
    %824 = vector.broadcast %815 : f32 to vector<2x298xf32>
    %825 = arith.mulf %5, %824 : vector<2x298xf32>
    %826 = arith.addf %823, %825 : vector<2x298xf32>
    %827 = vector.broadcast %819 : f32 to vector<2x298xf32>
    %828 = arith.mulf %6, %827 : vector<2x298xf32>
    %829 = arith.addf %826, %828 : vector<2x298xf32>
    %830 = vector.broadcast %821 : f32 to vector<2x298xf32>
    %831 = arith.addf %829, %830 : vector<2x298xf32>
    %cst_241 = arith.constant 0.000000e+00 : f32
    %832 = vector.broadcast %cst_241 : f32 to vector<2x298xf32>
    %833 = arith.maximumf %831, %832 : vector<2x298xf32>
    %834 = vector.extract_strided_slice %833 {offsets = [0, 0], sizes = [2, 296], strides = [1, 1]} : vector<2x298xf32> to vector<2x296xf32>
    %835 = vector.extract_strided_slice %833 {offsets = [0, 1], sizes = [2, 296], strides = [1, 1]} : vector<2x298xf32> to vector<2x296xf32>
    %836 = arith.maximumf %834, %835 : vector<2x296xf32>
    %837 = vector.extract_strided_slice %833 {offsets = [0, 2], sizes = [2, 296], strides = [1, 1]} : vector<2x298xf32> to vector<2x296xf32>
    %838 = arith.maximumf %836, %837 : vector<2x296xf32>
    %839 = arith.truncf %838 : vector<2x296xf32> to vector<2x296xbf16>
    %c21 = arith.constant 21 : index
    %c0_242 = arith.constant 0 : index
    %c0_243 = arith.constant 0 : index
    %840 = vector.load %arg4[%c21, %c0_242, %c0_243] : memref<32x296x42xbf16, #tpu.memory_space<vmem>>, vector<1x296x42xbf16>
    %841 = vector.shape_cast %840 : vector<1x296x42xbf16> to vector<296x42xbf16>
    %cst_244 = arith.constant dense<0.000000e+00> : vector<2x42xf32>
    %842 = tpu.matmul %839, %841, %cst_244 {dimension_numbers = #tpu.dot_dimension_numbers<[1], [0], [0], [1], [0, 0, 1, 1], [], []>} : vector<2x296xbf16>, vector<296x42xbf16>, vector<2x42xf32> -> vector<2x42xf32>
    %843 = arith.addf %805, %842 : vector<2x42xf32>
    %c32_i32_245 = arith.constant 32 : i32
    %844 = arith.muli %arg0, %c32_i32_245 : i32
    %c22_i32 = arith.constant 22 : i32
    %845 = arith.addi %844, %c22_i32 : i32
    %c3_i32_246 = arith.constant 3 : i32
    %846 = arith.muli %845, %c3_i32_246 : i32
    %c0_i32_247 = arith.constant 0 : i32
    %847 = arith.addi %846, %c0_i32_247 : i32
    %848 = arith.index_cast %847 : i32 to index
    %849 = memref.load %arg2[%848] : memref<192xf32, #tpu.memory_space<smem>>
    %c3_i32_248 = arith.constant 3 : i32
    %850 = arith.muli %845, %c3_i32_248 : i32
    %c1_i32_249 = arith.constant 1 : i32
    %851 = arith.addi %850, %c1_i32_249 : i32
    %852 = arith.index_cast %851 : i32 to index
    %853 = memref.load %arg2[%852] : memref<192xf32, #tpu.memory_space<smem>>
    %c3_i32_250 = arith.constant 3 : i32
    %854 = arith.muli %845, %c3_i32_250 : i32
    %c2_i32_251 = arith.constant 2 : i32
    %855 = arith.addi %854, %c2_i32_251 : i32
    %856 = arith.index_cast %855 : i32 to index
    %857 = memref.load %arg2[%856] : memref<192xf32, #tpu.memory_space<smem>>
    %858 = arith.index_cast %845 : i32 to index
    %859 = memref.load %arg3[%858] : memref<64xf32, #tpu.memory_space<smem>>
    %860 = vector.broadcast %849 : f32 to vector<2x298xf32>
    %861 = arith.mulf %4, %860 : vector<2x298xf32>
    %862 = vector.broadcast %853 : f32 to vector<2x298xf32>
    %863 = arith.mulf %5, %862 : vector<2x298xf32>
    %864 = arith.addf %861, %863 : vector<2x298xf32>
    %865 = vector.broadcast %857 : f32 to vector<2x298xf32>
    %866 = arith.mulf %6, %865 : vector<2x298xf32>
    %867 = arith.addf %864, %866 : vector<2x298xf32>
    %868 = vector.broadcast %859 : f32 to vector<2x298xf32>
    %869 = arith.addf %867, %868 : vector<2x298xf32>
    %cst_252 = arith.constant 0.000000e+00 : f32
    %870 = vector.broadcast %cst_252 : f32 to vector<2x298xf32>
    %871 = arith.maximumf %869, %870 : vector<2x298xf32>
    %872 = vector.extract_strided_slice %871 {offsets = [0, 0], sizes = [2, 296], strides = [1, 1]} : vector<2x298xf32> to vector<2x296xf32>
    %873 = vector.extract_strided_slice %871 {offsets = [0, 1], sizes = [2, 296], strides = [1, 1]} : vector<2x298xf32> to vector<2x296xf32>
    %874 = arith.maximumf %872, %873 : vector<2x296xf32>
    %875 = vector.extract_strided_slice %871 {offsets = [0, 2], sizes = [2, 296], strides = [1, 1]} : vector<2x298xf32> to vector<2x296xf32>
    %876 = arith.maximumf %874, %875 : vector<2x296xf32>
    %877 = arith.truncf %876 : vector<2x296xf32> to vector<2x296xbf16>
    %c22 = arith.constant 22 : index
    %c0_253 = arith.constant 0 : index
    %c0_254 = arith.constant 0 : index
    %878 = vector.load %arg4[%c22, %c0_253, %c0_254] : memref<32x296x42xbf16, #tpu.memory_space<vmem>>, vector<1x296x42xbf16>
    %879 = vector.shape_cast %878 : vector<1x296x42xbf16> to vector<296x42xbf16>
    %cst_255 = arith.constant dense<0.000000e+00> : vector<2x42xf32>
    %880 = tpu.matmul %877, %879, %cst_255 {dimension_numbers = #tpu.dot_dimension_numbers<[1], [0], [0], [1], [0, 0, 1, 1], [], []>} : vector<2x296xbf16>, vector<296x42xbf16>, vector<2x42xf32> -> vector<2x42xf32>
    %881 = arith.addf %843, %880 : vector<2x42xf32>
    %c32_i32_256 = arith.constant 32 : i32
    %882 = arith.muli %arg0, %c32_i32_256 : i32
    %c23_i32 = arith.constant 23 : i32
    %883 = arith.addi %882, %c23_i32 : i32
    %c3_i32_257 = arith.constant 3 : i32
    %884 = arith.muli %883, %c3_i32_257 : i32
    %c0_i32_258 = arith.constant 0 : i32
    %885 = arith.addi %884, %c0_i32_258 : i32
    %886 = arith.index_cast %885 : i32 to index
    %887 = memref.load %arg2[%886] : memref<192xf32, #tpu.memory_space<smem>>
    %c3_i32_259 = arith.constant 3 : i32
    %888 = arith.muli %883, %c3_i32_259 : i32
    %c1_i32_260 = arith.constant 1 : i32
    %889 = arith.addi %888, %c1_i32_260 : i32
    %890 = arith.index_cast %889 : i32 to index
    %891 = memref.load %arg2[%890] : memref<192xf32, #tpu.memory_space<smem>>
    %c3_i32_261 = arith.constant 3 : i32
    %892 = arith.muli %883, %c3_i32_261 : i32
    %c2_i32_262 = arith.constant 2 : i32
    %893 = arith.addi %892, %c2_i32_262 : i32
    %894 = arith.index_cast %893 : i32 to index
    %895 = memref.load %arg2[%894] : memref<192xf32, #tpu.memory_space<smem>>
    %896 = arith.index_cast %883 : i32 to index
    %897 = memref.load %arg3[%896] : memref<64xf32, #tpu.memory_space<smem>>
    %898 = vector.broadcast %887 : f32 to vector<2x298xf32>
    %899 = arith.mulf %4, %898 : vector<2x298xf32>
    %900 = vector.broadcast %891 : f32 to vector<2x298xf32>
    %901 = arith.mulf %5, %900 : vector<2x298xf32>
    %902 = arith.addf %899, %901 : vector<2x298xf32>
    %903 = vector.broadcast %895 : f32 to vector<2x298xf32>
    %904 = arith.mulf %6, %903 : vector<2x298xf32>
    %905 = arith.addf %902, %904 : vector<2x298xf32>
    %906 = vector.broadcast %897 : f32 to vector<2x298xf32>
    %907 = arith.addf %905, %906 : vector<2x298xf32>
    %cst_263 = arith.constant 0.000000e+00 : f32
    %908 = vector.broadcast %cst_263 : f32 to vector<2x298xf32>
    %909 = arith.maximumf %907, %908 : vector<2x298xf32>
    %910 = vector.extract_strided_slice %909 {offsets = [0, 0], sizes = [2, 296], strides = [1, 1]} : vector<2x298xf32> to vector<2x296xf32>
    %911 = vector.extract_strided_slice %909 {offsets = [0, 1], sizes = [2, 296], strides = [1, 1]} : vector<2x298xf32> to vector<2x296xf32>
    %912 = arith.maximumf %910, %911 : vector<2x296xf32>
    %913 = vector.extract_strided_slice %909 {offsets = [0, 2], sizes = [2, 296], strides = [1, 1]} : vector<2x298xf32> to vector<2x296xf32>
    %914 = arith.maximumf %912, %913 : vector<2x296xf32>
    %915 = arith.truncf %914 : vector<2x296xf32> to vector<2x296xbf16>
    %c23 = arith.constant 23 : index
    %c0_264 = arith.constant 0 : index
    %c0_265 = arith.constant 0 : index
    %916 = vector.load %arg4[%c23, %c0_264, %c0_265] : memref<32x296x42xbf16, #tpu.memory_space<vmem>>, vector<1x296x42xbf16>
    %917 = vector.shape_cast %916 : vector<1x296x42xbf16> to vector<296x42xbf16>
    %cst_266 = arith.constant dense<0.000000e+00> : vector<2x42xf32>
    %918 = tpu.matmul %915, %917, %cst_266 {dimension_numbers = #tpu.dot_dimension_numbers<[1], [0], [0], [1], [0, 0, 1, 1], [], []>} : vector<2x296xbf16>, vector<296x42xbf16>, vector<2x42xf32> -> vector<2x42xf32>
    %919 = arith.addf %881, %918 : vector<2x42xf32>
    %c32_i32_267 = arith.constant 32 : i32
    %920 = arith.muli %arg0, %c32_i32_267 : i32
    %c24_i32 = arith.constant 24 : i32
    %921 = arith.addi %920, %c24_i32 : i32
    %c3_i32_268 = arith.constant 3 : i32
    %922 = arith.muli %921, %c3_i32_268 : i32
    %c0_i32_269 = arith.constant 0 : i32
    %923 = arith.addi %922, %c0_i32_269 : i32
    %924 = arith.index_cast %923 : i32 to index
    %925 = memref.load %arg2[%924] : memref<192xf32, #tpu.memory_space<smem>>
    %c3_i32_270 = arith.constant 3 : i32
    %926 = arith.muli %921, %c3_i32_270 : i32
    %c1_i32_271 = arith.constant 1 : i32
    %927 = arith.addi %926, %c1_i32_271 : i32
    %928 = arith.index_cast %927 : i32 to index
    %929 = memref.load %arg2[%928] : memref<192xf32, #tpu.memory_space<smem>>
    %c3_i32_272 = arith.constant 3 : i32
    %930 = arith.muli %921, %c3_i32_272 : i32
    %c2_i32_273 = arith.constant 2 : i32
    %931 = arith.addi %930, %c2_i32_273 : i32
    %932 = arith.index_cast %931 : i32 to index
    %933 = memref.load %arg2[%932] : memref<192xf32, #tpu.memory_space<smem>>
    %934 = arith.index_cast %921 : i32 to index
    %935 = memref.load %arg3[%934] : memref<64xf32, #tpu.memory_space<smem>>
    %936 = vector.broadcast %925 : f32 to vector<2x298xf32>
    %937 = arith.mulf %4, %936 : vector<2x298xf32>
    %938 = vector.broadcast %929 : f32 to vector<2x298xf32>
    %939 = arith.mulf %5, %938 : vector<2x298xf32>
    %940 = arith.addf %937, %939 : vector<2x298xf32>
    %941 = vector.broadcast %933 : f32 to vector<2x298xf32>
    %942 = arith.mulf %6, %941 : vector<2x298xf32>
    %943 = arith.addf %940, %942 : vector<2x298xf32>
    %944 = vector.broadcast %935 : f32 to vector<2x298xf32>
    %945 = arith.addf %943, %944 : vector<2x298xf32>
    %cst_274 = arith.constant 0.000000e+00 : f32
    %946 = vector.broadcast %cst_274 : f32 to vector<2x298xf32>
    %947 = arith.maximumf %945, %946 : vector<2x298xf32>
    %948 = vector.extract_strided_slice %947 {offsets = [0, 0], sizes = [2, 296], strides = [1, 1]} : vector<2x298xf32> to vector<2x296xf32>
    %949 = vector.extract_strided_slice %947 {offsets = [0, 1], sizes = [2, 296], strides = [1, 1]} : vector<2x298xf32> to vector<2x296xf32>
    %950 = arith.maximumf %948, %949 : vector<2x296xf32>
    %951 = vector.extract_strided_slice %947 {offsets = [0, 2], sizes = [2, 296], strides = [1, 1]} : vector<2x298xf32> to vector<2x296xf32>
    %952 = arith.maximumf %950, %951 : vector<2x296xf32>
    %953 = arith.truncf %952 : vector<2x296xf32> to vector<2x296xbf16>
    %c24 = arith.constant 24 : index
    %c0_275 = arith.constant 0 : index
    %c0_276 = arith.constant 0 : index
    %954 = vector.load %arg4[%c24, %c0_275, %c0_276] : memref<32x296x42xbf16, #tpu.memory_space<vmem>>, vector<1x296x42xbf16>
    %955 = vector.shape_cast %954 : vector<1x296x42xbf16> to vector<296x42xbf16>
    %cst_277 = arith.constant dense<0.000000e+00> : vector<2x42xf32>
    %956 = tpu.matmul %953, %955, %cst_277 {dimension_numbers = #tpu.dot_dimension_numbers<[1], [0], [0], [1], [0, 0, 1, 1], [], []>} : vector<2x296xbf16>, vector<296x42xbf16>, vector<2x42xf32> -> vector<2x42xf32>
    %957 = arith.addf %919, %956 : vector<2x42xf32>
    %c32_i32_278 = arith.constant 32 : i32
    %958 = arith.muli %arg0, %c32_i32_278 : i32
    %c25_i32 = arith.constant 25 : i32
    %959 = arith.addi %958, %c25_i32 : i32
    %c3_i32_279 = arith.constant 3 : i32
    %960 = arith.muli %959, %c3_i32_279 : i32
    %c0_i32_280 = arith.constant 0 : i32
    %961 = arith.addi %960, %c0_i32_280 : i32
    %962 = arith.index_cast %961 : i32 to index
    %963 = memref.load %arg2[%962] : memref<192xf32, #tpu.memory_space<smem>>
    %c3_i32_281 = arith.constant 3 : i32
    %964 = arith.muli %959, %c3_i32_281 : i32
    %c1_i32_282 = arith.constant 1 : i32
    %965 = arith.addi %964, %c1_i32_282 : i32
    %966 = arith.index_cast %965 : i32 to index
    %967 = memref.load %arg2[%966] : memref<192xf32, #tpu.memory_space<smem>>
    %c3_i32_283 = arith.constant 3 : i32
    %968 = arith.muli %959, %c3_i32_283 : i32
    %c2_i32_284 = arith.constant 2 : i32
    %969 = arith.addi %968, %c2_i32_284 : i32
    %970 = arith.index_cast %969 : i32 to index
    %971 = memref.load %arg2[%970] : memref<192xf32, #tpu.memory_space<smem>>
    %972 = arith.index_cast %959 : i32 to index
    %973 = memref.load %arg3[%972] : memref<64xf32, #tpu.memory_space<smem>>
    %974 = vector.broadcast %963 : f32 to vector<2x298xf32>
    %975 = arith.mulf %4, %974 : vector<2x298xf32>
    %976 = vector.broadcast %967 : f32 to vector<2x298xf32>
    %977 = arith.mulf %5, %976 : vector<2x298xf32>
    %978 = arith.addf %975, %977 : vector<2x298xf32>
    %979 = vector.broadcast %971 : f32 to vector<2x298xf32>
    %980 = arith.mulf %6, %979 : vector<2x298xf32>
    %981 = arith.addf %978, %980 : vector<2x298xf32>
    %982 = vector.broadcast %973 : f32 to vector<2x298xf32>
    %983 = arith.addf %981, %982 : vector<2x298xf32>
    %cst_285 = arith.constant 0.000000e+00 : f32
    %984 = vector.broadcast %cst_285 : f32 to vector<2x298xf32>
    %985 = arith.maximumf %983, %984 : vector<2x298xf32>
    %986 = vector.extract_strided_slice %985 {offsets = [0, 0], sizes = [2, 296], strides = [1, 1]} : vector<2x298xf32> to vector<2x296xf32>
    %987 = vector.extract_strided_slice %985 {offsets = [0, 1], sizes = [2, 296], strides = [1, 1]} : vector<2x298xf32> to vector<2x296xf32>
    %988 = arith.maximumf %986, %987 : vector<2x296xf32>
    %989 = vector.extract_strided_slice %985 {offsets = [0, 2], sizes = [2, 296], strides = [1, 1]} : vector<2x298xf32> to vector<2x296xf32>
    %990 = arith.maximumf %988, %989 : vector<2x296xf32>
    %991 = arith.truncf %990 : vector<2x296xf32> to vector<2x296xbf16>
    %c25 = arith.constant 25 : index
    %c0_286 = arith.constant 0 : index
    %c0_287 = arith.constant 0 : index
    %992 = vector.load %arg4[%c25, %c0_286, %c0_287] : memref<32x296x42xbf16, #tpu.memory_space<vmem>>, vector<1x296x42xbf16>
    %993 = vector.shape_cast %992 : vector<1x296x42xbf16> to vector<296x42xbf16>
    %cst_288 = arith.constant dense<0.000000e+00> : vector<2x42xf32>
    %994 = tpu.matmul %991, %993, %cst_288 {dimension_numbers = #tpu.dot_dimension_numbers<[1], [0], [0], [1], [0, 0, 1, 1], [], []>} : vector<2x296xbf16>, vector<296x42xbf16>, vector<2x42xf32> -> vector<2x42xf32>
    %995 = arith.addf %957, %994 : vector<2x42xf32>
    %c32_i32_289 = arith.constant 32 : i32
    %996 = arith.muli %arg0, %c32_i32_289 : i32
    %c26_i32 = arith.constant 26 : i32
    %997 = arith.addi %996, %c26_i32 : i32
    %c3_i32_290 = arith.constant 3 : i32
    %998 = arith.muli %997, %c3_i32_290 : i32
    %c0_i32_291 = arith.constant 0 : i32
    %999 = arith.addi %998, %c0_i32_291 : i32
    %1000 = arith.index_cast %999 : i32 to index
    %1001 = memref.load %arg2[%1000] : memref<192xf32, #tpu.memory_space<smem>>
    %c3_i32_292 = arith.constant 3 : i32
    %1002 = arith.muli %997, %c3_i32_292 : i32
    %c1_i32_293 = arith.constant 1 : i32
    %1003 = arith.addi %1002, %c1_i32_293 : i32
    %1004 = arith.index_cast %1003 : i32 to index
    %1005 = memref.load %arg2[%1004] : memref<192xf32, #tpu.memory_space<smem>>
    %c3_i32_294 = arith.constant 3 : i32
    %1006 = arith.muli %997, %c3_i32_294 : i32
    %c2_i32_295 = arith.constant 2 : i32
    %1007 = arith.addi %1006, %c2_i32_295 : i32
    %1008 = arith.index_cast %1007 : i32 to index
    %1009 = memref.load %arg2[%1008] : memref<192xf32, #tpu.memory_space<smem>>
    %1010 = arith.index_cast %997 : i32 to index
    %1011 = memref.load %arg3[%1010] : memref<64xf32, #tpu.memory_space<smem>>
    %1012 = vector.broadcast %1001 : f32 to vector<2x298xf32>
    %1013 = arith.mulf %4, %1012 : vector<2x298xf32>
    %1014 = vector.broadcast %1005 : f32 to vector<2x298xf32>
    %1015 = arith.mulf %5, %1014 : vector<2x298xf32>
    %1016 = arith.addf %1013, %1015 : vector<2x298xf32>
    %1017 = vector.broadcast %1009 : f32 to vector<2x298xf32>
    %1018 = arith.mulf %6, %1017 : vector<2x298xf32>
    %1019 = arith.addf %1016, %1018 : vector<2x298xf32>
    %1020 = vector.broadcast %1011 : f32 to vector<2x298xf32>
    %1021 = arith.addf %1019, %1020 : vector<2x298xf32>
    %cst_296 = arith.constant 0.000000e+00 : f32
    %1022 = vector.broadcast %cst_296 : f32 to vector<2x298xf32>
    %1023 = arith.maximumf %1021, %1022 : vector<2x298xf32>
    %1024 = vector.extract_strided_slice %1023 {offsets = [0, 0], sizes = [2, 296], strides = [1, 1]} : vector<2x298xf32> to vector<2x296xf32>
    %1025 = vector.extract_strided_slice %1023 {offsets = [0, 1], sizes = [2, 296], strides = [1, 1]} : vector<2x298xf32> to vector<2x296xf32>
    %1026 = arith.maximumf %1024, %1025 : vector<2x296xf32>
    %1027 = vector.extract_strided_slice %1023 {offsets = [0, 2], sizes = [2, 296], strides = [1, 1]} : vector<2x298xf32> to vector<2x296xf32>
    %1028 = arith.maximumf %1026, %1027 : vector<2x296xf32>
    %1029 = arith.truncf %1028 : vector<2x296xf32> to vector<2x296xbf16>
    %c26 = arith.constant 26 : index
    %c0_297 = arith.constant 0 : index
    %c0_298 = arith.constant 0 : index
    %1030 = vector.load %arg4[%c26, %c0_297, %c0_298] : memref<32x296x42xbf16, #tpu.memory_space<vmem>>, vector<1x296x42xbf16>
    %1031 = vector.shape_cast %1030 : vector<1x296x42xbf16> to vector<296x42xbf16>
    %cst_299 = arith.constant dense<0.000000e+00> : vector<2x42xf32>
    %1032 = tpu.matmul %1029, %1031, %cst_299 {dimension_numbers = #tpu.dot_dimension_numbers<[1], [0], [0], [1], [0, 0, 1, 1], [], []>} : vector<2x296xbf16>, vector<296x42xbf16>, vector<2x42xf32> -> vector<2x42xf32>
    %1033 = arith.addf %995, %1032 : vector<2x42xf32>
    %c32_i32_300 = arith.constant 32 : i32
    %1034 = arith.muli %arg0, %c32_i32_300 : i32
    %c27_i32 = arith.constant 27 : i32
    %1035 = arith.addi %1034, %c27_i32 : i32
    %c3_i32_301 = arith.constant 3 : i32
    %1036 = arith.muli %1035, %c3_i32_301 : i32
    %c0_i32_302 = arith.constant 0 : i32
    %1037 = arith.addi %1036, %c0_i32_302 : i32
    %1038 = arith.index_cast %1037 : i32 to index
    %1039 = memref.load %arg2[%1038] : memref<192xf32, #tpu.memory_space<smem>>
    %c3_i32_303 = arith.constant 3 : i32
    %1040 = arith.muli %1035, %c3_i32_303 : i32
    %c1_i32_304 = arith.constant 1 : i32
    %1041 = arith.addi %1040, %c1_i32_304 : i32
    %1042 = arith.index_cast %1041 : i32 to index
    %1043 = memref.load %arg2[%1042] : memref<192xf32, #tpu.memory_space<smem>>
    %c3_i32_305 = arith.constant 3 : i32
    %1044 = arith.muli %1035, %c3_i32_305 : i32
    %c2_i32_306 = arith.constant 2 : i32
    %1045 = arith.addi %1044, %c2_i32_306 : i32
    %1046 = arith.index_cast %1045 : i32 to index
    %1047 = memref.load %arg2[%1046] : memref<192xf32, #tpu.memory_space<smem>>
    %1048 = arith.index_cast %1035 : i32 to index
    %1049 = memref.load %arg3[%1048] : memref<64xf32, #tpu.memory_space<smem>>
    %1050 = vector.broadcast %1039 : f32 to vector<2x298xf32>
    %1051 = arith.mulf %4, %1050 : vector<2x298xf32>
    %1052 = vector.broadcast %1043 : f32 to vector<2x298xf32>
    %1053 = arith.mulf %5, %1052 : vector<2x298xf32>
    %1054 = arith.addf %1051, %1053 : vector<2x298xf32>
    %1055 = vector.broadcast %1047 : f32 to vector<2x298xf32>
    %1056 = arith.mulf %6, %1055 : vector<2x298xf32>
    %1057 = arith.addf %1054, %1056 : vector<2x298xf32>
    %1058 = vector.broadcast %1049 : f32 to vector<2x298xf32>
    %1059 = arith.addf %1057, %1058 : vector<2x298xf32>
    %cst_307 = arith.constant 0.000000e+00 : f32
    %1060 = vector.broadcast %cst_307 : f32 to vector<2x298xf32>
    %1061 = arith.maximumf %1059, %1060 : vector<2x298xf32>
    %1062 = vector.extract_strided_slice %1061 {offsets = [0, 0], sizes = [2, 296], strides = [1, 1]} : vector<2x298xf32> to vector<2x296xf32>
    %1063 = vector.extract_strided_slice %1061 {offsets = [0, 1], sizes = [2, 296], strides = [1, 1]} : vector<2x298xf32> to vector<2x296xf32>
    %1064 = arith.maximumf %1062, %1063 : vector<2x296xf32>
    %1065 = vector.extract_strided_slice %1061 {offsets = [0, 2], sizes = [2, 296], strides = [1, 1]} : vector<2x298xf32> to vector<2x296xf32>
    %1066 = arith.maximumf %1064, %1065 : vector<2x296xf32>
    %1067 = arith.truncf %1066 : vector<2x296xf32> to vector<2x296xbf16>
    %c27 = arith.constant 27 : index
    %c0_308 = arith.constant 0 : index
    %c0_309 = arith.constant 0 : index
    %1068 = vector.load %arg4[%c27, %c0_308, %c0_309] : memref<32x296x42xbf16, #tpu.memory_space<vmem>>, vector<1x296x42xbf16>
    %1069 = vector.shape_cast %1068 : vector<1x296x42xbf16> to vector<296x42xbf16>
    %cst_310 = arith.constant dense<0.000000e+00> : vector<2x42xf32>
    %1070 = tpu.matmul %1067, %1069, %cst_310 {dimension_numbers = #tpu.dot_dimension_numbers<[1], [0], [0], [1], [0, 0, 1, 1], [], []>} : vector<2x296xbf16>, vector<296x42xbf16>, vector<2x42xf32> -> vector<2x42xf32>
    %1071 = arith.addf %1033, %1070 : vector<2x42xf32>
    %c32_i32_311 = arith.constant 32 : i32
    %1072 = arith.muli %arg0, %c32_i32_311 : i32
    %c28_i32 = arith.constant 28 : i32
    %1073 = arith.addi %1072, %c28_i32 : i32
    %c3_i32_312 = arith.constant 3 : i32
    %1074 = arith.muli %1073, %c3_i32_312 : i32
    %c0_i32_313 = arith.constant 0 : i32
    %1075 = arith.addi %1074, %c0_i32_313 : i32
    %1076 = arith.index_cast %1075 : i32 to index
    %1077 = memref.load %arg2[%1076] : memref<192xf32, #tpu.memory_space<smem>>
    %c3_i32_314 = arith.constant 3 : i32
    %1078 = arith.muli %1073, %c3_i32_314 : i32
    %c1_i32_315 = arith.constant 1 : i32
    %1079 = arith.addi %1078, %c1_i32_315 : i32
    %1080 = arith.index_cast %1079 : i32 to index
    %1081 = memref.load %arg2[%1080] : memref<192xf32, #tpu.memory_space<smem>>
    %c3_i32_316 = arith.constant 3 : i32
    %1082 = arith.muli %1073, %c3_i32_316 : i32
    %c2_i32_317 = arith.constant 2 : i32
    %1083 = arith.addi %1082, %c2_i32_317 : i32
    %1084 = arith.index_cast %1083 : i32 to index
    %1085 = memref.load %arg2[%1084] : memref<192xf32, #tpu.memory_space<smem>>
    %1086 = arith.index_cast %1073 : i32 to index
    %1087 = memref.load %arg3[%1086] : memref<64xf32, #tpu.memory_space<smem>>
    %1088 = vector.broadcast %1077 : f32 to vector<2x298xf32>
    %1089 = arith.mulf %4, %1088 : vector<2x298xf32>
    %1090 = vector.broadcast %1081 : f32 to vector<2x298xf32>
    %1091 = arith.mulf %5, %1090 : vector<2x298xf32>
    %1092 = arith.addf %1089, %1091 : vector<2x298xf32>
    %1093 = vector.broadcast %1085 : f32 to vector<2x298xf32>
    %1094 = arith.mulf %6, %1093 : vector<2x298xf32>
    %1095 = arith.addf %1092, %1094 : vector<2x298xf32>
    %1096 = vector.broadcast %1087 : f32 to vector<2x298xf32>
    %1097 = arith.addf %1095, %1096 : vector<2x298xf32>
    %cst_318 = arith.constant 0.000000e+00 : f32
    %1098 = vector.broadcast %cst_318 : f32 to vector<2x298xf32>
    %1099 = arith.maximumf %1097, %1098 : vector<2x298xf32>
    %1100 = vector.extract_strided_slice %1099 {offsets = [0, 0], sizes = [2, 296], strides = [1, 1]} : vector<2x298xf32> to vector<2x296xf32>
    %1101 = vector.extract_strided_slice %1099 {offsets = [0, 1], sizes = [2, 296], strides = [1, 1]} : vector<2x298xf32> to vector<2x296xf32>
    %1102 = arith.maximumf %1100, %1101 : vector<2x296xf32>
    %1103 = vector.extract_strided_slice %1099 {offsets = [0, 2], sizes = [2, 296], strides = [1, 1]} : vector<2x298xf32> to vector<2x296xf32>
    %1104 = arith.maximumf %1102, %1103 : vector<2x296xf32>
    %1105 = arith.truncf %1104 : vector<2x296xf32> to vector<2x296xbf16>
    %c28 = arith.constant 28 : index
    %c0_319 = arith.constant 0 : index
    %c0_320 = arith.constant 0 : index
    %1106 = vector.load %arg4[%c28, %c0_319, %c0_320] : memref<32x296x42xbf16, #tpu.memory_space<vmem>>, vector<1x296x42xbf16>
    %1107 = vector.shape_cast %1106 : vector<1x296x42xbf16> to vector<296x42xbf16>
    %cst_321 = arith.constant dense<0.000000e+00> : vector<2x42xf32>
    %1108 = tpu.matmul %1105, %1107, %cst_321 {dimension_numbers = #tpu.dot_dimension_numbers<[1], [0], [0], [1], [0, 0, 1, 1], [], []>} : vector<2x296xbf16>, vector<296x42xbf16>, vector<2x42xf32> -> vector<2x42xf32>
    %1109 = arith.addf %1071, %1108 : vector<2x42xf32>
    %c32_i32_322 = arith.constant 32 : i32
    %1110 = arith.muli %arg0, %c32_i32_322 : i32
    %c29_i32 = arith.constant 29 : i32
    %1111 = arith.addi %1110, %c29_i32 : i32
    %c3_i32_323 = arith.constant 3 : i32
    %1112 = arith.muli %1111, %c3_i32_323 : i32
    %c0_i32_324 = arith.constant 0 : i32
    %1113 = arith.addi %1112, %c0_i32_324 : i32
    %1114 = arith.index_cast %1113 : i32 to index
    %1115 = memref.load %arg2[%1114] : memref<192xf32, #tpu.memory_space<smem>>
    %c3_i32_325 = arith.constant 3 : i32
    %1116 = arith.muli %1111, %c3_i32_325 : i32
    %c1_i32_326 = arith.constant 1 : i32
    %1117 = arith.addi %1116, %c1_i32_326 : i32
    %1118 = arith.index_cast %1117 : i32 to index
    %1119 = memref.load %arg2[%1118] : memref<192xf32, #tpu.memory_space<smem>>
    %c3_i32_327 = arith.constant 3 : i32
    %1120 = arith.muli %1111, %c3_i32_327 : i32
    %c2_i32_328 = arith.constant 2 : i32
    %1121 = arith.addi %1120, %c2_i32_328 : i32
    %1122 = arith.index_cast %1121 : i32 to index
    %1123 = memref.load %arg2[%1122] : memref<192xf32, #tpu.memory_space<smem>>
    %1124 = arith.index_cast %1111 : i32 to index
    %1125 = memref.load %arg3[%1124] : memref<64xf32, #tpu.memory_space<smem>>
    %1126 = vector.broadcast %1115 : f32 to vector<2x298xf32>
    %1127 = arith.mulf %4, %1126 : vector<2x298xf32>
    %1128 = vector.broadcast %1119 : f32 to vector<2x298xf32>
    %1129 = arith.mulf %5, %1128 : vector<2x298xf32>
    %1130 = arith.addf %1127, %1129 : vector<2x298xf32>
    %1131 = vector.broadcast %1123 : f32 to vector<2x298xf32>
    %1132 = arith.mulf %6, %1131 : vector<2x298xf32>
    %1133 = arith.addf %1130, %1132 : vector<2x298xf32>
    %1134 = vector.broadcast %1125 : f32 to vector<2x298xf32>
    %1135 = arith.addf %1133, %1134 : vector<2x298xf32>
    %cst_329 = arith.constant 0.000000e+00 : f32
    %1136 = vector.broadcast %cst_329 : f32 to vector<2x298xf32>
    %1137 = arith.maximumf %1135, %1136 : vector<2x298xf32>
    %1138 = vector.extract_strided_slice %1137 {offsets = [0, 0], sizes = [2, 296], strides = [1, 1]} : vector<2x298xf32> to vector<2x296xf32>
    %1139 = vector.extract_strided_slice %1137 {offsets = [0, 1], sizes = [2, 296], strides = [1, 1]} : vector<2x298xf32> to vector<2x296xf32>
    %1140 = arith.maximumf %1138, %1139 : vector<2x296xf32>
    %1141 = vector.extract_strided_slice %1137 {offsets = [0, 2], sizes = [2, 296], strides = [1, 1]} : vector<2x298xf32> to vector<2x296xf32>
    %1142 = arith.maximumf %1140, %1141 : vector<2x296xf32>
    %1143 = arith.truncf %1142 : vector<2x296xf32> to vector<2x296xbf16>
    %c29 = arith.constant 29 : index
    %c0_330 = arith.constant 0 : index
    %c0_331 = arith.constant 0 : index
    %1144 = vector.load %arg4[%c29, %c0_330, %c0_331] : memref<32x296x42xbf16, #tpu.memory_space<vmem>>, vector<1x296x42xbf16>
    %1145 = vector.shape_cast %1144 : vector<1x296x42xbf16> to vector<296x42xbf16>
    %cst_332 = arith.constant dense<0.000000e+00> : vector<2x42xf32>
    %1146 = tpu.matmul %1143, %1145, %cst_332 {dimension_numbers = #tpu.dot_dimension_numbers<[1], [0], [0], [1], [0, 0, 1, 1], [], []>} : vector<2x296xbf16>, vector<296x42xbf16>, vector<2x42xf32> -> vector<2x42xf32>
    %1147 = arith.addf %1109, %1146 : vector<2x42xf32>
    %c32_i32_333 = arith.constant 32 : i32
    %1148 = arith.muli %arg0, %c32_i32_333 : i32
    %c30_i32 = arith.constant 30 : i32
    %1149 = arith.addi %1148, %c30_i32 : i32
    %c3_i32_334 = arith.constant 3 : i32
    %1150 = arith.muli %1149, %c3_i32_334 : i32
    %c0_i32_335 = arith.constant 0 : i32
    %1151 = arith.addi %1150, %c0_i32_335 : i32
    %1152 = arith.index_cast %1151 : i32 to index
    %1153 = memref.load %arg2[%1152] : memref<192xf32, #tpu.memory_space<smem>>
    %c3_i32_336 = arith.constant 3 : i32
    %1154 = arith.muli %1149, %c3_i32_336 : i32
    %c1_i32_337 = arith.constant 1 : i32
    %1155 = arith.addi %1154, %c1_i32_337 : i32
    %1156 = arith.index_cast %1155 : i32 to index
    %1157 = memref.load %arg2[%1156] : memref<192xf32, #tpu.memory_space<smem>>
    %c3_i32_338 = arith.constant 3 : i32
    %1158 = arith.muli %1149, %c3_i32_338 : i32
    %c2_i32_339 = arith.constant 2 : i32
    %1159 = arith.addi %1158, %c2_i32_339 : i32
    %1160 = arith.index_cast %1159 : i32 to index
    %1161 = memref.load %arg2[%1160] : memref<192xf32, #tpu.memory_space<smem>>
    %1162 = arith.index_cast %1149 : i32 to index
    %1163 = memref.load %arg3[%1162] : memref<64xf32, #tpu.memory_space<smem>>
    %1164 = vector.broadcast %1153 : f32 to vector<2x298xf32>
    %1165 = arith.mulf %4, %1164 : vector<2x298xf32>
    %1166 = vector.broadcast %1157 : f32 to vector<2x298xf32>
    %1167 = arith.mulf %5, %1166 : vector<2x298xf32>
    %1168 = arith.addf %1165, %1167 : vector<2x298xf32>
    %1169 = vector.broadcast %1161 : f32 to vector<2x298xf32>
    %1170 = arith.mulf %6, %1169 : vector<2x298xf32>
    %1171 = arith.addf %1168, %1170 : vector<2x298xf32>
    %1172 = vector.broadcast %1163 : f32 to vector<2x298xf32>
    %1173 = arith.addf %1171, %1172 : vector<2x298xf32>
    %cst_340 = arith.constant 0.000000e+00 : f32
    %1174 = vector.broadcast %cst_340 : f32 to vector<2x298xf32>
    %1175 = arith.maximumf %1173, %1174 : vector<2x298xf32>
    %1176 = vector.extract_strided_slice %1175 {offsets = [0, 0], sizes = [2, 296], strides = [1, 1]} : vector<2x298xf32> to vector<2x296xf32>
    %1177 = vector.extract_strided_slice %1175 {offsets = [0, 1], sizes = [2, 296], strides = [1, 1]} : vector<2x298xf32> to vector<2x296xf32>
    %1178 = arith.maximumf %1176, %1177 : vector<2x296xf32>
    %1179 = vector.extract_strided_slice %1175 {offsets = [0, 2], sizes = [2, 296], strides = [1, 1]} : vector<2x298xf32> to vector<2x296xf32>
    %1180 = arith.maximumf %1178, %1179 : vector<2x296xf32>
    %1181 = arith.truncf %1180 : vector<2x296xf32> to vector<2x296xbf16>
    %c30 = arith.constant 30 : index
    %c0_341 = arith.constant 0 : index
    %c0_342 = arith.constant 0 : index
    %1182 = vector.load %arg4[%c30, %c0_341, %c0_342] : memref<32x296x42xbf16, #tpu.memory_space<vmem>>, vector<1x296x42xbf16>
    %1183 = vector.shape_cast %1182 : vector<1x296x42xbf16> to vector<296x42xbf16>
    %cst_343 = arith.constant dense<0.000000e+00> : vector<2x42xf32>
    %1184 = tpu.matmul %1181, %1183, %cst_343 {dimension_numbers = #tpu.dot_dimension_numbers<[1], [0], [0], [1], [0, 0, 1, 1], [], []>} : vector<2x296xbf16>, vector<296x42xbf16>, vector<2x42xf32> -> vector<2x42xf32>
    %1185 = arith.addf %1147, %1184 : vector<2x42xf32>
    %c32_i32_344 = arith.constant 32 : i32
    %1186 = arith.muli %arg0, %c32_i32_344 : i32
    %c31_i32 = arith.constant 31 : i32
    %1187 = arith.addi %1186, %c31_i32 : i32
    %c3_i32_345 = arith.constant 3 : i32
    %1188 = arith.muli %1187, %c3_i32_345 : i32
    %c0_i32_346 = arith.constant 0 : i32
    %1189 = arith.addi %1188, %c0_i32_346 : i32
    %1190 = arith.index_cast %1189 : i32 to index
    %1191 = memref.load %arg2[%1190] : memref<192xf32, #tpu.memory_space<smem>>
    %c3_i32_347 = arith.constant 3 : i32
    %1192 = arith.muli %1187, %c3_i32_347 : i32
    %c1_i32_348 = arith.constant 1 : i32
    %1193 = arith.addi %1192, %c1_i32_348 : i32
    %1194 = arith.index_cast %1193 : i32 to index
    %1195 = memref.load %arg2[%1194] : memref<192xf32, #tpu.memory_space<smem>>
    %c3_i32_349 = arith.constant 3 : i32
    %1196 = arith.muli %1187, %c3_i32_349 : i32
    %c2_i32_350 = arith.constant 2 : i32
    %1197 = arith.addi %1196, %c2_i32_350 : i32
    %1198 = arith.index_cast %1197 : i32 to index
    %1199 = memref.load %arg2[%1198] : memref<192xf32, #tpu.memory_space<smem>>
    %1200 = arith.index_cast %1187 : i32 to index
    %1201 = memref.load %arg3[%1200] : memref<64xf32, #tpu.memory_space<smem>>
    %1202 = vector.broadcast %1191 : f32 to vector<2x298xf32>
    %1203 = arith.mulf %4, %1202 : vector<2x298xf32>
    %1204 = vector.broadcast %1195 : f32 to vector<2x298xf32>
    %1205 = arith.mulf %5, %1204 : vector<2x298xf32>
    %1206 = arith.addf %1203, %1205 : vector<2x298xf32>
    %1207 = vector.broadcast %1199 : f32 to vector<2x298xf32>
    %1208 = arith.mulf %6, %1207 : vector<2x298xf32>
    %1209 = arith.addf %1206, %1208 : vector<2x298xf32>
    %1210 = vector.broadcast %1201 : f32 to vector<2x298xf32>
    %1211 = arith.addf %1209, %1210 : vector<2x298xf32>
    %cst_351 = arith.constant 0.000000e+00 : f32
    %1212 = vector.broadcast %cst_351 : f32 to vector<2x298xf32>
    %1213 = arith.maximumf %1211, %1212 : vector<2x298xf32>
    %1214 = vector.extract_strided_slice %1213 {offsets = [0, 0], sizes = [2, 296], strides = [1, 1]} : vector<2x298xf32> to vector<2x296xf32>
    %1215 = vector.extract_strided_slice %1213 {offsets = [0, 1], sizes = [2, 296], strides = [1, 1]} : vector<2x298xf32> to vector<2x296xf32>
    %1216 = arith.maximumf %1214, %1215 : vector<2x296xf32>
    %1217 = vector.extract_strided_slice %1213 {offsets = [0, 2], sizes = [2, 296], strides = [1, 1]} : vector<2x298xf32> to vector<2x296xf32>
    %1218 = arith.maximumf %1216, %1217 : vector<2x296xf32>
    %1219 = arith.truncf %1218 : vector<2x296xf32> to vector<2x296xbf16>
    %c31 = arith.constant 31 : index
    %c0_352 = arith.constant 0 : index
    %c0_353 = arith.constant 0 : index
    %1220 = vector.load %arg4[%c31, %c0_352, %c0_353] : memref<32x296x42xbf16, #tpu.memory_space<vmem>>, vector<1x296x42xbf16>
    %1221 = vector.shape_cast %1220 : vector<1x296x42xbf16> to vector<296x42xbf16>
    %cst_354 = arith.constant dense<0.000000e+00> : vector<2x42xf32>
    %1222 = tpu.matmul %1219, %1221, %cst_354 {dimension_numbers = #tpu.dot_dimension_numbers<[1], [0], [0], [1], [0, 0, 1, 1], [], []>} : vector<2x296xbf16>, vector<296x42xbf16>, vector<2x42xf32> -> vector<2x42xf32>
    %1223 = arith.addf %1185, %1222 : vector<2x42xf32>
    %c0_355 = arith.constant 0 : index
    %c0_356 = arith.constant 0 : index
    %1224 = vector.load %arg7[%c0_355, %c0_356] : memref<2x42xf32, #tpu.memory_space<vmem>>, vector<2x42xf32>
    %1225 = arith.addf %1224, %1223 : vector<2x42xf32>
    %c0_357 = arith.constant 0 : index
    %c0_358 = arith.constant 0 : index
    %1226 = vector.load %arg7[%c0_357, %c0_358] : memref<2x42xf32, #tpu.memory_space<vmem>>, vector<2x42xf32>
    tpu.vector_store %arg7[%c0_357, %c0_358], %1225 {strides = array<i32>} : memref<2x42xf32, #tpu.memory_space<vmem>>, vector<2x42xf32>,
    %c1_i32_359 = arith.constant 1 : i32
    %1227 = arith.cmpi eq, %arg0, %c1_i32_359 : i32
    %1228 = arith.extui %1227 : i1 to i32
    %c0_i32_360 = arith.constant 0 : i32
    %1229 = arith.cmpi ne, %1228, %c0_i32_360 : i32
    scf.if %1229 {
      %c0_361 = arith.constant 0 : index
      %c0_362 = arith.constant 0 : index
      %1230 = vector.load %arg7[%c0_361, %c0_362] : memref<2x42xf32, #tpu.memory_space<vmem>>, vector<2x42xf32>
      %c0_363 = arith.constant 0 : index
      %c0_364 = arith.constant 0 : index
      %1231 = vector.load %arg5[%c0_363, %c0_364] : memref<1x42xf32, #tpu.memory_space<vmem>>, vector<1x42xf32>
      %1232 = vector.broadcast %1231 : vector<1x42xf32> to vector<2x42xf32>
      %1233 = arith.addf %1230, %1232 : vector<2x42xf32>
      %c0_365 = arith.constant 0 : index
      %c0_366 = arith.constant 0 : index
      %1234 = vector.load %arg6[%c0_365, %c0_366] : memref<2x42xf32, #tpu.memory_space<vmem>>, vector<2x42xf32>
      tpu.vector_store %arg6[%c0_365, %c0_366], %1233 {strides = array<i32>} : memref<2x42xf32, #tpu.memory_space<vmem>>, vector<2x42xf32>,
    } else {
    }
    return
  }
  func.func @transform_0(%arg0: i32) -> (i32, i32) {
    %c0_i32 = arith.constant 0 : i32
    %c0_i32_0 = arith.constant 0 : i32
    %c0_i32_1 = arith.constant 0 : i32
    return %c0_i32, %c0_i32_0 : i32, i32
  }
  func.func @transform_1(%arg0: i32) -> i32 {
    %c0_i32 = arith.constant 0 : i32
    %c0_i32_0 = arith.constant 0 : i32
    return %c0_i32 : i32
  }
  func.func @transform_2(%arg0: i32) -> i32 {
    %c0_i32 = arith.constant 0 : i32
    %c0_i32_0 = arith.constant 0 : i32
    return %c0_i32 : i32
  }
  func.func @transform_3(%arg0: i32) -> (i32, i32, i32) {
    %c0_i32 = arith.constant 0 : i32
    %c0_i32_0 = arith.constant 0 : i32
    %c0_i32_1 = arith.constant 0 : i32
    return %arg0, %c0_i32, %c0_i32_0 : i32, i32, i32
  }
  func.func @transform_4(%arg0: i32) -> (i32, i32) {
    %c0_i32 = arith.constant 0 : i32
    %c0_i32_0 = arith.constant 0 : i32
    %c0_i32_1 = arith.constant 0 : i32
    return %c0_i32, %c0_i32_0 : i32, i32
  }
  func.func @transform_5(%arg0: i32) -> (i32, i32) {
    %c0_i32 = arith.constant 0 : i32
    %c0_i32_0 = arith.constant 0 : i32
    %c0_i32_1 = arith.constant 0 : i32
    return %c0_i32, %c0_i32_0 : i32, i32
  }
}

</mosaic_0001>

<bundles_post_ra>
// kernel: tpu_custom_call.1
= control target key start
LH: loop header
LB: loop body
LE: loop exit
PB: predicated region body
PF: predicated region fallthrough
CT: control target
= control target key end

     0   :  { %10 = vsyncpa [#allocation5], 0  ;;  %s16242_s0 = inlined_call_operand.vmem [shape: f32[2,300], index: 0, kind: input, shape index: {}]   ;;  %s16243_s1 = inlined_call_operand.vmem [shape: f32[192], index: 1, kind: input, shape index: {}]   ;;  %s16244_s2 = inlined_call_operand.vmem [shape: f32[64], index: 2, kind: input, shape index: {}]   ;;  %s16245_s3 = inlined_call_operand.vmem [shape: bf16[64,296,42], index: 3, kind: input, shape index: {}]   ;;  %s16246_s4 = inlined_call_operand.vmem [shape: f32[1,42], index: 4, kind: input, shape index: {}]   ;;  %s16247_s5 = inlined_call_operand.hbm [shape: f32[2,42], index: 5, kind: output, shape index: {}]  }
   0x1   :  { %11 = vsyncpa [#allocation7], 0 }
   0x2   :  { %12 = vsyncpa [#allocation4], 0  ;;  %s13762_s18 = smov 0  }
   0x3 LB: > { %s13768_s19 = sadd.s32 4294967295, %s13721_s18   ;;  %p10035_p0 = scmp.ge.s32.totalorder %s13721_s18, 1  ;;  %s13721_s18 = sphi %s13762_s18, %s18_s18  }
   0x4   : > { %p154_p1 = scmp.lt.s32.totalorder %s13721_s18, 3  ;;  %s170_s22 = sshll.u32 %s16243_s1, 4  ;;  %s171_s22 = int_to_ptr.vmem [resolvable:$true] %s170_s22 }
   0x5   : > { %p16248_p4 = scmp.eq.s32.totalorder %s13768_s19, 0  ;;  %s181_s26 = sshll.u32 %s16244_s2, 4  ;;  %s182_s26 = int_to_ptr.vmem [resolvable:$true] %s181_s26 }
   0x6   : > { %p13776_p3 = pnand %p10035_p0, %p154_p1  ;;  %s13649_s28 = scalar_lea.vmem %s171_s22, 32 }
   0x7   : > { %p13650_p7 = scmp.ne.s32.totalorder %s171_s22, %s13649_s28  ;;  %p13657_p11 = scmp.lt.s32.totalorder %s171_s22, %s171_s22 }
   0x8   : > { %s16250_s23 = scalar_select %p13776_p3, 1, 0 }
   0x9   : > { %p13004_p5 = pneg %p13776_p3  ;;  %p13658_p12 = scmp.lt.s32.totalorder %s13649_s28, %s13649_s28 }
   0xb   : > { %p13788_p6 = pnand %p16248_p4, %p13004_p5  ;;  %p13659_p13 = por %p13658_p12, %p13657_p11 }
   0xd   : > { %p13651_p8 = pneg %p13788_p6 }
   0xf   : > { %p13652_p9 = pnand %p13651_p8, %p13650_p7 }
  0x11   : > { %p13653_p10 = pneg %p13652_p9 }
  0x13   : > { %p13660_p0 = pnand %p13659_p13, %p13653_p10 }
  0x15   : > { %13663 = shalt.err (!%p13660_p0)
}
  0x16   : > { %s13723_s29 = smov [#allocation3]   ;;  %s13664_s30 = scalar_lea.vmem %s182_s26, 16 }
  0x17   : > { %13007 = dma.vmem_to_smem (!%p13788_p6), %s171_s22, 32, %s13723_s29, [#allocation5]  }
  0x18   : > { %p13665_p1 = scmp.ne.s32.totalorder %s182_s26, %s13664_s30  ;;  %p13672_p4 = scmp.lt.s32.totalorder %s182_s26, %s182_s26 }
  0x19   : > { %p13673_p3 = scmp.lt.s32.totalorder %s13664_s30, %s13664_s30 }
  0x1a   : > { %p13667_p5 = pnand %p13665_p1, %p13651_p8 }
  0x1b   : > { %p13674_p7 = por %p13673_p3, %p13672_p4 }
  0x1c   : > { %p13668_p2 = pneg %p13667_p5 }
  0x1e   : > { %p13675_p9 = pnand %p13674_p7, %p13668_p2 }
  0x20   : > { %13678 = shalt.err (!%p13675_p9)
}
  0x21   : > { %s13724_s6 = smov [#allocation6]   ;;  %p16252_p10 = scmp.ne.s32.totalorder %s16250_s23, 0 }
  0x22   : > { %13010 = dma.vmem_to_smem (!%p13788_p6), %s182_s26, 16, %s13724_s6, [#allocation7]  }
  0x23   : > { %207 = sbr.rel (%p16252_p10) target bundleno = 1633 (0x661), region = 40  ;;  %p16253_p11 = scmp.eq.s32.totalorder (!%p16252_p10), %s13768_s19, 0 }
  0x28   : > { %13708 = dma.done.wait (%p16253_p11), [#allocation5], 32   ;;  %p16254_p12 = pmov %p16253_p11 }
  0x29   : > { %p16255_p8 = pmov %p16253_p11 }
  0x2a   : > { %13710 = vsyncadd (%p16254_p12), [#allocation5], 4294967264 }
  0x2b   : > { %13712 = dma.done.wait (%p16255_p8), [#allocation7], 16   ;;  %p16256_p3 = pmov %p16255_p8 }
  0x2d   : > { %13714 = vsyncadd (%p16256_p3), [#allocation7], 4294967280 }
  0x2e   : > { %217 = sfence }
  0x2f   : > { %s13809_s7 = sshll.u32 %s13768_s19, 5  ;;  %p16257_p4 = scmp.ne.s32.totalorder %s13768_s19, 0 }
  0x30   : > { %p237_p2 = scmp.lt.s32.totalorder %s13809_s7, 63 }
  0x32   : > { %s238_s8 = scalar_select %p237_p2, %s13809_s7, 63 }
  0x33   : > { %247 = sbr.rel (%p16257_p4) target bundleno = 58 (0x3a), region = 52 }
  0x34   : > { %s12991_s9 = smul.u32 148, %s238_s8 }
  0x36   : > { %s13816_s12 = scalar_lea.vmem %s16245_s3, %s12991_s9 }
  0x38   : > { %vm248_vm0 = vcmask 336896   ;;  %v13725_v0 = vmov 0.0  }
  0x39   : > { %249 = vst.msk [vmem:[#allocation2] sm:$0x3] %vm248_vm0, %v13725_v0 }
  0x3a PF: > { %s357_s13 = sadd.s32 1, %s13809_s7  ;;  %s13826_s15 = smul.u32 96, %s13768_s19  ;;  %v13836_v1 = vld [vmem:[%s16242_s0] sm:$0x3f]  ;;  %v13034_v14 = vld [vmem:[%s13816_s12 + $0x10c] sm:$0xff]   ;;  %v13040_v20 = vld [vmem:[%s13816_s12 + $0xf4] sm:$0xff]  }
  0x3b   : > { %s13823_s14 = smul.u32 3, %s357_s13  ;;  %s858_s16 = sadd.s32 2, %s13809_s7  ;;  %v13035_v15 = vld [vmem:[%s13816_s12 + $0xcc] sm:$0xff]   ;;  %v13036_v16 = vld [vmem:[%s13816_s12 + $0x104] sm:$0xff]   ;;  %11839 = vmatprep.subr.bf16.mxu0 %v13034_v14  ;;  %v13038_v18 = vld [vmem:[%s13816_s12 + $0xfc] sm:$0xff]   ;;  %vm267_vm1 = vcmask 1039360  }
  0x3c   : > { %s254_s22 = sadd.s32 1, %s13826_s15  ;;  %s256_s24 = sadd.s32 2, %s13826_s15  ;;  %v13037_v17 = vld [vmem:[%s13816_s12 + $0xc4] sm:$0xff]   ;;  %11840 = vmatpush3.bf16.msra.mxu0 %v13035_v15  ;;  %v13039_v19 = vld [vmem:[%s13816_s12 + $0xbc] sm:$0xff]   ;;  %v13041_v21 = vld [vmem:[%s13816_s12 + $0xb4] sm:$0xff]   ;;  %vm577_vm2 = vcmask 1043456  }
  0x3d   : > { %s360_s17 = sadd.s32 1, %s13823_s14  ;;  %s362_s20 = sadd.s32 2, %s13823_s14  ;;  %11841 = vmatprep.subr.bf16.mxu0 %v13036_v16  ;;  %v13042_v22 = vld [vmem:[%s13816_s12 + $0xec] sm:$0xff]   ;;  %v13045_v25 = vld [vmem:[%s13816_s12 + $0x124] ss:$0 sps:$4 sm:$0xff]   ;;  %v13728_v29 = vmov 0.0  }
  0x3e   : > { %s361_s21 = sld [smem:[#allocation3 + %s360_s17]]  ;;  %s13840_s28 = smul.u32 3, %s858_s16  ;;  %v13043_v23 = vld [vmem:[%s13816_s12 + $0xac] sm:$0xff]   ;;  %v13044_v27 = vld [vmem:[%s13816_s12 + $0xe4] sm:$0xff]   ;;  %12671 = vmatprep.subr.bf16.mxu1 %v13728_v29  ;;  %v579_v30 = vsel %vm577_vm2, %v13045_v25, 0  ;;  %vm277_vm3 = vcmask 1031168  }
  0x3f   : > { %s363_s23 = sld [smem:[#allocation3 + %s362_s20]]  ;;  %s13726_s10 = smov 127   ;;  %v13046_v31 = vld [vmem:[%s13816_s12 + $0xa4] sm:$0xff]   ;;  %12672 = vmatpush3.bf16.msra.mxu1 %v579_v30  ;;  %v13047_v38 = vld [vmem:[%s13816_s12 + $0xdc] sm:$0xff]   ;;  %v13050_v53 = vld [vmem:[%s13816_s12 + $0xd4] sm:$0xff]   ;;  %vm13729_vm4 = vmmov 0  }
  0x40   : > { %s255_s27 = sld [smem:[#allocation3 + %s254_s22]]  ;;  %s861_s30 = sadd.s32 1, %s13840_s28  ;;  %11842 = vmatpush3.bf16.msra.mxu0 %v13037_v17  ;;  %12673 = vmatprep.subr.bf16.mxu1 %v13728_v29  ;;  %v13048_v39 = vld [vmem:[%s13816_s12 + $0x11c] sm:$0xff]   ;;  %v13051_v54 = vld [vmem:[%s13816_s12 + $0x114] sm:$0xff]   ;;  %vm573_vm5 = vcmask 326656   ;;  %vm9950_vm6 = vcmask 336896  }
  0x41   : > { %s257_s29 = sld [smem:[#allocation3 + %s256_s24]]  ;;  %s863_s6 = sadd.s32 2, %s13840_s28  ;;  %11843 = vmatprep.subr.bf16.mxu0 %v13038_v18  ;;  %v13049_v42 = vld [vmem:[%s13816_s12 + $0x9c] sm:$0xff]   ;;  %v13052_v56 = vld [vmem:[%s13816_s12 + $0x94] sm:$0xff]   ;;  %12677 = vmatprep.mubr.msk.bf16.mxu1 %vm13729_vm4, %v13728_v29 }
  0x42   : > { %s862_s8 = sld [smem:[#allocation3 + %s861_s30]]  ;;  %s13727_s11 = smov 126  }
  0x43   : > { %s864_s9 = sld [smem:[#allocation3 + %s863_s6]]  ;;  %s1161_s17 = sadd.s32 3, %s13809_s7  ;;  %12674 = vmatpush3.bf16.msra.mxu1 %v13048_v39 }
  0x44   : > { %v367_v2 = vstv %s361_s21  ;;  %s13859_s20 = smul.u32 3, %s1161_s17  ;;  %s1464_s21 = sadd.s32 4, %s13809_s7  ;;  %11844 = vmatpush3.bf16.msra.mxu0 %v13039_v19  ;;  %12675 = vmatprep.subr.bf16.mxu1 %v13728_v29 }
  0x45   : > { %v368_v3 = vmul.f32 %v367_v2, %v13836_v1  ;;  %v376_v4 = vstv %s363_s23  ;;  %s13863_s22 = sld [smem:[#allocation3 + %s13823_s14]]  ;;  %s13871_s25 = smul.u32 3, %s1464_s21  ;;  %11845 = vmatprep.subr.bf16.mxu0 %v13040_v20  ;;  %v13053_v2 = vld [vmem:[%s13816_s12 + $0x78] sm:$0xff]  }
  0x46   : > { %v261_v5 = vstv %s255_s27  ;;  %v377_v6 = vmul.f32 %v376_v4, %v13836_v1  ;;  %s1164_s23 = sadd.s32 1, %s13859_s20  ;;  %s13867_s24 = sld [smem:[#allocation3 + %s13826_s15]] }
  0x47   : > { %370 = vrot.lane.b32.xlu0 %v368_v3, %s13726_s10  ;;  %v262_v7 = vmul.f32 %v261_v5, %v13836_v1  ;;  %v271_v8 = vstv %s257_s29  ;;  %s13875_s26 = sld [smem:[#allocation6 + %s357_s13]]  ;;  %s1166_s15 = sadd.s32 2, %s13859_s20  ;;  %12676 = vmatpush3.bf16.msra.mxu1 %v13051_v54 }
  0x48   : > { %v272_v9 = vmul.f32 %v271_v8, %v13836_v1  ;;  %v868_v10 = vstv %s862_s8  ;;  %s13881_s27 = sld [smem:[#allocation3 + %s13840_s28]]  ;;  %s1467_s29 = sadd.s32 1, %s13871_s25  ;;  %11846 = vmatpush3.bf16.msra.mxu0 %v13041_v21  ;;  %11865 = vmatprep.subr.bf16.mxu1 %v13053_v2  ;;  %v13987_v21 = vld [vmem:[%s16242_s0] sm:$0x3f] }
  0x49   : > { %264 = vrot.lane.b32.xlu1 %v262_v7, %s13726_s10  ;;  %v877_v11 = vstv %s864_s9  ;;  %v869_v12 = vmul.f32 %v868_v10, %v13836_v1  ;;  %s13883_s14 = sld [smem:[#allocation3 + %s1164_s23]]  ;;  %11847 = vmatprep.subr.bf16.mxu0 %v13042_v22  ;;  %s1469_s28 = sadd.s32 2, %s13871_s25 }
  0x4a   : > { %v878_v13 = vmul.f32 %v877_v11, %v13836_v1  ;;  %s13895_s13 = sld [smem:[#allocation3 + %s1166_s15]]  ;;  %s2070_s23 = sadd.s32 6, %s13809_s7 }
  0x4b   : > { %379 = vrot.lane.b32.xlu0 %v377_v6, %s13727_s11  ;;  %v365_v24 = vstv %s13863_s22  ;;  %s13900_s30 = sld [smem:[#allocation3 + %s1467_s29]]  ;;  %p11833_p6 = scmp.ne.s32.totalorder %s13768_s19, 1 }
  0x4c   : > { %11848 = vmatpush3.bf16.msra.mxu0 %v13043_v23  ;;  %v366_v32 = vmul.f32 %v365_v24, %v13836_v1  ;;  %v259_v35 = vstv %s13867_s24  ;;  %s13908_s6 = sld [smem:[#allocation3 + %s1469_s28]] }
  0x4d   : > { %274 = vrot.lane.b32.xlu1 %v272_v9, %s13727_s11  ;;  %11849 = vmatprep.subr.bf16.mxu0 %v13044_v27  ;;  %s13913_s8 = sld [smem:[#allocation6 + %s858_s16]]  ;;  %v260_v44 = vmul.f32 %v259_v35, %v13836_v1  ;;  %v385_v48 = vstv %s13875_s26  ;;  %s1767_s16 = sadd.s32 5, %s13809_s7 }
  0x4e   : > { %v866_v41 = vstv %s13881_s27  ;;  %s13921_s9 = sld [smem:[#allocation6 + %s13809_s7]]  ;;  %s13935_s22 = smul.u32 3, %s1767_s16 }
  0x4f   : > { %871 = vrot.lane.b32.xlu0 %v869_v12, %s13726_s10  ;;  %v867_v51 = vmul.f32 %v866_v41, %v13836_v1  ;;  %v1171_v59 = vstv %s13883_s14  ;;  %s13958_s26 = smul.u32 3, %s2070_s23 }
  0x50   : > { %11850 = vmatpush3.bf16.msra.mxu0 %v13046_v31  ;;  %v1180_v63 = vstv %s13895_s13  ;;  %v1172_v5 = vmul.f32 %v1171_v59, %v13836_v1  ;;  %s1770_s24 = sadd.s32 1, %s13935_s22  ;;  %s1772_s27 = sadd.s32 2, %s13935_s22  ;;  %v13730_v31 = vmov 1983009808  }
  0x51   : > { %880 = vrot.lane.b32.xlu1 %v878_v13, %s13727_s11  ;;  %11851 = vmatprep.subr.bf16.mxu0 %v13047_v38  ;;  %v1181_v9 = vmul.f32 %v1180_v63, %v13836_v1  ;;  %v1474_v11 = vstv %s13900_s30  ;;  %s1771_s14 = sld [smem:[#allocation3 + %s1770_s24]]  ;;  %s2073_s29 = sadd.s32 1, %s13958_s26 }
  0x52   : > { %v1483_v12 = vstv %s13908_s6  ;;  %v1475_v15 = vmul.f32 %v1474_v11, %v13836_v1  ;;  %s1773_s15 = sld [smem:[#allocation3 + %s1772_s27]]  ;;  %s2075_s13 = sadd.s32 2, %s13958_s26 }
  0x53   : > { %v886_v7 = vstv %s13913_s8  ;;  %v1484_v16 = vmul.f32 %v1483_v12, %v13836_v1  ;;  %s2074_s28 = sld [smem:[#allocation3 + %s2073_s29]] }
  0x54   : > { %11852 = vmatpush3.bf16.msra.mxu0 %v13049_v42  ;;  %v281_v13 = vstv %s13921_s9  ;;  %s2076_s30 = sld [smem:[#allocation3 + %s2075_s13]]  ;;  %s2676_s13 = sadd.s32 8, %s13809_s7 }
  0x55   : > { %11853 = vmatprep.subr.bf16.mxu0 %v13050_v53  ;;  %s1163_s9 = sld [smem:[#allocation3 + %s13859_s20]]  ;;  %s14026_s20 = smul.u32 3, %s2676_s13 }
  0x56   : > { %s13999_s24 = sld [smem:[#allocation3 + %s13871_s25]] }
  0x57   : > { %v1777_v1 = vstv %s1771_s14  ;;  %s14003_s27 = sld [smem:[#allocation6 + %s1161_s17]]  ;;  %s2373_s14 = sadd.s32 7, %s13809_s7 }
  0x58   : > { %11854 = vmatpush3.bf16.msra.mxu0 %v13052_v56  ;;  %v1786_v20 = vstv %s1773_s15  ;;  %v1778_v22 = vmul.f32 %v13987_v21, %v1777_v1  ;;  %s14008_s15 = sld [smem:[#allocation6 + %s1464_s21]]  ;;  %s14012_s29 = smul.u32 3, %s2373_s14 }
  0x59   : > { %12681 = vmatprep.subr.bf16.mxu0 %v13728_v29  ;;  %v1787_v23 = vmul.f32 %v13987_v21, %v1786_v20  ;;  %v2080_v24 = vstv %s2074_s28  ;;  %s14029_s21 = sld [smem:[#allocation3 + %s13935_s22]]  ;;  %s2679_s8 = sadd.s32 1, %s14026_s20  ;;  %v13057_v20 = vld [vmem:[%s13816_s12 + $0x30] sm:$0xff]  }
  0x5a   : > { %v2089_v25 = vstv %s2076_s30  ;;  %s2378_s17 = sadd.s32 2, %s14012_s29  ;;  %s2376_s25 = sadd.s32 1, %s14012_s29 }
  0x5b   : > { %v2090_v27 = vmul.f32 %v13987_v21, %v2089_v25  ;;  %v1169_v38 = vstv %s1163_s9  ;;  %s14036_s28 = sld [smem:[#allocation3 + %s2378_s17]]  ;;  %s2681_s30 = sadd.s32 2, %s14026_s20 }
  0x5c   : > { %v1170_v41 = vmul.f32 %v13987_v21, %v1169_v38  ;;  %s14041_s22 = sld [smem:[#allocation3 + %s2376_s25]] }
  0x5d   : > { %v1189_v63 = vstv %s14003_s27  ;;  %s14046_s6 = sld [smem:[#allocation3 + %s13958_s26]]  ;;  %s2979_s27 = sadd.s32 9, %s13809_s7 }
  0x5e   : > { %s14051_s9 = sld [smem:[#allocation3 + %s2681_s30]] }
  0x5f   : > { %s14055_s26 = sld [smem:[#allocation3 + %s2679_s8]]  ;;  %v1775_v25 = vstv %s14029_s21 }
  0x60   : > { %s14110_s17 = sld [smem:[#allocation6 + %s2070_s23]] }
  0x62   : > { %v2383_v38 = vstv %s14041_s22 }
  0xb9   : > { %v371_v26 = vpop.permute.xlu0 %370 }
  0xba   : > { %v372_v28 = vrot.slane %v371_v26, 2 }
  0xbb   : > { %v265_v33 = vpop.permute.xlu1 %264 }
  0xbc   : > { %v373_v34 = vsel %vm267_vm1, %v371_v26, %v372_v28  ;;  %v266_v36 = vrot.slane %v265_v33, 2  ;;  %v2081_v26 = vmul.f32 %v13987_v21, %v2080_v24  ;;  %v302_v28 = vlaneseq }
  0xbd   : > { %v380_v37 = vpop.permute.xlu0 %379  ;;  %v375_v43 = vadd.f32 %v373_v34, %v366_v32  ;;  %v300_v32 = vunpack.c.l.s4 %v13730_v31  ;;  %v2392_v31 = vstv %s14036_s28 }
  0xbe   : > { %v381_v40 = vrot.slane %v380_v37, 2  ;;  %v268_v47 = vsel %vm267_vm1, %v265_v33, %v266_v36  ;;  %v303_v30 = vshrl.u32 %v302_v28, 7 }
  0xbf   : > { %v275_v45 = vpop.permute.xlu1 %274  ;;  %v270_v57 = vadd.f32 %v268_v47, %v260_v44  ;;  %v301_v35 = vunpack.c.0.s8 %v300_v32  ;;  %v1472_v44 = vstv %s13999_s24  ;;  %s14071_s24 = sld [smem:[#allocation6 + %s1767_s16]]  ;;  %s14092_s16 = smul.u32 3, %s2979_s27 }
  0xc0   : > { %v382_v46 = vsel %vm277_vm3, %v380_v37, %v381_v40  ;;  %v276_v49 = vrot.slane %v275_v45, 2 }
  0xc1   : > { %v384_v50 = vadd.f32 %v382_v46, %v375_v43  ;;  %v872_v52 = vpop.permute.xlu0 %871  ;;  %v13055_v46 = vld [vmem:[%s13816_s12 + $0x90] ss:$0 sps:$4 sm:$0xff]   ;;  %s2984_s21 = sadd.s32 2, %s14092_s16  ;;  %s2982_s23 = sadd.s32 1, %s14092_s16 }
  0xc2   : > { %v873_v55 = vrot.slane %v872_v52, 2  ;;  %v278_v61 = vsel %vm277_vm3, %v275_v45, %v276_v49  ;;  %v14019_v45 = vsub.s32 %v301_v35, %v303_v30  ;;  %s14140_s28 = sld [smem:[#allocation3 + %s2984_s21]] }
  0xc3   : > { %v386_v58 = vadd.f32 %v385_v48, %v384_v50  ;;  %v881_v60 = vpop.permute.xlu1 %880  ;;  %v280_v8 = vadd.f32 %v278_v61, %v270_v57  ;;  %s14142_s22 = sld [smem:[#allocation3 + %s2982_s23]] }
  0xc4   : > { %v874_v62 = vsel %vm267_vm1, %v872_v52, %v873_v55  ;;  %v882_v0 = vrot.slane %v881_v60, 2  ;;  %v1473_v52 = vmul.f32 %v13987_v21, %v1472_v44  ;;  %s14253_s21 = sld [smem:[#allocation3 + %s14026_s20]]  ;;  %s3888_s20 = sadd.s32 12, %s13809_s7 }
  0xc5   : > { %v13942_v3 = vmax.f32 %v386_v58, 0.0  ;;  %v876_v4 = vadd.f32 %v874_v62, %v867_v51  ;;  %v282_v17 = vadd.f32 %v281_v13, %v280_v8  ;;  %v776_v58 = vsel %vm577_vm2, %v13055_v46, 0  ;;  %v13054_v62 = vld [vmem:[%s13816_s12 + $0x38] sm:$0xff]   ;;  %s14257_s23 = sld [smem:[#allocation6 + %s2373_s14]]  ;;  %s14276_s14 = smul.u32 3, %s3888_s20 }
  0xc6   : > { %v883_v6 = vsel %vm277_vm3, %v881_v60, %v882_v0 }
  0xc7   : > { %389 = vrot.lane.b32.xlu0 %v13942_v3, %s13726_s10  ;;  %395 = vrot.lane.b32.xlu1 %v13942_v3, %s13727_s11  ;;  %v885_v10 = vadd.f32 %v883_v6, %v876_v4  ;;  %v13972_v18 = vmax.f32 %v282_v17, 0.0 }
  0xc9   : > { %v887_v14 = vadd.f32 %v886_v7, %v885_v10 }
  0xcb   : > { %1174 = vrot.lane.b32.xlu0 %v1172_v5, %s13726_s10  ;;  %1183 = vrot.lane.b32.xlu1 %v1181_v9, %s13727_s11  ;;  %v13978_v19 = vmax.f32 %v887_v14, 0.0  ;;  %v1492_v5 = vstv %s14008_s15  ;;  %s3282_s15 = sadd.s32 10, %s13809_s7 }
  0xcc   : > { %s14127_s25 = smul.u32 3, %s3282_s15 }
  0xce   : > { %s3287_s30 = sadd.s32 2, %s14127_s25 }
  0xcf   : > { %1477 = vrot.lane.b32.xlu0 %v1475_v15, %s13726_s10  ;;  %1486 = vrot.lane.b32.xlu1 %v1484_v16, %s13727_s11  ;;  %v13056_v16 = vld [vmem:[%s13816_s12 + $0x70] sm:$0xff]   ;;  %s14157_s8 = sld [smem:[#allocation3 + %s3287_s30]] }
  0xd3   : > { %285 = vrot.lane.b32.xlu0 %v13972_v18, %s13726_s10  ;;  %291 = vrot.lane.b32.xlu1 %v13972_v18, %s13727_s11 }
  0xd7   : > { %890 = vrot.lane.b32.xlu0 %v13978_v19, %s13726_s10  ;;  %896 = vrot.lane.b32.xlu1 %v13978_v19, %s13727_s11 }
  0xdb   : > { %1780 = vrot.lane.b32.xlu0 %v1778_v22, %s13726_s10  ;;  %1789 = vrot.lane.b32.xlu1 %v1787_v23, %s13727_s11  ;;  %v13058_v22 = vld [vmem:[%s13816_s12 + $0x88] sm:$0xff]  }
  0xdf   : > { %2083 = vrot.lane.b32.xlu0 %v2081_v26, %s13726_s10  ;;  %2092 = vrot.lane.b32.xlu1 %v2090_v27, %s13727_s11 }
 0x139   : > { %v390_v33 = vpop.permute.xlu0 %389  ;;  %v396_v34 = vpop.permute.xlu1 %395 }
 0x13a   : > { %v391_v36 = vrot.slane %v390_v33, 2  ;;  %v397_v37 = vrot.slane %v396_v34, 2 }
 0x13c   : > { %v392_v39 = vsel %vm267_vm1, %v390_v33, %v391_v36  ;;  %v398_v47 = vsel %vm277_vm3, %v396_v34, %v397_v37  ;;  %v13059_v33 = vld [vmem:[%s13816_s12 + $0x68] sm:$0xff]   ;;  %v1776_v36 = vmul.f32 %v13987_v21, %v1775_v25  ;;  %v13069_v25 = vld [vmem:[%s13816_s12 + $0x158] sm:$0xff]  }
 0x13d   : > { %v394_v40 = vmax.f32 %v13942_v3, %v392_v39  ;;  %v1175_v42 = vpop.permute.xlu0 %1174  ;;  %v1184_v43 = vpop.permute.xlu1 %1183  ;;  %v13060_v37 = vld [vmem:[%s13816_s12 + $0x28] sm:$0xff]  }
 0x13e   : > { %v1176_v48 = vrot.slane %v1175_v42, 2  ;;  %v1185_v49 = vrot.slane %v1184_v43, 2 }
 0x13f   : > { %v400_v50 = vmax.f32 %v394_v40, %v398_v47 }
 0x140   : > { %v1177_v51 = vsel %vm267_vm1, %v1175_v42, %v1176_v48  ;;  %v1186_v59 = vsel %vm277_vm3, %v1184_v43, %v1185_v49  ;;  %v2393_v42 = vmul.f32 %v13987_v21, %v2392_v31  ;;  %v2078_v43 = vstv %s14046_s6  ;;  %v13062_v49 = vld [vmem:[%s13816_s12 + $0x60] sm:$0xff]   ;;  %s3285_s6 = sadd.s32 1, %s14127_s25  ;;  %v13071_v31 = vld [vmem:[%s13816_s12 + $0x10] sm:$0xff]  }
 0x141   : > { %v1179_v53 = vadd.f32 %v1177_v51, %v1170_v41  ;;  %v1478_v54 = vpop.permute.xlu0 %1477  ;;  %v1487_v55 = vpop.permute.xlu1 %1486  ;;  %v402_v56 = vcombine.high %v400_v50, %v400_v50  ;;  %v409_v57 = vrot.slane %v400_v50, %v14019_v45  ;;  %v13061_v41 = vld [vmem:[%s13816_s12 + $0x80] sm:$0xff]   ;;  %v2695_v51 = vstv %s14051_s9  ;;  %s14162_s9 = sld [smem:[#allocation3 + %s3285_s6]] }
 0x142   : > { %v1479_v60 = vrot.slane %v1478_v54, 2  ;;  %v1488_v61 = vrot.slane %v1487_v55, 2  ;;  %s14292_s6 = sld [smem:[#allocation3 + %s14092_s16]] }
 0x143   : > { %v1188_v0 = vadd.f32 %v1186_v59, %v1179_v53  ;;  %v417_v2 = vcombine.high %v409_v57, %v409_v57  ;;  %v416_v3 = vrot.slane %v402_v56, %v14019_v45  ;;  %v421_v15 = vpack.c.bf16 %v409_v57, %v409_v57 }
 0x144   : > { %v1480_v4 = vsel %vm267_vm1, %v1478_v54, %v1479_v60  ;;  %v1489_v12 = vsel %vm277_vm3, %v1487_v55, %v1488_v61  ;;  %v2384_v53 = vmul.f32 %v13987_v21, %v2383_v38  ;;  %v13063_v54 = vld [vmem:[%s13816_s12 + $0x20] sm:$0xff]   ;;  %v2686_v55 = vstv %s14055_s26  ;;  %v13076_v38 = vld [vmem:[%s13816_s12 + $0x188] sm:$0xff]   ;;  %s14313_s26 = sld [smem:[#allocation3 + %s14127_s25]] }
 0x145   : > { %v1482_v6 = vadd.f32 %v1480_v4, %v1473_v52  ;;  %v286_v7 = vpop.permute.xlu0 %285  ;;  %v422_v8 = vpack.c.bf16 %v417_v2, %v417_v2  ;;  %v423_v9 = vpack.c.bf16 %v416_v3, %v416_v3  ;;  %v292_v10 = vpop.permute.xlu1 %291  ;;  %v1190_v11 = vadd.f32 %v1189_v63, %v1188_v0 }
 0x146   : > { %v287_v13 = vrot.slane %v286_v7, 2  ;;  %v293_v14 = vrot.slane %v292_v10, 2  ;;  %v2696_v63 = vmul.f32 %v13987_v21, %v2695_v51  ;;  %v13083_v51 = vld [vmem:[%s13816_s12 + $0x1b8] ss:$0 sps:$4 sm:$0xff]  }
 0x147   : > { %v1491_v17 = vadd.f32 %v1489_v12, %v1482_v6  ;;  %613 = vmatprep.mubr.bf16.mxu0 %v422_v8  ;;  %12678 = vmatmul.mubr.msk.bf16.vlgmr.msra.gmra.mxu1 %vm573_vm5, %v423_v9  ;;  %v14058_v1 = vmax.f32 %v1190_v11, 0.0  ;;  %v1795_v6 = vstv %s14071_s24  ;;  %v13066_v11 = vld [vmem:[%s13816_s12 + $0x58] sm:$0xff]   ;;  %s3891_s24 = sadd.s32 1, %s14276_s14 }
 0x148   : > { %v288_v23 = vsel %vm267_vm1, %v286_v7, %v287_v13  ;;  %11866 = vmatpush3.bf16.msra.mxu1 %v13054_v62  ;;  %v294_v24 = vsel %vm277_vm3, %v292_v10, %v293_v14  ;;  %614 = vmatmul.mubr.bf16.vlgmr.msra.gmra.mxu0 %v421_v15  ;;  %v2079_v62 = vmul.f32 %v13987_v21, %v2078_v43  ;;  %v13065_v10 = vld [vmem:[%s13816_s12 + $0x160] sm:$0xff]   ;;  %v13068_v12 = vld [vmem:[%s13816_s12 + $0x198] sm:$0xff]   ;;  %v13077_v43 = vld [vmem:[%s13816_s12 + $0x148] sm:$0xff]   ;;  %s14336_s25 = sld [smem:[#allocation3 + %s3891_s24]] }
 0x149   : > { %v290_v26 = vmax.f32 %v13972_v18, %v288_v23  ;;  %12682 = vmatpush3.bf16.msra.mxu0 %v776_v58  ;;  %1199 = vrot.lane.b32.xlu1 %v14058_v1, %s13727_s11  ;;  %v891_v27 = vpop.permute.xlu0 %890  ;;  %v897_v28 = vpop.permute.xlu1 %896  ;;  %v1493_v30 = vadd.f32 %v1492_v5, %v1491_v17  ;;  %v13064_v58 = vld [vmem:[%s13816_s12 + $0x1a0] sm:$0xff]   ;;  %v2687_v5 = vmul.f32 %v13987_v21, %v2686_v55  ;;  %v13070_v23 = vld [vmem:[%s13816_s12 + $0x50] sm:$0xff]  }
 0x14a   : > { %1193 = vrot.lane.b32.xlu0 %v14058_v1, %s13726_s10  ;;  %v892_v32 = vrot.slane %v891_v27, 2  ;;  %11867 = vmatprep.subr.bf16.mxu1 %v13056_v16  ;;  %v898_v18 = vrot.slane %v897_v28, 2  ;;  %v13067_v16 = vld [vmem:[%s13816_s12 + $0x18] sm:$0xff]  }
 0x14b   : > { %v296_v34 = vmax.f32 %v290_v26, %v294_v24  ;;  %12683 = vmatprep.subr.bf16.mxu0 %v13728_v29  ;;  %v14078_v35 = vmax.f32 %v1493_v30, 0.0  ;;  %12687 = vmatprep.mubr.msk.bf16.mxu0 %vm13729_vm4, %v13728_v29  ;;  %v2098_v26 = vstv %s14110_s17  ;;  %v13072_v30 = vld [vmem:[%s13816_s12 + $0x190] sm:$0xff]   ;;  %s2375_s17 = sld [smem:[#allocation3 + %s14012_s29]] }
 0x14c   : > { %v893_v39 = vsel %vm267_vm1, %v891_v27, %v892_v32  ;;  %11868 = vmatpush3.bf16.msra.mxu1 %v13057_v20  ;;  %v899_v40 = vsel %vm277_vm3, %v897_v28, %v898_v18  ;;  %v13074_v18 = vld [vmem:[%s13816_s12 + $0x48] sm:$0xff]  }
 0x14d   : > { %v298_v44 = vcombine.high %v296_v34, %v296_v34  ;;  %v895_v46 = vmax.f32 %v13978_v19, %v893_v39  ;;  %12684 = vmatpush3.bf16.msra.mxu0 %v13058_v22  ;;  %1502 = vrot.lane.b32.xlu1 %v14078_v35, %s13727_s11  ;;  %v1781_v47 = vpop.permute.xlu0 %1780  ;;  %v1790_v48 = vpop.permute.xlu1 %1789  ;;  %v14099_v50 = vrot.slane %v296_v34, %v14019_v45  ;;  %v2998_v34 = vstv %s14140_s28  ;;  %s3585_s28 = sadd.s32 11, %s13809_s7 }
 0x14e   : > { %1496 = vrot.lane.b32.xlu0 %v14078_v35, %s13726_s10  ;;  %v1782_v52 = vrot.slane %v1781_v47, 2  ;;  %11869 = vmatprep.subr.bf16.mxu1 %v13059_v33  ;;  %v1791_v19 = vrot.slane %v1790_v48, 2  ;;  %v13073_v33 = vld [vmem:[%s13816_s12 + $0x150] sm:$0xff]   ;;  %v2989_v39 = vstv %s14142_s22  ;;  %s14265_s29 = smul.u32 3, %s3585_s28  ;;  %s14283_s22 = sld [smem:[#allocation6 + %s2676_s13]] }
 0x14f   : > { %v312_v56 = vrot.slane %v298_v44, %v14019_v45  ;;  %v14113_v57 = vmax.f32 %v895_v46, %v899_v40  ;;  %12685 = vmatprep.subr.bf16.mxu0 %v13728_v29  ;;  %v313_v59 = vcombine.high %v14099_v50, %v14099_v50  ;;  %v13078_v40 = vld [vmem:[%s13816_s12 + $0x40] sm:$0xff]   ;;  %v3301_v46 = vstv %s14157_s8 }
 0x150   : > { %v1783_v60 = vsel %vm267_vm1, %v1781_v47, %v1782_v52  ;;  %11870 = vmatpush3.bf16.msra.mxu1 %v13060_v37  ;;  %v1792_v61 = vsel %vm277_vm3, %v1790_v48, %v1791_v19  ;;  %v13075_v37 = vld [vmem:[%s13816_s12 + $0x8] sm:$0xff]   ;;  %v13080_v47 = vld [vmem:[%s13816_s12 + $0x180] sm:$0xff]   ;;  %v3292_v48 = vstv %s14162_s9  ;;  %v317_v55 = vpack.c.bf16 %v14099_v50, %v14099_v50  ;;  %v13087_v50 = vld [vmem:[%s13816_s12 + $0x130] sm:$0xff]   ;;  %s3590_s30 = sadd.s32 2, %s14265_s29  ;;  %s3588_s8 = sadd.s32 1, %s14265_s29 }
 0x151   : > { %v319_v0 = vpack.c.bf16 %v312_v56, %v312_v56  ;;  %v1785_v2 = vadd.f32 %v1783_v60, %v1776_v36  ;;  %12686 = vmatpush3.bf16.msra.mxu0 %v13061_v41  ;;  %2395 = vrot.lane.b32.xlu1 %v2393_v42, %s13727_s11  ;;  %v2084_v3 = vpop.permute.xlu0 %2083  ;;  %v2093_v4 = vpop.permute.xlu1 %2092  ;;  %v318_v9 = vpack.c.bf16 %v313_v59, %v313_v59  ;;  %v14183_v41 = vld [vmem:[%s16242_s0] sm:$0x3f]  ;;  %v1078_v56 = vsel %vm577_vm2, %v13083_v51, 0  ;;  %v13085_v59 = vld [vmem:[%s13816_s12 + $0x170] sm:$0xff]   ;;  %s14298_s13 = sld [smem:[#allocation3 + %s3590_s30]]  ;;  %s3893_s9 = sadd.s32 2, %s14276_s14 }
 0x152   : > { %2386 = vrot.lane.b32.xlu0 %v2384_v53, %s13726_s10  ;;  %v2085_v7 = vrot.slane %v2084_v3, 2  ;;  %11871 = vmatprep.subr.bf16.mxu1 %v13062_v49  ;;  %v2094_v8 = vrot.slane %v2093_v4, 2  ;;  %v14138_v13 = vrot.slane %v14113_v57, %v14019_v45  ;;  %v2999_v42 = vmul.f32 %v14183_v41, %v2998_v34  ;;  %v13079_v49 = vld [vmem:[%s13816_s12] sm:$0xff]   ;;  %v13086_v60 = vld [vmem:[%s13816_s12 + $0x1b0] sm:$0xff]   ;;  %s14310_s16 = sld [smem:[#allocation3 + %s3588_s8]]  ;;  %s4797_s8 = sadd.s32 15, %s13809_s7 }
 0x153   : > { %v1794_v21 = vadd.f32 %v1792_v61, %v1785_v2  ;;  %11891 = vmatprep.subr.bf16.mxu0 %v13064_v58  ;;  %810 = vmatprep.mubr.bf16.mxu1 %v318_v9  ;;  %v2990_v44 = vmul.f32 %v14183_v41, %v2989_v39  ;;  %v3302_v52 = vmul.f32 %v14183_v41, %v3301_v46  ;;  %v13081_v19 = vld [vmem:[%s13816_s12 + $0x140] sm:$0xff]   ;;  %v13084_v58 = vld [vmem:[%s13816_s12 + $0x138] sm:$0xff]   ;;  %v2381_v39 = vstv %s2375_s17  ;;  %s14324_s17 = sld [smem:[#allocation3 + %s3893_s9]] }
 0x154   : > { %v2086_v14 = vsel %vm267_vm1, %v2084_v3, %v2085_v7  ;;  %11872 = vmatpush3.bf16.msra.mxu1 %v13063_v54  ;;  %v2095_v15 = vsel %vm277_vm3, %v2093_v4, %v2094_v8  ;;  %v918_v17 = vcombine.high %v14138_v13, %v14138_v13  ;;  %12688 = vmatmul.mubr.msk.bf16.vlgmr.msra.gmra.mxu0 %vm573_vm5, %v319_v0  ;;  %v13082_v54 = vld [vmem:[%s13816_s12 + $0x178] sm:$0xff]   ;;  %v13090_v3 = vld [vmem:[%s13816_s12 + $0x128] sm:$0xff]   ;;  %v13112_v34 = vld [vmem:[%s13816_s12 + $0x2e0] ss:$0 sps:$4 sm:$0xff]   ;;  %s14384_s30 = sld [smem:[#allocation6 + %s3282_s15]] }
 0x155   : > { %v2088_v20 = vadd.f32 %v2086_v14, %v2079_v62  ;;  %2698 = vrot.lane.b32.xlu1 %v2696_v63, %s13727_s11  ;;  %v1796_v22 = vadd.f32 %v1795_v6, %v1794_v21  ;;  %11892 = vmatpush3.bf16.msra.mxu0 %v13065_v10  ;;  %v3293_v53 = vmul.f32 %v14183_v41, %v3292_v48  ;;  %v13088_v62 = vld [vmem:[%s13816_s12 + $0x168] sm:$0xff]   ;;  %v13091_v0 = vld [vmem:[%s13816_s12 + $0x234] sm:$0xff]   ;;  %v13108_v21 = vld [vmem:[%s13816_s12 + $0x23c] sm:$0xff]  }
 0x156   : > { %2689 = vrot.lane.b32.xlu0 %v2687_v5, %s13726_s10  ;;  %v923_v24 = vpack.c.bf16 %v918_v17, %v918_v17  ;;  %11873 = vmatprep.subr.bf16.mxu1 %v13066_v11  ;;  %v903_v61 = vcombine.high %v14113_v57, %v14113_v57  ;;  %v13089_v63 = vld [vmem:[%s13816_s12 + $0x1a8] sm:$0xff]   ;;  %v13092_v4 = vld [vmem:[%s13816_s12 + $0x1f4] sm:$0xff]   ;;  %v922_v7 = vpack.c.bf16 %v14138_v13, %v14138_v13  ;;  %v13097_v13 = vld [vmem:[%s13816_s12 + $0x21c] sm:$0xff]  }
 0x157   : > { %v2097_v27 = vadd.f32 %v2095_v15, %v2088_v20  ;;  %11893 = vmatprep.subr.bf16.mxu0 %v13068_v12  ;;  %v14159_v28 = vmax.f32 %v1796_v22, 0.0  ;;  %v13102_v57 = vld [vmem:[%s13816_s12 + $0x24c] ss:$0 sps:$4 sm:$0xff]   ;;  %v13095_v10 = vld [vmem:[%s13816_s12 + $0x224] sm:$0xff]   ;;  %v13098_v14 = vld [vmem:[%s13816_s12 + $0x1dc] sm:$0xff]   ;;  %v2684_v48 = vstv %s14253_s21  ;;  %s14350_s21 = sld [smem:[#allocation6 + %s2979_s27]] }
 0x158   : > { %11874 = vmatpush3.bf16.msra.mxu1 %v13067_v16  ;;  %1112 = vmatprep.mubr.bf16.mxu0 %v923_v24  ;;  %v917_v2 = vrot.slane %v903_v61, %v14019_v45  ;;  %v13093_v6 = vld [vmem:[%s13816_s12 + $0x22c] sm:$0xff]   ;;  %v1381_v9 = vsel %vm577_vm2, %v13102_v57, 0  ;;  %v13105_v11 = vld [vmem:[%s13816_s12 + $0x244] sm:$0xff]   ;;  %v13099_v16 = vld [vmem:[%s13816_s12 + $0x214] sm:$0xff]   ;;  %v2401_v57 = vstv %s14257_s23  ;;  %s4191_s23 = sadd.s32 13, %s13809_s7 }
 0x159   : > { %11875 = vmatprep.subr.bf16.mxu1 %v13070_v23  ;;  %1805 = vrot.lane.b32.xlu1 %v14159_v28, %s13727_s11  ;;  %v2099_v32 = vadd.f32 %v2098_v26, %v2097_v27  ;;  %v13094_v8 = vld [vmem:[%s13816_s12 + $0x1ec] sm:$0xff]   ;;  %v13096_v12 = vld [vmem:[%s13816_s12 + $0x1e4] sm:$0xff]   ;;  %v13100_v17 = vld [vmem:[%s13816_s12 + $0x1d4] sm:$0xff]   ;;  %s14376_s27 = smul.u32 3, %s4191_s23 }
 0x15a   : > { %11894 = vmatpush3.bf16.msra.mxu0 %v13069_v25  ;;  %1799 = vrot.lane.b32.xlu0 %v14159_v28, %s13726_s10  ;;  %v924_v5 = vpack.c.bf16 %v917_v2, %v917_v2  ;;  %v13110_v15 = vld [vmem:[%s13816_s12 + $0x2c8] sm:$0xff]   ;;  %v13107_v25 = vld [vmem:[%s13816_s12 + $0x1fc] sm:$0xff]  }
 0x15b   : > { %11895 = vmatprep.subr.bf16.mxu0 %v13072_v30  ;;  %v14172_v36 = vmax.f32 %v2099_v32, 0.0  ;;  %v13101_v20 = vld [vmem:[%s13816_s12 + $0x20c] sm:$0xff]   ;;  %v13104_v23 = vld [vmem:[%s13816_s12 + $0x204] sm:$0xff]   ;;  %v13109_v26 = vld [vmem:[%s13816_s12 + $0x1bc] sm:$0xff]   ;;  %s4194_s9 = sadd.s32 1, %s14376_s27 }
 0x15c   : > { %11876 = vmatpush3.bf16.msra.mxu1 %v13071_v31  ;;  %v13103_v22 = vld [vmem:[%s13816_s12 + $0x1cc] sm:$0xff]   ;;  %v13106_v24 = vld [vmem:[%s13816_s12 + $0x1c4] sm:$0xff]   ;;  %s14421_s24 = sld [smem:[#allocation3 + %s4194_s9]] }
 0x15d   : > { %11877 = vmatprep.subr.bf16.mxu1 %v13074_v18  ;;  %2108 = vrot.lane.b32.xlu1 %v14172_v36, %s13727_s11 }
 0x15e   : > { %11896 = vmatpush3.bf16.msra.mxu0 %v13073_v33  ;;  %2102 = vrot.lane.b32.xlu0 %v14172_v36, %s13726_s10 }
 0x15f   : > { %11897 = vmatprep.subr.bf16.mxu0 %v13076_v38 }
 0x160   : > { %11878 = vmatpush3.bf16.msra.mxu1 %v13075_v37 }
 0x161   : > { %11879 = vmatprep.subr.bf16.mxu1 %v13078_v40  ;;  %3001 = vrot.lane.b32.xlu1 %v2999_v42, %s13727_s11 }
 0x162   : > { %11898 = vmatpush3.bf16.msra.mxu0 %v13077_v43  ;;  %2992 = vrot.lane.b32.xlu0 %v2990_v44, %s13726_s10 }
 0x163   : > { %11899 = vmatprep.subr.bf16.mxu0 %v13080_v47 }
 0x164   : > { %11880 = vmatpush3.bf16.msra.mxu1 %v13079_v49 }
 0x165   : > { %12691 = vmatprep.subr.bf16.mxu1 %v13728_v29  ;;  %3304 = vrot.lane.b32.xlu1 %v3302_v52, %s13727_s11 }
 0x166   : > { %11900 = vmatpush3.bf16.msra.mxu0 %v13081_v19  ;;  %3295 = vrot.lane.b32.xlu0 %v3293_v53, %s13726_s10 }
 0x167   : > { %811 = vmatmul.mubr.bf16.vlgmr.msra.gmra.mxu1 %v317_v55  ;;  %11901 = vmatprep.subr.bf16.mxu0 %v13082_v54 }
 0x168   : > { %12692 = vmatpush3.bf16.msra.mxu1 %v1078_v56  ;;  %12697 = vmatprep.mubr.msk.bf16.mxu1 %vm13729_vm4, %v13728_v29  ;;  %v13111_v56 = vld [vmem:[%s13816_s12 + $0x288] sm:$0xff]  }
 0x169   : > { %12693 = vmatprep.subr.bf16.mxu1 %v13728_v29 }
 0x16a   : > { %11902 = vmatpush3.bf16.msra.mxu0 %v13084_v58  ;;  %v1684_v58 = vsel %vm577_vm2, %v13112_v34, 0  ;;  %v13117_v34 = vld [vmem:[%s13816_s12 + $0x278] sm:$0xff]  }
 0x16b   : > { %11903 = vmatprep.subr.bf16.mxu0 %v13085_v59 }
 0x16c   : > { %12694 = vmatpush3.bf16.msra.mxu1 %v13086_v60 }
 0x16d   : > { %12695 = vmatprep.subr.bf16.mxu1 %v13728_v29 }
 0x16e   : > { %11904 = vmatpush3.bf16.msra.mxu0 %v13087_v50 }
 0x16f   : > { %11905 = vmatprep.subr.bf16.mxu0 %v13088_v62  ;;  %v2685_v62 = vmul.f32 %v14183_v41, %v2684_v48 }
 0x170   : > { %12696 = vmatpush3.bf16.msra.mxu1 %v13089_v63 }
 0x171   : > { %11917 = vmatprep.subr.bf16.mxu1 %v13091_v0 }
 0x172   : > { %11906 = vmatpush3.bf16.msra.mxu0 %v13090_v3 }
 0x173   : > { %12698 = vmatmul.mubr.msk.bf16.vlgmr.msra.gmra.mxu1 %vm573_vm5, %v924_v5  ;;  %12701 = vmatprep.subr.bf16.mxu0 %v13728_v29 }
 0x174   : > { %11918 = vmatpush3.bf16.msra.mxu1 %v13092_v4  ;;  %v13113_v4 = vld [vmem:[%s13816_s12 + $0x2c0] sm:$0xff]  }
 0x175   : > { %1113 = vmatmul.mubr.bf16.vlgmr.msra.gmra.mxu0 %v922_v7  ;;  %11919 = vmatprep.subr.bf16.mxu1 %v13093_v6 }
 0x176   : > { %12702 = vmatpush3.bf16.msra.mxu0 %v1381_v9  ;;  %12707 = vmatprep.mubr.msk.bf16.mxu0 %vm13729_vm4, %v13728_v29 }
 0x177   : > { %12703 = vmatprep.subr.bf16.mxu0 %v13728_v29 }
 0x178   : > { %11920 = vmatpush3.bf16.msra.mxu1 %v13094_v8 }
 0x179   : > { %11921 = vmatprep.subr.bf16.mxu1 %v13095_v10 }
 0x17a   : > { %12704 = vmatpush3.bf16.msra.mxu0 %v13105_v11 }
 0x17b   : > { %12705 = vmatprep.subr.bf16.mxu0 %v13728_v29 }
 0x17c   : > { %11922 = vmatpush3.bf16.msra.mxu1 %v13096_v12 }
 0x17d   : > { %11923 = vmatprep.subr.bf16.mxu1 %v13097_v13  ;;  %v13114_v13 = vld [vmem:[%s13816_s12 + $0x280] sm:$0xff]  }
 0x17e   : > { %12706 = vmatpush3.bf16.msra.mxu0 %v13108_v21 }
 0x17f   : > { %11943 = vmatprep.subr.bf16.mxu0 %v13110_v15 }
 0x180   : > { %11924 = vmatpush3.bf16.msra.mxu1 %v13098_v14 }
 0x181   : > { %11925 = vmatprep.subr.bf16.mxu1 %v13099_v16 }
 0x184   : > { %11926 = vmatpush3.bf16.msra.mxu1 %v13100_v17 }
 0x185   : > { %11927 = vmatprep.subr.bf16.mxu1 %v13101_v20 }
 0x188   : > { %11928 = vmatpush3.bf16.msra.mxu1 %v13103_v22 }
 0x189   : > { %11929 = vmatprep.subr.bf16.mxu1 %v13104_v23 }
 0x18c   : > { %11930 = vmatpush3.bf16.msra.mxu1 %v13106_v24  ;;  %v13115_v24 = vld [vmem:[%s13816_s12 + $0x2d8] sm:$0xff]  }
 0x18d   : > { %11931 = vmatprep.subr.bf16.mxu1 %v13107_v25  ;;  %v13116_v25 = vld [vmem:[%s13816_s12 + $0x2b8] sm:$0xff]  }
 0x190   : > { %11932 = vmatpush3.bf16.msra.mxu1 %v13109_v26  ;;  %v2704_v26 = vstv %s14283_s22  ;;  %s4494_s22 = sadd.s32 14, %s13809_s7 }
 0x191   : > { %12711 = vmatprep.subr.bf16.mxu1 %v13728_v29  ;;  %s14402_s15 = smul.u32 3, %s4494_s22 }
 0x1bb   : > { %v1200_v27 = vpop.permute.xlu1 %1199 }
 0x1bc   : > { %v1194_v30 = vpop.permute.xlu0 %1193  ;;  %v1201_v31 = vrot.slane %v1200_v27, 2 }
 0x1bd   : > { %v1195_v32 = vrot.slane %v1194_v30, 2 }
 0x1be   : > { %v1202_v40 = vsel %vm277_vm3, %v1200_v27, %v1201_v31 }
 0x1bf   : > { %v1196_v18 = vsel %vm267_vm1, %v1194_v30, %v1195_v32  ;;  %v1503_v33 = vpop.permute.xlu1 %1502 }
 0x1c0   : > { %v1198_v37 = vmax.f32 %v14058_v1, %v1196_v18  ;;  %v1497_v38 = vpop.permute.xlu0 %1496  ;;  %v1504_v42 = vrot.slane %v1503_v33, 2  ;;  %v2382_v1 = vmul.f32 %v14183_v41, %v2381_v39  ;;  %v13118_v39 = vld [vmem:[%s13816_s12 + $0x2d0] sm:$0xff]  }
 0x1c1   : > { %v1498_v43 = vrot.slane %v1497_v38, 2 }
 0x1c2   : > { %v1204_v44 = vmax.f32 %v1198_v37, %v1202_v40  ;;  %v1505_v54 = vsel %vm277_vm3, %v1503_v33, %v1504_v42  ;;  %v13119_v42 = vld [vmem:[%s13816_s12 + $0x2b0] sm:$0xff]  }
 0x1c3   : > { %v1499_v46 = vsel %vm267_vm1, %v1497_v38, %v1498_v43  ;;  %v2396_v47 = vpop.permute.xlu1 %2395  ;;  %v2987_v43 = vstv %s14292_s6  ;;  %s14560_s6 = sld [smem:[#allocation3 + %s14276_s14]]  ;;  %s14572_s14 = smul.u32 3, %s4797_s8 }
 0x1c4   : > { %v1206_v49 = vcombine.high %v1204_v44, %v1204_v44  ;;  %v1501_v51 = vmax.f32 %v14078_v35, %v1499_v46  ;;  %v2397_v52 = vrot.slane %v2396_v47, 2  ;;  %v2387_v19 = vpop.permute.xlu0 %2386  ;;  %v1213_v53 = vrot.slane %v1204_v44, %v14019_v45 }
 0x1c5   : > { %v2388_v55 = vrot.slane %v2387_v19, 2  ;;  %s4802_s9 = sadd.s32 2, %s14572_s14 }
 0x1c6   : > { %v1220_v35 = vrot.slane %v1206_v49, %v14019_v45  ;;  %v14287_v59 = vmax.f32 %v1501_v51, %v1505_v54  ;;  %v1221_v60 = vcombine.high %v1213_v53, %v1213_v53  ;;  %v2398_v0 = vsel %vm277_vm3, %v2396_v47, %v2397_v52  ;;  %v13121_v47 = vld [vmem:[%s13816_s12 + $0x35c] sm:$0xff]   ;;  %v13120_v49 = vld [vmem:[%s13816_s12 + $0x270] sm:$0xff]  }
 0x1c7   : > { %v2389_v50 = vsel %vm267_vm1, %v2387_v19, %v2388_v55  ;;  %v2699_v61 = vpop.permute.xlu1 %2698  ;;  %v1225_v9 = vpack.c.bf16 %v1213_v53, %v1213_v53  ;;  %v13122_v51 = vld [vmem:[%s13816_s12 + $0x31c] sm:$0xff]   ;;  %v3595_v52 = vstv %s14310_s16  ;;  %v2988_v19 = vmul.f32 %v14183_v41, %v2987_v43  ;;  %v13123_v55 = vld [vmem:[%s13816_s12 + $0x2a8] sm:$0xff]  }
 0x1c8   : > { %v1227_v63 = vpack.c.bf16 %v1220_v35, %v1220_v35  ;;  %v2391_v2 = vadd.f32 %v2389_v50, %v2382_v1  ;;  %v2690_v3 = vpop.permute.xlu0 %2689  ;;  %v2700_v5 = vrot.slane %v2699_v61, 2  ;;  %v1226_v7 = vpack.c.bf16 %v1221_v60, %v1221_v60  ;;  %v13134_v43 = vld [vmem:[%s13816_s12 + $0x304] sm:$0xff]  }
 0x1c9   : > { %v2691_v6 = vrot.slane %v2690_v3, 2  ;;  %v14303_v8 = vrot.slane %v14287_v59, %v14019_v45  ;;  %v1509_v27 = vcombine.high %v14287_v59, %v14287_v59  ;;  %v3604_v1 = vstv %s14298_s13  ;;  %s4196_s13 = sadd.s32 2, %s14376_s27 }
 0x1ca   : > { %12708 = vmatmul.mubr.msk.bf16.vlgmr.msra.gmra.mxu0 %vm573_vm5, %v1227_v63  ;;  %v2400_v10 = vadd.f32 %v2398_v0, %v2391_v2  ;;  %1415 = vmatprep.mubr.bf16.mxu1 %v1226_v7  ;;  %v2701_v20 = vsel %vm277_vm3, %v2699_v61, %v2700_v5  ;;  %v3605_v35 = vmul.f32 %v14183_v41, %v3604_v1  ;;  %v3290_v59 = vstv %s14313_s26  ;;  %v14389_v61 = vld [vmem:[%s16242_s0] sm:$0x3f]  ;;  %v13124_v63 = vld [vmem:[%s13816_s12 + $0x268] sm:$0xff]   ;;  %s14413_s16 = sld [smem:[#allocation3 + %s4196_s13]]  ;;  %s4499_s26 = sadd.s32 2, %s14402_s15 }
 0x1cb   : > { %v2692_v11 = vsel %vm267_vm1, %v2690_v3, %v2691_v6  ;;  %11944 = vmatpush3.bf16.msra.mxu0 %v13111_v56  ;;  %v1806_v12 = vpop.permute.xlu1 %1805  ;;  %v1524_v21 = vcombine.high %v14303_v8, %v14303_v8  ;;  %1416 = vmatmul.mubr.bf16.vlgmr.msra.gmra.mxu1 %v1225_v9  ;;  %v3907_v60 = vstv %s14324_s17  ;;  %v3291_v6 = vmul.f32 %v14389_v61, %v3290_v59  ;;  %s4497_s17 = sadd.s32 1, %s14402_s15  ;;  %s5100_s13 = sadd.s32 16, %s13809_s7 }
 0x1cc   : > { %v2694_v14 = vadd.f32 %v2692_v11, %v2685_v62  ;;  %v1800_v15 = vpop.permute.xlu0 %1799  ;;  %11945 = vmatprep.subr.bf16.mxu0 %v13113_v4  ;;  %v1807_v16 = vrot.slane %v1806_v12, 2  ;;  %v2402_v17 = vadd.f32 %v2401_v57, %v2400_v10  ;;  %12712 = vmatpush3.bf16.msra.mxu1 %v1684_v58  ;;  %v3596_v62 = vmul.f32 %v14389_v61, %v3595_v52  ;;  %v13125_v4 = vld [vmem:[%s13816_s12 + $0x354] sm:$0xff]   ;;  %v13127_v10 = vld [vmem:[%s13816_s12 + $0x2a0] sm:$0xff]  }
 0x1cd   : > { %v1801_v22 = vrot.slane %v1800_v15, 2  ;;  %v1529_v23 = vpack.c.bf16 %v1524_v21, %v1524_v21  ;;  %12717 = vmatprep.mubr.msk.bf16.mxu1 %vm13729_vm4, %v13728_v29  ;;  %12713 = vmatprep.subr.bf16.mxu1 %v13728_v29  ;;  %v3898_v57 = vstv %s14336_s25  ;;  %v3908_v9 = vmul.f32 %v14389_v61, %v3907_v60  ;;  %v13126_v21 = vld [vmem:[%s13816_s12 + $0x314] sm:$0xff]   ;;  %s14429_s25 = sld [smem:[#allocation3 + %s4499_s26]]  ;;  %s4800_s26 = sadd.s32 1, %s14572_s14 }
 0x1ce   : > { %v14329_v30 = vmax.f32 %v2402_v17, 0.0  ;;  %v2703_v31 = vadd.f32 %v2701_v20, %v2694_v14  ;;  %v1808_v18 = vsel %vm277_vm3, %v1806_v12, %v1807_v16  ;;  %v13129_v14 = vld [vmem:[%s13816_s12 + $0x34c] sm:$0xff]   ;;  %v3899_v17 = vmul.f32 %v14389_v61, %v3898_v57  ;;  %v13145_v57 = vld [vmem:[%s13816_s12 + $0x324] sm:$0xff]  }
 0x1cf   : > { %v1802_v32 = vsel %vm267_vm1, %v1800_v15, %v1801_v22  ;;  %11946 = vmatpush3.bf16.msra.mxu0 %v13114_v13  ;;  %1718 = vmatprep.mubr.bf16.mxu0 %v1529_v23  ;;  %v14333_v33 = vpop.permute.xlu1 %2108  ;;  %v3007_v15 = vstv %s14350_s21  ;;  %v13128_v23 = vld [vmem:[%s13816_s12 + $0x260] sm:$0xff]   ;;  %s14436_s21 = sld [smem:[#allocation3 + %s4497_s17]]  ;;  %v4201_v52 = vstv %s14421_s24  ;;  %v1528_v60 = vpack.c.bf16 %v14303_v8, %v14303_v8  ;;  %v13142_v8 = vld [vmem:[%s13816_s12 + $0x32c] sm:$0xff]  }
 0x1d0   : > { %v1804_v37 = vmax.f32 %v14159_v28, %v1802_v32  ;;  %2411 = vrot.lane.b32.xlu1 %v14329_v30, %s13727_s11  ;;  %2405 = vrot.lane.b32.xlu0 %v14329_v30, %s13726_s10  ;;  %v14343_v38 = vpop.permute.xlu0 %2102  ;;  %v2705_v40 = vadd.f32 %v2704_v26, %v2703_v31  ;;  %v1523_v28 = vrot.slane %v1509_v27, %v14019_v45  ;;  %v13131_v27 = vld [vmem:[%s13816_s12 + $0x298] sm:$0xff]   ;;  %v13133_v31 = vld [vmem:[%s13816_s12 + $0x344] sm:$0xff]   ;;  %v2110_v1 = vrot.slane %v14333_v33, 2  ;;  %s14608_s24 = sld [smem:[#allocation3 + %s4802_s9]] }
 0x1d1   : > { %12714 = vmatpush3.bf16.msra.mxu1 %v13115_v24  ;;  %11947 = vmatprep.subr.bf16.mxu0 %v13116_v25  ;;  %v13130_v25 = vld [vmem:[%s13816_s12 + $0x30c] sm:$0xff]   ;;  %v3310_v32 = vstv %s14384_s30  ;;  %s3587_s30 = sld [smem:[#allocation3 + %s14265_s29]] }
 0x1d2   : > { %v14354_v44 = vmax.f32 %v1804_v37, %v1808_v18  ;;  %12715 = vmatprep.subr.bf16.mxu1 %v13728_v29  ;;  %v14357_v46 = vmax.f32 %v2705_v40, 0.0  ;;  %v1530_v50 = vpack.c.bf16 %v1523_v28, %v1523_v28  ;;  %v2104_v18 = vrot.slane %v14343_v38, 2  ;;  %v13136_v28 = vld [vmem:[%s13816_s12 + $0x250] sm:$0xff]   ;;  %s14567_s29 = sld [smem:[#allocation6 + %s3585_s28]] }
 0x1d3   : > { %11948 = vmatpush3.bf16.msra.mxu0 %v13117_v34  ;;  %v3002_v48 = vpop.permute.xlu1 %3001  ;;  %s14585_s28 = sld [smem:[#allocation6 + %s3888_s20]] }
 0x1d4   : > { %2714 = vrot.lane.b32.xlu1 %v14357_v46, %s13727_s11  ;;  %2708 = vrot.lane.b32.xlu0 %v14357_v46, %s13726_s10  ;;  %v2993_v53 = vpop.permute.xlu0 %2992  ;;  %v3003_v54 = vrot.slane %v3002_v48, 2  ;;  %v14372_v56 = vrot.slane %v14354_v44, %v14019_v45  ;;  %s14603_s20 = sld [smem:[#allocation3 + %s14376_s27]] }
 0x1d5   : > { %12716 = vmatpush3.bf16.msra.mxu1 %v13118_v39  ;;  %v2994_v58 = vrot.slane %v2993_v53, 2  ;;  %11949 = vmatprep.subr.bf16.mxu0 %v13119_v42  ;;  %v13132_v39 = vld [vmem:[%s13816_s12 + $0x258] sm:$0xff]   ;;  %v13135_v42 = vld [vmem:[%s13816_s12 + $0x290] sm:$0xff]   ;;  %v4504_v59 = vstv %s14436_s21  ;;  %s14614_s27 = sld [smem:[#allocation3 + %s4800_s26]]  ;;  %s5706_s26 = sadd.s32 18, %s13809_s7 }
 0x1d6   : > { %11969 = vmatprep.subr.bf16.mxu1 %v13121_v47  ;;  %v1827_v41 = vcombine.high %v14372_v56, %v14372_v56  ;;  %v3004_v2 = vsel %vm277_vm3, %v3002_v48, %v3003_v54  ;;  %v2105_v47 = vsel %vm267_vm1, %v14343_v38, %v2104_v18  ;;  %v13138_v38 = vld [vmem:[%s13816_s12 + $0x2fc] sm:$0xff]   ;;  %v13168_v18 = vld [vmem:[%s13816_s12 + $0x444] sm:$0xff]   ;;  %s14627_s21 = sld [smem:[#allocation3 + %s14402_s15]]  ;;  %s5403_s15 = sadd.s32 17, %s13809_s7 }
 0x1d7   : > { %v2995_v0 = vsel %vm267_vm1, %v2993_v53, %v2994_v58  ;;  %11950 = vmatpush3.bf16.msra.mxu0 %v13120_v49  ;;  %v3305_v3 = vpop.permute.xlu1 %3304  ;;  %v13137_v49 = vld [vmem:[%s13816_s12 + $0x33c] sm:$0xff]   ;;  %v2107_v53 = vmax.f32 %v14172_v36, %v2105_v47  ;;  %v4202_v58 = vmul.f32 %v14389_v61, %v4201_v52  ;;  %v13139_v36 = vld [vmem:[%s13816_s12 + $0x334] sm:$0xff]   ;;  %v13173_v52 = vld [vmem:[%s13816_s12 + $0x46c] sm:$0xff]  }
 0x1d8   : > { %v2997_v5 = vadd.f32 %v2995_v0, %v2988_v19  ;;  %12718 = vmatmul.mubr.msk.bf16.vlgmr.msra.gmra.mxu1 %vm573_vm5, %v1530_v50  ;;  %v3296_v7 = vpop.permute.xlu0 %3295  ;;  %3607 = vrot.lane.b32.xlu1 %v3605_v35, %s13727_s11  ;;  %v3306_v12 = vrot.slane %v3305_v3, 2  ;;  %v1832_v13 = vpack.c.bf16 %v1827_v41, %v1827_v41  ;;  %v13140_v19 = vld [vmem:[%s13816_s12 + $0x374] ss:$0 sps:$4 sm:$0xff]   ;;  %v4513_v35 = vstv %s14429_s25  ;;  %v13143_v0 = vld [vmem:[%s13816_s12 + $0x36c] sm:$0xff]  }
 0x1d9   : > { %11970 = vmatpush3.bf16.msra.mxu1 %v13122_v51  ;;  %v3297_v11 = vrot.slane %v3296_v7, 2  ;;  %3598 = vrot.lane.b32.xlu0 %v3596_v62, %s13726_s10  ;;  %v4210_v51 = vstv %s14413_s16  ;;  %v1987_v50 = vsel %vm577_vm2, %v13140_v19, 0  ;;  %v13141_v62 = vld [vmem:[%s13816_s12 + $0x2f4] sm:$0xff]   ;;  %v4505_v41 = vmul.f32 %v14389_v61, %v4504_v59  ;;  %v13175_v59 = vld [vmem:[%s13816_s12 + $0x464] sm:$0xff]   ;;  %s14592_s16 = smul.u32 3, %s5100_s13 }
 0x1da   : > { %v3006_v16 = vadd.f32 %v3004_v2, %v2997_v5  ;;  %11951 = vmatprep.subr.bf16.mxu0 %v13123_v55  ;;  %v3307_v22 = vsel %vm277_vm3, %v3305_v3, %v3306_v12  ;;  %11971 = vmatprep.subr.bf16.mxu1 %v13125_v4  ;;  %v4211_v54 = vmul.f32 %v14389_v61, %v4210_v51  ;;  %v13144_v4 = vld [vmem:[%s13816_s12 + $0x2ec] sm:$0xff]   ;;  %v13147_v5 = vld [vmem:[%s13816_s12 + $0x2e4] sm:$0xff]   ;;  %v13171_v47 = vld [vmem:[%s13816_s12 + $0x474] sm:$0xff]  }
 0x1db   : > { %v3298_v20 = vsel %vm267_vm1, %v3296_v7, %v3297_v11  ;;  %11952 = vmatpush3.bf16.msra.mxu0 %v13124_v63  ;;  %2021 = vmatprep.mubr.bf16.mxu1 %v1832_v13  ;;  %v2111_v55 = vsel %vm277_vm3, %v14333_v33, %v2110_v1  ;;  %v4514_v63 = vmul.f32 %v14389_v61, %v4513_v35  ;;  %v13148_v7 = vld [vmem:[%s13816_s12 + $0x3f0] sm:$0xff]   ;;  %v13150_v11 = vld [vmem:[%s13816_s12 + $0x408] ss:$0 sps:$4 sm:$0xff]   ;;  %s5105_s17 = sadd.s32 2, %s14592_s16  ;;  %s5103_s25 = sadd.s32 1, %s14592_s16 }
 0x1dc   : > { %v3300_v24 = vadd.f32 %v3298_v20, %v3291_v6  ;;  %11953 = vmatprep.subr.bf16.mxu0 %v13127_v10  ;;  %v3008_v26 = vadd.f32 %v3007_v15, %v3006_v16  ;;  %3910 = vrot.lane.b32.xlu1 %v3908_v9, %s13727_s11  ;;  %v2113_v33 = vmax.f32 %v2107_v53, %v2111_v55  ;;  %v13149_v9 = vld [vmem:[%s13816_s12 + $0x3b0] sm:$0xff]   ;;  %v13151_v12 = vld [vmem:[%s13816_s12 + $0x3e8] sm:$0xff]   ;;  %v2290_v15 = vsel %vm577_vm2, %v13150_v11, 0  ;;  %v13154_v20 = vld [vmem:[%s13816_s12 + $0x3e0] sm:$0xff]   ;;  %s14866_s9 = sld [smem:[#allocation3 + %s14592_s16]] }
 0x1dd   : > { %11972 = vmatpush3.bf16.msra.mxu1 %v13126_v21  ;;  %3901 = vrot.lane.b32.xlu0 %v3899_v17, %s13726_s10  ;;  %v1812_v2 = vcombine.high %v14354_v44, %v14354_v44  ;;  %v13146_v44 = vld [vmem:[%s13816_s12 + $0x364] sm:$0xff]   ;;  %v13186_v11 = vld [vmem:[%s13816_s12 + $0x518] sm:$0xff]   ;;  %s14874_s16 = sld [smem:[#allocation6 + %s4797_s8]] }
 0x1de   : > { %v3309_v34 = vadd.f32 %v3307_v22, %v3300_v24  ;;  %11973 = vmatprep.subr.bf16.mxu1 %v13129_v14  ;;  %v14433_v37 = vmax.f32 %v3008_v26, 0.0  ;;  %v14484_v3 = vrot.slane %v2113_v33, %v14019_v45  ;;  %v1831_v14 = vpack.c.bf16 %v14372_v56, %v14372_v56  ;;  %v13152_v16 = vld [vmem:[%s13816_s12 + $0x3a8] sm:$0xff]   ;;  %v13153_v17 = vld [vmem:[%s13816_s12 + $0x400] sm:$0xff]   ;;  %v13156_v24 = vld [vmem:[%s13816_s12 + $0x3f8] sm:$0xff]   ;;  %s14889_s8 = sld [smem:[#allocation6 + %s5100_s13]] }
 0x1df   : > { %11954 = vmatpush3.bf16.msra.mxu0 %v13128_v23  ;;  %v1826_v6 = vrot.slane %v1812_v2, %v14019_v45  ;;  %v13155_v22 = vld [vmem:[%s13816_s12 + $0x3a0] sm:$0xff]   ;;  %v2115_v56 = vcombine.high %v2113_v33, %v2113_v33  ;;  %v13157_v23 = vld [vmem:[%s13816_s12 + $0x3d8] sm:$0xff]  }
 0x1e0   : > { %11955 = vmatprep.subr.bf16.mxu0 %v13131_v27  ;;  %v3311_v40 = vadd.f32 %v3310_v32, %v3309_v34  ;;  %3017 = vrot.lane.b32.xlu1 %v14433_v37, %s13727_s11  ;;  %v2130_v10 = vcombine.high %v14484_v3, %v14484_v3  ;;  %v13167_v27 = vld [vmem:[%s13816_s12 + $0x484] sm:$0xff]   ;;  %v13160_v32 = vld [vmem:[%s13816_s12 + $0x390] sm:$0xff]   ;;  %v13166_v33 = vld [vmem:[%s13816_s12 + $0x378] sm:$0xff]  }
 0x1e1   : > { %11974 = vmatpush3.bf16.msra.mxu1 %v13130_v25  ;;  %3011 = vrot.lane.b32.xlu0 %v14433_v37, %s13726_s10  ;;  %v1833_v13 = vpack.c.bf16 %v1826_v6, %v1826_v6  ;;  %v13158_v25 = vld [vmem:[%s13816_s12 + $0x398] sm:$0xff]   ;;  %v2129_v26 = vrot.slane %v2115_v56, %v14019_v45  ;;  %v13164_v53 = vld [vmem:[%s13816_s12 + $0x380] sm:$0xff]  }
 0x1e2   : > { %11975 = vmatprep.subr.bf16.mxu1 %v13133_v31  ;;  %v14448_v48 = vmax.f32 %v3311_v40, 0.0  ;;  %v2135_v21 = vpack.c.bf16 %v2130_v10, %v2130_v10  ;;  %v13159_v31 = vld [vmem:[%s13816_s12 + $0x3d0] sm:$0xff]   ;;  %v13169_v40 = vld [vmem:[%s13816_s12 + $0x47c] sm:$0xff]  }
 0x1e3   : > { %11956 = vmatpush3.bf16.msra.mxu0 %v13132_v39  ;;  %v2136_v34 = vpack.c.bf16 %v2129_v26, %v2129_v26  ;;  %v13161_v39 = vld [vmem:[%s13816_s12 + $0x3c8] sm:$0xff]   ;;  %v13179_v2 = vld [vmem:[%s13816_s12 + $0x41c] sm:$0xff]  }
 0x1e4   : > { %11957 = vmatprep.subr.bf16.mxu0 %v13135_v42  ;;  %3320 = vrot.lane.b32.xlu1 %v14448_v48, %s13727_s11  ;;  %v13162_v42 = vld [vmem:[%s13816_s12 + $0x388] sm:$0xff]  }
 0x1e5   : > { %11976 = vmatpush3.bf16.msra.mxu1 %v13134_v43  ;;  %3314 = vrot.lane.b32.xlu0 %v14448_v48, %s13726_s10  ;;  %v13170_v43 = vld [vmem:[%s13816_s12 + $0x43c] sm:$0xff]   ;;  %v13184_v10 = vld [vmem:[%s13816_s12 + $0x48c] sm:$0xff]  }
 0x1e6   : > { %11977 = vmatprep.subr.bf16.mxu1 %v13137_v49  ;;  %v13172_v49 = vld [vmem:[%s13816_s12 + $0x434] sm:$0xff]  }
 0x1e7   : > { %11958 = vmatpush3.bf16.msra.mxu0 %v13136_v28  ;;  %v13163_v28 = vld [vmem:[%s13816_s12 + $0x3c0] sm:$0xff]  }
 0x1e8   : > { %12721 = vmatprep.subr.bf16.mxu0 %v13728_v29  ;;  %4213 = vrot.lane.b32.xlu1 %v4211_v54, %s13727_s11  ;;  %v13165_v54 = vld [vmem:[%s13816_s12 + $0x3b8] sm:$0xff]  }
 0x1e9   : > { %11978 = vmatpush3.bf16.msra.mxu1 %v13138_v38  ;;  %4204 = vrot.lane.b32.xlu0 %v4202_v58, %s13726_s10 }
 0x1ea   : > { %1719 = vmatmul.mubr.bf16.vlgmr.msra.gmra.mxu0 %v1528_v60  ;;  %11979 = vmatprep.subr.bf16.mxu1 %v13139_v36  ;;  %v13174_v36 = vld [vmem:[%s13816_s12 + $0x42c] sm:$0xff]  }
 0x1eb   : > { %12722 = vmatpush3.bf16.msra.mxu0 %v1987_v50  ;;  %12727 = vmatprep.mubr.msk.bf16.mxu0 %vm13729_vm4, %v13728_v29 }
 0x1ec   : > { %12723 = vmatprep.subr.bf16.mxu0 %v13728_v29  ;;  %4516 = vrot.lane.b32.xlu1 %v4514_v63, %s13727_s11 }
 0x1ed   : > { %11980 = vmatpush3.bf16.msra.mxu1 %v13141_v62  ;;  %4507 = vrot.lane.b32.xlu0 %v4505_v41, %s13726_s10  ;;  %v13178_v62 = vld [vmem:[%s13816_s12 + $0x49c] ss:$0 sps:$4 sm:$0xff]   ;;  %v13176_v41 = vld [vmem:[%s13816_s12 + $0x424] sm:$0xff]  }
 0x1ee   : > { %11981 = vmatprep.subr.bf16.mxu1 %v13142_v8  ;;  %v13177_v8 = vld [vmem:[%s13816_s12 + $0x45c] sm:$0xff]  }
 0x1ef   : > { %12724 = vmatpush3.bf16.msra.mxu0 %v13143_v0  ;;  %v2593_v0 = vsel %vm577_vm2, %v13178_v62, 0 }
 0x1f0   : > { %12725 = vmatprep.subr.bf16.mxu0 %v13728_v29 }
 0x1f1   : > { %11982 = vmatpush3.bf16.msra.mxu1 %v13144_v4  ;;  %v2134_v4 = vpack.c.bf16 %v14484_v3, %v14484_v3  ;;  %v13183_v3 = vld [vmem:[%s13816_s12 + $0x44c] sm:$0xff]  }
 0x1f2   : > { %11983 = vmatprep.subr.bf16.mxu1 %v13145_v57  ;;  %v13180_v57 = vld [vmem:[%s13816_s12 + $0x454] sm:$0xff]  }
 0x1f3   : > { %12726 = vmatpush3.bf16.msra.mxu0 %v13146_v44 }
 0x1f4   : > { %11995 = vmatprep.subr.bf16.mxu0 %v13148_v7  ;;  %v13182_v7 = vld [vmem:[%s13816_s12 + $0x414] sm:$0xff]  }
 0x1f5   : > { %11984 = vmatpush3.bf16.msra.mxu1 %v13147_v5  ;;  %v13181_v5 = vld [vmem:[%s13816_s12 + $0x494] sm:$0xff]  }
 0x1f6   : > { %12728 = vmatmul.mubr.msk.bf16.vlgmr.msra.gmra.mxu0 %vm573_vm5, %v1833_v13  ;;  %12731 = vmatprep.subr.bf16.mxu1 %v13728_v29  ;;  %v13185_v13 = vld [vmem:[%s13816_s12 + $0x40c] sm:$0xff]  }
 0x1f7   : > { %11996 = vmatpush3.bf16.msra.mxu0 %v13149_v9  ;;  %2324 = vmatprep.mubr.bf16.mxu0 %v2135_v21 }
 0x1f8   : > { %2022 = vmatmul.mubr.bf16.vlgmr.msra.gmra.mxu1 %v1831_v14  ;;  %11997 = vmatprep.subr.bf16.mxu0 %v13151_v12 }
 0x1f9   : > { %12732 = vmatpush3.bf16.msra.mxu1 %v2290_v15  ;;  %12737 = vmatprep.mubr.msk.bf16.mxu1 %vm13729_vm4, %v13728_v29 }
 0x1fa   : > { %12733 = vmatprep.subr.bf16.mxu1 %v13728_v29 }
 0x1fb   : > { %11998 = vmatpush3.bf16.msra.mxu0 %v13152_v16 }
 0x1fc   : > { %11999 = vmatprep.subr.bf16.mxu0 %v13154_v20 }
 0x1fd   : > { %12734 = vmatpush3.bf16.msra.mxu1 %v13153_v17 }
 0x1fe   : > { %12735 = vmatprep.subr.bf16.mxu1 %v13728_v29 }
 0x1ff   : > { %12000 = vmatpush3.bf16.msra.mxu0 %v13155_v22 }
 0x200   : > { %12001 = vmatprep.subr.bf16.mxu0 %v13157_v23 }
 0x201   : > { %12736 = vmatpush3.bf16.msra.mxu1 %v13156_v24 }
 0x202   : > { %12021 = vmatprep.subr.bf16.mxu1 %v13167_v27 }
 0x203   : > { %12002 = vmatpush3.bf16.msra.mxu0 %v13158_v25 }
 0x204   : > { %12738 = vmatmul.mubr.msk.bf16.vlgmr.msra.gmra.mxu1 %vm573_vm5, %v2136_v34  ;;  %12003 = vmatprep.subr.bf16.mxu0 %v13159_v31 }
 0x205   : > { %12022 = vmatpush3.bf16.msra.mxu1 %v13168_v18 }
 0x206   : > { %12023 = vmatprep.subr.bf16.mxu1 %v13169_v40 }
 0x207   : > { %12004 = vmatpush3.bf16.msra.mxu0 %v13160_v32  ;;  %v655_v1 = vpop.f32.mrf.mxu1 }
 0x208   : > { %v11855_v51 = vpop.f32.mrf.mxu0  ;;  %12005 = vmatprep.subr.bf16.mxu0 %v13161_v39 }
 0x209   : > { %v12679_v19 = vpop.f32.mrf.mxu1  ;;  %12024 = vmatpush3.bf16.msra.mxu1 %v13170_v43 }
 0x20a   : > { %v11856_v38 = vpop.f32.mrf.mxu0  ;;  %12025 = vmatprep.subr.bf16.mxu1 %v13171_v47 }
 0x20b   : > { %12006 = vmatpush3.bf16.msra.mxu0 %v13162_v42  ;;  %v11857_v55 = vadd.f32 %v11856_v38, %v11855_v51  ;;  %v658_v58 = vpop.f32.mrf.mxu1 }
 0x20c   : > { %v11858_v35 = vpop.f32.mrf.mxu0  ;;  %12007 = vmatprep.subr.bf16.mxu0 %v13163_v28 }
 0x20d   : > { %v656_v60 = vadd.f32 %v11857_v55, %v655_v1  ;;  %v12680_v50 = vpop.f32.mrf.mxu1  ;;  %12026 = vmatpush3.bf16.msra.mxu1 %v13172_v49  ;;  %v3593_v55 = vstv %s3587_s30  ;;  %s14629_s30 = sld [smem:[#allocation3 + %s5105_s17]] }
 0x20e   : > { %v11859_v63 = vpop.f32.mrf.mxu0  ;;  %12027 = vmatprep.subr.bf16.mxu1 %v13173_v52  ;;  %v3594_v62 = vmul.f32 %v14389_v61, %v3593_v55 }
 0x20f   : > { %12008 = vmatpush3.bf16.msra.mxu0 %v13164_v53 }
 0x210   : > { %12009 = vmatprep.subr.bf16.mxu0 %v13165_v54 }
 0x211   : > { %12028 = vmatpush3.bf16.msra.mxu1 %v13174_v36 }
 0x212   : > { %12029 = vmatprep.subr.bf16.mxu1 %v13175_v59 }
 0x213   : > { %12010 = vmatpush3.bf16.msra.mxu0 %v13166_v33 }
 0x214   : > { %12741 = vmatprep.subr.bf16.mxu0 %v13728_v29  ;;  %v852_v44 = vpop.f32.mrf.mxu0 }
 0x215   : > { %12030 = vmatpush3.bf16.msra.mxu1 %v13176_v41 }
 0x216   : > { %2325 = vmatmul.mubr.bf16.vlgmr.msra.gmra.mxu0 %v2134_v4  ;;  %12031 = vmatprep.subr.bf16.mxu1 %v13177_v8  ;;  %v12689_v6 = vpop.f32.mrf.mxu0 }
 0x217   : > { %12742 = vmatpush3.bf16.msra.mxu0 %v2593_v0  ;;  %12747 = vmatprep.mubr.msk.bf16.mxu0 %vm13729_vm4, %v13728_v29  ;;  %v3896_v0 = vstv %s14560_s6  ;;  %s14634_s6 = sld [smem:[#allocation3 + %s5103_s25]] }
 0x218   : > { %12743 = vmatprep.subr.bf16.mxu0 %v13728_v29  ;;  %v855_v9 = vpop.f32.mrf.mxu0 }
 0x219   : > { %12032 = vmatpush3.bf16.msra.mxu1 %v13179_v2  ;;  %v13187_v2 = vld [vmem:[%s13816_s12 + $0x4d8] sm:$0xff]  }
 0x21a   : > { %12033 = vmatprep.subr.bf16.mxu1 %v13180_v57  ;;  %v12690_v12 = vpop.f32.mrf.mxu0 }
 0x21b   : > { %12744 = vmatpush3.bf16.msra.mxu0 %v13181_v5 }
 0x21c   : > { %12745 = vmatprep.subr.bf16.mxu0 %v13728_v29 }
 0x21d   : > { %12034 = vmatpush3.bf16.msra.mxu1 %v13182_v7 }
 0x21e   : > { %12035 = vmatprep.subr.bf16.mxu1 %v13183_v3 }
 0x21f   : > { %12746 = vmatpush3.bf16.msra.mxu0 %v13184_v10 }
 0x220   : > { %12047 = vmatprep.subr.bf16.mxu0 %v13186_v11  ;;  %v3897_v11 = vmul.f32 %v14389_v61, %v3896_v0 }
 0x221   : > { %12036 = vmatpush3.bf16.msra.mxu1 %v13185_v13  ;;  %v3613_v13 = vstv %s14567_s29  ;;  %s14661_s29 = sld [smem:[#allocation6 + %s4191_s23]]  ;;  %s14678_s23 = smul.u32 3, %s5403_s15 }
 0x222   : > { %12751 = vmatprep.subr.bf16.mxu1 %v13728_v29 }
 0x227   : > { %v11881_v21 = vpop.f32.mrf.mxu1 }
 0x229   : > { %v11882_v14 = vpop.f32.mrf.mxu1 }
 0x22a   : > { %v11883_v15 = vadd.f32 %v11882_v14, %v11881_v21 }
 0x22b   : > { %v11884_v16 = vpop.f32.mrf.mxu1 }
 0x22c   : > { %v813_v17 = vadd.f32 %v11883_v15, %v656_v60  ;;  %v13188_v60 = vld [vmem:[%s13816_s12 + $0x530] ss:$0 sps:$4 sm:$0xff]  }
 0x22d   : > { %v11885_v20 = vpop.f32.mrf.mxu1  ;;  %v2896_v3 = vsel %vm577_vm2, %v13188_v60, 0  ;;  %v13190_v16 = vld [vmem:[%s13816_s12 + $0x4d0] sm:$0xff]  }
 0x22e   : > { %v853_v22 = vadd.f32 %v852_v44, %v813_v17  ;;  %v13189_v44 = vld [vmem:[%s13816_s12 + $0x510] sm:$0xff]   ;;  %v13191_v20 = vld [vmem:[%s13816_s12 + $0x528] sm:$0xff]  }
 0x22f   : > { %v13198_v60 = vld [vmem:[%s13816_s12 + $0x56c] sm:$0xff]  }
 0x233   : > { %v1154_v56 = vpop.f32.mrf.mxu1 }
 0x235   : > { %v11907_v23 = vpop.f32.mrf.mxu0  ;;  %v12699_v24 = vpop.f32.mrf.mxu1 }
 0x237   : > { %v11908_v25 = vpop.f32.mrf.mxu0  ;;  %v1157_v26 = vpop.f32.mrf.mxu1 }
 0x238   : > { %v11909_v27 = vadd.f32 %v11908_v25, %v11907_v23 }
 0x239   : > { %v11910_v31 = vpop.f32.mrf.mxu0  ;;  %v12700_v32 = vpop.f32.mrf.mxu1 }
 0x23a   : > { %v1155_v18 = vadd.f32 %v11909_v27, %v1154_v56 }
 0x23b   : > { %v11911_v34 = vpop.f32.mrf.mxu0 }
 0x23c   : > { %v14555_v39 = vadd.f32 %v1155_v18, %v853_v22  ;;  %v13192_v22 = vld [vmem:[%s13816_s12 + $0x508] sm:$0xff]  }
 0x242   : > { %v2412_v40 = vpop.permute.xlu1 %2411  ;;  %v2406_v42 = vpop.permute.xlu0 %2405 }
 0x243   : > { %v2413_v43 = vrot.slane %v2412_v40, 2  ;;  %v2407_v28 = vrot.slane %v2406_v42, 2 }
 0x245   : > { %v2408_v47 = vsel %vm267_vm1, %v2406_v42, %v2407_v28  ;;  %v2414_v52 = vsel %vm277_vm3, %v2412_v40, %v2413_v43  ;;  %v13193_v40 = vld [vmem:[%s13816_s12 + $0x4c8] sm:$0xff]   ;;  %v3916_v42 = vstv %s14585_s28  ;;  %s4799_s28 = sld [smem:[#allocation3 + %s14572_s14]]  ;;  %s6009_s14 = sadd.s32 19, %s13809_s7 }
 0x246   : > { %v2410_v1 = vmax.f32 %v14329_v30, %v2408_v47  ;;  %v2715_v49 = vpop.permute.xlu1 %2714  ;;  %v2709_v51 = vpop.permute.xlu0 %2708  ;;  %v13194_v47 = vld [vmem:[%s13816_s12 + $0x520] sm:$0xff]  }
 0x247   : > { %v2716_v19 = vrot.slane %v2715_v49, 2  ;;  %v2710_v53 = vrot.slane %v2709_v51, 2 }
 0x248   : > { %v2416_v38 = vmax.f32 %v2410_v1, %v2414_v52  ;;  %v13195_v1 = vld [vmem:[%s13816_s12 + $0x500] sm:$0xff]  }
 0x249   : > { %v2711_v54 = vsel %vm267_vm1, %v2709_v51, %v2710_v53  ;;  %v2717_v36 = vsel %vm277_vm3, %v2715_v49, %v2716_v19  ;;  %v13197_v53 = vld [vmem:[%s13816_s12 + $0x5ac] sm:$0xff]  }
 0x24a   : > { %v2418_v30 = vcombine.high %v2416_v38, %v2416_v38  ;;  %v2713_v58 = vmax.f32 %v14357_v46, %v2711_v54  ;;  %v2425_v35 = vrot.slane %v2416_v38, %v14019_v45  ;;  %v3608_v59 = vpop.permute.xlu1 %3607 }
 0x24b   : > { %v3599_v63 = vpop.permute.xlu0 %3598  ;;  %v3609_v46 = vrot.slane %v3608_v59, 2 }
 0x24c   : > { %v2432_v50 = vrot.slane %v2418_v30, %v14019_v45  ;;  %v14580_v33 = vmax.f32 %v2713_v58, %v2717_v36  ;;  %v2433_v41 = vcombine.high %v2425_v35, %v2425_v35  ;;  %v3600_v8 = vrot.slane %v3599_v63, 2  ;;  %v13196_v58 = vld [vmem:[%s13816_s12 + $0x4c0] sm:$0xff]  }
 0x24d   : > { %v2437_v7 = vpack.c.bf16 %v2425_v35, %v2425_v35  ;;  %v3610_v21 = vsel %vm277_vm3, %v3608_v59, %v3609_v46  ;;  %v4199_v30 = vstv %s14603_s20  ;;  %v4816_v35 = vstv %s14608_s24  ;;  %v13201_v46 = vld [vmem:[%s13816_s12 + $0x5a4] sm:$0xff]   ;;  %s14698_s20 = sld [smem:[#allocation6 + %s4494_s22]]  ;;  %s5408_s24 = sadd.s32 2, %s14678_s23 }
 0x24e   : > { %v2439_v4 = vpack.c.bf16 %v2432_v50, %v2432_v50  ;;  %v2438_v57 = vpack.c.bf16 %v2433_v41, %v2433_v41  ;;  %v3601_v5 = vsel %vm267_vm1, %v3599_v63, %v3600_v8  ;;  %v3911_v6 = vpop.permute.xlu1 %3910  ;;  %v14600_v9 = vrot.slane %v14580_v33, %v14019_v45  ;;  %v13199_v41 = vld [vmem:[%s13816_s12 + $0x4f8] sm:$0xff]   ;;  %s14711_s22 = smul.u32 3, %s5706_s26  ;;  %s14720_s17 = sld [smem:[#allocation3 + %s5408_s24]] }
 0x24f   : > { %v3603_v10 = vadd.f32 %v3601_v5, %v3594_v62  ;;  %v3902_v12 = vpop.permute.xlu0 %3901  ;;  %v3912_v14 = vrot.slane %v3911_v6, 2  ;;  %v2721_v56 = vcombine.high %v14580_v33, %v14580_v33  ;;  %v4807_v36 = vstv %s14614_s27  ;;  %v14671_v33 = vld [vmem:[%s16242_s0] sm:$0x3f]  ;;  %s5406_s27 = sadd.s32 1, %s14678_s23  ;;  %s6312_s24 = sadd.s32 20, %s13809_s7 }
 0x250   : > { %2627 = vmatprep.mubr.bf16.mxu1 %v2438_v57  ;;  %12748 = vmatmul.mubr.msk.bf16.vlgmr.msra.gmra.mxu0 %vm573_vm5, %v2439_v4  ;;  %v3903_v15 = vrot.slane %v3902_v12, 2  ;;  %v2736_v61 = vcombine.high %v14600_v9, %v14600_v9  ;;  %v4200_v62 = vmul.f32 %v14671_v33, %v4199_v30  ;;  %v4817_v4 = vmul.f32 %v14671_v33, %v4816_v35  ;;  %s14724_s25 = sld [smem:[#allocation3 + %s5406_s27]]  ;;  %s14897_s27 = smul.u32 3, %s6312_s24 }
 0x251   : > { %12048 = vmatpush3.bf16.msra.mxu0 %v13187_v2  ;;  %2628 = vmatmul.mubr.bf16.vlgmr.msra.gmra.mxu1 %v2437_v7  ;;  %v3612_v17 = vadd.f32 %v3610_v21, %v3603_v10  ;;  %v3913_v18 = vsel %vm277_vm3, %v3911_v6, %v3912_v14  ;;  %v2735_v49 = vrot.slane %v2721_v56, %v14019_v45  ;;  %v4502_v5 = vstv %s14627_s21  ;;  %v13200_v6 = vld [vmem:[%s13816_s12 + $0x4b8] sm:$0xff]   ;;  %v13202_v10 = vld [vmem:[%s13816_s12 + $0x564] sm:$0xff]   ;;  %s5711_s21 = sadd.s32 2, %s14711_s22 }
 0x252   : > { %12752 = vmatpush3.bf16.msra.mxu1 %v2896_v3  ;;  %12049 = vmatprep.subr.bf16.mxu0 %v13189_v44  ;;  %v3904_v23 = vsel %vm267_vm1, %v3902_v12, %v3903_v15  ;;  %v3018_v24 = vpop.permute.xlu1 %3017  ;;  %v2741_v25 = vpack.c.bf16 %v2736_v61, %v2736_v61  ;;  %v4808_v57 = vmul.f32 %v14671_v33, %v4807_v36  ;;  %v5119_v7 = vstv %s14629_s30  ;;  %v13205_v15 = vld [vmem:[%s13816_s12 + $0x59c] sm:$0xff]   ;;  %s5709_s30 = sadd.s32 1, %s14711_s22 }
 0x253   : > { %12753 = vmatprep.subr.bf16.mxu1 %v13728_v29  ;;  %12757 = vmatprep.mubr.msk.bf16.mxu1 %vm13729_vm4, %v13728_v29  ;;  %v3906_v26 = vadd.f32 %v3904_v23, %v3897_v11  ;;  %v3012_v27 = vpop.permute.xlu0 %3011  ;;  %v3019_v31 = vrot.slane %v3018_v24, 2  ;;  %v3614_v32 = vadd.f32 %v3613_v13, %v3612_v17  ;;  %v2742_v50 = vpack.c.bf16 %v2735_v49, %v2735_v49  ;;  %v13203_v11 = vld [vmem:[%s13816_s12 + $0x4f0] sm:$0xff]   ;;  %v13212_v36 = vld [vmem:[%s13816_s12 + $0x4a0] sm:$0xff]  }
 0x254   : > { %v3013_v34 = vrot.slane %v3012_v27, 2  ;;  %2930 = vmatprep.mubr.bf16.mxu0 %v2741_v25  ;;  %v5110_v3 = vstv %s14634_s6  ;;  %v4503_v61 = vmul.f32 %v14671_v33, %v4502_v5  ;;  %v13204_v25 = vld [vmem:[%s13816_s12 + $0x4b0] sm:$0xff]   ;;  %v4522_v49 = vstv %s14698_s20  ;;  %s14736_s6 = sld [smem:[#allocation3 + %s5711_s21]]  ;;  %v13217_v5 = vld [vmem:[%s13816_s12 + $0x544] sm:$0xff]   ;;  %s14881_s20 = smul.u32 3, %s6009_s14 }
 0x255   : > { %12050 = vmatpush3.bf16.msra.mxu0 %v13190_v16  ;;  %v3915_v43 = vadd.f32 %v3913_v18, %v3906_v26  ;;  %v14636_v28 = vmax.f32 %v3614_v32, 0.0  ;;  %v3020_v52 = vsel %vm277_vm3, %v3018_v24, %v3019_v31  ;;  %v4219_v26 = vstv %s14661_s29  ;;  %v13206_v31 = vld [vmem:[%s13816_s12 + $0x55c] sm:$0xff]   ;;  %v13207_v32 = vld [vmem:[%s13816_s12 + $0x4e8] sm:$0xff]   ;;  %s14742_s29 = sld [smem:[#allocation3 + %s5709_s30]]  ;;  %s6317_s30 = sadd.s32 2, %s14897_s27 }
 0x256   : > { %12754 = vmatpush3.bf16.msra.mxu1 %v13191_v20  ;;  %12051 = vmatprep.subr.bf16.mxu0 %v13192_v22  ;;  %v3014_v51 = vsel %vm267_vm1, %v3012_v27, %v3013_v34  ;;  %v14643_v19 = vpop.permute.xlu1 %3320  ;;  %v5120_v20 = vmul.f32 %v14671_v33, %v5119_v7  ;;  %v5111_v22 = vmul.f32 %v14671_v33, %v5110_v3  ;;  %s6014_s13 = sadd.s32 2, %s14881_s20 }
 0x257   : > { %12755 = vmatprep.subr.bf16.mxu1 %v13728_v29  ;;  %v3016_v38 = vmax.f32 %v14433_v37, %v3014_v51  ;;  %3623 = vrot.lane.b32.xlu1 %v14636_v28, %s13727_s11  ;;  %v14652_v54 = vpop.permute.xlu0 %3314  ;;  %v3917_v55 = vadd.f32 %v3916_v42, %v3915_v43  ;;  %v3322_v35 = vrot.slane %v14643_v19, 2  ;;  %s14916_s21 = sld [smem:[#allocation3 + %s6014_s13]]  ;;  %s6918_s13 = sadd.s32 22, %s13809_s7 }
 0x258   : > { %3617 = vrot.lane.b32.xlu0 %v14636_v28, %s13726_s10 }
 0x259   : > { %12052 = vmatpush3.bf16.msra.mxu0 %v13193_v40  ;;  %v14663_v37 = vmax.f32 %v3016_v38, %v3020_v52  ;;  %v14665_v59 = vmax.f32 %v3917_v55, 0.0  ;;  %v13209_v40 = vld [vmem:[%s13816_s12 + $0x594] sm:$0xff]   ;;  %v13211_v38 = vld [vmem:[%s13816_s12 + $0x4e0] sm:$0xff]   ;;  %v13213_v55 = vld [vmem:[%s13816_s12 + $0x58c] sm:$0xff]  }
 0x25a   : > { %12756 = vmatpush3.bf16.msra.mxu1 %v13194_v47  ;;  %12053 = vmatprep.subr.bf16.mxu0 %v13195_v1  ;;  %v4214_v63 = vpop.permute.xlu1 %4213  ;;  %v3316_v47 = vrot.slane %v14652_v54, 2  ;;  %v13208_v1 = vld [vmem:[%s13816_s12 + $0x4a8] sm:$0xff]  }
 0x25b   : > { %12073 = vmatprep.subr.bf16.mxu1 %v13197_v53  ;;  %v14682_v8 = vrot.slane %v14663_v37, %v14019_v45  ;;  %3926 = vrot.lane.b32.xlu1 %v14665_v59, %s13727_s11  ;;  %v4205_v0 = vpop.permute.xlu0 %4204  ;;  %v4215_v2 = vrot.slane %v4214_v63, 2  ;;  %v13210_v53 = vld [vmem:[%s13816_s12 + $0x554] sm:$0xff]  }
 0x25c   : > { %3920 = vrot.lane.b32.xlu0 %v14665_v59, %s13726_s10  ;;  %v4206_v44 = vrot.slane %v4205_v0, 2 }
 0x25d   : > { %12054 = vmatpush3.bf16.msra.mxu0 %v13196_v58  ;;  %12758 = vmatmul.mubr.msk.bf16.vlgmr.msra.gmra.mxu1 %vm573_vm5, %v2742_v50  ;;  %v4216_v13 = vsel %vm277_vm3, %v4214_v63, %v4215_v2  ;;  %v3039_v14 = vcombine.high %v14682_v8, %v14682_v8  ;;  %v3317_v58 = vsel %vm267_vm1, %v14652_v54, %v3316_v47  ;;  %v5413_v63 = vstv %s14724_s25  ;;  %v13215_v54 = vld [vmem:[%s13816_s12 + $0x584] sm:$0xff]   ;;  %s14912_s25 = sld [smem:[#allocation3 + %s14678_s23]] }
 0x25e   : > { %12074 = vmatpush3.bf16.msra.mxu1 %v13198_v60  ;;  %v4207_v12 = vsel %vm267_vm1, %v4205_v0, %v4206_v44  ;;  %12055 = vmatprep.subr.bf16.mxu0 %v13199_v41  ;;  %v4517_v21 = vpop.permute.xlu1 %4516  ;;  %v5422_v60 = vstv %s14720_s17  ;;  %v13216_v41 = vld [vmem:[%s13816_s12 + $0x5c4] ss:$0 sps:$4 sm:$0xff]   ;;  %v3323_v2 = vsel %vm277_vm3, %v14643_v19, %v3322_v35  ;;  %v13218_v19 = vld [vmem:[%s13816_s12 + $0x57c] sm:$0xff]   ;;  %s6012_s17 = sadd.s32 1, %s14881_s20 }
 0x25f   : > { %12075 = vmatprep.subr.bf16.mxu1 %v13201_v46  ;;  %v4209_v16 = vadd.f32 %v4207_v12, %v4200_v62  ;;  %4819 = vrot.lane.b32.xlu1 %v4817_v4, %s13727_s11  ;;  %v4508_v17 = vpop.permute.xlu0 %4507  ;;  %v4518_v23 = vrot.slane %v4517_v21, 2  ;;  %v3044_v24 = vpack.c.bf16 %v3039_v14, %v3039_v14  ;;  %v13214_v62 = vld [vmem:[%s13816_s12 + $0x54c] sm:$0xff]   ;;  %v3319_v46 = vmax.f32 %v14448_v48, %v3317_v58  ;;  %v13220_v12 = vld [vmem:[%s13816_s12 + $0x53c] sm:$0xff]   ;;  %v13247_v58 = vld [vmem:[%s13816_s12 + $0x6c4] sm:$0xff]   ;;  %s14923_s23 = sld [smem:[#allocation3 + %s6012_s17]] }
 0x260   : > { %4810 = vrot.lane.b32.xlu0 %v4808_v57, %s13726_s10  ;;  %v4509_v56 = vrot.slane %v4508_v17, 2  ;;  %v5423_v0 = vmul.f32 %v14671_v33, %v5422_v60  ;;  %v5414_v4 = vmul.f32 %v14671_v33, %v5413_v63  ;;  %v5725_v57 = vstv %s14736_s6  ;;  %v13235_v47 = vld [vmem:[%s13816_s12 + $0x620] sm:$0xff]   ;;  %v13238_v60 = vld [vmem:[%s13816_s12 + $0x5d8] sm:$0xff]   ;;  %s14929_s6 = sld [smem:[#allocation3 + %s14711_s22]] }
 0x261   : > { %12056 = vmatpush3.bf16.msra.mxu0 %v13200_v6  ;;  %v4218_v27 = vadd.f32 %v4216_v13, %v4209_v16  ;;  %v4519_v34 = vsel %vm277_vm3, %v4517_v21, %v4518_v23  ;;  %3233 = vmatprep.mubr.bf16.mxu1 %v3044_v24  ;;  %v2740_v48 = vpack.c.bf16 %v14600_v9, %v14600_v9  ;;  %v3199_v44 = vsel %vm577_vm2, %v13216_v41, 0  ;;  %v13221_v13 = vld [vmem:[%s13816_s12 + $0x574] sm:$0xff]   ;;  %v13224_v16 = vld [vmem:[%s13816_s12 + $0x640] sm:$0xff]  }
 0x262   : > { %12076 = vmatpush3.bf16.msra.mxu1 %v13202_v10  ;;  %12057 = vmatprep.subr.bf16.mxu0 %v13203_v11  ;;  %v4510_v18 = vsel %vm267_vm1, %v4508_v17, %v4509_v56  ;;  %v5716_v6 = vstv %s14742_s29  ;;  %v3325_v7 = vmax.f32 %v3319_v46, %v3323_v2  ;;  %v5726_v3 = vmul.f32 %v14671_v33, %v5725_v57  ;;  %v13219_v10 = vld [vmem:[%s13816_s12 + $0x5bc] sm:$0xff]   ;;  %v13239_v41 = vld [vmem:[%s13816_s12 + $0x610] sm:$0xff]   ;;  %s6315_s29 = sadd.s32 1, %s14897_s27 }
 0x263   : > { %12077 = vmatprep.subr.bf16.mxu1 %v13205_v15  ;;  %v4512_v42 = vadd.f32 %v4510_v18, %v4503_v61  ;;  %5122 = vrot.lane.b32.xlu1 %v5120_v20, %s13727_s11  ;;  %v4220_v43 = vadd.f32 %v4219_v26, %v4218_v27  ;;  %v5717_v9 = vmul.f32 %v14671_v33, %v5716_v6  ;;  %v13223_v15 = vld [vmem:[%s13816_s12 + $0x534] sm:$0xff]   ;;  %v13225_v20 = vld [vmem:[%s13816_s12 + $0x600] sm:$0xff]   ;;  %v13232_v18 = vld [vmem:[%s13816_s12 + $0x648] sm:$0xff]   ;;  %s14951_s22 = sld [smem:[#allocation3 + %s6315_s29]] }
 0x264   : > { %5113 = vrot.lane.b32.xlu0 %v5111_v22, %s13726_s10  ;;  %v3024_v11 = vcombine.high %v14663_v37, %v14663_v37  ;;  %v14790_v21 = vrot.slane %v3325_v7, %v14019_v45  ;;  %v13222_v37 = vld [vmem:[%s13816_s12 + $0x5b4] sm:$0xff]   ;;  %v3043_v56 = vpack.c.bf16 %v14682_v8, %v14682_v8  ;;  %v13250_v6 = vld [vmem:[%s13816_s12 + $0x67c] sm:$0xff]  }
 0x265   : > { %12058 = vmatpush3.bf16.msra.mxu0 %v13204_v25  ;;  %v4521_v51 = vadd.f32 %v4519_v34, %v4512_v42  ;;  %v14738_v52 = vmax.f32 %v4220_v43, 0.0  ;;  %v13226_v61 = vld [vmem:[%s13816_s12 + $0x658] ss:$0 sps:$4 sm:$0xff]   ;;  %v13229_v27 = vld [vmem:[%s13816_s12 + $0x650] sm:$0xff]   ;;  %v13233_v34 = vld [vmem:[%s13816_s12 + $0x628] sm:$0xff]  }
 0x266   : > { %12078 = vmatpush3.bf16.msra.mxu1 %v13206_v31  ;;  %12059 = vmatprep.subr.bf16.mxu0 %v13207_v32  ;;  %v3038_v14 = vrot.slane %v3024_v11, %v14019_v45  ;;  %v3342_v17 = vcombine.high %v14790_v21, %v14790_v21  ;;  %v3502_v23 = vsel %vm577_vm2, %v13226_v61, 0  ;;  %v13227_v24 = vld [vmem:[%s13816_s12 + $0x638] sm:$0xff]   ;;  %v13230_v8 = vld [vmem:[%s13816_s12 + $0x630] sm:$0xff]   ;;  %v3327_v31 = vcombine.high %v3325_v7, %v3325_v7  ;;  %v13234_v43 = vld [vmem:[%s13816_s12 + $0x5e8] sm:$0xff]  }
 0x267   : > { %12079 = vmatprep.subr.bf16.mxu1 %v13209_v40  ;;  %4229 = vrot.lane.b32.xlu1 %v14738_v52, %s13727_s11  ;;  %v4523_v30 = vadd.f32 %v4522_v49, %v4521_v51  ;;  %v13228_v26 = vld [vmem:[%s13816_s12 + $0x5f8] sm:$0xff]   ;;  %v13231_v32 = vld [vmem:[%s13816_s12 + $0x5f0] sm:$0xff]   ;;  %v13257_v61 = vld [vmem:[%s13816_s12 + $0x6e4] sm:$0xff]  }
 0x268   : > { %4223 = vrot.lane.b32.xlu0 %v14738_v52, %s13726_s10  ;;  %v3045_v22 = vpack.c.bf16 %v3038_v14, %v3038_v14  ;;  %v3347_v25 = vpack.c.bf16 %v3342_v17, %v3342_v17  ;;  %v3341_v40 = vrot.slane %v3327_v31, %v14019_v45  ;;  %v13243_v42 = vld [vmem:[%s13816_s12 + $0x6d4] sm:$0xff]   ;;  %v13245_v51 = vld [vmem:[%s13816_s12 + $0x6cc] sm:$0xff]   ;;  %v13258_v17 = vld [vmem:[%s13816_s12 + $0x664] sm:$0xff]  }
 0x269   : > { %12060 = vmatpush3.bf16.msra.mxu0 %v13208_v1  ;;  %v14754_v50 = vmax.f32 %v4523_v30, 0.0  ;;  %v13244_v1 = vld [vmem:[%s13816_s12 + $0x694] sm:$0xff]   ;;  %v13246_v30 = vld [vmem:[%s13816_s12 + $0x68c] sm:$0xff]  }
 0x26a   : > { %12080 = vmatpush3.bf16.msra.mxu1 %v13210_v53  ;;  %12061 = vmatprep.subr.bf16.mxu0 %v13211_v38  ;;  %v3348_v49 = vpack.c.bf16 %v3341_v40, %v3341_v40  ;;  %v13236_v53 = vld [vmem:[%s13816_s12 + $0x5e0] sm:$0xff]   ;;  %v13251_v7 = vld [vmem:[%s13816_s12 + $0x6b4] sm:$0xff]   ;;  %v13253_v11 = vld [vmem:[%s13816_s12 + $0x6ac] sm:$0xff]  }
 0x26b   : > { %12081 = vmatprep.subr.bf16.mxu1 %v13213_v55  ;;  %4532 = vrot.lane.b32.xlu1 %v14754_v50, %s13727_s11  ;;  %v13237_v55 = vld [vmem:[%s13816_s12 + $0x618] sm:$0xff]   ;;  %v13255_v14 = vld [vmem:[%s13816_s12 + $0x66c] sm:$0xff]  }
 0x26c   : > { %4526 = vrot.lane.b32.xlu0 %v14754_v50, %s13726_s10 }
 0x26d   : > { %12062 = vmatpush3.bf16.msra.mxu0 %v13212_v36 }
 0x26e   : > { %12082 = vmatpush3.bf16.msra.mxu1 %v13214_v62  ;;  %12761 = vmatprep.subr.bf16.mxu0 %v13728_v29 }
 0x26f   : > { %12083 = vmatprep.subr.bf16.mxu1 %v13215_v54  ;;  %5425 = vrot.lane.b32.xlu1 %v5423_v0, %s13727_s11  ;;  %v13248_v54 = vld [vmem:[%s13816_s12 + $0x684] sm:$0xff]   ;;  %v13249_v0 = vld [vmem:[%s13816_s12 + $0x6bc] sm:$0xff]  }
 0x270   : > { %2931 = vmatmul.mubr.bf16.vlgmr.msra.gmra.mxu0 %v2740_v48  ;;  %5416 = vrot.lane.b32.xlu0 %v5414_v4, %s13726_s10  ;;  %v13240_v48 = vld [vmem:[%s13816_s12 + $0x5d0] sm:$0xff]  }
 0x271   : > { %12762 = vmatpush3.bf16.msra.mxu0 %v3199_v44  ;;  %12767 = vmatprep.mubr.msk.bf16.mxu0 %vm13729_vm4, %v13728_v29 }
 0x272   : > { %12084 = vmatpush3.bf16.msra.mxu1 %v13217_v5  ;;  %12763 = vmatprep.subr.bf16.mxu0 %v13728_v29  ;;  %v13241_v5 = vld [vmem:[%s13816_s12 + $0x608] sm:$0xff]  }
 0x273   : > { %12085 = vmatprep.subr.bf16.mxu1 %v13218_v19  ;;  %5728 = vrot.lane.b32.xlu1 %v5726_v3, %s13727_s11  ;;  %v13242_v3 = vld [vmem:[%s13816_s12 + $0x5c8] sm:$0xff]  }
 0x274   : > { %5719 = vrot.lane.b32.xlu0 %v5717_v9, %s13726_s10  ;;  %v13252_v9 = vld [vmem:[%s13816_s12 + $0x674] sm:$0xff]  }
 0x275   : > { %12764 = vmatpush3.bf16.msra.mxu0 %v13219_v10  ;;  %v13254_v10 = vld [vmem:[%s13816_s12 + $0x6ec] ss:$0 sps:$4 sm:$0xff]  }
 0x276   : > { %12086 = vmatpush3.bf16.msra.mxu1 %v13220_v12  ;;  %12765 = vmatprep.subr.bf16.mxu0 %v13728_v29 }
 0x277   : > { %12087 = vmatprep.subr.bf16.mxu1 %v13221_v13  ;;  %v3346_v13 = vpack.c.bf16 %v14790_v21, %v14790_v21 }
 0x279   : > { %12766 = vmatpush3.bf16.msra.mxu0 %v13222_v37  ;;  %v3805_v37 = vsel %vm577_vm2, %v13254_v10, 0 }
 0x27a   : > { %12088 = vmatpush3.bf16.msra.mxu1 %v13223_v15  ;;  %12099 = vmatprep.subr.bf16.mxu0 %v13224_v16  ;;  %v13256_v15 = vld [vmem:[%s13816_s12 + $0x6a4] sm:$0xff]  }
 0x27b   : > { %12771 = vmatprep.subr.bf16.mxu1 %v13728_v29 }
 0x27c   : > { %12768 = vmatmul.mubr.msk.bf16.vlgmr.msra.gmra.mxu0 %vm573_vm5, %v3045_v22  ;;  %v13260_v22 = vld [vmem:[%s13816_s12 + $0x6dc] sm:$0xff]  }
 0x27d   : > { %3234 = vmatmul.mubr.bf16.vlgmr.msra.gmra.mxu1 %v3043_v56  ;;  %12100 = vmatpush3.bf16.msra.mxu0 %v13225_v20  ;;  %v13259_v20 = vld [vmem:[%s13816_s12 + $0x69c] sm:$0xff]  }
 0x27e   : > { %3536 = vmatprep.mubr.bf16.mxu0 %v3347_v25  ;;  %12772 = vmatpush3.bf16.msra.mxu1 %v3502_v23  ;;  %v13261_v56 = vld [vmem:[%s13816_s12 + $0x65c] sm:$0xff]   ;;  %v13262_v23 = vld [vmem:[%s13816_s12 + $0x768] sm:$0xff]  }
 0x27f   : > { %12101 = vmatprep.subr.bf16.mxu0 %v13227_v24  ;;  %12773 = vmatprep.subr.bf16.mxu1 %v13728_v29 }
 0x280   : > { %12777 = vmatprep.mubr.msk.bf16.mxu1 %vm13729_vm4, %v13728_v29 }
 0x281   : > { %12102 = vmatpush3.bf16.msra.mxu0 %v13228_v26 }
 0x282   : > { %12774 = vmatpush3.bf16.msra.mxu1 %v13229_v27  ;;  %12103 = vmatprep.subr.bf16.mxu0 %v13230_v8 }
 0x283   : > { %12775 = vmatprep.subr.bf16.mxu1 %v13728_v29 }
 0x285   : > { %12104 = vmatpush3.bf16.msra.mxu0 %v13231_v32 }
 0x286   : > { %12776 = vmatpush3.bf16.msra.mxu1 %v13232_v18  ;;  %12105 = vmatprep.subr.bf16.mxu0 %v13233_v34 }
 0x287   : > { %12125 = vmatprep.subr.bf16.mxu1 %v13243_v42 }
 0x289   : > { %12106 = vmatpush3.bf16.msra.mxu0 %v13234_v43  ;;  %12778 = vmatmul.mubr.msk.bf16.vlgmr.msra.gmra.mxu1 %vm573_vm5, %v3348_v49 }
 0x28a   : > { %v1457_v38 = vpop.f32.mrf.mxu0  ;;  %12107 = vmatprep.subr.bf16.mxu0 %v13235_v47  ;;  %12126 = vmatpush3.bf16.msra.mxu1 %v13244_v1 }
 0x28b   : > { %12127 = vmatprep.subr.bf16.mxu1 %v13245_v51  ;;  %v11933_v35 = vpop.f32.mrf.mxu1 }
 0x28c   : > { %v12709_v36 = vpop.f32.mrf.mxu0 }
 0x28d   : > { %12108 = vmatpush3.bf16.msra.mxu0 %v13236_v53  ;;  %v11934_v62 = vpop.f32.mrf.mxu1 }
 0x28e   : > { %v1460_v63 = vpop.f32.mrf.mxu0  ;;  %12109 = vmatprep.subr.bf16.mxu0 %v13237_v55  ;;  %12128 = vmatpush3.bf16.msra.mxu1 %v13246_v30  ;;  %v11935_v46 = vadd.f32 %v11934_v62, %v11933_v35 }
 0x28f   : > { %12129 = vmatprep.subr.bf16.mxu1 %v13247_v58  ;;  %v11936_v2 = vpop.f32.mrf.mxu1 }
 0x290   : > { %v12710_v4 = vpop.f32.mrf.mxu0  ;;  %v1458_v57 = vadd.f32 %v11935_v46, %v1457_v38  ;;  %v4805_v2 = vstv %s4799_s28  ;;  %s14936_s28 = sld [smem:[#allocation3 + %s6317_s30]] }
 0x291   : > { %12110 = vmatpush3.bf16.msra.mxu0 %v13238_v60  ;;  %v11937_v44 = vpop.f32.mrf.mxu1 }
 0x292   : > { %12111 = vmatprep.subr.bf16.mxu0 %v13239_v41  ;;  %12130 = vmatpush3.bf16.msra.mxu1 %v13248_v54  ;;  %v1463_v19 = vadd.f32 %v1458_v57, %v14555_v39 }
 0x293   : > { %12131 = vmatprep.subr.bf16.mxu1 %v13249_v0 }
 0x295   : > { %12112 = vmatpush3.bf16.msra.mxu0 %v13240_v48 }
 0x296   : > { %12113 = vmatprep.subr.bf16.mxu0 %v13241_v5  ;;  %12132 = vmatpush3.bf16.msra.mxu1 %v13250_v6 }
 0x297   : > { %12133 = vmatprep.subr.bf16.mxu1 %v13251_v7 }
 0x298   : > { %v1760_v12 = vpop.f32.mrf.mxu1 }
 0x299   : > { %12114 = vmatpush3.bf16.msra.mxu0 %v13242_v3 }
 0x29a   : > { %v12719_v39 = vpop.f32.mrf.mxu1  ;;  %12134 = vmatpush3.bf16.msra.mxu1 %v13252_v9  ;;  %12781 = vmatprep.subr.bf16.mxu0 %v13728_v29 }
 0x29b   : > { %12135 = vmatprep.subr.bf16.mxu1 %v13253_v11 }
 0x29c   : > { %v1763_v16 = vpop.f32.mrf.mxu1  ;;  %3537 = vmatmul.mubr.bf16.vlgmr.msra.gmra.mxu0 %v3346_v13 }
 0x29d   : > { %12782 = vmatpush3.bf16.msra.mxu0 %v3805_v37  ;;  %12787 = vmatprep.mubr.msk.bf16.mxu0 %vm13729_vm4, %v13728_v29 }
 0x29e   : > { %v12720_v21 = vpop.f32.mrf.mxu1  ;;  %12136 = vmatpush3.bf16.msra.mxu1 %v13255_v14  ;;  %12783 = vmatprep.subr.bf16.mxu0 %v13728_v29 }
 0x29f   : > { %12137 = vmatprep.subr.bf16.mxu1 %v13256_v15 }
 0x2a1   : > { %12784 = vmatpush3.bf16.msra.mxu0 %v13257_v61 }
 0x2a2   : > { %12138 = vmatpush3.bf16.msra.mxu1 %v13258_v17  ;;  %12785 = vmatprep.subr.bf16.mxu0 %v13728_v29  ;;  %v13263_v17 = vld [vmem:[%s13816_s12 + $0x728] sm:$0xff]  }
 0x2a3   : > { %12139 = vmatprep.subr.bf16.mxu1 %v13259_v20 }
 0x2a5   : > { %12786 = vmatpush3.bf16.msra.mxu0 %v13260_v22 }
 0x2a6   : > { %12140 = vmatpush3.bf16.msra.mxu1 %v13261_v56  ;;  %12151 = vmatprep.subr.bf16.mxu0 %v13262_v23 }
 0x2a7   : > { %12791 = vmatprep.subr.bf16.mxu1 %v13728_v29 }
 0x2aa   : > { %v11959_v24 = vpop.f32.mrf.mxu0 }
 0x2ac   : > { %v11960_v25 = vpop.f32.mrf.mxu0 }
 0x2ad   : > { %v11961_v26 = vadd.f32 %v11960_v25, %v11959_v24  ;;  %v13265_v25 = vld [vmem:[%s13816_s12 + $0x760] sm:$0xff]  }
 0x2ae   : > { %v11962_v27 = vpop.f32.mrf.mxu0 }
 0x2af   : > { %v1761_v8 = vadd.f32 %v11961_v26, %v1760_v12  ;;  %v13264_v12 = vld [vmem:[%s13816_s12 + $0x780] ss:$0 sps:$4 sm:$0xff]  }
 0x2b0   : > { %v11963_v31 = vpop.f32.mrf.mxu0  ;;  %v4108_v24 = vsel %vm577_vm2, %v13264_v12, 0  ;;  %v6028_v12 = vstv %s14916_s21 }
 0x2b1   : > { %v1766_v32 = vadd.f32 %v1761_v8, %v1463_v19  ;;  %v4806_v19 = vmul.f32 %v14671_v33, %v4805_v2 }
 0x2b6   : > { %v2063_v18 = vpop.f32.mrf.mxu0 }
 0x2b8   : > { %v11985_v34 = vpop.f32.mrf.mxu1  ;;  %v12729_v40 = vpop.f32.mrf.mxu0 }
 0x2ba   : > { %v11986_v42 = vpop.f32.mrf.mxu1  ;;  %v2066_v43 = vpop.f32.mrf.mxu0 }
 0x2bb   : > { %v11987_v47 = vadd.f32 %v11986_v42, %v11985_v34  ;;  %v4825_v42 = vstv %s14874_s16  ;;  %s6615_s16 = sadd.s32 21, %s13809_s7 }
 0x2bc   : > { %v11988_v1 = vpop.f32.mrf.mxu1  ;;  %v12730_v49 = vpop.f32.mrf.mxu0 }
 0x2bd   : > { %v2064_v51 = vadd.f32 %v11987_v47, %v2063_v18  ;;  %v13266_v49 = vld [vmem:[%s13816_s12 + $0x720] sm:$0xff]  }
 0x2be   : > { %v11989_v53 = vpop.f32.mrf.mxu1 }
 0x2bf   : > { %v14860_v38 = vadd.f32 %v2064_v51, %v1766_v32 }
 0x2c4   : > { %v14862_v55 = vpop.f32.mrf.mxu1 }
 0x2c6   : > { %v12739_v30 = vpop.f32.mrf.mxu1 }
 0x2c8   : > { %v2369_v58 = vpop.f32.mrf.mxu1 }
 0x2c9   : > { %v3624_v36 = vpop.permute.xlu1 %3623 }
 0x2ca   : > { %v12740_v35 = vpop.f32.mrf.mxu1  ;;  %v3618_v60 = vpop.permute.xlu0 %3617  ;;  %v3625_v62 = vrot.slane %v3624_v36, 2 }
 0x2cb   : > { %v3619_v63 = vrot.slane %v3618_v60, 2 }
 0x2cc   : > { %v3626_v4 = vsel %vm277_vm3, %v3624_v36, %v3625_v62  ;;  %v13268_v36 = vld [vmem:[%s13816_s12 + $0x758] sm:$0xff]  }
 0x2cd   : > { %v3620_v41 = vsel %vm267_vm1, %v3618_v60, %v3619_v63  ;;  %v3927_v54 = vpop.permute.xlu1 %3926  ;;  %v5128_v60 = vstv %s14889_s8  ;;  %s14995_s8 = sld [smem:[#allocation6 + %s5706_s26]] }
 0x2ce   : > { %v3622_v46 = vmax.f32 %v14636_v28, %v3620_v41  ;;  %v3921_v0 = vpop.permute.xlu0 %3920  ;;  %v3928_v57 = vrot.slane %v3927_v54, 2  ;;  %v5108_v28 = vstv %s14866_s9  ;;  %s14963_s9 = sld [smem:[#allocation6 + %s5403_s15]]  ;;  %s14985_s15 = smul.u32 3, %s6615_s16 }
 0x2cf   : > { %v3922_v48 = vrot.slane %v3921_v0, 2  ;;  %v5109_v61 = vmul.f32 %v14671_v33, %v5108_v28 }
 0x2d0   : > { %v3628_v44 = vmax.f32 %v3622_v46, %v3626_v4  ;;  %v3929_v13 = vsel %vm277_vm3, %v3927_v54, %v3928_v57  ;;  %v13267_v46 = vld [vmem:[%s13816_s12 + $0x778] sm:$0xff]   ;;  %s6620_s26 = sadd.s32 2, %s14985_s15  ;;  %s6618_s17 = sadd.s32 1, %s14985_s15 }
 0x2d1   : > { %v3923_v5 = vsel %vm267_vm1, %v3921_v0, %v3922_v48  ;;  %v4820_v6 = vpop.permute.xlu1 %4819  ;;  %s15025_s21 = sld [smem:[#allocation3 + %s6620_s26]] }
 0x2d2   : > { %v3630_v7 = vcombine.high %v3628_v44, %v3628_v44  ;;  %v3925_v3 = vmax.f32 %v14665_v59, %v3923_v5  ;;  %v4821_v9 = vrot.slane %v4820_v6, 2  ;;  %v4811_v10 = vpop.permute.xlu0 %4810  ;;  %v3637_v11 = vrot.slane %v3628_v44, %v14019_v45  ;;  %s15030_s30 = sld [smem:[#allocation3 + %s6618_s17]] }
 0x2d3   : > { %v4812_v39 = vrot.slane %v4811_v10, 2  ;;  %s15177_s26 = sld [smem:[#allocation3 + %s14897_s27]]  ;;  %s7524_s27 = sadd.s32 24, %s13809_s7 }
 0x2d4   : > { %v3644_v37 = vrot.slane %v3630_v7, %v14019_v45  ;;  %v14893_v14 = vmax.f32 %v3925_v3, %v3929_v13  ;;  %v3645_v59 = vcombine.high %v3637_v11, %v3637_v11  ;;  %v4822_v22 = vsel %vm277_vm3, %v4820_v6, %v4821_v9  ;;  %v13269_v6 = vld [vmem:[%s13816_s12 + $0x718] sm:$0xff]   ;;  %v13271_v7 = vld [vmem:[%s13816_s12 + $0x750] sm:$0xff]   ;;  %s15182_s17 = sld [smem:[#allocation6 + %s6009_s14]] }
 0x2d5   : > { %v4813_v15 = vsel %vm267_vm1, %v4811_v10, %v4812_v39  ;;  %v5123_v16 = vpop.permute.xlu1 %5122  ;;  %v3649_v40 = vpack.c.bf16 %v3637_v11, %v3637_v11  ;;  %v13270_v3 = vld [vmem:[%s13816_s12 + $0x770] sm:$0xff]   ;;  %v5411_v9 = vstv %s14912_s25  ;;  %s15017_s25 = smul.u32 3, %s6918_s13 }
 0x2d6   : > { %v12011_v21 = vpop.f32.mrf.mxu0  ;;  %v3651_v20 = vpack.c.bf16 %v3644_v37, %v3644_v37  ;;  %v4815_v56 = vadd.f32 %v4813_v15, %v4806_v19  ;;  %v5114_v23 = vpop.permute.xlu0 %5113  ;;  %v5124_v26 = vrot.slane %v5123_v16, 2  ;;  %v3650_v8 = vpack.c.bf16 %v3645_v59, %v3645_v59  ;;  %v13272_v39 = vld [vmem:[%s13816_s12 + $0x710] sm:$0xff]   ;;  %v13273_v37 = vld [vmem:[%s13816_s12 + $0x7fc] sm:$0xff]  }
 0x2d7   : > { %v5115_v27 = vrot.slane %v5114_v23, 2  ;;  %v14909_v32 = vrot.slane %v14893_v14, %v14019_v45  ;;  %v5412_v15 = vmul.f32 %v14671_v33, %v5411_v9  ;;  %v13287_v9 = vld [vmem:[%s13816_s12 + $0x730] sm:$0xff]  }
 0x2d8   : > { %v12012_v31 = vpop.f32.mrf.mxu0  ;;  %v4824_v18 = vadd.f32 %v4822_v22, %v4815_v56  ;;  %12788 = vmatmul.mubr.msk.bf16.vlgmr.msra.gmra.mxu0 %vm573_vm5, %v3651_v20  ;;  %3839 = vmatprep.mubr.bf16.mxu1 %v3650_v8  ;;  %v5125_v62 = vsel %vm277_vm3, %v5123_v16, %v5124_v26  ;;  %v6029_v20 = vmul.f32 %v14671_v33, %v6028_v12  ;;  %v5714_v22 = vstv %s14929_s6  ;;  %s6921_s6 = sadd.s32 1, %s15017_s25 }
 0x2d9   : > { %v12013_v34 = vadd.f32 %v12012_v31, %v12011_v21  ;;  %v5116_v43 = vsel %vm267_vm1, %v5114_v23, %v5115_v27  ;;  %12152 = vmatpush3.bf16.msra.mxu0 %v13263_v17  ;;  %v4230_v1 = vpop.permute.xlu1 %4229  ;;  %v3948_v51 = vcombine.high %v14909_v32, %v14909_v32  ;;  %3840 = vmatmul.mubr.bf16.vlgmr.msra.gmra.mxu1 %v3649_v40  ;;  %v13274_v17 = vld [vmem:[%s13816_s12 + $0x7bc] sm:$0xff]   ;;  %v6331_v56 = vstv %s14936_s28  ;;  %v13276_v31 = vld [vmem:[%s13816_s12 + $0x708] sm:$0xff]   ;;  %s15046_s28 = sld [smem:[#allocation3 + %s6921_s6]] }
 0x2da   : > { %v12014_v47 = vpop.f32.mrf.mxu0  ;;  %v5118_v53 = vadd.f32 %v5116_v43, %v5109_v61  ;;  %v4224_v58 = vpop.permute.xlu0 %4223  ;;  %12153 = vmatprep.subr.bf16.mxu0 %v13265_v25  ;;  %v4231_v35 = vrot.slane %v4230_v1, 2  ;;  %12792 = vmatpush3.bf16.msra.mxu1 %v4108_v24  ;;  %v4826_v0 = vadd.f32 %v4825_v42, %v4824_v18  ;;  %v13275_v25 = vld [vmem:[%s13816_s12 + $0x748] sm:$0xff]   ;;  %v13277_v18 = vld [vmem:[%s13816_s12 + $0x7f4] sm:$0xff]   ;;  %v6322_v40 = vstv %s14951_s22  ;;  %s15223_s6 = sld [smem:[#allocation3 + %s14985_s15]] }
 0x2db   : > { %v2367_v30 = vadd.f32 %v12013_v34, %v14862_v55  ;;  %v4225_v63 = vrot.slane %v4224_v58, 2  ;;  %v3953_v41 = vpack.c.bf16 %v3948_v51, %v3948_v51  ;;  %12797 = vmatprep.mubr.msk.bf16.mxu1 %vm13729_vm4, %v13728_v29  ;;  %v3933_v55 = vcombine.high %v14893_v14, %v14893_v14  ;;  %12793 = vmatprep.subr.bf16.mxu1 %v13728_v29  ;;  %s15239_s22 = sld [smem:[#allocation3 + %s15017_s25]] }
 0x2dc   : > { %v12015_v54 = vpop.f32.mrf.mxu0  ;;  %v5127_v2 = vadd.f32 %v5125_v62, %v5118_v53  ;;  %v4232_v48 = vsel %vm277_vm3, %v4230_v1, %v4231_v35  ;;  %v14946_v44 = vmax.f32 %v4826_v0, 0.0  ;;  %v6019_v14 = vstv %s14923_s23  ;;  %v13281_v62 = vld [vmem:[%s13816_s12 + $0x7ec] sm:$0xff]   ;;  %s6923_s23 = sadd.s32 2, %s15017_s25 }
 0x2dd   : > { %v14941_v4 = vadd.f32 %v2367_v30, %v14860_v38  ;;  %v4226_v57 = vsel %vm267_vm1, %v4224_v58, %v4225_v63  ;;  %12154 = vmatpush3.bf16.msra.mxu0 %v13266_v49  ;;  %4142 = vmatprep.mubr.bf16.mxu0 %v3953_v41  ;;  %v14948_v5 = vpop.permute.xlu1 %4532  ;;  %v6020_v24 = vmul.f32 %v14671_v33, %v6019_v14  ;;  %v13279_v49 = vld [vmem:[%s13816_s12 + $0x740] sm:$0xff]   ;;  %v13278_v58 = vld [vmem:[%s13816_s12 + $0x7b4] sm:$0xff]   ;;  %v5431_v35 = vstv %s14963_s9  ;;  %s15043_s29 = sld [smem:[#allocation3 + %s6923_s23]] }
 0x2de   : > { %v4228_v38 = vmax.f32 %v14738_v52, %v4226_v57  ;;  %v14954_v19 = vpop.permute.xlu0 %4526  ;;  %12155 = vmatprep.subr.bf16.mxu0 %v13268_v36  ;;  %v5129_v28 = vadd.f32 %v5128_v60, %v5127_v2  ;;  %12794 = vmatpush3.bf16.msra.mxu1 %v13267_v46  ;;  %v3947_v52 = vrot.slane %v3933_v55, %v14019_v45  ;;  %v13280_v54 = vld [vmem:[%s13816_s12 + $0x700] sm:$0xff]   ;;  %v13283_v55 = vld [vmem:[%s13816_s12 + $0x738] sm:$0xff]   ;;  %v13282_v2 = vld [vmem:[%s13816_s12 + $0x7ac] sm:$0xff]   ;;  %v5734_v57 = vstv %s14995_s8  ;;  %s6011_s8 = sld [smem:[#allocation3 + %s14881_s20]]  ;;  %s7221_s20 = sadd.s32 23, %s13809_s7 }
 0x2df   : > { %4835 = vrot.lane.b32.xlu1 %v14946_v44, %s13727_s11  ;;  %4829 = vrot.lane.b32.xlu0 %v14946_v44, %s13726_s10  ;;  %v5715_v43 = vmul.f32 %v14671_v33, %v5714_v22  ;;  %v6332_v1 = vmul.f32 %v14671_v33, %v6331_v56  ;;  %v6323_v60 = vmul.f32 %v14671_v33, %v6322_v40  ;;  %v6634_v14 = vstv %s15025_s21  ;;  %v13296_v40 = vld [vmem:[%s13816_s12 + $0x78c] sm:$0xff]   ;;  %s15192_s14 = smul.u32 3, %s7221_s20  ;;  %s15199_s21 = sld [smem:[#allocation6 + %s6312_s24]] }
 0x2e0   : > { %v14967_v10 = vmax.f32 %v4228_v38, %v4232_v48  ;;  %12795 = vmatprep.subr.bf16.mxu1 %v13728_v29  ;;  %v14972_v11 = vmax.f32 %v5129_v28, 0.0  ;;  %v3954_v23 = vpack.c.bf16 %v3947_v52, %v3947_v52  ;;  %v4528_v48 = vrot.slane %v14954_v19, 2  ;;  %v13285_v28 = vld [vmem:[%s13816_s12 + $0x7e4] sm:$0xff]  }
 0x2e1   : > { %12156 = vmatpush3.bf16.msra.mxu0 %v13269_v6  ;;  %v5426_v13 = vpop.permute.xlu1 %5425  ;;  %v13286_v52 = vld [vmem:[%s13816_s12 + $0x7a4] sm:$0xff]   ;;  %s7226_s24 = sadd.s32 2, %s15192_s14  ;;  %s7224_s23 = sadd.s32 1, %s15192_s14 }
 0x2e2   : > { %v14980_v59 = vrot.slane %v14967_v10, %v14019_v45  ;;  %v5417_v16 = vpop.permute.xlu0 %5416  ;;  %12157 = vmatprep.subr.bf16.mxu0 %v13271_v7  ;;  %v5427_v61 = vrot.slane %v5426_v13, 2  ;;  %12796 = vmatpush3.bf16.msra.mxu1 %v13270_v3  ;;  %v13284_v7 = vld [vmem:[%s13816_s12 + $0x6f8] sm:$0xff]   ;;  %v4529_v12 = vsel %vm267_vm1, %v14954_v19, %v4528_v48  ;;  %v13311_v48 = vld [vmem:[%s13816_s12 + $0x870] sm:$0xff]   ;;  %s15235_s15 = sld [smem:[#allocation3 + %s7224_s23]] }
 0x2e3   : > { %5138 = vrot.lane.b32.xlu1 %v14972_v11, %s13727_s11  ;;  %v5418_v21 = vrot.slane %v5417_v16, 2  ;;  %5132 = vrot.lane.b32.xlu0 %v14972_v11, %s13726_s10  ;;  %v4531_v19 = vmax.f32 %v14754_v50, %v4529_v12  ;;  %v6937_v56 = vstv %s15043_s29  ;;  %v13291_v50 = vld [vmem:[%s13816_s12 + $0x7d4] sm:$0xff]   ;;  %s15227_s29 = sld [smem:[#allocation3 + %s7226_s24]]  ;;  %s8130_s24 = sadd.s32 26, %s13809_s7 }
 0x2e4   : > { %v5428_v27 = vsel %vm277_vm3, %v5426_v13, %v5427_v61  ;;  %12177 = vmatprep.subr.bf16.mxu1 %v13273_v37  ;;  %v4251_v34 = vcombine.high %v14980_v59, %v14980_v59  ;;  %v4534_v13 = vrot.slane %v14948_v5, 2  ;;  %v13289_v37 = vld [vmem:[%s13816_s12 + $0x7dc] sm:$0xff]   ;;  %v13292_v61 = vld [vmem:[%s13816_s12 + $0x814] ss:$0 sps:$4 sm:$0xff]  }
 0x2e5   : > { %v5419_v26 = vsel %vm267_vm1, %v5417_v16, %v5418_v21  ;;  %12158 = vmatpush3.bf16.msra.mxu0 %v13272_v39  ;;  %v5729_v8 = vpop.permute.xlu1 %5728  ;;  %12798 = vmatmul.mubr.msk.bf16.vlgmr.msra.gmra.mxu1 %vm573_vm5, %v3954_v23  ;;  %v6625_v16 = vstv %s15030_s30  ;;  %v13290_v21 = vld [vmem:[%s13816_s12 + $0x79c] sm:$0xff]   ;;  %v6928_v23 = vstv %s15046_s28  ;;  %v13312_v12 = vld [vmem:[%s13816_s12 + $0x830] sm:$0xff]   ;;  %s15208_s30 = smul.u32 3, %s7524_s27 }
 0x2e6   : > { %v5421_v42 = vadd.f32 %v5419_v26, %v5412_v15  ;;  %v5720_v47 = vpop.permute.xlu0 %5719  ;;  %12178 = vmatpush3.bf16.msra.mxu1 %v13274_v17  ;;  %v5730_v53 = vrot.slane %v5729_v8, 2  ;;  %v4256_v30 = vpack.c.bf16 %v4251_v34, %v4251_v34  ;;  %12159 = vmatprep.subr.bf16.mxu0 %v13275_v25  ;;  %v13288_v15 = vld [vmem:[%s13816_s12 + $0x6f0] sm:$0xff]   ;;  %v6635_v17 = vmul.f32 %v14671_v33, %v6634_v14 }
 0x2e7   : > { %6031 = vrot.lane.b32.xlu1 %v6029_v20, %s13727_s11  ;;  %v5721_v51 = vrot.slane %v5720_v47, 2  ;;  %6022 = vrot.lane.b32.xlu0 %v6020_v24, %s13726_s10  ;;  %v4535_v20 = vsel %vm277_vm3, %v14948_v5, %v4534_v13  ;;  %v6626_v22 = vmul.f32 %v14671_v33, %v6625_v16  ;;  %v3952_v24 = vpack.c.bf16 %v14909_v32, %v14909_v32  ;;  %v13293_v26 = vld [vmem:[%s13816_s12 + $0x794] sm:$0xff]   ;;  %v15086_v33 = vld [vmem:[%s16242_s0] sm:$0x3f]  ;;  %s7529_s28 = sadd.s32 2, %s15208_s30  ;;  %s7527_s9 = sadd.s32 1, %s15208_s30 }
 0x2e8   : > { %v5430_v36 = vadd.f32 %v5428_v27, %v5421_v42  ;;  %v5731_v41 = vsel %vm277_vm3, %v5729_v8, %v5730_v53  ;;  %12179 = vmatprep.subr.bf16.mxu1 %v13277_v18  ;;  %4445 = vmatprep.mubr.bf16.mxu1 %v4256_v30  ;;  %v4411_v25 = vsel %vm577_vm2, %v13292_v61, 0  ;;  %v4537_v5 = vmax.f32 %v4531_v19, %v4535_v20  ;;  %v13294_v8 = vld [vmem:[%s13816_s12 + $0x7cc] sm:$0xff]   ;;  %v13298_v42 = vld [vmem:[%s13816_s12 + $0x804] sm:$0xff]   ;;  %v13322_v16 = vld [vmem:[%s13816_s12 + $0x8dc] sm:$0xff]   ;;  %s15262_s25 = sld [smem:[#allocation3 + %s7527_s9]] }
 0x2e9   : > { %v5722_v63 = vsel %vm267_vm1, %v5720_v47, %v5721_v51  ;;  %12160 = vmatpush3.bf16.msra.mxu0 %v13276_v31  ;;  %v6938_v27 = vmul.f32 %v15086_v33, %v6937_v56  ;;  %v6929_v32 = vmul.f32 %v15086_v33, %v6928_v23  ;;  %v13295_v31 = vld [vmem:[%s13816_s12 + $0x80c] sm:$0xff]   ;;  %v4236_v18 = vcombine.high %v14967_v10, %v14967_v10  ;;  %v13297_v10 = vld [vmem:[%s13816_s12 + $0x7c4] sm:$0xff]   ;;  %v13323_v19 = vld [vmem:[%s13816_s12 + $0x914] sm:$0xff]  }
 0x2ea   : > { %v5724_v46 = vadd.f32 %v5722_v63, %v5715_v43  ;;  %12161 = vmatprep.subr.bf16.mxu0 %v13279_v49  ;;  %v5432_v0 = vadd.f32 %v5431_v35, %v5430_v36  ;;  %12180 = vmatpush3.bf16.msra.mxu1 %v13278_v58  ;;  %v15099_v34 = vrot.slane %v4537_v5, %v14019_v45  ;;  %v13300_v47 = vld [vmem:[%s13816_s12 + $0x890] sm:$0xff]   ;;  %v13302_v51 = vld [vmem:[%s13816_s12 + $0x8a8] ss:$0 sps:$4 sm:$0xff]   ;;  %v13306_v63 = vld [vmem:[%s13816_s12 + $0x880] sm:$0xff]  }
 0x2eb   : > { %6334 = vrot.lane.b32.xlu1 %v6332_v1, %s13727_s11  ;;  %6325 = vrot.lane.b32.xlu0 %v6323_v60, %s13726_s10  ;;  %v4250_v43 = vrot.slane %v4236_v18, %v14019_v45  ;;  %v13299_v1 = vld [vmem:[%s13816_s12 + $0x784] sm:$0xff]   ;;  %v13301_v53 = vld [vmem:[%s13816_s12 + $0x850] sm:$0xff]   ;;  %v4255_v36 = vpack.c.bf16 %v14980_v59, %v14980_v59  ;;  %v4714_v60 = vsel %vm577_vm2, %v13302_v51, 0  ;;  %v4539_v59 = vcombine.high %v4537_v5, %v4537_v5 }
 0x2ec   : > { %v5733_v6 = vadd.f32 %v5731_v41, %v5724_v46  ;;  %12181 = vmatprep.subr.bf16.mxu1 %v13281_v62  ;;  %v15040_v38 = vmax.f32 %v5432_v0, 0.0  ;;  %v4554_v49 = vcombine.high %v15099_v34, %v15099_v34  ;;  %v13303_v58 = vld [vmem:[%s13816_s12 + $0x888] sm:$0xff]   ;;  %v13305_v41 = vld [vmem:[%s13816_s12 + $0x8a0] sm:$0xff]   ;;  %v13309_v46 = vld [vmem:[%s13816_s12 + $0x878] sm:$0xff]  }
 0x2ed   : > { %12162 = vmatpush3.bf16.msra.mxu0 %v13280_v54  ;;  %v4257_v30 = vpack.c.bf16 %v4250_v43, %v4250_v43  ;;  %v13304_v62 = vld [vmem:[%s13816_s12 + $0x848] sm:$0xff]   ;;  %v13307_v54 = vld [vmem:[%s13816_s12 + $0x840] sm:$0xff]   ;;  %v13308_v0 = vld [vmem:[%s13816_s12 + $0x898] sm:$0xff]  }
 0x2ee   : > { %12163 = vmatprep.subr.bf16.mxu0 %v13283_v55  ;;  %v5735_v3 = vadd.f32 %v5734_v57, %v5733_v6  ;;  %12182 = vmatpush3.bf16.msra.mxu1 %v13282_v2  ;;  %v4559_v35 = vpack.c.bf16 %v4554_v49, %v4554_v49  ;;  %v4553_v55 = vrot.slane %v4539_v59, %v14019_v45  ;;  %v13319_v2 = vld [vmem:[%s13816_s12 + $0x924] sm:$0xff]   ;;  %v13310_v57 = vld [vmem:[%s13816_s12 + $0x838] sm:$0xff]  }
 0x2ef   : > { %5441 = vrot.lane.b32.xlu1 %v15040_v38, %s13727_s11  ;;  %5435 = vrot.lane.b32.xlu0 %v15040_v38, %s13726_s10  ;;  %v13314_v20 = vld [vmem:[%s13816_s12 + $0x828] sm:$0xff]   ;;  %v13315_v56 = vld [vmem:[%s13816_s12 + $0x860] sm:$0xff]  }
 0x2f0   : > { %12183 = vmatprep.subr.bf16.mxu1 %v13285_v28  ;;  %v15057_v39 = vmax.f32 %v5735_v3, 0.0  ;;  %v13320_v28 = vld [vmem:[%s13816_s12 + $0x8e4] sm:$0xff]   ;;  %v13324_v23 = vld [vmem:[%s13816_s12 + $0x8d4] sm:$0xff]  }
 0x2f1   : > { %12164 = vmatpush3.bf16.msra.mxu0 %v13284_v7  ;;  %v4560_v7 = vpack.c.bf16 %v4553_v55, %v4553_v55  ;;  %v13317_v5 = vld [vmem:[%s13816_s12 + $0x858] sm:$0xff]   ;;  %v13328_v18 = vld [vmem:[%s13816_s12 + $0x8c4] sm:$0xff]  }
 0x2f2   : > { %12165 = vmatprep.subr.bf16.mxu0 %v13287_v9  ;;  %12184 = vmatpush3.bf16.msra.mxu1 %v13286_v52  ;;  %v13321_v9 = vld [vmem:[%s13816_s12 + $0x91c] sm:$0xff]   ;;  %v13332_v49 = vld [vmem:[%s13816_s12 + $0x8f4] sm:$0xff]  }
 0x2f3   : > { %5744 = vrot.lane.b32.xlu1 %v15057_v39, %s13727_s11  ;;  %5738 = vrot.lane.b32.xlu0 %v15057_v39, %s13726_s10  ;;  %v13333_v51 = vld [vmem:[%s13816_s12 + $0x934] sm:$0xff]  }
 0x2f4   : > { %12185 = vmatprep.subr.bf16.mxu1 %v13289_v37  ;;  %v13313_v37 = vld [vmem:[%s13816_s12 + $0x868] sm:$0xff]  }
 0x2f5   : > { %12166 = vmatpush3.bf16.msra.mxu0 %v13288_v15 }
 0x2f6   : > { %12801 = vmatprep.subr.bf16.mxu0 %v13728_v29  ;;  %12186 = vmatpush3.bf16.msra.mxu1 %v13290_v21 }
 0x2f7   : > { %6637 = vrot.lane.b32.xlu1 %v6635_v17, %s13727_s11  ;;  %6628 = vrot.lane.b32.xlu0 %v6626_v22, %s13726_s10 }
 0x2f8   : > { %4143 = vmatmul.mubr.bf16.vlgmr.msra.gmra.mxu0 %v3952_v24  ;;  %12187 = vmatprep.subr.bf16.mxu1 %v13291_v50  ;;  %v13325_v24 = vld [vmem:[%s13816_s12 + $0x90c] sm:$0xff]  }
 0x2f9   : > { %12802 = vmatpush3.bf16.msra.mxu0 %v4411_v25  ;;  %12807 = vmatprep.mubr.msk.bf16.mxu0 %vm13729_vm4, %v13728_v29  ;;  %v13316_v25 = vld [vmem:[%s13816_s12 + $0x820] sm:$0xff]  }
 0x2fa   : > { %12803 = vmatprep.subr.bf16.mxu0 %v13728_v29  ;;  %12188 = vmatpush3.bf16.msra.mxu1 %v13293_v26  ;;  %v13326_v26 = vld [vmem:[%s13816_s12 + $0x8cc] sm:$0xff]  }
 0x2fb   : > { %6940 = vrot.lane.b32.xlu1 %v6938_v27, %s13727_s11  ;;  %6931 = vrot.lane.b32.xlu0 %v6929_v32, %s13726_s10  ;;  %v13327_v32 = vld [vmem:[%s13816_s12 + $0x904] sm:$0xff]  }
 0x2fc   : > { %12189 = vmatprep.subr.bf16.mxu1 %v13294_v8  ;;  %v13318_v8 = vld [vmem:[%s13816_s12 + $0x818] sm:$0xff]  }
 0x2fd   : > { %12804 = vmatpush3.bf16.msra.mxu0 %v13295_v31  ;;  %v13330_v31 = vld [vmem:[%s13816_s12 + $0x93c] ss:$0 sps:$4 sm:$0xff]  }
 0x2fe   : > { %12805 = vmatprep.subr.bf16.mxu0 %v13728_v29  ;;  %12190 = vmatpush3.bf16.msra.mxu1 %v13296_v40 }
 0x2ff   : > { %12191 = vmatprep.subr.bf16.mxu1 %v13297_v10  ;;  %v13329_v10 = vld [vmem:[%s13816_s12 + $0x8fc] sm:$0xff]  }
 0x301   : > { %12806 = vmatpush3.bf16.msra.mxu0 %v13298_v42  ;;  %v4558_v42 = vpack.c.bf16 %v15099_v34, %v15099_v34  ;;  %v13334_v34 = vld [vmem:[%s13816_s12 + $0x8b4] sm:$0xff]  }
 0x302   : > { %12203 = vmatprep.subr.bf16.mxu0 %v13300_v47  ;;  %12192 = vmatpush3.bf16.msra.mxu1 %v13299_v1  ;;  %v5017_v47 = vsel %vm577_vm2, %v13330_v31, 0  ;;  %v13331_v1 = vld [vmem:[%s13816_s12 + $0x8bc] sm:$0xff]  }
 0x303   : > { %12811 = vmatprep.subr.bf16.mxu1 %v13728_v29 }
 0x304   : > { %12808 = vmatmul.mubr.msk.bf16.vlgmr.msra.gmra.mxu0 %vm573_vm5, %v4257_v30  ;;  %v13336_v30 = vld [vmem:[%s13816_s12 + $0x92c] sm:$0xff]  }
 0x305   : > { %12204 = vmatpush3.bf16.msra.mxu0 %v13301_v53  ;;  %4748 = vmatprep.mubr.bf16.mxu0 %v4559_v35  ;;  %v13335_v53 = vld [vmem:[%s13816_s12 + $0x8ec] sm:$0xff]  }
 0x306   : > { %4446 = vmatmul.mubr.bf16.vlgmr.msra.gmra.mxu1 %v4255_v36  ;;  %12205 = vmatprep.subr.bf16.mxu0 %v13303_v58  ;;  %v13338_v58 = vld [vmem:[%s13816_s12 + $0x9b8] sm:$0xff]   ;;  %v13337_v35 = vld [vmem:[%s13816_s12 + $0x8ac] sm:$0xff]  }
 0x307   : > { %12812 = vmatpush3.bf16.msra.mxu1 %v4714_v60  ;;  %12817 = vmatprep.mubr.msk.bf16.mxu1 %vm13729_vm4, %v13728_v29 }
 0x308   : > { %12813 = vmatprep.subr.bf16.mxu1 %v13728_v29 }
 0x309   : > { %12206 = vmatpush3.bf16.msra.mxu0 %v13304_v62 }
 0x30a   : > { %12207 = vmatprep.subr.bf16.mxu0 %v13306_v63 }
 0x30b   : > { %12814 = vmatpush3.bf16.msra.mxu1 %v13305_v41 }
 0x30c   : > { %12815 = vmatprep.subr.bf16.mxu1 %v13728_v29 }
 0x30d   : > { %12208 = vmatpush3.bf16.msra.mxu0 %v13307_v54 }
 0x30e   : > { %12209 = vmatprep.subr.bf16.mxu0 %v13309_v46 }
 0x30f   : > { %12816 = vmatpush3.bf16.msra.mxu1 %v13308_v0 }
 0x310   : > { %v2669_v6 = vpop.f32.mrf.mxu0  ;;  %12229 = vmatprep.subr.bf16.mxu1 %v13319_v2 }
 0x311   : > { %v12037_v3 = vpop.f32.mrf.mxu1  ;;  %12210 = vmatpush3.bf16.msra.mxu0 %v13310_v57 }
 0x312   : > { %v12749_v52 = vpop.f32.mrf.mxu0  ;;  %12818 = vmatmul.mubr.msk.bf16.vlgmr.msra.gmra.mxu1 %vm573_vm5, %v4560_v7  ;;  %12211 = vmatprep.subr.bf16.mxu0 %v13311_v48 }
 0x313   : > { %v12038_v13 = vpop.f32.mrf.mxu1  ;;  %12230 = vmatpush3.bf16.msra.mxu1 %v13320_v28 }
 0x314   : > { %v12039_v14 = vadd.f32 %v12038_v13, %v12037_v3  ;;  %v2672_v15 = vpop.f32.mrf.mxu0  ;;  %12231 = vmatprep.subr.bf16.mxu1 %v13321_v9 }
 0x315   : > { %v12040_v61 = vpop.f32.mrf.mxu1  ;;  %12212 = vmatpush3.bf16.msra.mxu0 %v13312_v12 }
 0x316   : > { %v2670_v21 = vadd.f32 %v12039_v14, %v2669_v6  ;;  %v12750_v17 = vpop.f32.mrf.mxu0  ;;  %12213 = vmatprep.subr.bf16.mxu0 %v13313_v37 }
 0x317   : > { %v12041_v22 = vpop.f32.mrf.mxu1  ;;  %12232 = vmatpush3.bf16.msra.mxu1 %v13322_v16 }
 0x318   : > { %v2675_v50 = vadd.f32 %v2670_v21, %v14941_v4  ;;  %12233 = vmatprep.subr.bf16.mxu1 %v13323_v19  ;;  %v6017_v22 = vstv %s6011_s8  ;;  %s15250_s8 = sld [smem:[#allocation3 + %s7529_s28]] }
 0x319   : > { %12214 = vmatpush3.bf16.msra.mxu0 %v13314_v20 }
 0x31a   : > { %12215 = vmatprep.subr.bf16.mxu0 %v13315_v56 }
 0x31b   : > { %12234 = vmatpush3.bf16.msra.mxu1 %v13324_v23 }
 0x31c   : > { %12235 = vmatprep.subr.bf16.mxu1 %v13325_v24 }
 0x31d   : > { %v2972_v27 = vpop.f32.mrf.mxu1  ;;  %12216 = vmatpush3.bf16.msra.mxu0 %v13316_v25 }
 0x31e   : > { %12217 = vmatprep.subr.bf16.mxu0 %v13317_v5 }
 0x31f   : > { %v12759_v4 = vpop.f32.mrf.mxu1  ;;  %12236 = vmatpush3.bf16.msra.mxu1 %v13326_v26  ;;  %v6018_v26 = vmul.f32 %v15086_v33, %v6017_v22 }
 0x320   : > { %12237 = vmatprep.subr.bf16.mxu1 %v13327_v32 }
 0x321   : > { %v2975_v40 = vpop.f32.mrf.mxu1  ;;  %12218 = vmatpush3.bf16.msra.mxu0 %v13318_v8 }
 0x322   : > { %12821 = vmatprep.subr.bf16.mxu0 %v13728_v29 }
 0x323   : > { %v12760_v43 = vpop.f32.mrf.mxu1  ;;  %12238 = vmatpush3.bf16.msra.mxu1 %v13328_v18 }
 0x324   : > { %4749 = vmatmul.mubr.bf16.vlgmr.msra.gmra.mxu0 %v4558_v42  ;;  %12239 = vmatprep.subr.bf16.mxu1 %v13329_v10 }
 0x325   : > { %12822 = vmatpush3.bf16.msra.mxu0 %v5017_v47  ;;  %12827 = vmatprep.mubr.msk.bf16.mxu0 %vm13729_vm4, %v13728_v29  ;;  %v13340_v47 = vld [vmem:[%s13816_s12 + $0x9d0] ss:$0 sps:$4 sm:$0xff]  }
 0x326   : > { %12823 = vmatprep.subr.bf16.mxu0 %v13728_v29 }
 0x327   : > { %12240 = vmatpush3.bf16.msra.mxu1 %v13331_v1 }
 0x328   : > { %12241 = vmatprep.subr.bf16.mxu1 %v13332_v49 }
 0x329   : > { %12824 = vmatpush3.bf16.msra.mxu0 %v13333_v51 }
 0x32a   : > { %12825 = vmatprep.subr.bf16.mxu0 %v13728_v29 }
 0x32b   : > { %12242 = vmatpush3.bf16.msra.mxu1 %v13334_v34  ;;  %v13339_v34 = vld [vmem:[%s13816_s12 + $0x978] sm:$0xff]  }
 0x32c   : > { %12243 = vmatprep.subr.bf16.mxu1 %v13335_v53 }
 0x32d   : > { %12826 = vmatpush3.bf16.msra.mxu0 %v13336_v30  ;;  %v6037_v30 = vstv %s15182_s17  ;;  %s7827_s17 = sadd.s32 25, %s13809_s7 }
 0x32e   : > { %12255 = vmatprep.subr.bf16.mxu0 %v13338_v58 }
 0x32f   : > { %12244 = vmatpush3.bf16.msra.mxu1 %v13337_v35 }
 0x330   : > { %v12063_v36 = vpop.f32.mrf.mxu0  ;;  %12831 = vmatprep.subr.bf16.mxu1 %v13728_v29 }
 0x332   : > { %v12064_v60 = vpop.f32.mrf.mxu0 }
 0x333   : > { %v12065_v62 = vadd.f32 %v12064_v60, %v12063_v36 }
 0x334   : > { %v12066_v63 = vpop.f32.mrf.mxu0 }
 0x335   : > { %v2973_v41 = vadd.f32 %v12065_v62, %v2972_v27  ;;  %v6320_v27 = vstv %s15177_s26  ;;  %v13341_v63 = vld [vmem:[%s13816_s12 + $0x9b0] sm:$0xff]   ;;  %s15276_s26 = sld [smem:[#allocation6 + %s6615_s16]]  ;;  %s15300_s16 = smul.u32 3, %s7827_s17 }
 0x336   : > { %v12067_v59 = vpop.f32.mrf.mxu0  ;;  %v6321_v51 = vmul.f32 %v15086_v33, %v6320_v27 }
 0x337   : > { %v2978_v54 = vadd.f32 %v2973_v41, %v2675_v50  ;;  %s7830_s23 = sadd.s32 1, %s15300_s16 }
 0x338   : > { %s15341_s28 = sld [smem:[#allocation3 + %s7830_s23]]  ;;  %s9039_s23 = sadd.s32 29, %s13809_s7 }
 0x33c   : > { %v3275_v46 = vpop.f32.mrf.mxu0 }
 0x33d   : > { %v12089_v0 = vpop.f32.mrf.mxu1 }
 0x33e   : > { %v12769_v55 = vpop.f32.mrf.mxu0 }
 0x33f   : > { %v12090_v2 = vpop.f32.mrf.mxu1 }
 0x340   : > { %v12091_v57 = vadd.f32 %v12090_v2, %v12089_v0  ;;  %v3278_v48 = vpop.f32.mrf.mxu0 }
 0x341   : > { %v12092_v6 = vpop.f32.mrf.mxu1 }
 0x342   : > { %v3276_v28 = vadd.f32 %v12091_v57, %v3275_v46  ;;  %v12770_v7 = vpop.f32.mrf.mxu0  ;;  %v5320_v57 = vsel %vm577_vm2, %v13340_v47, 0 }
 0x343   : > { %v12093_v3 = vpop.f32.mrf.mxu1  ;;  %v13342_v7 = vld [vmem:[%s13816_s12 + $0x970] sm:$0xff]  }
 0x344   : > { %v15171_v9 = vadd.f32 %v3276_v28, %v2978_v54 }
 0x349   : > { %v15173_v52 = vpop.f32.mrf.mxu1 }
 0x34b   : > { %v12779_v12 = vpop.f32.mrf.mxu1 }
 0x34d   : > { %v3581_v13 = vpop.f32.mrf.mxu1 }
 0x34f   : > { %v12780_v37 = vpop.f32.mrf.mxu1 }
 0x351   : > { %v4836_v14 = vpop.permute.xlu1 %4835  ;;  %v4830_v15 = vpop.permute.xlu0 %4829 }
 0x352   : > { %v4837_v16 = vrot.slane %v4836_v14, 2  ;;  %v4831_v61 = vrot.slane %v4830_v15, 2 }
 0x354   : > { %v4832_v19 = vsel %vm267_vm1, %v4830_v15, %v4831_v61  ;;  %v4838_v56 = vsel %vm277_vm3, %v4836_v14, %v4837_v16  ;;  %v6340_v16 = vstv %s15199_s21  ;;  %s15308_s21 = sld [smem:[#allocation6 + %s6918_s13]]  ;;  %s7832_s13 = sadd.s32 2, %s15300_s16 }
 0x355   : > { %v5139_v21 = vpop.permute.xlu1 %5138  ;;  %v4834_v17 = vmax.f32 %v14946_v44, %v4832_v19  ;;  %v5133_v20 = vpop.permute.xlu0 %5132 }
 0x356   : > { %v5140_v50 = vrot.slane %v5139_v21, 2  ;;  %v5134_v23 = vrot.slane %v5133_v20, 2 }
 0x357   : > { %v4840_v24 = vmax.f32 %v4834_v17, %v4838_v56  ;;  %v13343_v17 = vld [vmem:[%s13816_s12 + $0x9c8] sm:$0xff]  }
 0x358   : > { %v5135_v25 = vsel %vm267_vm1, %v5133_v20, %v5134_v23  ;;  %v5141_v18 = vsel %vm277_vm3, %v5139_v21, %v5140_v50  ;;  %v13344_v20 = vld [vmem:[%s13816_s12 + $0x9a8] sm:$0xff]  }
 0x359   : > { %v6032_v5 = vpop.permute.xlu1 %6031  ;;  %v4842_v44 = vcombine.high %v4840_v24, %v4840_v24  ;;  %v5137_v32 = vmax.f32 %v14972_v11, %v5135_v25  ;;  %v6023_v4 = vpop.permute.xlu0 %6022  ;;  %v4849_v31 = vrot.slane %v4840_v24, %v14019_v45  ;;  %v13345_v25 = vld [vmem:[%s13816_s12 + $0x968] sm:$0xff]  }
 0x35a   : > { %v6033_v8 = vrot.slane %v6032_v5, 2  ;;  %v6024_v40 = vrot.slane %v6023_v4, 2 }
 0x35b   : > { %v4856_v42 = vrot.slane %v4842_v44, %v14019_v45  ;;  %v15203_v43 = vmax.f32 %v5137_v32, %v5141_v18  ;;  %v4857_v11 = vcombine.high %v4849_v31, %v4849_v31  ;;  %v4861_v2 = vpack.c.bf16 %v4849_v31, %v4849_v31  ;;  %v13346_v44 = vld [vmem:[%s13816_s12 + $0x9c0] sm:$0xff]   ;;  %v13349_v18 = vld [vmem:[%s13816_s12 + $0xa4c] sm:$0xff]  }
 0x35c   : > { %v12115_v10 = vpop.f32.mrf.mxu0  ;;  %v6025_v1 = vsel %vm267_vm1, %v6023_v4, %v6024_v40  ;;  %v6034_v35 = vsel %vm277_vm3, %v6032_v5, %v6033_v8  ;;  %v6623_v32 = vstv %s15223_s6  ;;  %v13347_v8 = vld [vmem:[%s13816_s12 + $0x9a0] sm:$0xff]   ;;  %v7240_v40 = vstv %s15227_s29  ;;  %s15328_s6 = smul.u32 3, %s8130_s24  ;;  %s15336_s29 = sld [smem:[#allocation3 + %s7832_s13]] }
 0x35d   : > { %v6335_v49 = vpop.permute.xlu1 %6334  ;;  %v4863_v58 = vpack.c.bf16 %v4856_v42, %v4856_v42  ;;  %v6027_v36 = vadd.f32 %v6025_v1, %v6018_v26  ;;  %v6326_v62 = vpop.permute.xlu0 %6325  ;;  %v4862_v59 = vpack.c.bf16 %v4857_v11, %v4857_v11  ;;  %v15220_v0 = vrot.slane %v15203_v43, %v14019_v45  ;;  %v13348_v42 = vld [vmem:[%s13816_s12 + $0x960] sm:$0xff]   ;;  %s15504_s13 = sld [smem:[#allocation6 + %s7524_s27]] }
 0x35e   : > { %v12116_v53 = vpop.f32.mrf.mxu0  ;;  %v6336_v60 = vrot.slane %v6335_v49, 2  ;;  %v6327_v41 = vrot.slane %v6326_v62, 2  ;;  %v5145_v22 = vcombine.high %v15203_v43, %v15203_v43  ;;  %v7231_v43 = vstv %s15235_s15  ;;  %s8135_s15 = sadd.s32 2, %s15328_s6 }
 0x35f   : > { %v12117_v54 = vadd.f32 %v12116_v53, %v12115_v10  ;;  %v6036_v55 = vadd.f32 %v6034_v35, %v6027_v36  ;;  %12828 = vmatmul.mubr.msk.bf16.vlgmr.msra.gmra.mxu0 %vm573_vm5, %v4863_v58  ;;  %5051 = vmatprep.mubr.bf16.mxu1 %v4862_v59  ;;  %v5160_v3 = vcombine.high %v15220_v0, %v15220_v0  ;;  %v7543_v58 = vstv %s15250_s8  ;;  %v13352_v59 = vld [vmem:[%s13816_s12 + $0x958] sm:$0xff]   ;;  %s15354_s9 = sld [smem:[#allocation3 + %s8135_s15]] }
 0x360   : > { %v12118_v46 = vpop.f32.mrf.mxu0  ;;  %v6328_v48 = vsel %vm267_vm1, %v6326_v62, %v6327_v41  ;;  %12256 = vmatpush3.bf16.msra.mxu0 %v13339_v34  ;;  %5052 = vmatmul.mubr.bf16.vlgmr.msra.gmra.mxu1 %v4861_v2  ;;  %v6624_v47 = vmul.f32 %v15086_v33, %v6623_v32  ;;  %v13350_v34 = vld [vmem:[%s13816_s12 + $0xa0c] sm:$0xff]   ;;  %v7241_v53 = vmul.f32 %v15086_v33, %v7240_v40 }
 0x361   : > { %v3579_v6 = vadd.f32 %v12117_v54, %v15173_v52  ;;  %v5442_v28 = vpop.permute.xlu1 %5441  ;;  %v6330_v13 = vadd.f32 %v6328_v48, %v6321_v51  ;;  %v5436_v37 = vpop.permute.xlu0 %5435  ;;  %12257 = vmatprep.subr.bf16.mxu0 %v13341_v63  ;;  %v6038_v15 = vadd.f32 %v6037_v30, %v6036_v55  ;;  %v6337_v52 = vsel %vm277_vm3, %v6335_v49, %v6336_v60  ;;  %v13351_v60 = vld [vmem:[%s13816_s12 + $0x998] sm:$0xff]   ;;  %v13353_v54 = vld [vmem:[%s13816_s12 + $0xa44] sm:$0xff]  }
 0x362   : > { %v12119_v12 = vpop.f32.mrf.mxu0  ;;  %v5443_v14 = vrot.slane %v5442_v28, 2  ;;  %12832 = vmatpush3.bf16.msra.mxu1 %v5320_v57  ;;  %v5437_v19 = vrot.slane %v5436_v37, 2  ;;  %v5165_v21 = vpack.c.bf16 %v5160_v3, %v5160_v3  ;;  %12837 = vmatprep.mubr.msk.bf16.mxu1 %vm13729_vm4, %v13728_v29  ;;  %v6926_v30 = vstv %s15239_s22  ;;  %s8133_s22 = sadd.s32 1, %s15328_s6 }
 0x363   : > { %v15244_v61 = vadd.f32 %v3579_v6, %v15171_v9  ;;  %v6339_v56 = vadd.f32 %v6337_v52, %v6330_v13  ;;  %12833 = vmatprep.subr.bf16.mxu1 %v13728_v29  ;;  %v15255_v9 = vmax.f32 %v6038_v15, 0.0  ;;  %v7232_v36 = vmul.f32 %v15086_v33, %v7231_v43  ;;  %v13354_v13 = vld [vmem:[%s13816_s12 + $0xa04] sm:$0xff]   ;;  %s15357_s8 = sld [smem:[#allocation3 + %s8133_s22]] }
 0x364   : > { %v5438_v50 = vsel %vm267_vm1, %v5436_v37, %v5437_v19  ;;  %v5444_v23 = vsel %vm277_vm3, %v5442_v28, %v5443_v14  ;;  %12258 = vmatpush3.bf16.msra.mxu0 %v13342_v7  ;;  %5354 = vmatprep.mubr.bf16.mxu0 %v5165_v21  ;;  %v7534_v55 = vstv %s15262_s25  ;;  %v6927_v57 = vmul.f32 %v15086_v33, %v6926_v30  ;;  %v13355_v28 = vld [vmem:[%s13816_s12 + $0x990] sm:$0xff]   ;;  %s15482_s25 = sld [smem:[#allocation3 + %s15192_s14]] }
 0x365   : > { %v15259_v24 = vpop.permute.xlu1 %5744  ;;  %v5440_v5 = vmax.f32 %v15040_v38, %v5438_v50  ;;  %6047 = vrot.lane.b32.xlu1 %v15255_v9, %s13727_s11  ;;  %6041 = vrot.lane.b32.xlu0 %v15255_v9, %s13726_s10  ;;  %v15269_v26 = vpop.permute.xlu0 %5738  ;;  %v6341_v27 = vadd.f32 %v6340_v16, %v6339_v56  ;;  %v5159_v38 = vrot.slane %v5145_v22, %v14019_v45  ;;  %v6643_v37 = vstv %s15276_s26  ;;  %v13357_v16 = vld [vmem:[%s13816_s12 + $0xa3c] sm:$0xff]   ;;  %s15485_s26 = sld [smem:[#allocation3 + %s15208_s30]] }
 0x366   : > { %12834 = vmatpush3.bf16.msra.mxu1 %v13343_v17  ;;  %12259 = vmatprep.subr.bf16.mxu0 %v13344_v20  ;;  %v7544_v6 = vmul.f32 %v15086_v33, %v7543_v58  ;;  %v7535_v15 = vmul.f32 %v15086_v33, %v7534_v55  ;;  %v13356_v21 = vld [vmem:[%s13816_s12 + $0x950] sm:$0xff]   ;;  %v13359_v22 = vld [vmem:[%s13816_s12 + $0x988] sm:$0xff]   ;;  %v13358_v56 = vld [vmem:[%s13816_s12 + $0x9fc] sm:$0xff]   ;;  %v6946_v50 = vstv %s15308_s21  ;;  %v5746_v40 = vrot.slane %v15259_v24, 2  ;;  %s8433_s21 = sadd.s32 27, %s13809_s7  ;;  %s15493_s14 = sld [smem:[#allocation6 + %s7221_s20]] }
 0x367   : > { %v15280_v4 = vmax.f32 %v5440_v5, %v5444_v23  ;;  %12835 = vmatprep.subr.bf16.mxu1 %v13728_v29  ;;  %v15283_v31 = vmax.f32 %v6341_v27, 0.0  ;;  %v5166_v35 = vpack.c.bf16 %v5159_v38, %v5159_v38  ;;  %v5740_v23 = vrot.slane %v15269_v26, 2  ;;  %v13361_v27 = vld [vmem:[%s13816_s12 + $0xa34] sm:$0xff]   ;;  %s15498_s30 = smul.u32 3, %s8433_s21  ;;  %s8736_s20 = sadd.s32 28, %s13809_s7 }
 0x368   : > { %12260 = vmatpush3.bf16.msra.mxu0 %v13345_v25  ;;  %v13362_v38 = vld [vmem:[%s13816_s12 + $0x9f4] sm:$0xff]   ;;  %v7846_v43 = vstv %s15336_s29  ;;  %v8149_v58 = vstv %s15354_s9  ;;  %s15526_s15 = smul.u32 3, %s8736_s20  ;;  %s15532_s22 = sld [smem:[#allocation3 + %s15300_s16]] }
 0x369   : > { %v6638_v10 = vpop.permute.xlu1 %6637  ;;  %v15291_v11 = vrot.slane %v15280_v4, %v14019_v45  ;;  %6350 = vrot.lane.b32.xlu1 %v15283_v31, %s13727_s11  ;;  %6344 = vrot.lane.b32.xlu0 %v15283_v31, %s13726_s10  ;;  %v6629_v1 = vpop.permute.xlu0 %6628  ;;  %v13374_v55 = vld [vmem:[%s13816_s12 + $0xa54] sm:$0xff]   ;;  %s8438_s27 = sadd.s32 2, %s15498_s30  ;;  %s9342_s29 = sadd.s32 30, %s13809_s7 }
 0x36a   : > { %v6639_v49 = vrot.slane %v6638_v10, 2  ;;  %12836 = vmatpush3.bf16.msra.mxu1 %v13346_v44  ;;  %v6630_v51 = vrot.slane %v6629_v1, 2  ;;  %12261 = vmatprep.subr.bf16.mxu0 %v13347_v8  ;;  %v13360_v44 = vld [vmem:[%s13816_s12 + $0x948] sm:$0xff]   ;;  %v13363_v8 = vld [vmem:[%s13816_s12 + $0x980] sm:$0xff]   ;;  %s15539_s9 = sld [smem:[#allocation3 + %s8438_s27]] }
 0x36b   : > { %12281 = vmatprep.subr.bf16.mxu1 %v13349_v18  ;;  %v5463_v46 = vcombine.high %v15291_v11, %v15291_v11  ;;  %v5741_v18 = vsel %vm267_vm1, %v15269_v26, %v5740_v23  ;;  %v13396_v23 = vld [vmem:[%s13816_s12 + $0xb34] sm:$0xff]   ;;  %s15624_s27 = sld [smem:[#allocation6 + %s8130_s24]] }
 0x36c   : > { %v6631_v62 = vsel %vm267_vm1, %v6629_v1, %v6630_v51  ;;  %v6640_v63 = vsel %vm277_vm3, %v6638_v10, %v6639_v49  ;;  %12262 = vmatpush3.bf16.msra.mxu0 %v13348_v42  ;;  %v13365_v42 = vld [vmem:[%s13816_s12 + $0xa2c] sm:$0xff]   ;;  %v7837_v1 = vstv %s15341_s28  ;;  %v13368_v49 = vld [vmem:[%s13816_s12 + $0xa64] ss:$0 sps:$4 sm:$0xff]   ;;  %v5743_v26 = vmax.f32 %v15057_v39, %v5741_v18  ;;  %v13389_v18 = vld [vmem:[%s13816_s12 + $0xab8] sm:$0xff]   ;;  %s8436_s28 = sadd.s32 1, %s15498_s30 }
 0x36d   : > { %v6941_v41 = vpop.permute.xlu1 %6940  ;;  %v6633_v2 = vadd.f32 %v6631_v62, %v6624_v47  ;;  %12838 = vmatmul.mubr.msk.bf16.vlgmr.msra.gmra.mxu1 %vm573_vm5, %v5166_v35  ;;  %v6932_v48 = vpop.permute.xlu0 %6931  ;;  %7243 = vrot.lane.b32.xlu1 %v7241_v53, %s13727_s11  ;;  %v5468_v12 = vpack.c.bf16 %v5463_v46, %v5463_v46  ;;  %v13364_v47 = vld [vmem:[%s13816_s12 + $0x940] sm:$0xff]   ;;  %v13366_v51 = vld [vmem:[%s13816_s12 + $0x9ec] sm:$0xff]   ;;  %v5747_v53 = vsel %vm277_vm3, %v15259_v24, %v5746_v40  ;;  %v8140_v35 = vstv %s15357_s8  ;;  %s15543_s16 = sld [smem:[#allocation3 + %s8436_s28]]  ;;  %s8741_s8 = sadd.s32 2, %s15526_s15 }
 0x36e   : > { %12282 = vmatpush3.bf16.msra.mxu1 %v13350_v34  ;;  %v6933_v7 = vrot.slane %v6932_v48, 2  ;;  %v6942_v3 = vrot.slane %v6941_v41, 2  ;;  %7234 = vrot.lane.b32.xlu0 %v7232_v36, %s13726_s10  ;;  %v7847_v34 = vmul.f32 %v15086_v33, %v7846_v43  ;;  %v7838_v30 = vmul.f32 %v15086_v33, %v7837_v1  ;;  %v13367_v39 = vld [vmem:[%s13816_s12 + $0xa24] sm:$0xff]   ;;  %v13398_v40 = vld [vmem:[%s13816_s12 + $0xb2c] sm:$0xff]   ;;  %s15639_s28 = smul.u32 3, %s9342_s29 }
 0x36f   : > { %v6642_v14 = vadd.f32 %v6640_v63, %v6633_v2  ;;  %12263 = vmatprep.subr.bf16.mxu0 %v13351_v60  ;;  %12283 = vmatprep.subr.bf16.mxu1 %v13353_v54  ;;  %v5164_v36 = vpack.c.bf16 %v15220_v0, %v15220_v0  ;;  %v5623_v60 = vsel %vm577_vm2, %v13368_v49, 0  ;;  %v5749_v24 = vmax.f32 %v5743_v26, %v5747_v53  ;;  %v13369_v62 = vld [vmem:[%s13816_s12 + $0x9e4] sm:$0xff]   ;;  %v13370_v0 = vld [vmem:[%s13816_s12 + $0xa1c] sm:$0xff]  }
 0x370   : > { %v6934_v52 = vsel %vm267_vm1, %v6932_v48, %v6933_v7  ;;  %v6943_v19 = vsel %vm277_vm3, %v6941_v41, %v6942_v3  ;;  %12264 = vmatpush3.bf16.msra.mxu0 %v13352_v59  ;;  %5657 = vmatprep.mubr.bf16.mxu1 %v5468_v12  ;;  %v8150_v63 = vmul.f32 %v15086_v33, %v8149_v58  ;;  %v13371_v59 = vld [vmem:[%s13816_s12 + $0xa5c] sm:$0xff]   ;;  %v13375_v48 = vld [vmem:[%s13816_s12 + $0x9d4] sm:$0xff]  }
 0x371   : > { %v6936_v17 = vadd.f32 %v6934_v52, %v6927_v57  ;;  %12265 = vmatprep.subr.bf16.mxu0 %v13355_v28  ;;  %v6644_v20 = vadd.f32 %v6643_v37, %v6642_v14  ;;  %7546 = vrot.lane.b32.xlu1 %v7544_v6, %s13727_s11  ;;  %v8141_v41 = vmul.f32 %v15086_v33, %v8140_v35  ;;  %v13372_v33 = vld [vmem:[%s13816_s12 + $0x9dc] sm:$0xff]   ;;  %v13378_v28 = vld [vmem:[%s13816_s12 + $0xaf8] ss:$0 sps:$4 sm:$0xff]   ;;  %v13381_v52 = vld [vmem:[%s13816_s12 + $0xaf0] sm:$0xff]  }
 0x372   : > { %12284 = vmatpush3.bf16.msra.mxu1 %v13354_v13  ;;  %7537 = vrot.lane.b32.xlu0 %v7535_v15, %s13726_s10  ;;  %v5448_v54 = vcombine.high %v15280_v4, %v15280_v4  ;;  %v15405_v46 = vrot.slane %v5749_v24, %v14019_v45  ;;  %v13373_v4 = vld [vmem:[%s13816_s12 + $0xa14] sm:$0xff]   ;;  %v13376_v57 = vld [vmem:[%s13816_s12 + $0xae0] sm:$0xff]   ;;  %v5467_v37 = vpack.c.bf16 %v15291_v11, %v15291_v11  ;;  %v5926_v14 = vsel %vm577_vm2, %v13378_v28, 0 }
 0x373   : > { %v6945_v25 = vadd.f32 %v6943_v19, %v6936_v17  ;;  %12285 = vmatprep.subr.bf16.mxu1 %v13357_v16  ;;  %v15351_v5 = vmax.f32 %v6644_v20, 0.0  ;;  %v13377_v7 = vld [vmem:[%s13816_s12 + $0xaa0] sm:$0xff]   ;;  %v13379_v12 = vld [vmem:[%s13816_s12 + $0xad8] sm:$0xff]   ;;  %v13382_v16 = vld [vmem:[%s13816_s12 + $0xad0] sm:$0xff]   ;;  %v5751_v11 = vcombine.high %v5749_v24, %v5749_v24 }
 0x374   : > { %12266 = vmatpush3.bf16.msra.mxu0 %v13356_v21  ;;  %v5462_v2 = vrot.slane %v5448_v54, %v14019_v45  ;;  %v5766_v6 = vcombine.high %v15405_v46, %v15405_v46  ;;  %v13380_v15 = vld [vmem:[%s13816_s12 + $0xa98] sm:$0xff]   ;;  %v13383_v19 = vld [vmem:[%s13816_s12 + $0xa90] sm:$0xff]   ;;  %v13385_v21 = vld [vmem:[%s13816_s12 + $0xac8] sm:$0xff]  }
 0x375   : > { %12267 = vmatprep.subr.bf16.mxu0 %v13359_v22  ;;  %v6947_v32 = vadd.f32 %v6946_v50, %v6945_v25  ;;  %6653 = vrot.lane.b32.xlu1 %v15351_v5, %s13727_s11  ;;  %v13384_v17 = vld [vmem:[%s13816_s12 + $0xae8] sm:$0xff]   ;;  %v5765_v20 = vrot.slane %v5751_v11, %v14019_v45  ;;  %v13395_v22 = vld [vmem:[%s13816_s12 + $0xb74] sm:$0xff]   ;;  %v13387_v50 = vld [vmem:[%s13816_s12 + $0xac0] sm:$0xff]  }
 0x376   : > { %12286 = vmatpush3.bf16.msra.mxu1 %v13358_v56  ;;  %6647 = vrot.lane.b32.xlu0 %v15351_v5, %s13726_s10  ;;  %v5469_v3 = vpack.c.bf16 %v5462_v2, %v5462_v2  ;;  %v5771_v13 = vpack.c.bf16 %v5766_v6, %v5766_v6  ;;  %v13386_v56 = vld [vmem:[%s13816_s12 + $0xa88] sm:$0xff]   ;;  %v13390_v49 = vld [vmem:[%s13816_s12 + $0xa78] sm:$0xff]  }
 0x377   : > { %12287 = vmatprep.subr.bf16.mxu1 %v13361_v27  ;;  %v15368_v10 = vmax.f32 %v6947_v32, 0.0  ;;  %v5772_v25 = vpack.c.bf16 %v5765_v20, %v5765_v20  ;;  %v13388_v32 = vld [vmem:[%s13816_s12 + $0xa80] sm:$0xff]   ;;  %v13405_v54 = vld [vmem:[%s13816_s12 + $0xb4c] sm:$0xff]  }
 0x378   : > { %12268 = vmatpush3.bf16.msra.mxu0 %v13360_v44  ;;  %v13397_v44 = vld [vmem:[%s13816_s12 + $0xb6c] sm:$0xff]   ;;  %v13402_v24 = vld [vmem:[%s13816_s12 + $0xb1c] sm:$0xff]   ;;  %v13409_v6 = vld [vmem:[%s13816_s12 + $0xb84] sm:$0xff]  }
 0x379   : > { %12269 = vmatprep.subr.bf16.mxu0 %v13363_v8  ;;  %6956 = vrot.lane.b32.xlu1 %v15368_v10, %s13727_s11  ;;  %v13407_v2 = vld [vmem:[%s13816_s12 + $0xb0c] sm:$0xff]   ;;  %v13411_v28 = vld [vmem:[%s13816_s12 + $0xb3c] sm:$0xff]  }
 0x37a   : > { %12288 = vmatpush3.bf16.msra.mxu1 %v13362_v38  ;;  %6950 = vrot.lane.b32.xlu0 %v15368_v10, %s13726_s10 }
 0x37b   : > { %12289 = vmatprep.subr.bf16.mxu1 %v13365_v42 }
 0x37c   : > { %12270 = vmatpush3.bf16.msra.mxu0 %v13364_v47  ;;  %v13399_v47 = vld [vmem:[%s13816_s12 + $0xb64] sm:$0xff]  }
 0x37d   : > { %12841 = vmatprep.subr.bf16.mxu0 %v13728_v29  ;;  %7849 = vrot.lane.b32.xlu1 %v7847_v34, %s13727_s11  ;;  %v13391_v34 = vld [vmem:[%s13816_s12 + $0xab0] sm:$0xff]  }
 0x37e   : > { %12290 = vmatpush3.bf16.msra.mxu1 %v13366_v51  ;;  %7840 = vrot.lane.b32.xlu0 %v7838_v30, %s13726_s10  ;;  %v13400_v30 = vld [vmem:[%s13816_s12 + $0xb24] sm:$0xff]  }
 0x37f   : > { %5355 = vmatmul.mubr.bf16.vlgmr.msra.gmra.mxu0 %v5164_v36  ;;  %12291 = vmatprep.subr.bf16.mxu1 %v13367_v39  ;;  %v13401_v39 = vld [vmem:[%s13816_s12 + $0xb5c] sm:$0xff]   ;;  %v13392_v36 = vld [vmem:[%s13816_s12 + $0xa70] sm:$0xff]  }
 0x380   : > { %12842 = vmatpush3.bf16.msra.mxu0 %v5623_v60  ;;  %12847 = vmatprep.mubr.msk.bf16.mxu0 %vm13729_vm4, %v13728_v29  ;;  %v13393_v60 = vld [vmem:[%s13816_s12 + $0xaa8] sm:$0xff]  }
 0x381   : > { %12843 = vmatprep.subr.bf16.mxu0 %v13728_v29  ;;  %8152 = vrot.lane.b32.xlu1 %v8150_v63, %s13727_s11  ;;  %v13394_v63 = vld [vmem:[%s13816_s12 + $0xa68] sm:$0xff]  }
 0x382   : > { %12292 = vmatpush3.bf16.msra.mxu1 %v13369_v62  ;;  %8143 = vrot.lane.b32.xlu0 %v8141_v41, %s13726_s10  ;;  %v13403_v62 = vld [vmem:[%s13816_s12 + $0xb54] sm:$0xff]  }
 0x383   : > { %12293 = vmatprep.subr.bf16.mxu1 %v13370_v0  ;;  %v13406_v0 = vld [vmem:[%s13816_s12 + $0xb8c] ss:$0 sps:$4 sm:$0xff]  }
 0x384   : > { %12844 = vmatpush3.bf16.msra.mxu0 %v13371_v59  ;;  %v13404_v59 = vld [vmem:[%s13816_s12 + $0xb14] sm:$0xff]  }
 0x385   : > { %12845 = vmatprep.subr.bf16.mxu0 %v13728_v29 }
 0x386   : > { %12294 = vmatpush3.bf16.msra.mxu1 %v13372_v33  ;;  %v5770_v33 = vpack.c.bf16 %v15405_v46, %v15405_v46  ;;  %v13410_v46 = vld [vmem:[%s13816_s12 + $0xb04] sm:$0xff]  }
 0x387   : > { %12295 = vmatprep.subr.bf16.mxu1 %v13373_v4 }
 0x388   : > { %12846 = vmatpush3.bf16.msra.mxu0 %v13374_v55  ;;  %v6229_v55 = vsel %vm577_vm2, %v13406_v0, 0 }
 0x389   : > { %12307 = vmatprep.subr.bf16.mxu0 %v13376_v57 }
 0x38a   : > { %12296 = vmatpush3.bf16.msra.mxu1 %v13375_v48  ;;  %v13408_v48 = vld [vmem:[%s13816_s12 + $0xb44] sm:$0xff]  }
 0x38b   : > { %12848 = vmatmul.mubr.msk.bf16.vlgmr.msra.gmra.mxu0 %vm573_vm5, %v5469_v3  ;;  %12851 = vmatprep.subr.bf16.mxu1 %v13728_v29  ;;  %v13414_v3 = vld [vmem:[%s13816_s12 + $0xc08] sm:$0xff]  }
 0x38c   : > { %12308 = vmatpush3.bf16.msra.mxu0 %v13377_v7  ;;  %5960 = vmatprep.mubr.bf16.mxu0 %v5771_v13  ;;  %v13412_v7 = vld [vmem:[%s13816_s12 + $0xb7c] sm:$0xff]  }
 0x38d   : > { %5658 = vmatmul.mubr.bf16.vlgmr.msra.gmra.mxu1 %v5467_v37  ;;  %12309 = vmatprep.subr.bf16.mxu0 %v13379_v12  ;;  %v13413_v12 = vld [vmem:[%s13816_s12 + $0xafc] sm:$0xff]  }
 0x38e   : > { %12852 = vmatpush3.bf16.msra.mxu1 %v5926_v14  ;;  %12857 = vmatprep.mubr.msk.bf16.mxu1 %vm13729_vm4, %v13728_v29 }
 0x38f   : > { %12853 = vmatprep.subr.bf16.mxu1 %v13728_v29 }
 0x390   : > { %12310 = vmatpush3.bf16.msra.mxu0 %v13380_v15 }
 0x391   : > { %12311 = vmatprep.subr.bf16.mxu0 %v13382_v16 }
 0x392   : > { %12854 = vmatpush3.bf16.msra.mxu1 %v13381_v52 }
 0x393   : > { %12855 = vmatprep.subr.bf16.mxu1 %v13728_v29 }
 0x394   : > { %12312 = vmatpush3.bf16.msra.mxu0 %v13383_v19 }
 0x395   : > { %12313 = vmatprep.subr.bf16.mxu0 %v13385_v21 }
 0x396   : > { %12856 = vmatpush3.bf16.msra.mxu1 %v13384_v17 }
 0x397   : > { %12333 = vmatprep.subr.bf16.mxu1 %v13395_v22 }
 0x398   : > { %v3881_v27 = vpop.f32.mrf.mxu0  ;;  %12314 = vmatpush3.bf16.msra.mxu0 %v13386_v56 }
 0x399   : > { %12858 = vmatmul.mubr.msk.bf16.vlgmr.msra.gmra.mxu1 %vm573_vm5, %v5772_v25  ;;  %v12141_v8 = vpop.f32.mrf.mxu1  ;;  %12315 = vmatprep.subr.bf16.mxu0 %v13387_v50 }
 0x39a   : > { %v12789_v38 = vpop.f32.mrf.mxu0  ;;  %12334 = vmatpush3.bf16.msra.mxu1 %v13396_v23 }
 0x39b   : > { %v12142_v42 = vpop.f32.mrf.mxu1  ;;  %12335 = vmatprep.subr.bf16.mxu1 %v13397_v44 }
 0x39c   : > { %v3884_v43 = vpop.f32.mrf.mxu0  ;;  %12316 = vmatpush3.bf16.msra.mxu0 %v13388_v32  ;;  %v12143_v1 = vadd.f32 %v12142_v42, %v12141_v8 }
 0x39d   : > { %v12144_v26 = vpop.f32.mrf.mxu1  ;;  %12317 = vmatprep.subr.bf16.mxu0 %v13389_v18 }
 0x39e   : > { %v12790_v51 = vpop.f32.mrf.mxu0  ;;  %v3882_v53 = vadd.f32 %v12143_v1, %v3881_v27  ;;  %12336 = vmatpush3.bf16.msra.mxu1 %v13398_v40 }
 0x39f   : > { %v12145_v58 = vpop.f32.mrf.mxu1  ;;  %12337 = vmatprep.subr.bf16.mxu1 %v13399_v47 }
 0x3a0   : > { %v3887_v35 = vadd.f32 %v3882_v53, %v15244_v61  ;;  %12318 = vmatpush3.bf16.msra.mxu0 %v13390_v49 }
 0x3a1   : > { %12319 = vmatprep.subr.bf16.mxu0 %v13391_v34 }
 0x3a2   : > { %12338 = vmatpush3.bf16.msra.mxu1 %v13400_v30 }
 0x3a3   : > { %12339 = vmatprep.subr.bf16.mxu1 %v13401_v39  ;;  %v7229_v39 = vstv %s15482_s25  ;;  %s8739_s25 = sadd.s32 1, %s15526_s15 }
 0x3a4   : > { %12320 = vmatpush3.bf16.msra.mxu0 %v13392_v36 }
 0x3a5   : > { %v4184_v41 = vpop.f32.mrf.mxu1  ;;  %12321 = vmatprep.subr.bf16.mxu0 %v13393_v60 }
 0x3a6   : > { %12340 = vmatpush3.bf16.msra.mxu1 %v13402_v24  ;;  %v7532_v24 = vstv %s15485_s26  ;;  %s15559_s26 = sld [smem:[#allocation3 + %s15328_s6]] }
 0x3a7   : > { %v12799_v61 = vpop.f32.mrf.mxu1  ;;  %12341 = vmatprep.subr.bf16.mxu1 %v13403_v62  ;;  %s15572_s6 = sld [smem:[#allocation3 + %s8739_s25]]  ;;  %s9347_s25 = sadd.s32 2, %s15639_s28 }
 0x3a8   : > { %12322 = vmatpush3.bf16.msra.mxu0 %v13394_v63  ;;  %v13416_v63 = vld [vmem:[%s13816_s12 + $0xc20] ss:$0 sps:$4 sm:$0xff]  }
 0x3a9   : > { %v4187_v4 = vpop.f32.mrf.mxu1  ;;  %12861 = vmatprep.subr.bf16.mxu0 %v13728_v29 }
 0x3aa   : > { %12342 = vmatpush3.bf16.msra.mxu1 %v13404_v59 }
 0x3ab   : > { %5961 = vmatmul.mubr.bf16.vlgmr.msra.gmra.mxu0 %v5770_v33  ;;  %v12800_v57 = vpop.f32.mrf.mxu1  ;;  %12343 = vmatprep.subr.bf16.mxu1 %v13405_v54 }
 0x3ac   : > { %12862 = vmatpush3.bf16.msra.mxu0 %v6229_v55  ;;  %12867 = vmatprep.mubr.msk.bf16.mxu0 %vm13729_vm4, %v13728_v29 }
 0x3ad   : > { %12863 = vmatprep.subr.bf16.mxu0 %v13728_v29 }
 0x3ae   : > { %12344 = vmatpush3.bf16.msra.mxu1 %v13407_v2 }
 0x3af   : > { %12345 = vmatprep.subr.bf16.mxu1 %v13408_v48  ;;  %v13415_v48 = vld [vmem:[%s13816_s12 + $0xbc8] sm:$0xff]  }
 0x3b0   : > { %12864 = vmatpush3.bf16.msra.mxu0 %v13409_v6 }
 0x3b1   : > { %12865 = vmatprep.subr.bf16.mxu0 %v13728_v29 }
 0x3b2   : > { %12346 = vmatpush3.bf16.msra.mxu1 %v13410_v46 }
 0x3b3   : > { %12347 = vmatprep.subr.bf16.mxu1 %v13411_v28 }
 0x3b4   : > { %12866 = vmatpush3.bf16.msra.mxu0 %v13412_v7 }
 0x3b5   : > { %12359 = vmatprep.subr.bf16.mxu0 %v13414_v3  ;;  %v6532_v3 = vsel %vm577_vm2, %v13416_v63, 0  ;;  %v7835_v63 = vstv %s15532_s22 }
 0x3b6   : > { %12348 = vmatpush3.bf16.msra.mxu1 %v13413_v12  ;;  %v13417_v12 = vld [vmem:[%s13816_s12 + $0xc00] sm:$0xff]  }
 0x3b7   : > { %12871 = vmatprep.subr.bf16.mxu1 %v13728_v29 }
 0x3b8   : > { %v12167_v13 = vpop.f32.mrf.mxu0 }
 0x3ba   : > { %v12168_v37 = vpop.f32.mrf.mxu0 }
 0x3bb   : > { %v12169_v14 = vadd.f32 %v12168_v37, %v12167_v13  ;;  %v7249_v13 = vstv %s15493_s14  ;;  %s15567_s14 = sld [smem:[#allocation3 + %s8741_s8]] }
 0x3bc   : > { %v12170_v15 = vpop.f32.mrf.mxu0 }
 0x3bd   : > { %v4185_v16 = vadd.f32 %v12169_v14, %v4184_v41 }
 0x3be   : > { %v12171_v52 = vpop.f32.mrf.mxu0 }
 0x3bf   : > { %v4190_v11 = vadd.f32 %v4185_v16, %v3887_v35 }
 0x3c4   : > { %v4487_v19 = vpop.f32.mrf.mxu0 }
 0x3c6   : > { %v12193_v21 = vpop.f32.mrf.mxu1  ;;  %v12809_v17 = vpop.f32.mrf.mxu0 }
 0x3c8   : > { %v12194_v20 = vpop.f32.mrf.mxu1  ;;  %v4490_v22 = vpop.f32.mrf.mxu0 }
 0x3c9   : > { %v12195_v56 = vadd.f32 %v12194_v20, %v12193_v21 }
 0x3ca   : > { %v12196_v50 = vpop.f32.mrf.mxu1  ;;  %v12810_v23 = vpop.f32.mrf.mxu0 }
 0x3cb   : > { %v4488_v25 = vadd.f32 %v12195_v56, %v4487_v19  ;;  %v13418_v56 = vld [vmem:[%s13816_s12 + $0xbc0] sm:$0xff]   ;;  %v7552_v23 = vstv %s15504_s13  ;;  %s15590_s13 = sld [smem:[#allocation6 + %s7827_s17]]  ;;  %s15607_s17 = smul.u32 3, %s9039_s23 }
 0x3cc   : > { %v12197_v27 = vpop.f32.mrf.mxu1 }
 0x3cd   : > { %v15477_v44 = vadd.f32 %v4488_v25, %v4190_v11  ;;  %s9042_s24 = sadd.s32 1, %s15607_s17  ;;  %s9044_s22 = sadd.s32 2, %s15607_s17 }
 0x3ce   : > { %s15658_s8 = sld [smem:[#allocation3 + %s9044_s22]] }
 0x3cf   : > { %s15833_s22 = sld [smem:[#allocation3 + %s15607_s17]] }
 0x3d2   : > { %v15479_v32 = vpop.f32.mrf.mxu1 }
 0x3d4   : > { %v12819_v8 = vpop.f32.mrf.mxu1 }
 0x3d6   : > { %v4793_v38 = vpop.f32.mrf.mxu1 }
 0x3d7   : > { %v6048_v40 = vpop.permute.xlu1 %6047  ;;  %v6042_v42 = vpop.permute.xlu0 %6041  ;;  %v13419_v38 = vld [vmem:[%s13816_s12 + $0xc18] sm:$0xff]  }
 0x3d8   : > { %v12820_v18 = vpop.f32.mrf.mxu1  ;;  %v6049_v43 = vrot.slane %v6048_v40, 2  ;;  %v6043_v47 = vrot.slane %v6042_v42, 2 }
 0x3d9   : > { %v13420_v18 = vld [vmem:[%s13816_s12 + $0xbf8] sm:$0xff]  }
 0x3da   : > { %v6044_v1 = vsel %vm267_vm1, %v6042_v42, %v6043_v47  ;;  %v6050_v34 = vsel %vm277_vm3, %v6048_v40, %v6049_v43 }
 0x3db   : > { %v6351_v49 = vpop.permute.xlu1 %6350  ;;  %v6046_v26 = vmax.f32 %v15255_v9, %v6044_v1  ;;  %v6345_v51 = vpop.permute.xlu0 %6344 }
 0x3dc   : > { %v6352_v53 = vrot.slane %v6351_v49, 2  ;;  %v6346_v30 = vrot.slane %v6345_v51, 2 }
 0x3dd   : > { %v6052_v58 = vmax.f32 %v6046_v26, %v6050_v34 }
 0x3de   : > { %v6347_v35 = vsel %vm267_vm1, %v6345_v51, %v6346_v30  ;;  %v6353_v41 = vsel %vm277_vm3, %v6351_v49, %v6352_v53 }
 0x3df   : > { %v6054_v36 = vcombine.high %v6052_v58, %v6052_v58  ;;  %v6349_v9 = vmax.f32 %v15283_v31, %v6347_v35  ;;  %v7244_v60 = vpop.permute.xlu1 %7243  ;;  %v6061_v62 = vrot.slane %v6052_v58, %v14019_v45  ;;  %v15514_v31 = vld [vmem:[%s16242_s0] sm:$0x3f]  ;;  %v13421_v58 = vld [vmem:[%s13816_s12 + $0xbb8] sm:$0xff]  }
 0x3e0   : > { %v7245_v0 = vrot.slane %v7244_v60, 2  ;;  %v7230_v59 = vmul.f32 %v15514_v31, %v7229_v39  ;;  %v7235_v61 = vpop.permute.xlu0 %7234  ;;  %v7533_v2 = vmul.f32 %v15514_v31, %v7532_v24 }
 0x3e1   : > { %v6068_v54 = vrot.slane %v6054_v36, %v14019_v45  ;;  %v15518_v33 = vmax.f32 %v6349_v9, %v6353_v41  ;;  %v7236_v4 = vrot.slane %v7235_v61, 2  ;;  %v6069_v55 = vcombine.high %v6061_v62, %v6061_v62  ;;  %v13422_v36 = vld [vmem:[%s13816_s12 + $0xc10] sm:$0xff]  }
 0x3e2   : > { %v6073_v16 = vpack.c.bf16 %v6061_v62, %v6061_v62  ;;  %v7246_v11 = vsel %vm277_vm3, %v7244_v60, %v7245_v0  ;;  %v13423_v9 = vld [vmem:[%s13816_s12 + $0xbf0] sm:$0xff]   ;;  %v8452_v0 = vstv %s15539_s9  ;;  %s15651_s9 = sld [smem:[#allocation3 + %s9042_s24]]  ;;  %s9645_s24 = sadd.s32 31, %s13809_s7 }
 0x3e3   : > { %v6075_v6 = vpack.c.bf16 %v6068_v54, %v6068_v54  ;;  %v7237_v46 = vsel %vm267_vm1, %v7235_v61, %v7236_v4  ;;  %v7547_v28 = vpop.permute.xlu1 %7546  ;;  %v6074_v7 = vpack.c.bf16 %v6069_v55, %v6069_v55  ;;  %v15537_v52 = vrot.slane %v15518_v33, %v14019_v45 }
 0x3e4   : > { %v12219_v57 = vpop.f32.mrf.mxu0  ;;  %v7239_v37 = vadd.f32 %v7237_v46, %v7230_v59  ;;  %v7538_v14 = vpop.permute.xlu0 %7537  ;;  %v7548_v19 = vrot.slane %v7547_v28, 2  ;;  %v8443_v59 = vstv %s15543_s16  ;;  %v7836_v4 = vmul.f32 %v15514_v31, %v7835_v63  ;;  %v13426_v46 = vld [vmem:[%s13816_s12 + $0xc5c] sm:$0xff]   ;;  %s9345_s16 = sadd.s32 1, %s15639_s28 }
 0x3e5   : > { %v7539_v21 = vrot.slane %v7538_v14, 2  ;;  %6263 = vmatprep.mubr.bf16.mxu1 %v6074_v7  ;;  %12868 = vmatmul.mubr.msk.bf16.vlgmr.msra.gmra.mxu0 %vm573_vm5, %v6075_v6  ;;  %v6372_v50 = vcombine.high %v15537_v52, %v15537_v52  ;;  %v8444_v7 = vmul.f32 %v15514_v31, %v8443_v59  ;;  %v13441_v59 = vld [vmem:[%s13816_s12 + $0xc7c] sm:$0xff]  }
 0x3e6   : > { %v12220_v15 = vpop.f32.mrf.mxu0  ;;  %v7248_v20 = vadd.f32 %v7246_v11, %v7239_v37  ;;  %12360 = vmatpush3.bf16.msra.mxu0 %v13415_v48  ;;  %6264 = vmatmul.mubr.bf16.vlgmr.msra.gmra.mxu1 %v6073_v16  ;;  %v7549_v26 = vsel %vm277_vm3, %v7547_v28, %v7548_v19  ;;  %v8453_v28 = vmul.f32 %v15514_v31, %v8452_v0  ;;  %v8755_v37 = vstv %s15567_s14  ;;  %s15673_s14 = sld [smem:[#allocation3 + %s9347_s25]] }
 0x3e7   : > { %v12221_v17 = vadd.f32 %v12220_v15, %v12219_v57  ;;  %v7540_v25 = vsel %vm267_vm1, %v7538_v14, %v7539_v21  ;;  %12872 = vmatpush3.bf16.msra.mxu1 %v6532_v3  ;;  %12361 = vmatprep.subr.bf16.mxu0 %v13417_v12  ;;  %v6654_v8 = vpop.permute.xlu1 %6653  ;;  %v6377_v1 = vpack.c.bf16 %v6372_v50, %v6372_v50  ;;  %v13428_v14 = vld [vmem:[%s13816_s12 + $0xba8] sm:$0xff]   ;;  %v13429_v15 = vld [vmem:[%s13816_s12 + $0xc94] sm:$0xff]   ;;  %v8746_v16 = vstv %s15572_s6  ;;  %s8435_s6 = sld [smem:[#allocation3 + %s15498_s30]]  ;;  %s15809_s30 = smul.u32 3, %s9645_s24 }
 0x3e8   : > { %v12222_v22 = vpop.f32.mrf.mxu0  ;;  %v7250_v40 = vadd.f32 %v7249_v13, %v7248_v20  ;;  %v7542_v42 = vadd.f32 %v7540_v25, %v7533_v2  ;;  %v6648_v43 = vpop.permute.xlu0 %6647  ;;  %v6655_v47 = vrot.slane %v6654_v8, 2  ;;  %12873 = vmatprep.subr.bf16.mxu1 %v13728_v29  ;;  %12877 = vmatprep.mubr.msk.bf16.mxu1 %vm13729_vm4, %v13728_v29  ;;  %v13427_v2 = vld [vmem:[%s13816_s12 + $0xbe8] sm:$0xff]   ;;  %v8138_v13 = vstv %s15559_s26  ;;  %v13431_v20 = vld [vmem:[%s13816_s12 + $0xbe0] sm:$0xff]   ;;  %v13430_v25 = vld [vmem:[%s13816_s12 + $0xc54] sm:$0xff]   ;;  %s15669_s26 = sld [smem:[#allocation3 + %s9345_s16]] }
 0x3e9   : > { %v4791_v27 = vadd.f32 %v12221_v17, %v15479_v32  ;;  %v6357_v32 = vcombine.high %v15518_v33, %v15518_v33  ;;  %v6649_v34 = vrot.slane %v6648_v43, 2  ;;  %6566 = vmatprep.mubr.bf16.mxu0 %v6377_v1  ;;  %v13424_v33 = vld [vmem:[%s13816_s12 + $0xbb0] sm:$0xff]   ;;  %v8139_v50 = vmul.f32 %v15514_v31, %v8138_v13  ;;  %s15859_s16 = sld [smem:[#allocation3 + %s15639_s28]] }
 0x3ea   : > { %v12223_v49 = vpop.f32.mrf.mxu0  ;;  %v15569_v53 = vmax.f32 %v7250_v40, 0.0  ;;  %v7551_v30 = vadd.f32 %v7549_v26, %v7542_v42  ;;  %12362 = vmatpush3.bf16.msra.mxu0 %v13418_v56  ;;  %v6656_v35 = vsel %vm277_vm3, %v6654_v8, %v6655_v47  ;;  %v7855_v56 = vstv %s15590_s13  ;;  %v13433_v47 = vld [vmem:[%s13816_s12 + $0xc8c] sm:$0xff]   ;;  %s15797_s13 = sld [smem:[#allocation3 + %s15526_s15]]  ;;  %s9650_s15 = sadd.s32 2, %s15809_s30 }
 0x3eb   : > { %v15565_v51 = vadd.f32 %v4791_v27, %v15477_v44  ;;  %v6650_v39 = vsel %vm267_vm1, %v6648_v43, %v6649_v34  ;;  %12874 = vmatpush3.bf16.msra.mxu1 %v13419_v38  ;;  %12363 = vmatprep.subr.bf16.mxu0 %v13420_v18  ;;  %v15576_v44 = vpop.permute.xlu1 %6956  ;;  %v6371_v41 = vrot.slane %v6357_v32, %v14019_v45  ;;  %v13432_v43 = vld [vmem:[%s13816_s12 + $0xba0] sm:$0xff]   ;;  %v13435_v32 = vld [vmem:[%s13816_s12 + $0xbd8] sm:$0xff]   ;;  %s15885_s28 = sld [smem:[#allocation6 + %s9039_s23]] }
 0x3ec   : > { %v7553_v60 = vadd.f32 %v7552_v23, %v7551_v30  ;;  %v6652_v24 = vmax.f32 %v15351_v5, %v6650_v39  ;;  %7259 = vrot.lane.b32.xlu1 %v15569_v53, %s13727_s11  ;;  %7253 = vrot.lane.b32.xlu0 %v15569_v53, %s13726_s10  ;;  %v15585_v62 = vpop.permute.xlu0 %6950  ;;  %v13425_v5 = vld [vmem:[%s13816_s12 + $0xc9c] sm:$0xff]   ;;  %v8756_v27 = vmul.f32 %v15514_v31, %v8755_v37  ;;  %v13434_v30 = vld [vmem:[%s13816_s12 + $0xc4c] sm:$0xff]   ;;  %v6958_v0 = vrot.slane %v15576_v44, 2  ;;  %s15912_s23 = sld [smem:[#allocation6 + %s9342_s29]] }
 0x3ed   : > { %12875 = vmatprep.subr.bf16.mxu1 %v13728_v29  ;;  %v6378_v3 = vpack.c.bf16 %v6371_v41, %v6371_v41  ;;  %v8747_v40 = vmul.f32 %v15514_v31, %v8746_v16  ;;  %v8158_v39 = vstv %s15624_s27  ;;  %v13438_v41 = vld [vmem:[%s13816_s12 + $0xc44] sm:$0xff]   ;;  %v13445_v37 = vld [vmem:[%s13816_s12 + $0xc34] sm:$0xff]   ;;  %v13446_v16 = vld [vmem:[%s13816_s12 + $0xc6c] sm:$0xff]   ;;  %s15802_s27 = sld [smem:[#allocation6 + %s8433_s21]] }
 0x3ee   : > { %v15598_v61 = vmax.f32 %v7553_v60, 0.0  ;;  %v15600_v54 = vmax.f32 %v6652_v24, %v6656_v35  ;;  %12364 = vmatpush3.bf16.msra.mxu0 %v13421_v58  ;;  %v6952_v58 = vrot.slane %v15585_v62, 2  ;;  %v13437_v35 = vld [vmem:[%s13816_s12 + $0xc84] sm:$0xff]   ;;  %v13436_v60 = vld [vmem:[%s13816_s12 + $0xb98] sm:$0xff]   ;;  %v13439_v24 = vld [vmem:[%s13816_s12 + $0xbd0] sm:$0xff]   ;;  %s15817_s21 = sld [smem:[#allocation6 + %s8736_s20]] }
 0x3ef   : > { %12876 = vmatpush3.bf16.msra.mxu1 %v13422_v36  ;;  %12365 = vmatprep.subr.bf16.mxu0 %v13423_v9  ;;  %v7850_v55 = vpop.permute.xlu1 %7849  ;;  %s9648_s20 = sadd.s32 1, %s15809_s30  ;;  %s9647_s25 = sld [smem:[#allocation3 + %s15809_s30]] }
 0x3f0   : > { %v15611_v57 = vrot.slane %v15600_v54, %v14019_v45  ;;  %7562 = vrot.lane.b32.xlu1 %v15598_v61, %s13727_s11  ;;  %7556 = vrot.lane.b32.xlu0 %v15598_v61, %s13726_s10  ;;  %v7841_v48 = vpop.permute.xlu0 %7840  ;;  %v7851_v6 = vrot.slane %v7850_v55, 2  ;;  %s15844_s17 = sld [smem:[#allocation3 + %s9648_s20]] }
 0x3f1   : > { %v7842_v12 = vrot.slane %v7841_v48, 2  ;;  %12385 = vmatprep.subr.bf16.mxu1 %v13425_v5  ;;  %v6953_v5 = vsel %vm267_vm1, %v15585_v62, %v6952_v58  ;;  %v13462_v58 = vld [vmem:[%s13816_s12 + $0xcd8] sm:$0xff]  }
 0x3f2   : > { %12366 = vmatpush3.bf16.msra.mxu0 %v13424_v33  ;;  %v7852_v19 = vsel %vm277_vm3, %v7850_v55, %v7851_v6  ;;  %12878 = vmatmul.mubr.msk.bf16.vlgmr.msra.gmra.mxu1 %vm573_vm5, %v6378_v3  ;;  %v6675_v17 = vcombine.high %v15611_v57, %v15611_v57  ;;  %v9049_v55 = vstv %s15651_s9  ;;  %v6955_v62 = vmax.f32 %v15368_v10, %v6953_v5  ;;  %v13443_v10 = vld [vmem:[%s13816_s12 + $0xc74] sm:$0xff]   ;;  %s15841_s9 = sld [smem:[#allocation3 + %s9650_s15]] }
 0x3f3   : > { %v7843_v11 = vsel %vm267_vm1, %v7841_v48, %v7842_v12  ;;  %12367 = vmatprep.subr.bf16.mxu0 %v13427_v2  ;;  %v8153_v21 = vpop.permute.xlu1 %8152  ;;  %12386 = vmatpush3.bf16.msra.mxu1 %v13426_v46  ;;  %v13444_v2 = vld [vmem:[%s13816_s12 + $0xcb4] ss:$0 sps:$4 sm:$0xff]   ;;  %v13442_v48 = vld [vmem:[%s13816_s12 + $0xc3c] sm:$0xff]   ;;  %v9058_v6 = vstv %s15658_s8  ;;  %v6959_v46 = vsel %vm277_vm3, %v15576_v44, %v6958_v0  ;;  %v6376_v3 = vpack.c.bf16 %v15537_v52, %v15537_v52  ;;  %v13447_v52 = vld [vmem:[%s13816_s12 + $0xcac] sm:$0xff]  }
 0x3f4   : > { %v7845_v22 = vadd.f32 %v7843_v11, %v7836_v4  ;;  %v8144_v23 = vpop.permute.xlu0 %8143  ;;  %8455 = vrot.lane.b32.xlu1 %v8453_v28, %s13727_s11  ;;  %8446 = vrot.lane.b32.xlu0 %v8444_v7, %s13726_s10  ;;  %v8154_v38 = vrot.slane %v8153_v21, 2  ;;  %v6680_v18 = vpack.c.bf16 %v6675_v17, %v6675_v17  ;;  %v13440_v4 = vld [vmem:[%s13816_s12 + $0xb90] sm:$0xff]   ;;  %v9050_v28 = vmul.f32 %v15514_v31, %v9049_v55 }
 0x3f5   : > { %v8145_v8 = vrot.slane %v8144_v23, 2  ;;  %12387 = vmatprep.subr.bf16.mxu1 %v13429_v15  ;;  %v9352_v7 = vstv %s15669_s26  ;;  %v6835_v44 = vsel %vm577_vm2, %v13444_v2, 0  ;;  %v9059_v12 = vmul.f32 %v15514_v31, %v9058_v6  ;;  %v13448_v17 = vld [vmem:[%s13816_s12 + $0xc2c] sm:$0xff]   ;;  %v13467_v6 = vld [vmem:[%s13816_s12 + $0xd00] sm:$0xff]   ;;  %s16059_s26 = sld [smem:[#allocation6 + %s9645_s24]] }
 0x3f6   : > { %v7854_v42 = vadd.f32 %v7852_v19, %v7845_v22  ;;  %12368 = vmatpush3.bf16.msra.mxu0 %v13428_v14  ;;  %v8155_v49 = vsel %vm277_vm3, %v8153_v21, %v8154_v38  ;;  %6869 = vmatprep.mubr.bf16.mxu1 %v6680_v18  ;;  %v6961_v13 = vmax.f32 %v6955_v62, %v6959_v46  ;;  %v9361_v14 = vstv %s15673_s14  ;;  %v13455_v38 = vld [vmem:[%s13816_s12 + $0xd28] sm:$0xff]  }
 0x3f7   : > { %v8146_v1 = vsel %vm267_vm1, %v8144_v23, %v8145_v8  ;;  %12369 = vmatprep.subr.bf16.mxu0 %v13431_v20  ;;  %12388 = vmatpush3.bf16.msra.mxu1 %v13430_v25  ;;  %v9353_v15 = vmul.f32 %v15514_v31, %v9352_v7  ;;  %v6660_v11 = vcombine.high %v15600_v54, %v15600_v54  ;;  %v13449_v54 = vld [vmem:[%s13816_s12 + $0xc64] sm:$0xff]  }
 0x3f8   : > { %v7856_v26 = vadd.f32 %v7855_v56, %v7854_v42  ;;  %v8148_v34 = vadd.f32 %v8146_v1, %v8139_v50  ;;  %8758 = vrot.lane.b32.xlu1 %v8756_v27, %s13727_s11  ;;  %8749 = vrot.lane.b32.xlu0 %v8747_v40, %s13726_s10  ;;  %v9362_v19 = vmul.f32 %v15514_v31, %v9361_v14  ;;  %v13450_v20 = vld [vmem:[%s13816_s12 + $0xca4] sm:$0xff]   ;;  %v13452_v56 = vld [vmem:[%s13816_s12 + $0xd30] sm:$0xff]  }
 0x3f9   : > { %12389 = vmatprep.subr.bf16.mxu1 %v13433_v47  ;;  %v15717_v21 = vrot.slane %v6961_v13, %v14019_v45  ;;  %v6674_v22 = vrot.slane %v6660_v11, %v14019_v45  ;;  %v13451_v50 = vld [vmem:[%s13816_s12 + $0xc24] sm:$0xff]   ;;  %v13453_v27 = vld [vmem:[%s13816_s12 + $0xcf0] sm:$0xff]   ;;  %v6679_v40 = vpack.c.bf16 %v15611_v57, %v15611_v57  ;;  %v6963_v57 = vcombine.high %v6961_v13, %v6961_v13 }
 0x3fa   : > { %v15666_v36 = vmax.f32 %v7856_v26, 0.0  ;;  %v8157_v9 = vadd.f32 %v8155_v49, %v8148_v34  ;;  %12370 = vmatpush3.bf16.msra.mxu0 %v13432_v43  ;;  %v13454_v25 = vld [vmem:[%s13816_s12 + $0xd48] ss:$0 sps:$4 sm:$0xff]   ;;  %v13458_v47 = vld [vmem:[%s13816_s12 + $0xd20] sm:$0xff]   ;;  %v13460_v26 = vld [vmem:[%s13816_s12 + $0xd38] sm:$0xff]  }
 0x3fb   : > { %12371 = vmatprep.subr.bf16.mxu0 %v13435_v32  ;;  %12390 = vmatpush3.bf16.msra.mxu1 %v13434_v30  ;;  %v6978_v23 = vcombine.high %v15717_v21, %v15717_v21  ;;  %v6681_v8 = vpack.c.bf16 %v6674_v22, %v6674_v22  ;;  %v7138_v42 = vsel %vm577_vm2, %v13454_v25, 0  ;;  %v13456_v43 = vld [vmem:[%s13816_s12 + $0xce8] sm:$0xff]   ;;  %v13457_v1 = vld [vmem:[%s13816_s12 + $0xd40] sm:$0xff]   ;;  %v13461_v32 = vld [vmem:[%s13816_s12 + $0xd18] sm:$0xff]   ;;  %v6977_v34 = vrot.slane %v6963_v57, %v14019_v45 }
 0x3fc   : > { %v8159_v63 = vadd.f32 %v8158_v39, %v8157_v9  ;;  %7859 = vrot.lane.b32.xlu0 %v15666_v36, %s13726_s10  ;;  %12391 = vmatprep.subr.bf16.mxu1 %v13437_v35  ;;  %v13459_v49 = vld [vmem:[%s13816_s12 + $0xce0] sm:$0xff]   ;;  %v13463_v39 = vld [vmem:[%s13816_s12 + $0xd10] sm:$0xff]   ;;  %v13466_v62 = vld [vmem:[%s13816_s12 + $0xcc8] sm:$0xff]  }
 0x3fd   : > { %7865 = vrot.lane.b32.xlu1 %v15666_v36, %s13727_s11  ;;  %v6983_v18 = vpack.c.bf16 %v6978_v23, %v6978_v23  ;;  %v13471_v30 = vld [vmem:[%s13816_s12 + $0xdc4] sm:$0xff]   ;;  %v6984_v9 = vpack.c.bf16 %v6977_v34, %v6977_v34  ;;  %v13478_v14 = vld [vmem:[%s13816_s12 + $0xd6c] sm:$0xff]   ;;  %v13485_v25 = vld [vmem:[%s13816_s12 + $0xdd4] sm:$0xff]  }
 0x3fe   : > { %v15681_v33 = vmax.f32 %v8159_v63, 0.0  ;;  %12372 = vmatpush3.bf16.msra.mxu0 %v13436_v60  ;;  %v13472_v35 = vld [vmem:[%s13816_s12 + $0xd84] sm:$0xff]   ;;  %v13473_v60 = vld [vmem:[%s13816_s12 + $0xdbc] sm:$0xff]   ;;  %v13464_v63 = vld [vmem:[%s13816_s12 + $0xcd0] sm:$0xff]  }
 0x3ff   : > { %12373 = vmatprep.subr.bf16.mxu0 %v13439_v24  ;;  %12392 = vmatpush3.bf16.msra.mxu1 %v13438_v41  ;;  %v13465_v41 = vld [vmem:[%s13816_s12 + $0xd08] sm:$0xff]  }
 0x400   : > { %8162 = vrot.lane.b32.xlu0 %v15681_v33, %s13726_s10  ;;  %12393 = vmatprep.subr.bf16.mxu1 %v13441_v59  ;;  %v13474_v59 = vld [vmem:[%s13816_s12 + $0xd7c] sm:$0xff]  }
 0x401   : > { %8168 = vrot.lane.b32.xlu1 %v15681_v33, %s13727_s11 }
 0x402   : > { %12374 = vmatpush3.bf16.msra.mxu0 %v13440_v4  ;;  %v13475_v4 = vld [vmem:[%s13816_s12 + $0xdb4] sm:$0xff]  }
 0x403   : > { %12881 = vmatprep.subr.bf16.mxu0 %v13728_v29  ;;  %12394 = vmatpush3.bf16.msra.mxu1 %v13442_v48 }
 0x404   : > { %9052 = vrot.lane.b32.xlu0 %v9050_v28, %s13726_s10  ;;  %12395 = vmatprep.subr.bf16.mxu1 %v13443_v10  ;;  %v13476_v10 = vld [vmem:[%s13816_s12 + $0xd74] sm:$0xff]  }
 0x405   : > { %6567 = vmatmul.mubr.bf16.vlgmr.msra.gmra.mxu0 %v6376_v3  ;;  %9061 = vrot.lane.b32.xlu1 %v9059_v12, %s13727_s11  ;;  %v13477_v3 = vld [vmem:[%s13816_s12 + $0xdac] sm:$0xff]   ;;  %v13468_v12 = vld [vmem:[%s13816_s12 + $0xcc0] sm:$0xff]  }
 0x406   : > { %12882 = vmatpush3.bf16.msra.mxu0 %v6835_v44  ;;  %12887 = vmatprep.mubr.msk.bf16.mxu0 %vm13729_vm4, %v13728_v29 }
 0x407   : > { %12883 = vmatprep.subr.bf16.mxu0 %v13728_v29  ;;  %12396 = vmatpush3.bf16.msra.mxu1 %v13445_v37  ;;  %v13469_v37 = vld [vmem:[%s13816_s12 + $0xcf8] sm:$0xff]  }
 0x408   : > { %9355 = vrot.lane.b32.xlu0 %v9353_v15, %s13726_s10  ;;  %12397 = vmatprep.subr.bf16.mxu1 %v13446_v16  ;;  %v13479_v15 = vld [vmem:[%s13816_s12 + $0xda4] sm:$0xff]   ;;  %v13470_v16 = vld [vmem:[%s13816_s12 + $0xcb8] sm:$0xff]  }
 0x409   : > { %9364 = vrot.lane.b32.xlu1 %v9362_v19, %s13727_s11  ;;  %v13480_v19 = vld [vmem:[%s13816_s12 + $0xd64] sm:$0xff]  }
 0x40a   : > { %12884 = vmatpush3.bf16.msra.mxu0 %v13447_v52  ;;  %v13482_v52 = vld [vmem:[%s13816_s12 + $0xddc] ss:$0 sps:$4 sm:$0xff]  }
 0x40b   : > { %12885 = vmatprep.subr.bf16.mxu0 %v13728_v29  ;;  %12398 = vmatpush3.bf16.msra.mxu1 %v13448_v17  ;;  %v13481_v17 = vld [vmem:[%s13816_s12 + $0xd9c] sm:$0xff]  }
 0x40c   : > { %12399 = vmatprep.subr.bf16.mxu1 %v13449_v54 }
 0x40e   : > { %12886 = vmatpush3.bf16.msra.mxu0 %v13450_v20  ;;  %v7441_v20 = vsel %vm577_vm2, %v13482_v52, 0 }
 0x40f   : > { %12411 = vmatprep.subr.bf16.mxu0 %v13452_v56  ;;  %12400 = vmatpush3.bf16.msra.mxu1 %v13451_v50  ;;  %v13483_v56 = vld [vmem:[%s13816_s12 + $0xd5c] sm:$0xff]   ;;  %v13484_v50 = vld [vmem:[%s13816_s12 + $0xd94] sm:$0xff]  }
 0x410   : > { %12891 = vmatprep.subr.bf16.mxu1 %v13728_v29 }
 0x411   : > { %12888 = vmatmul.mubr.msk.bf16.vlgmr.msra.gmra.mxu0 %vm573_vm5, %v6681_v8  ;;  %v13488_v8 = vld [vmem:[%s13816_s12 + $0xdcc] sm:$0xff]  }
 0x412   : > { %12412 = vmatpush3.bf16.msra.mxu0 %v13453_v27  ;;  %7172 = vmatprep.mubr.bf16.mxu0 %v6983_v18  ;;  %v13487_v27 = vld [vmem:[%s13816_s12 + $0xd8c] sm:$0xff]  }
 0x413   : > { %6870 = vmatmul.mubr.bf16.vlgmr.msra.gmra.mxu1 %v6679_v40  ;;  %12413 = vmatprep.subr.bf16.mxu0 %v13455_v38  ;;  %v13490_v38 = vld [vmem:[%s13816_s12 + $0xe58] sm:$0xff]   ;;  %v13489_v18 = vld [vmem:[%s13816_s12 + $0xd4c] sm:$0xff]  }
 0x414   : > { %12892 = vmatpush3.bf16.msra.mxu1 %v7138_v42  ;;  %12897 = vmatprep.mubr.msk.bf16.mxu1 %vm13729_vm4, %v13728_v29 }
 0x415   : > { %12893 = vmatprep.subr.bf16.mxu1 %v13728_v29 }
 0x416   : > { %12414 = vmatpush3.bf16.msra.mxu0 %v13456_v43 }
 0x417   : > { %12415 = vmatprep.subr.bf16.mxu0 %v13458_v47 }
 0x418   : > { %12894 = vmatpush3.bf16.msra.mxu1 %v13457_v1 }
 0x419   : > { %12895 = vmatprep.subr.bf16.mxu1 %v13728_v29 }
 0x41a   : > { %12416 = vmatpush3.bf16.msra.mxu0 %v13459_v49 }
 0x41b   : > { %12417 = vmatprep.subr.bf16.mxu0 %v13461_v32 }
 0x41c   : > { %12896 = vmatpush3.bf16.msra.mxu1 %v13460_v26 }
 0x41d   : > { %12437 = vmatprep.subr.bf16.mxu1 %v13471_v30 }
 0x41e   : > { %12418 = vmatpush3.bf16.msra.mxu0 %v13462_v58 }
 0x41f   : > { %v5093_v24 = vpop.f32.mrf.mxu0  ;;  %12898 = vmatmul.mubr.msk.bf16.vlgmr.msra.gmra.mxu1 %vm573_vm5, %v6984_v9  ;;  %12419 = vmatprep.subr.bf16.mxu0 %v13463_v39 }
 0x420   : > { %v12245_v5 = vpop.f32.mrf.mxu1  ;;  %12438 = vmatpush3.bf16.msra.mxu1 %v13472_v35 }
 0x421   : > { %v12829_v0 = vpop.f32.mrf.mxu0  ;;  %12439 = vmatprep.subr.bf16.mxu1 %v13473_v60 }
 0x422   : > { %12420 = vmatpush3.bf16.msra.mxu0 %v13464_v63  ;;  %v12246_v55 = vpop.f32.mrf.mxu1 }
 0x423   : > { %v5096_v2 = vpop.f32.mrf.mxu0  ;;  %v12247_v48 = vadd.f32 %v12246_v55, %v12245_v5  ;;  %12421 = vmatprep.subr.bf16.mxu0 %v13465_v41 }
 0x424   : > { %v12248_v46 = vpop.f32.mrf.mxu1  ;;  %12440 = vmatpush3.bf16.msra.mxu1 %v13474_v59 }
 0x425   : > { %v12830_v28 = vpop.f32.mrf.mxu0  ;;  %v5094_v7 = vadd.f32 %v12247_v48, %v5093_v24  ;;  %12441 = vmatprep.subr.bf16.mxu1 %v13475_v4 }
 0x426   : > { %12422 = vmatpush3.bf16.msra.mxu0 %v13466_v62  ;;  %v12249_v44 = vpop.f32.mrf.mxu1 }
 0x427   : > { %v5099_v13 = vadd.f32 %v5094_v7, %v15565_v51  ;;  %12423 = vmatprep.subr.bf16.mxu0 %v13467_v6  ;;  %v6982_v51 = vpack.c.bf16 %v15717_v21, %v15717_v21  ;;  %v13486_v21 = vld [vmem:[%s13816_s12 + $0xd54] sm:$0xff]  }
 0x428   : > { %12442 = vmatpush3.bf16.msra.mxu1 %v13476_v10  ;;  %v8441_v10 = vstv %s8435_s6 }
 0x429   : > { %12443 = vmatprep.subr.bf16.mxu1 %v13477_v3 }
 0x42a   : > { %12424 = vmatpush3.bf16.msra.mxu0 %v13468_v12 }
 0x42b   : > { %12425 = vmatprep.subr.bf16.mxu0 %v13469_v37  ;;  %v8442_v37 = vmul.f32 %v15514_v31, %v8441_v10 }
 0x42c   : > { %12444 = vmatpush3.bf16.msra.mxu1 %v13478_v14  ;;  %v13492_v14 = vld [vmem:[%s13816_s12 + $0xe70] ss:$0 sps:$4 sm:$0xff]  }
 0x42d   : > { %v5396_v11 = vpop.f32.mrf.mxu1  ;;  %12445 = vmatprep.subr.bf16.mxu1 %v13479_v15 }
 0x42e   : > { %12426 = vmatpush3.bf16.msra.mxu0 %v13470_v16 }
 0x42f   : > { %v12839_v54 = vpop.f32.mrf.mxu1  ;;  %12901 = vmatprep.subr.bf16.mxu0 %v13728_v29 }
 0x430   : > { %12446 = vmatpush3.bf16.msra.mxu1 %v13480_v19 }
 0x431   : > { %v5399_v22 = vpop.f32.mrf.mxu1  ;;  %7173 = vmatmul.mubr.bf16.vlgmr.msra.gmra.mxu0 %v6982_v51  ;;  %12447 = vmatprep.subr.bf16.mxu1 %v13481_v17 }
 0x432   : > { %12902 = vmatpush3.bf16.msra.mxu0 %v7441_v20  ;;  %12907 = vmatprep.mubr.msk.bf16.mxu0 %vm13729_vm4, %v13728_v29 }
 0x433   : > { %v12840_v23 = vpop.f32.mrf.mxu1  ;;  %12903 = vmatprep.subr.bf16.mxu0 %v13728_v29 }
 0x434   : > { %12448 = vmatpush3.bf16.msra.mxu1 %v13483_v56  ;;  %v8461_v56 = vstv %s15802_s27 }
 0x435   : > { %12449 = vmatprep.subr.bf16.mxu1 %v13484_v50 }
 0x436   : > { %12904 = vmatpush3.bf16.msra.mxu0 %v13485_v25 }
 0x437   : > { %12905 = vmatprep.subr.bf16.mxu0 %v13728_v29 }
 0x438   : > { %12450 = vmatpush3.bf16.msra.mxu1 %v13486_v21  ;;  %v13491_v21 = vld [vmem:[%s13816_s12 + $0xe18] sm:$0xff]  }
 0x439   : > { %12451 = vmatprep.subr.bf16.mxu1 %v13487_v27  ;;  %v7744_v27 = vsel %vm577_vm2, %v13492_v14, 0 }
 0x43a   : > { %12906 = vmatpush3.bf16.msra.mxu0 %v13488_v8 }
 0x43b   : > { %12463 = vmatprep.subr.bf16.mxu0 %v13490_v38 }
 0x43c   : > { %12452 = vmatpush3.bf16.msra.mxu1 %v13489_v18 }
 0x43d   : > { %12911 = vmatprep.subr.bf16.mxu1 %v13728_v29 }
 0x43f   : > { %v12271_v40 = vpop.f32.mrf.mxu0 }
 0x441   : > { %v12272_v42 = vpop.f32.mrf.mxu0 }
 0x442   : > { %v12273_v43 = vadd.f32 %v12272_v42, %v12271_v40 }
 0x443   : > { %v12274_v47 = vpop.f32.mrf.mxu0 }
 0x444   : > { %v5397_v1 = vadd.f32 %v12273_v43, %v5396_v11  ;;  %v8744_v11 = vstv %s15797_s13 }
 0x445   : > { %v12275_v57 = vpop.f32.mrf.mxu0  ;;  %v8745_v23 = vmul.f32 %v15514_v31, %v8744_v11 }
 0x446   : > { %v5402_v49 = vadd.f32 %v5397_v1, %v5099_v13 }
 0x44b   : > { %v5699_v32 = vpop.f32.mrf.mxu0 }
 0x44d   : > { %v12297_v26 = vpop.f32.mrf.mxu1  ;;  %v12849_v34 = vpop.f32.mrf.mxu0 }
 0x44f   : > { %v12298_v30 = vpop.f32.mrf.mxu1  ;;  %v5702_v58 = vpop.f32.mrf.mxu0 }
 0x450   : > { %v12299_v39 = vadd.f32 %v12298_v30, %v12297_v26 }
 0x451   : > { %v12300_v35 = vpop.f32.mrf.mxu1  ;;  %v12850_v9 = vpop.f32.mrf.mxu0 }
 0x452   : > { %v5700_v60 = vadd.f32 %v12299_v39, %v5699_v32  ;;  %v13493_v32 = vld [vmem:[%s13816_s12 + $0xe50] sm:$0xff]  }
 0x453   : > { %v12301_v24 = vpop.f32.mrf.mxu1  ;;  %v13494_v35 = vld [vmem:[%s13816_s12 + $0xe10] sm:$0xff]  }
 0x454   : > { %v15791_v63 = vadd.f32 %v5700_v60, %v5402_v49  ;;  %v8764_v24 = vstv %s15817_s21 }
 0x459   : > { %v15793_v41 = vpop.f32.mrf.mxu1 }
 0x45b   : > { %v12859_v5 = vpop.f32.mrf.mxu1 }
 0x45d   : > { %v6005_v0 = vpop.f32.mrf.mxu1 }
 0x45e   : > { %v7260_v4 = vpop.permute.xlu1 %7259  ;;  %v7254_v55 = vpop.permute.xlu0 %7253 }
 0x45f   : > { %v12860_v59 = vpop.f32.mrf.mxu1  ;;  %v7261_v2 = vrot.slane %v7260_v4, 2  ;;  %v7255_v62 = vrot.slane %v7254_v55, 2 }
 0x461   : > { %v7256_v48 = vsel %vm267_vm1, %v7254_v55, %v7255_v62  ;;  %v7262_v7 = vsel %vm277_vm3, %v7260_v4, %v7261_v2  ;;  %v13495_v4 = vld [vmem:[%s13816_s12 + $0xe68] sm:$0xff]  }
 0x462   : > { %v7563_v6 = vpop.permute.xlu1 %7562  ;;  %v7258_v46 = vmax.f32 %v15569_v53, %v7256_v48  ;;  %v7557_v28 = vpop.permute.xlu0 %7556 }
 0x463   : > { %v7564_v3 = vrot.slane %v7563_v6, 2  ;;  %v7558_v44 = vrot.slane %v7557_v28, 2 }
 0x464   : > { %v7264_v12 = vmax.f32 %v7258_v46, %v7262_v7 }
 0x465   : > { %v7559_v13 = vsel %vm267_vm1, %v7557_v28, %v7558_v44  ;;  %v7565_v17 = vsel %vm277_vm3, %v7563_v6, %v7564_v3  ;;  %v13496_v28 = vld [vmem:[%s13816_s12 + $0xe48] sm:$0xff]  }
 0x466   : > { %v7266_v15 = vcombine.high %v7264_v12, %v7264_v12  ;;  %v7561_v53 = vmax.f32 %v15598_v61, %v7559_v13  ;;  %v8456_v16 = vpop.permute.xlu1 %8455  ;;  %v8447_v52 = vpop.permute.xlu0 %8446  ;;  %v7273_v19 = vrot.slane %v7264_v12, %v14019_v45  ;;  %v13497_v12 = vld [vmem:[%s13816_s12 + $0xe08] sm:$0xff]  }
 0x467   : > { %v8457_v54 = vrot.slane %v8456_v16, 2  ;;  %v8448_v51 = vrot.slane %v8447_v52, 2 }
 0x468   : > { %v7280_v20 = vrot.slane %v7266_v15, %v14019_v45  ;;  %v15823_v22 = vmax.f32 %v7561_v53, %v7565_v17  ;;  %v7281_v61 = vcombine.high %v7273_v19, %v7273_v19  ;;  %v7285_v43 = vpack.c.bf16 %v7273_v19, %v7273_v19  ;;  %v13498_v15 = vld [vmem:[%s13816_s12 + $0xe60] sm:$0xff]  }
 0x469   : > { %v8449_v50 = vsel %vm267_vm1, %v8447_v52, %v8448_v51  ;;  %v8458_v47 = vsel %vm277_vm3, %v8456_v16, %v8457_v54  ;;  %v9047_v16 = vstv %s15833_s22  ;;  %v9664_v52 = vstv %s15841_s9  ;;  %v13499_v17 = vld [vmem:[%s13816_s12 + $0xe40] sm:$0xff]   ;;  %v13501_v54 = vld [vmem:[%s13816_s12 + $0xeec] sm:$0xff]  }
 0x46a   : > { %v7287_v8 = vpack.c.bf16 %v7280_v20, %v7280_v20  ;;  %v8451_v38 = vadd.f32 %v8449_v50, %v8442_v37  ;;  %v8759_v18 = vpop.permute.xlu1 %8758  ;;  %v8750_v40 = vpop.permute.xlu0 %8749  ;;  %v7286_v42 = vpack.c.bf16 %v7281_v61, %v7281_v61  ;;  %v15839_v26 = vrot.slane %v15823_v22, %v14019_v45  ;;  %v13500_v20 = vld [vmem:[%s13816_s12 + $0xe00] sm:$0xff]   ;;  %v13502_v50 = vld [vmem:[%s13816_s12 + $0xeac] sm:$0xff]  }
 0x46b   : > { %v12323_v25 = vpop.f32.mrf.mxu0  ;;  %v8760_v1 = vrot.slane %v8759_v18, 2  ;;  %v8751_v57 = vrot.slane %v8750_v40, 2  ;;  %v7569_v55 = vcombine.high %v15823_v22, %v15823_v22  ;;  %v9655_v51 = vstv %s15844_s17 }
 0x46c   : > { %v8460_v34 = vadd.f32 %v8458_v47, %v8451_v38  ;;  %7475 = vmatprep.mubr.bf16.mxu1 %v7286_v42  ;;  %12908 = vmatmul.mubr.msk.bf16.vlgmr.msra.gmra.mxu0 %vm573_vm5, %v7287_v8  ;;  %v7584_v9 = vcombine.high %v15839_v26, %v15839_v26  ;;  %v9048_v61 = vmul.f32 %v15514_v31, %v9047_v16  ;;  %v9350_v8 = vstv %s15859_s16 }
 0x46d   : > { %v12324_v49 = vpop.f32.mrf.mxu0  ;;  %v8752_v58 = vsel %vm267_vm1, %v8750_v40, %v8751_v57  ;;  %12464 = vmatpush3.bf16.msra.mxu0 %v13491_v21  ;;  %7476 = vmatmul.mubr.bf16.vlgmr.msra.gmra.mxu1 %v7285_v43  ;;  %v8761_v2 = vsel %vm277_vm3, %v8759_v18, %v8760_v1  ;;  %v7583_v53 = vrot.slane %v7569_v55, %v14019_v45  ;;  %v13503_v18 = vld [vmem:[%s13816_s12 + $0xe38] sm:$0xff]   ;;  %v13505_v40 = vld [vmem:[%s13816_s12 + $0xee4] sm:$0xff]  }
 0x46e   : > { %v12325_v30 = vadd.f32 %v12324_v49, %v12323_v25  ;;  %v8462_v60 = vadd.f32 %v8461_v56, %v8460_v34  ;;  %v8754_v5 = vadd.f32 %v8752_v58, %v8745_v23  ;;  %12912 = vmatpush3.bf16.msra.mxu1 %v7744_v27  ;;  %v7860_v59 = vpop.permute.xlu0 %7859  ;;  %12465 = vmatprep.subr.bf16.mxu0 %v13493_v32  ;;  %v15924_v57 = vld [vmem:[%s16242_s0] sm:$0x3f]  ;;  %v9067_v58 = vstv %s15885_s28 }
 0x46f   : > { %v12326_v39 = vpop.f32.mrf.mxu0  ;;  %v7861_v62 = vrot.slane %v7860_v59, 2  ;;  %v7866_v48 = vpop.permute.xlu1 %7865  ;;  %v7589_v6 = vpack.c.bf16 %v7584_v9, %v7584_v9  ;;  %12913 = vmatprep.subr.bf16.mxu1 %v13728_v29  ;;  %12917 = vmatprep.mubr.msk.bf16.mxu1 %vm13729_vm4, %v13728_v29  ;;  %v9665_v23 = vmul.f32 %v15514_v31, %v9664_v52  ;;  %v7590_v25 = vpack.c.bf16 %v7583_v53, %v7583_v53  ;;  %v13506_v34 = vld [vmem:[%s13816_s12 + $0xea4] sm:$0xff]  }
 0x470   : > { %v6003_v0 = vadd.f32 %v12325_v30, %v15793_v41  ;;  %v15861_v41 = vmax.f32 %v8462_v60, 0.0  ;;  %v8763_v10 = vadd.f32 %v8761_v2, %v8754_v5  ;;  %v7867_v3 = vrot.slane %v7866_v48, 2  ;;  %v13507_v30 = vld [vmem:[%s13816_s12 + $0xe30] sm:$0xff]   ;;  %v13509_v60 = vld [vmem:[%s13816_s12 + $0xedc] sm:$0xff]  }
 0x471   : > { %v12327_v46 = vpop.f32.mrf.mxu0  ;;  %v7862_v44 = vsel %vm267_vm1, %v7860_v59, %v7861_v62  ;;  %12466 = vmatpush3.bf16.msra.mxu0 %v13494_v35  ;;  %7778 = vmatprep.mubr.bf16.mxu0 %v7589_v6  ;;  %v9656_v27 = vmul.f32 %v15514_v31, %v9655_v51  ;;  %v13504_v31 = vld [vmem:[%s13816_s12 + $0xdf8] sm:$0xff]   ;;  %v9351_v49 = vmul.f32 %v15924_v57, %v9350_v8  ;;  %v13520_v51 = vld [vmem:[%s13816_s12 + $0xf04] ss:$0 sps:$4 sm:$0xff]  }
 0x472   : > { %v15864_v7 = vadd.f32 %v6003_v0, %v15791_v63  ;;  %v8765_v13 = vadd.f32 %v8764_v24, %v8763_v10  ;;  %v7864_v37 = vmax.f32 %v15666_v36, %v7862_v44  ;;  %v7868_v14 = vsel %vm277_vm3, %v7866_v48, %v7867_v3  ;;  %12914 = vmatpush3.bf16.msra.mxu1 %v13495_v4  ;;  %v15874_v63 = vpop.permute.xlu0 %8162  ;;  %v13508_v4 = vld [vmem:[%s13816_s12 + $0xdf0] sm:$0xff]   ;;  %v13510_v62 = vld [vmem:[%s13816_s12 + $0xe9c] sm:$0xff]   ;;  %v13511_v46 = vld [vmem:[%s13816_s12 + $0xe28] sm:$0xff]  }
 0x473   : > { %8471 = vrot.lane.b32.xlu1 %v15861_v41, %s13727_s11  ;;  %8465 = vrot.lane.b32.xlu0 %v15861_v41, %s13726_s10  ;;  %v15880_v36 = vpop.permute.xlu1 %8168  ;;  %v9370_v48 = vstv %s15912_s23  ;;  %v8164_v44 = vrot.slane %v15874_v63, 2 }
 0x474   : > { %12467 = vmatprep.subr.bf16.mxu0 %v13496_v28  ;;  %v15888_v11 = vmax.f32 %v8765_v13, 0.0  ;;  %v15890_v19 = vmax.f32 %v7864_v37, %v7868_v14  ;;  %12915 = vmatprep.subr.bf16.mxu1 %v13728_v29  ;;  %v13513_v28 = vld [vmem:[%s13816_s12 + $0xed4] sm:$0xff]   ;;  %v13515_v14 = vld [vmem:[%s13816_s12 + $0xe20] sm:$0xff]   ;;  %v8170_v52 = vrot.slane %v15880_v36, 2 }
 0x475   : > { %12468 = vmatpush3.bf16.msra.mxu0 %v13497_v12  ;;  %v13512_v12 = vld [vmem:[%s13816_s12 + $0xde8] sm:$0xff]   ;;  %v13514_v37 = vld [vmem:[%s13816_s12 + $0xe94] sm:$0xff]   ;;  %v8165_v16 = vsel %vm267_vm1, %v15874_v63, %v8164_v44 }
 0x476   : > { %v15899_v22 = vrot.slane %v15890_v19, %v14019_v45  ;;  %12916 = vmatpush3.bf16.msra.mxu1 %v13498_v15  ;;  %v9053_v56 = vpop.permute.xlu0 %9052  ;;  %12469 = vmatprep.subr.bf16.mxu0 %v13499_v17  ;;  %v13517_v15 = vld [vmem:[%s13816_s12 + $0xecc] sm:$0xff]   ;;  %v13516_v17 = vld [vmem:[%s13816_s12 + $0xde0] sm:$0xff]   ;;  %v8171_v63 = vsel %vm277_vm3, %v15880_v36, %v8170_v52 }
 0x477   : > { %8774 = vrot.lane.b32.xlu1 %v15888_v11, %s13727_s11  ;;  %8768 = vrot.lane.b32.xlu0 %v15888_v11, %s13726_s10  ;;  %v9054_v21 = vrot.slane %v9053_v56, 2  ;;  %v9062_v38 = vpop.permute.xlu1 %9061  ;;  %v13523_v36 = vld [vmem:[%s13816_s12 + $0xefc] sm:$0xff]  }
 0x478   : > { %12489 = vmatprep.subr.bf16.mxu1 %v13501_v54  ;;  %v9063_v43 = vrot.slane %v9062_v38, 2  ;;  %v7887_v47 = vcombine.high %v15899_v22, %v15899_v22  ;;  %v13518_v54 = vld [vmem:[%s13816_s12 + $0xe8c] sm:$0xff]  }
 0x479   : > { %v9055_v42 = vsel %vm267_vm1, %v9053_v56, %v9054_v21  ;;  %12470 = vmatpush3.bf16.msra.mxu0 %v13500_v20  ;;  %12918 = vmatmul.mubr.msk.bf16.vlgmr.msra.gmra.mxu1 %vm573_vm5, %v7590_v25  ;;  %v13519_v20 = vld [vmem:[%s13816_s12 + $0xec4] sm:$0xff]   ;;  %v7588_v56 = vpack.c.bf16 %v15839_v26, %v15839_v26  ;;  %v7872_v26 = vcombine.high %v15890_v19, %v15890_v19  ;;  %v13524_v21 = vld [vmem:[%s13816_s12 + $0xe7c] sm:$0xff]  }
 0x47a   : > { %v9057_v1 = vadd.f32 %v9055_v42, %v9048_v61  ;;  %12490 = vmatpush3.bf16.msra.mxu1 %v13502_v50  ;;  %v9356_v32 = vpop.permute.xlu0 %9355  ;;  %v9064_v39 = vsel %vm277_vm3, %v9062_v38, %v9063_v43  ;;  %v7892_v9 = vpack.c.bf16 %v7887_v47, %v7887_v47  ;;  %12471 = vmatprep.subr.bf16.mxu0 %v13503_v18  ;;  %v8047_v50 = vsel %vm577_vm2, %v13520_v51, 0  ;;  %v13526_v38 = vld [vmem:[%s13816_s12 + $0xef4] sm:$0xff]   ;;  %v13528_v19 = vld [vmem:[%s13816_s12 + $0xf80] sm:$0xff]  }
 0x47b   : > { %9667 = vrot.lane.b32.xlu1 %v9665_v23, %s13727_s11  ;;  %9658 = vrot.lane.b32.xlu0 %v9656_v27, %s13726_s10  ;;  %v9357_v35 = vrot.slane %v9356_v32, 2  ;;  %v9365_v5 = vpop.permute.xlu1 %9364  ;;  %v8167_v61 = vmax.f32 %v15681_v33, %v8165_v16  ;;  %v13521_v23 = vld [vmem:[%s13816_s12 + $0xe84] sm:$0xff]   ;;  %v13522_v33 = vld [vmem:[%s13816_s12 + $0xebc] sm:$0xff]   ;;  %v7886_v18 = vrot.slane %v7872_v26, %v14019_v45 }
 0x47c   : > { %v9066_v24 = vadd.f32 %v9064_v39, %v9057_v1  ;;  %12491 = vmatprep.subr.bf16.mxu1 %v13505_v40  ;;  %v9366_v59 = vrot.slane %v9365_v5, 2  ;;  %8081 = vmatprep.mubr.bf16.mxu1 %v7892_v9  ;;  %v13525_v27 = vld [vmem:[%s13816_s12 + $0xeb4] sm:$0xff]   ;;  %v7891_v1 = vpack.c.bf16 %v15899_v22, %v15899_v22  ;;  %v13536_v9 = vld [vmem:[%s13816_s12 + $0xf88] sm:$0xff]  }
 0x47d   : > { %v9358_v0 = vsel %vm267_vm1, %v9356_v32, %v9357_v35  ;;  %12472 = vmatpush3.bf16.msra.mxu0 %v13504_v31  ;;  %v8173_v25 = vmax.f32 %v8167_v61, %v8171_v63  ;;  %v13527_v40 = vld [vmem:[%s13816_s12 + $0xe74] sm:$0xff]   ;;  %v13529_v31 = vld [vmem:[%s13816_s12 + $0xf40] sm:$0xff]   ;;  %v7893_v47 = vpack.c.bf16 %v7886_v18, %v7886_v18  ;;  %v13558_v26 = vld [vmem:[%s13816_s12 + $0x102c] ss:$0 sps:$4 sm:$0xff]  }
 0x47e   : > { %v9068_v55 = vadd.f32 %v9067_v58, %v9066_v24  ;;  %v9360_v2 = vadd.f32 %v9358_v0, %v9351_v49  ;;  %12492 = vmatpush3.bf16.msra.mxu1 %v13506_v34  ;;  %12473 = vmatprep.subr.bf16.mxu0 %v13507_v30  ;;  %v9367_v6 = vsel %vm277_vm3, %v9365_v5, %v9366_v59  ;;  %v13530_v42 = vld [vmem:[%s13816_s12 + $0xf98] ss:$0 sps:$4 sm:$0xff]   ;;  %v13533_v58 = vld [vmem:[%s13816_s12 + $0xf90] sm:$0xff]   ;;  %v13538_v0 = vld [vmem:[%s13816_s12 + $0xf28] sm:$0xff]   ;;  %v8653_v18 = vsel %vm577_vm2, %v13558_v26, 0 }
 0x47f   : > { %12493 = vmatprep.subr.bf16.mxu1 %v13509_v60  ;;  %v15983_v8 = vrot.slane %v8173_v25, %v14019_v45  ;;  %v8350_v49 = vsel %vm577_vm2, %v13530_v42, 0  ;;  %v13531_v32 = vld [vmem:[%s13816_s12 + $0xf78] sm:$0xff]   ;;  %v13534_v22 = vld [vmem:[%s13816_s12 + $0xf70] sm:$0xff]   ;;  %v8175_v39 = vcombine.high %v8173_v25, %v8173_v25  ;;  %v13537_v60 = vld [vmem:[%s13816_s12 + $0xf68] sm:$0xff]  }
 0x480   : > { %v15941_v10 = vmax.f32 %v9068_v55, 0.0  ;;  %v9369_v3 = vadd.f32 %v9367_v6, %v9360_v2  ;;  %v13532_v30 = vld [vmem:[%s13816_s12 + $0xf38] sm:$0xff]   ;;  %v13535_v35 = vld [vmem:[%s13816_s12 + $0xf30] sm:$0xff]   ;;  %v13539_v59 = vld [vmem:[%s13816_s12 + $0xf60] sm:$0xff]  }
 0x481   : > { %12474 = vmatpush3.bf16.msra.mxu0 %v13508_v4  ;;  %v8190_v43 = vcombine.high %v15983_v8, %v15983_v8  ;;  %v8189_v24 = vrot.slane %v8175_v39, %v14019_v45  ;;  %v13547_v5 = vld [vmem:[%s13816_s12 + $0x1014] sm:$0xff]   ;;  %v13549_v2 = vld [vmem:[%s13816_s12 + $0x100c] sm:$0xff]   ;;  %v13540_v6 = vld [vmem:[%s13816_s12 + $0xf20] sm:$0xff]  }
 0x482   : > { %v9371_v13 = vadd.f32 %v9370_v48, %v9369_v3  ;;  %12494 = vmatpush3.bf16.msra.mxu1 %v13510_v62  ;;  %9071 = vrot.lane.b32.xlu0 %v15941_v10, %s13726_s10  ;;  %v13548_v4 = vld [vmem:[%s13816_s12 + $0xfd4] sm:$0xff]   ;;  %v13550_v3 = vld [vmem:[%s13816_s12 + $0xfcc] sm:$0xff]  }
 0x483   : > { %12475 = vmatprep.subr.bf16.mxu0 %v13511_v46  ;;  %12495 = vmatprep.subr.bf16.mxu1 %v13513_v28  ;;  %v8195_v34 = vpack.c.bf16 %v8190_v43, %v8190_v43  ;;  %v8196_v55 = vpack.c.bf16 %v8189_v24, %v8189_v24  ;;  %v13541_v28 = vld [vmem:[%s13816_s12 + $0xf58] sm:$0xff]   ;;  %v13544_v63 = vld [vmem:[%s13816_s12 + $0xf10] sm:$0xff]   ;;  %v13561_v43 = vld [vmem:[%s13816_s12 + $0x1024] sm:$0xff]  }
 0x484   : > { %v15950_v53 = vmax.f32 %v9371_v13, 0.0  ;;  %9077 = vrot.lane.b32.xlu1 %v15941_v10, %s13727_s11 }
 0x485   : > { %12476 = vmatpush3.bf16.msra.mxu0 %v13512_v12  ;;  %v13551_v12 = vld [vmem:[%s13816_s12 + $0x1004] sm:$0xff]  }
 0x486   : > { %12496 = vmatpush3.bf16.msra.mxu1 %v13514_v37  ;;  %9374 = vrot.lane.b32.xlu0 %v15950_v53, %s13726_s10 }
 0x487   : > { %12477 = vmatprep.subr.bf16.mxu0 %v13515_v14  ;;  %12497 = vmatprep.subr.bf16.mxu1 %v13517_v15  ;;  %v13542_v15 = vld [vmem:[%s13816_s12 + $0xf18] sm:$0xff]  }
 0x488   : > { %9380 = vrot.lane.b32.xlu1 %v15950_v53, %s13727_s11 }
 0x489   : > { %12478 = vmatpush3.bf16.msra.mxu0 %v13516_v17  ;;  %v13543_v17 = vld [vmem:[%s13816_s12 + $0xf50] sm:$0xff]  }
 0x48a   : > { %12498 = vmatpush3.bf16.msra.mxu1 %v13518_v54  ;;  %12921 = vmatprep.subr.bf16.mxu0 %v13728_v29  ;;  %v13552_v54 = vld [vmem:[%s13816_s12 + $0xfc4] sm:$0xff]  }
 0x48b   : > { %12499 = vmatprep.subr.bf16.mxu1 %v13519_v20  ;;  %v13553_v20 = vld [vmem:[%s13816_s12 + $0xffc] sm:$0xff]  }
 0x48c   : > { %7779 = vmatmul.mubr.bf16.vlgmr.msra.gmra.mxu0 %v7588_v56  ;;  %v13545_v56 = vld [vmem:[%s13816_s12 + $0xf48] sm:$0xff]  }
 0x48d   : > { %12922 = vmatpush3.bf16.msra.mxu0 %v8047_v50  ;;  %12927 = vmatprep.mubr.msk.bf16.mxu0 %vm13729_vm4, %v13728_v29  ;;  %v13554_v50 = vld [vmem:[%s13816_s12 + $0xfbc] sm:$0xff]  }
 0x48e   : > { %12500 = vmatpush3.bf16.msra.mxu1 %v13521_v23  ;;  %12923 = vmatprep.subr.bf16.mxu0 %v13728_v29  ;;  %v13555_v23 = vld [vmem:[%s13816_s12 + $0xff4] sm:$0xff]  }
 0x48f   : > { %12501 = vmatprep.subr.bf16.mxu1 %v13522_v33  ;;  %v13546_v33 = vld [vmem:[%s13816_s12 + $0xf08] sm:$0xff]  }
 0x491   : > { %12924 = vmatpush3.bf16.msra.mxu0 %v13523_v36  ;;  %v13556_v36 = vld [vmem:[%s13816_s12 + $0xfb4] sm:$0xff]  }
 0x492   : > { %12502 = vmatpush3.bf16.msra.mxu1 %v13524_v21  ;;  %12925 = vmatprep.subr.bf16.mxu0 %v13728_v29 }
 0x493   : > { %12503 = vmatprep.subr.bf16.mxu1 %v13525_v27  ;;  %v8194_v27 = vpack.c.bf16 %v15983_v8, %v15983_v8  ;;  %v13562_v8 = vld [vmem:[%s13816_s12 + $0xfa4] sm:$0xff]  }
 0x495   : > { %12926 = vmatpush3.bf16.msra.mxu0 %v13526_v38 }
 0x496   : > { %12504 = vmatpush3.bf16.msra.mxu1 %v13527_v40  ;;  %12515 = vmatprep.subr.bf16.mxu0 %v13528_v19  ;;  %v13559_v40 = vld [vmem:[%s13816_s12 + $0xfac] sm:$0xff]   ;;  %v13560_v19 = vld [vmem:[%s13816_s12 + $0xfe4] sm:$0xff]  }
 0x497   : > { %12931 = vmatprep.subr.bf16.mxu1 %v13728_v29 }
 0x498   : > { %12928 = vmatmul.mubr.msk.bf16.vlgmr.msra.gmra.mxu0 %vm573_vm5, %v7893_v47  ;;  %v13564_v47 = vld [vmem:[%s13816_s12 + $0x101c] sm:$0xff]  }
 0x499   : > { %8082 = vmatmul.mubr.bf16.vlgmr.msra.gmra.mxu1 %v7891_v1  ;;  %12516 = vmatpush3.bf16.msra.mxu0 %v13529_v31  ;;  %v13563_v31 = vld [vmem:[%s13816_s12 + $0xfdc] sm:$0xff]  }
 0x49a   : > { %8384 = vmatprep.mubr.bf16.mxu0 %v8195_v34  ;;  %12932 = vmatpush3.bf16.msra.mxu1 %v8350_v49  ;;  %v13565_v1 = vld [vmem:[%s13816_s12 + $0xf9c] sm:$0xff]   ;;  %v13566_v49 = vld [vmem:[%s13816_s12 + $0x10a8] sm:$0xff]  }
 0x49b   : > { %12517 = vmatprep.subr.bf16.mxu0 %v13531_v32  ;;  %12933 = vmatprep.subr.bf16.mxu1 %v13728_v29 }
 0x49c   : > { %12937 = vmatprep.mubr.msk.bf16.mxu1 %vm13729_vm4, %v13728_v29 }
 0x49d   : > { %12518 = vmatpush3.bf16.msra.mxu0 %v13532_v30 }
 0x49e   : > { %12934 = vmatpush3.bf16.msra.mxu1 %v13533_v58  ;;  %12519 = vmatprep.subr.bf16.mxu0 %v13534_v22 }
 0x49f   : > { %12935 = vmatprep.subr.bf16.mxu1 %v13728_v29 }
 0x4a1   : > { %12520 = vmatpush3.bf16.msra.mxu0 %v13535_v35 }
 0x4a2   : > { %12936 = vmatpush3.bf16.msra.mxu1 %v13536_v9  ;;  %12521 = vmatprep.subr.bf16.mxu0 %v13537_v60 }
 0x4a3   : > { %12541 = vmatprep.subr.bf16.mxu1 %v13547_v5 }
 0x4a5   : > { %v6305_v62 = vpop.f32.mrf.mxu0  ;;  %12522 = vmatpush3.bf16.msra.mxu0 %v13538_v0  ;;  %12938 = vmatmul.mubr.msk.bf16.vlgmr.msra.gmra.mxu1 %vm573_vm5, %v8196_v55 }
 0x4a6   : > { %v12349_v48 = vpop.f32.mrf.mxu1  ;;  %12523 = vmatprep.subr.bf16.mxu0 %v13539_v59  ;;  %12542 = vmatpush3.bf16.msra.mxu1 %v13548_v4 }
 0x4a7   : > { %v12869_v46 = vpop.f32.mrf.mxu0  ;;  %12543 = vmatprep.subr.bf16.mxu1 %v13549_v2 }
 0x4a8   : > { %v12350_v44 = vpop.f32.mrf.mxu1 }
 0x4a9   : > { %v12351_v13 = vadd.f32 %v12350_v44, %v12349_v48  ;;  %v6308_v37 = vpop.f32.mrf.mxu0  ;;  %12524 = vmatpush3.bf16.msra.mxu0 %v13540_v6 }
 0x4aa   : > { %v12352_v14 = vpop.f32.mrf.mxu1  ;;  %12525 = vmatprep.subr.bf16.mxu0 %v13541_v28  ;;  %12544 = vmatpush3.bf16.msra.mxu1 %v13550_v3 }
 0x4ab   : > { %v6306_v16 = vadd.f32 %v12351_v13, %v6305_v62  ;;  %v12870_v52 = vpop.f32.mrf.mxu0  ;;  %12545 = vmatprep.subr.bf16.mxu1 %v13551_v12 }
 0x4ac   : > { %v12353_v51 = vpop.f32.mrf.mxu1 }
 0x4ad   : > { %v6311_v61 = vadd.f32 %v6306_v16, %v15864_v7  ;;  %12526 = vmatpush3.bf16.msra.mxu0 %v13542_v15  ;;  %v13557_v7 = vld [vmem:[%s13816_s12 + $0xfec] sm:$0xff]  }
 0x4ae   : > { %12527 = vmatprep.subr.bf16.mxu0 %v13543_v17  ;;  %12546 = vmatpush3.bf16.msra.mxu1 %v13552_v54 }
 0x4af   : > { %12547 = vmatprep.subr.bf16.mxu1 %v13553_v20  ;;  %v9653_v20 = vstv %s9647_s25 }
 0x4b1   : > { %12528 = vmatpush3.bf16.msra.mxu0 %v13544_v63 }
 0x4b2   : > { %v6608_v25 = vpop.f32.mrf.mxu1  ;;  %12529 = vmatprep.subr.bf16.mxu0 %v13545_v56  ;;  %12548 = vmatpush3.bf16.msra.mxu1 %v13554_v50 }
 0x4b3   : > { %12549 = vmatprep.subr.bf16.mxu1 %v13555_v23 }
 0x4b4   : > { %v12879_v21 = vpop.f32.mrf.mxu1 }
 0x4b5   : > { %12530 = vmatpush3.bf16.msra.mxu0 %v13546_v33 }
 0x4b6   : > { %v6611_v38 = vpop.f32.mrf.mxu1  ;;  %12550 = vmatpush3.bf16.msra.mxu1 %v13556_v36  ;;  %12941 = vmatprep.subr.bf16.mxu0 %v13728_v29  ;;  %v13568_v36 = vld [vmem:[%s13816_s12 + $0x10c0] ss:$0 sps:$4 sm:$0xff]  }
 0x4b7   : > { %12551 = vmatprep.subr.bf16.mxu1 %v13557_v7 }
 0x4b8   : > { %8385 = vmatmul.mubr.bf16.vlgmr.msra.gmra.mxu0 %v8194_v27  ;;  %v12880_v42 = vpop.f32.mrf.mxu1 }
 0x4b9   : > { %12942 = vmatpush3.bf16.msra.mxu0 %v8653_v18  ;;  %12947 = vmatprep.mubr.msk.bf16.mxu0 %vm13729_vm4, %v13728_v29 }
 0x4ba   : > { %12552 = vmatpush3.bf16.msra.mxu1 %v13559_v40  ;;  %12943 = vmatprep.subr.bf16.mxu0 %v13728_v29 }
 0x4bb   : > { %12553 = vmatprep.subr.bf16.mxu1 %v13560_v19  ;;  %v13567_v19 = vld [vmem:[%s13816_s12 + $0x1068] sm:$0xff]  }
 0x4bd   : > { %12944 = vmatpush3.bf16.msra.mxu0 %v13561_v43 }
 0x4be   : > { %12554 = vmatpush3.bf16.msra.mxu1 %v13562_v8  ;;  %12945 = vmatprep.subr.bf16.mxu0 %v13728_v29  ;;  %v8956_v8 = vsel %vm577_vm2, %v13568_v36, 0  ;;  %v13586_v36 = vld [vmem:[%s13816_s12 + $0x10ec] sm:$0xff]  }
 0x4bf   : > { %12555 = vmatprep.subr.bf16.mxu1 %v13563_v31  ;;  %v13569_v31 = vld [vmem:[%s13816_s12 + $0x10a0] sm:$0xff]  }
 0x4c1   : > { %12946 = vmatpush3.bf16.msra.mxu0 %v13564_v47 }
 0x4c2   : > { %12556 = vmatpush3.bf16.msra.mxu1 %v13565_v1  ;;  %12567 = vmatprep.subr.bf16.mxu0 %v13566_v49  ;;  %v9673_v1 = vstv %s16059_s26 }
 0x4c3   : > { %12951 = vmatprep.subr.bf16.mxu1 %v13728_v29 }
 0x4c5   : > { %v12375_v32 = vpop.f32.mrf.mxu0 }
 0x4c7   : > { %v12376_v34 = vpop.f32.mrf.mxu0 }
 0x4c8   : > { %v12377_v30 = vadd.f32 %v12376_v34, %v12375_v32 }
 0x4c9   : > { %v12378_v58 = vpop.f32.mrf.mxu0 }
 0x4ca   : > { %v6609_v22 = vadd.f32 %v12377_v30, %v6608_v25 }
 0x4cb   : > { %v12379_v39 = vpop.f32.mrf.mxu0 }
 0x4cc   : > { %v6614_v35 = vadd.f32 %v6609_v22, %v6311_v61 }
 0x4d1   : > { %v6911_v9 = vpop.f32.mrf.mxu0 }
 0x4d3   : > { %v12401_v60 = vpop.f32.mrf.mxu1  ;;  %v12889_v24 = vpop.f32.mrf.mxu0 }
 0x4d5   : > { %v12402_v5 = vpop.f32.mrf.mxu1  ;;  %v6914_v0 = vpop.f32.mrf.mxu0 }
 0x4d6   : > { %v12403_v59 = vadd.f32 %v12402_v5, %v12401_v60  ;;  %v13571_v0 = vld [vmem:[%s13816_s12 + $0x10b8] sm:$0xff]  }
 0x4d7   : > { %v12404_v4 = vpop.f32.mrf.mxu1  ;;  %v12890_v55 = vpop.f32.mrf.mxu0 }
 0x4d8   : > { %v6912_v2 = vadd.f32 %v12403_v59, %v6911_v9 }
 0x4d9   : > { %v12405_v62 = vpop.f32.mrf.mxu1 }
 0x4da   : > { %v16051_v48 = vadd.f32 %v6912_v2, %v6614_v35  ;;  %v13570_v35 = vld [vmem:[%s13816_s12 + $0x1060] sm:$0xff]   ;;  %v13572_v62 = vld [vmem:[%s13816_s12 + $0x1098] sm:$0xff]  }
 0x4df   : > { %v7214_v6 = vpop.f32.mrf.mxu1 }
 0x4e1   : > { %v12899_v46 = vpop.f32.mrf.mxu1 }
 0x4e3   : > { %v7217_v28 = vpop.f32.mrf.mxu1 }
 0x4e5   : > { %v12900_v3 = vpop.f32.mrf.mxu1  ;;  %v8472_v44 = vpop.permute.xlu1 %8471 }
 0x4e6   : > { %v8466_v12 = vpop.permute.xlu0 %8465  ;;  %v8473_v13 = vrot.slane %v8472_v44, 2 }
 0x4e7   : > { %v8467_v37 = vrot.slane %v8466_v12, 2 }
 0x4e8   : > { %v8474_v17 = vsel %vm277_vm3, %v8472_v44, %v8473_v13 }
 0x4e9   : > { %v8468_v14 = vsel %vm267_vm1, %v8466_v12, %v8467_v37  ;;  %v8775_v16 = vpop.permute.xlu1 %8774  ;;  %v13573_v12 = vld [vmem:[%s13816_s12 + $0x1058] sm:$0xff]   ;;  %v13575_v37 = vld [vmem:[%s13816_s12 + $0x1090] sm:$0xff]  }
 0x4ea   : > { %v8470_v15 = vmax.f32 %v15861_v41, %v8468_v14  ;;  %v8769_v52 = vpop.permute.xlu0 %8768  ;;  %v8776_v54 = vrot.slane %v8775_v16, 2  ;;  %v9654_v41 = vmul.f32 %v15924_v57, %v9653_v20  ;;  %v13581_v20 = vld [vmem:[%s13816_s12 + $0x1134] sm:$0xff]  }
 0x4eb   : > { %v8770_v51 = vrot.slane %v8769_v52, 2 }
 0x4ec   : > { %v8476_v61 = vmax.f32 %v8470_v15, %v8474_v17  ;;  %v8777_v26 = vsel %vm277_vm3, %v8775_v16, %v8776_v54  ;;  %v13578_v17 = vld [vmem:[%s13816_s12 + $0x10fc] sm:$0xff]   ;;  %v13579_v54 = vld [vmem:[%s13816_s12 + $0x1088] sm:$0xff]  }
 0x4ed   : > { %v8771_v63 = vsel %vm267_vm1, %v8769_v52, %v8770_v51  ;;  %v9668_v23 = vpop.permute.xlu1 %9667  ;;  %v13576_v52 = vld [vmem:[%s13816_s12 + $0x1050] sm:$0xff]  }
 0x4ee   : > { %v8478_v56 = vcombine.high %v8476_v61, %v8476_v61  ;;  %v8773_v50 = vmax.f32 %v15888_v11, %v8771_v63  ;;  %v9659_v33 = vpop.permute.xlu0 %9658  ;;  %v8485_v25 = vrot.slane %v8476_v61, %v14019_v45  ;;  %v9669_v7 = vrot.slane %v9668_v23, 2  ;;  %v13580_v63 = vld [vmem:[%s13816_s12 + $0x1048] sm:$0xff]  }
 0x4ef   : > { %v9660_v21 = vrot.slane %v9659_v33, 2 }
 0x4f0   : > { %v8492_v27 = vrot.slane %v8478_v56, %v14019_v45  ;;  %v8779_v38 = vmax.f32 %v8773_v50, %v8777_v26  ;;  %v8493_v18 = vcombine.high %v8485_v25, %v8485_v25  ;;  %v9670_v47 = vsel %vm277_vm3, %v9668_v23, %v9669_v7  ;;  %v13582_v50 = vld [vmem:[%s13816_s12 + $0x10f4] sm:$0xff]   ;;  %v13583_v23 = vld [vmem:[%s13816_s12 + $0x1080] sm:$0xff]  }
 0x4f1   : > { %v9661_v40 = vsel %vm267_vm1, %v9659_v33, %v9660_v21  ;;  %v12427_v11 = vpop.f32.mrf.mxu0  ;;  %v8497_v32 = vpack.c.bf16 %v8485_v25, %v8485_v25  ;;  %v13584_v33 = vld [vmem:[%s13816_s12 + $0x1040] sm:$0xff]   ;;  %v13587_v26 = vld [vmem:[%s13816_s12 + $0x1078] sm:$0xff]  }
 0x4f2   : > { %v8499_v42 = vpack.c.bf16 %v8492_v27, %v8492_v27  ;;  %v9663_v57 = vadd.f32 %v9661_v40, %v9654_v41  ;;  %v8498_v43 = vpack.c.bf16 %v8493_v18, %v8493_v18  ;;  %v16075_v34 = vrot.slane %v8779_v38, %v14019_v45  ;;  %v13585_v41 = vld [vmem:[%s13816_s12 + $0x112c] sm:$0xff]   ;;  %v13589_v7 = vld [vmem:[%s13816_s12 + $0x1124] sm:$0xff]   ;;  %v13588_v27 = vld [vmem:[%s13816_s12 + $0x1038] sm:$0xff]  }
 0x4f3   : > { %v12428_v49 = vpop.f32.mrf.mxu0  ;;  %v8781_v59 = vcombine.high %v8779_v38, %v8779_v38  ;;  %v13590_v18 = vld [vmem:[%s13816_s12 + $0x10e4] sm:$0xff]   ;;  %v13591_v40 = vld [vmem:[%s13816_s12 + $0x1070] sm:$0xff]  }
 0x4f4   : > { %v9672_v30 = vadd.f32 %v9670_v47, %v9663_v57  ;;  %8687 = vmatprep.mubr.bf16.mxu1 %v8498_v43  ;;  %12948 = vmatmul.mubr.msk.bf16.vlgmr.msra.gmra.mxu0 %vm573_vm5, %v8499_v42  ;;  %v12429_v58 = vadd.f32 %v12428_v49, %v12427_v11  ;;  %v9072_v22 = vpop.permute.xlu0 %9071  ;;  %v8796_v9 = vcombine.high %v16075_v34, %v16075_v34  ;;  %v13593_v11 = vld [vmem:[%s13816_s12 + $0x111c] sm:$0xff]   ;;  %v13592_v57 = vld [vmem:[%s13816_s12 + $0x1030] sm:$0xff]  }
 0x4f5   : > { %12568 = vmatpush3.bf16.msra.mxu0 %v13567_v19  ;;  %8688 = vmatmul.mubr.bf16.vlgmr.msra.gmra.mxu1 %v8497_v32  ;;  %v12430_v39 = vpop.f32.mrf.mxu0  ;;  %v9073_v5 = vrot.slane %v9072_v22, 2  ;;  %v8795_v14 = vrot.slane %v8781_v59, %v14019_v45  ;;  %v13594_v43 = vld [vmem:[%s13816_s12 + $0x10dc] sm:$0xff]   ;;  %v8800_v49 = vpack.c.bf16 %v16075_v34, %v16075_v34  ;;  %v13606_v59 = vld [vmem:[%s13816_s12 + $0x11e8] ss:$0 sps:$4 sm:$0xff]  }
 0x4f6   : > { %v9674_v60 = vadd.f32 %v9673_v1, %v9672_v30  ;;  %v7215_v24 = vadd.f32 %v12429_v58, %v7214_v6  ;;  %12952 = vmatpush3.bf16.msra.mxu1 %v8956_v8  ;;  %12569 = vmatprep.subr.bf16.mxu0 %v13569_v31  ;;  %v9078_v4 = vpop.permute.xlu1 %9077  ;;  %v8801_v55 = vpack.c.bf16 %v8796_v9, %v8796_v9  ;;  %v13596_v8 = vld [vmem:[%s13816_s12 + $0x1154] ss:$0 sps:$4 sm:$0xff]   ;;  %v13598_v58 = vld [vmem:[%s13816_s12 + $0x110c] sm:$0xff]  }
 0x4f7   : > { %12953 = vmatprep.subr.bf16.mxu1 %v13728_v29  ;;  %v12431_v2 = vpop.f32.mrf.mxu0  ;;  %12957 = vmatprep.mubr.msk.bf16.mxu1 %vm13729_vm4, %v13728_v29  ;;  %v9074_v28 = vsel %vm267_vm1, %v9072_v22, %v9073_v5  ;;  %v9079_v3 = vrot.slane %v9078_v4, 2  ;;  %v8802_v51 = vpack.c.bf16 %v8795_v14, %v8795_v14  ;;  %v13595_v31 = vld [vmem:[%s13816_s12 + $0x1114] sm:$0xff]   ;;  %v9259_v32 = vsel %vm577_vm2, %v13596_v8, 0  ;;  %v13600_v39 = vld [vmem:[%s13816_s12 + $0x10cc] sm:$0xff]   ;;  %v13603_v5 = vld [vmem:[%s13816_s12 + $0x10c4] sm:$0xff]  }
 0x4f8   : > { %v16086_v46 = vmax.f32 %v9674_v60, 0.0  ;;  %v16089_v6 = vadd.f32 %v7215_v24, %v16051_v48  ;;  %v9076_v44 = vmax.f32 %v15941_v10, %v9074_v28  ;;  %8990 = vmatprep.mubr.bf16.mxu0 %v8801_v55  ;;  %v13574_v48 = vld [vmem:[%s13816_s12 + $0x10b0] sm:$0xff]   ;;  %v13577_v10 = vld [vmem:[%s13816_s12 + $0x113c] sm:$0xff]   ;;  %v9375_v25 = vpop.permute.xlu0 %9374  ;;  %v13602_v60 = vld [vmem:[%s13816_s12 + $0x1144] sm:$0xff]   ;;  %v9562_v28 = vsel %vm577_vm2, %v13606_v59, 0 }
 0x4f9   : > { %12570 = vmatpush3.bf16.msra.mxu0 %v13570_v35  ;;  %v9080_v13 = vsel %vm277_vm3, %v9078_v4, %v9079_v3  ;;  %v9376_v21 = vrot.slane %v9375_v25, 2  ;;  %v13597_v30 = vld [vmem:[%s13816_s12 + $0x10d4] sm:$0xff]   ;;  %v13601_v35 = vld [vmem:[%s13816_s12 + $0x1104] sm:$0xff]   ;;  %v13641_v59 = vld [vmem:[%s13816_s12 + $0x11ec] sm:$0xff]  }
 0x4fa   : > { %12954 = vmatpush3.bf16.msra.mxu1 %v13571_v0  ;;  %9683 = vrot.lane.b32.xlu1 %v16086_v46, %s13727_s11  ;;  %v16100_v15 = vmax.f32 %v9076_v44, %v9080_v13  ;;  %v9381_v38 = vpop.permute.xlu1 %9380  ;;  %v13604_v0 = vld [vmem:[%s13816_s12 + $0x11d0] sm:$0xff]   ;;  %v13607_v3 = vld [vmem:[%s13816_s12 + $0x11c8] sm:$0xff]   ;;  %v13609_v13 = vld [vmem:[%s13816_s12 + $0x11e0] sm:$0xff]  }
 0x4fb   : > { %9677 = vrot.lane.b32.xlu0 %v16086_v46, %s13726_s10  ;;  %12571 = vmatprep.subr.bf16.mxu0 %v13572_v62  ;;  %v9377_v19 = vsel %vm267_vm1, %v9375_v25, %v9376_v21  ;;  %v9382_v42 = vrot.slane %v9381_v38, 2  ;;  %v13605_v55 = vld [vmem:[%s13816_s12 + $0x1190] sm:$0xff]   ;;  %v13611_v14 = vld [vmem:[%s13816_s12 + $0x1180] sm:$0xff]   ;;  %v13618_v21 = vld [vmem:[%s13816_s12 + $0x1168] sm:$0xff]  }
 0x4fc   : > { %12955 = vmatprep.subr.bf16.mxu1 %v13728_v29  ;;  %v16108_v16 = vrot.slane %v16100_v15, %v14019_v45  ;;  %v9379_v47 = vmax.f32 %v15950_v53, %v9377_v19  ;;  %v13599_v53 = vld [vmem:[%s13816_s12 + $0x114c] sm:$0xff]   ;;  %v9084_v34 = vcombine.high %v16100_v15, %v16100_v15  ;;  %v13612_v15 = vld [vmem:[%s13816_s12 + $0x11d8] sm:$0xff]  }
 0x4fd   : > { %12572 = vmatpush3.bf16.msra.mxu0 %v13573_v12  ;;  %v9383_v1 = vsel %vm277_vm3, %v9381_v38, %v9382_v42  ;;  %v13608_v12 = vld [vmem:[%s13816_s12 + $0x1188] sm:$0xff]   ;;  %v13627_v25 = vld [vmem:[%s13816_s12 + $0x1254] sm:$0xff]   ;;  %v13619_v38 = vld [vmem:[%s13816_s12 + $0x11a0] sm:$0xff]  }
 0x4fe   : > { %12956 = vmatpush3.bf16.msra.mxu1 %v13574_v48  ;;  %12573 = vmatprep.subr.bf16.mxu0 %v13575_v37  ;;  %v9099_v61 = vcombine.high %v16108_v16, %v16108_v16  ;;  %v9385_v22 = vmax.f32 %v9379_v47, %v9383_v1  ;;  %v9098_v24 = vrot.slane %v9084_v34, %v14019_v45  ;;  %v13610_v48 = vld [vmem:[%s13816_s12 + $0x11c0] sm:$0xff]   ;;  %v13629_v19 = vld [vmem:[%s13816_s12 + $0x124c] sm:$0xff]   ;;  %v13621_v8 = vld [vmem:[%s13816_s12 + $0x1198] sm:$0xff]  }
 0x4ff   : > { %12593 = vmatprep.subr.bf16.mxu1 %v13577_v10  ;;  %v9103_v62 = vpack.c.bf16 %v16108_v16, %v16108_v16  ;;  %v13613_v10 = vld [vmem:[%s13816_s12 + $0x11b8] sm:$0xff]   ;;  %v13631_v47 = vld [vmem:[%s13816_s12 + $0x1244] sm:$0xff]  }
 0x500   : > { %v9104_v56 = vpack.c.bf16 %v9099_v61, %v9099_v61  ;;  %v16151_v9 = vrot.slane %v9385_v22, %v14019_v45  ;;  %v9105_v2 = vpack.c.bf16 %v9098_v24, %v9098_v24  ;;  %v9387_v37 = vcombine.high %v9385_v22, %v9385_v22  ;;  %v13625_v61 = vld [vmem:[%s13816_s12 + $0x125c] sm:$0xff]   ;;  %v13637_v24 = vld [vmem:[%s13816_s12 + $0x1274] sm:$0xff]  }
 0x501   : > { %12574 = vmatpush3.bf16.msra.mxu0 %v13576_v52  ;;  %12958 = vmatmul.mubr.msk.bf16.vlgmr.msra.gmra.mxu1 %vm573_vm5, %v8802_v51  ;;  %v13623_v52 = vld [vmem:[%s13816_s12 + $0x1264] sm:$0xff]   ;;  %v13622_v1 = vld [vmem:[%s13816_s12 + $0x1158] sm:$0xff]  }
 0x502   : > { %12594 = vmatpush3.bf16.msra.mxu1 %v13578_v17  ;;  %12575 = vmatprep.subr.bf16.mxu0 %v13579_v54  ;;  %v9402_v4 = vcombine.high %v16151_v9, %v16151_v9  ;;  %v9401_v16 = vrot.slane %v9387_v37, %v14019_v45  ;;  %v13614_v17 = vld [vmem:[%s13816_s12 + $0x1178] sm:$0xff]   ;;  %v13615_v54 = vld [vmem:[%s13816_s12 + $0x11b0] sm:$0xff]   ;;  %v13624_v51 = vld [vmem:[%s13816_s12 + $0x1224] sm:$0xff]   ;;  %v9406_v22 = vpack.c.bf16 %v16151_v9, %v16151_v9 }
 0x503   : > { %12595 = vmatprep.subr.bf16.mxu1 %v13581_v20  ;;  %9293 = vmatprep.mubr.bf16.mxu1 %v9104_v56  ;;  %v13616_v56 = vld [vmem:[%s13816_s12 + $0x1170] sm:$0xff]  }
 0x504   : > { %v9407_v44 = vpack.c.bf16 %v9402_v4, %v9402_v4  ;;  %v9408_v20 = vpack.c.bf16 %v9401_v16, %v9401_v16  ;;  %v13638_v9 = vld [vmem:[%s13816_s12 + $0x11f4] sm:$0xff]  }
 0x505   : > { %12576 = vmatpush3.bf16.msra.mxu0 %v13580_v63 }
 0x506   : > { %12596 = vmatpush3.bf16.msra.mxu1 %v13582_v50  ;;  %12577 = vmatprep.subr.bf16.mxu0 %v13583_v23  ;;  %v13617_v23 = vld [vmem:[%s13816_s12 + $0x11a8] sm:$0xff]  }
 0x507   : > { %12597 = vmatprep.subr.bf16.mxu1 %v13585_v41  ;;  %v13626_v41 = vld [vmem:[%s13816_s12 + $0x121c] sm:$0xff]  }
 0x509   : > { %12578 = vmatpush3.bf16.msra.mxu0 %v13584_v33 }
 0x50a   : > { %12598 = vmatpush3.bf16.msra.mxu1 %v13586_v36  ;;  %12579 = vmatprep.subr.bf16.mxu0 %v13587_v26 }
 0x50b   : > { %12599 = vmatprep.subr.bf16.mxu1 %v13589_v7 }
 0x50d   : > { %12580 = vmatpush3.bf16.msra.mxu0 %v13588_v27 }
 0x50e   : > { %12600 = vmatpush3.bf16.msra.mxu1 %v13590_v18  ;;  %12581 = vmatprep.subr.bf16.mxu0 %v13591_v40  ;;  %v13628_v18 = vld [vmem:[%s13816_s12 + $0x1214] sm:$0xff]  }
 0x50f   : > { %12601 = vmatprep.subr.bf16.mxu1 %v13593_v11 }
 0x511   : > { %12582 = vmatpush3.bf16.msra.mxu0 %v13592_v57 }
 0x512   : > { %12602 = vmatpush3.bf16.msra.mxu1 %v13594_v43  ;;  %12961 = vmatprep.subr.bf16.mxu0 %v13728_v29  ;;  %v13620_v43 = vld [vmem:[%s13816_s12 + $0x1160] sm:$0xff]  }
 0x513   : > { %12603 = vmatprep.subr.bf16.mxu1 %v13595_v31  ;;  %v13630_v31 = vld [vmem:[%s13816_s12 + $0x120c] sm:$0xff]  }
 0x514   : > { %8991 = vmatmul.mubr.bf16.vlgmr.msra.gmra.mxu0 %v8800_v49 }
 0x515   : > { %12962 = vmatpush3.bf16.msra.mxu0 %v9259_v32  ;;  %12967 = vmatprep.mubr.msk.bf16.mxu0 %vm13729_vm4, %v13728_v29  ;;  %v13632_v32 = vld [vmem:[%s13816_s12 + $0x1204] sm:$0xff]  }
 0x516   : > { %12604 = vmatpush3.bf16.msra.mxu1 %v13597_v30  ;;  %12963 = vmatprep.subr.bf16.mxu0 %v13728_v29  ;;  %v13634_v30 = vld [vmem:[%s13816_s12 + $0x127c] ss:$0 sps:$4 sm:$0xff]  }
 0x517   : > { %12605 = vmatprep.subr.bf16.mxu1 %v13598_v58  ;;  %v9865_v34 = vsel %vm577_vm2, %v13634_v30, 0 }
 0x519   : > { %12964 = vmatpush3.bf16.msra.mxu0 %v13599_v53 }
 0x51a   : > { %12606 = vmatpush3.bf16.msra.mxu1 %v13600_v39  ;;  %12965 = vmatprep.subr.bf16.mxu0 %v13728_v29  ;;  %v13635_v39 = vld [vmem:[%s13816_s12 + $0x11fc] sm:$0xff]  }
 0x51b   : > { %12607 = vmatprep.subr.bf16.mxu1 %v13601_v35  ;;  %v13636_v35 = vld [vmem:[%s13816_s12 + $0x1234] sm:$0xff]  }
 0x51d   : > { %12966 = vmatpush3.bf16.msra.mxu0 %v13602_v60 }
 0x51e   : > { %12608 = vmatpush3.bf16.msra.mxu1 %v13603_v5  ;;  %12619 = vmatprep.subr.bf16.mxu0 %v13604_v0  ;;  %v13639_v5 = vld [vmem:[%s13816_s12 + $0x122c] sm:$0xff]  }
 0x51f   : > { %12971 = vmatprep.subr.bf16.mxu1 %v13728_v29  ;;  %v13640_v0 = vld [vmem:[%s13816_s12 + $0x126c] sm:$0xff]  }
 0x520   : > { %12968 = vmatmul.mubr.msk.bf16.vlgmr.msra.gmra.mxu0 %vm573_vm5, %v9105_v2 }
 0x521   : > { %9294 = vmatmul.mubr.bf16.vlgmr.msra.gmra.mxu1 %v9103_v62  ;;  %12620 = vmatpush3.bf16.msra.mxu0 %v13605_v55 }
 0x522   : > { %9596 = vmatprep.mubr.bf16.mxu0 %v9407_v44  ;;  %12972 = vmatpush3.bf16.msra.mxu1 %v9562_v28 }
 0x523   : > { %12621 = vmatprep.subr.bf16.mxu0 %v13607_v3  ;;  %12973 = vmatprep.subr.bf16.mxu1 %v13728_v29 }
 0x524   : > { %12977 = vmatprep.mubr.msk.bf16.mxu1 %vm13729_vm4, %v13728_v29 }
 0x525   : > { %12622 = vmatpush3.bf16.msra.mxu0 %v13608_v12 }
 0x526   : > { %12974 = vmatpush3.bf16.msra.mxu1 %v13609_v13  ;;  %12623 = vmatprep.subr.bf16.mxu0 %v13610_v48 }
 0x527   : > { %12975 = vmatprep.subr.bf16.mxu1 %v13728_v29 }
 0x529   : > { %12624 = vmatpush3.bf16.msra.mxu0 %v13611_v14 }
 0x52a   : > { %12976 = vmatpush3.bf16.msra.mxu1 %v13612_v15  ;;  %12625 = vmatprep.subr.bf16.mxu0 %v13613_v10 }
 0x52b   : > { %12645 = vmatprep.subr.bf16.mxu1 %v13623_v52 }
 0x52c   : > { %v7517_v63 = vpop.f32.mrf.mxu0 }
 0x52d   : > { %12626 = vmatpush3.bf16.msra.mxu0 %v13614_v17  ;;  %12978 = vmatmul.mubr.msk.bf16.vlgmr.msra.gmra.mxu1 %vm573_vm5, %v9408_v20  ;;  %v12453_v50 = vpop.f32.mrf.mxu1 }
 0x52e   : > { %12627 = vmatprep.subr.bf16.mxu0 %v13615_v54  ;;  %12646 = vmatpush3.bf16.msra.mxu1 %v13624_v51  ;;  %v12909_v33 = vpop.f32.mrf.mxu0 }
 0x52f   : > { %12647 = vmatprep.subr.bf16.mxu1 %v13625_v61  ;;  %v12454_v36 = vpop.f32.mrf.mxu1 }
 0x530   : > { %v12455_v26 = vadd.f32 %v12454_v36, %v12453_v50  ;;  %v7520_v7 = vpop.f32.mrf.mxu0 }
 0x531   : > { %12628 = vmatpush3.bf16.msra.mxu0 %v13616_v56  ;;  %v12456_v27 = vpop.f32.mrf.mxu1 }
 0x532   : > { %12629 = vmatprep.subr.bf16.mxu0 %v13617_v23  ;;  %12648 = vmatpush3.bf16.msra.mxu1 %v13626_v41  ;;  %v7518_v40 = vadd.f32 %v12455_v26, %v7517_v63  ;;  %v12910_v11 = vpop.f32.mrf.mxu0 }
 0x533   : > { %12649 = vmatprep.subr.bf16.mxu1 %v13627_v25  ;;  %v12457_v42 = vpop.f32.mrf.mxu1 }
 0x534   : > { %v7523_v57 = vadd.f32 %v7518_v40, %v16089_v6  ;;  %v13633_v6 = vld [vmem:[%s13816_s12 + $0x123c] sm:$0xff]  }
 0x535   : > { %12630 = vmatpush3.bf16.msra.mxu0 %v13618_v21 }
 0x536   : > { %12631 = vmatprep.subr.bf16.mxu0 %v13619_v38  ;;  %12650 = vmatpush3.bf16.msra.mxu1 %v13628_v18 }
 0x537   : > { %12651 = vmatprep.subr.bf16.mxu1 %v13629_v19 }
 0x539   : > { %12632 = vmatpush3.bf16.msra.mxu0 %v13620_v43  ;;  %v7820_v49 = vpop.f32.mrf.mxu1 }
 0x53a   : > { %12633 = vmatprep.subr.bf16.mxu0 %v13621_v8  ;;  %12652 = vmatpush3.bf16.msra.mxu1 %v13630_v31 }
 0x53b   : > { %12653 = vmatprep.subr.bf16.mxu1 %v13631_v47  ;;  %v12919_v58 = vpop.f32.mrf.mxu1 }
 0x53d   : > { %12634 = vmatpush3.bf16.msra.mxu0 %v13622_v1  ;;  %v7823_v53 = vpop.f32.mrf.mxu1 }
 0x53e   : > { %12654 = vmatpush3.bf16.msra.mxu1 %v13632_v32  ;;  %12981 = vmatprep.subr.bf16.mxu0 %v13728_v29 }
 0x53f   : > { %12655 = vmatprep.subr.bf16.mxu1 %v13633_v6  ;;  %v12920_v60 = vpop.f32.mrf.mxu1 }
 0x540   : > { %9597 = vmatmul.mubr.bf16.vlgmr.msra.gmra.mxu0 %v9406_v22 }
 0x541   : > { %12982 = vmatpush3.bf16.msra.mxu0 %v9865_v34  ;;  %12987 = vmatprep.mubr.msk.bf16.mxu0 %vm13729_vm4, %v13728_v29 }
 0x542   : > { %12656 = vmatpush3.bf16.msra.mxu1 %v13635_v39  ;;  %12983 = vmatprep.subr.bf16.mxu0 %v13728_v29 }
 0x543   : > { %12657 = vmatprep.subr.bf16.mxu1 %v13636_v35 }
 0x545   : > { %12984 = vmatpush3.bf16.msra.mxu0 %v13637_v24 }
 0x546   : > { %12658 = vmatpush3.bf16.msra.mxu1 %v13638_v9  ;;  %12985 = vmatprep.subr.bf16.mxu0 %v13728_v29 }
 0x547   : > { %12659 = vmatprep.subr.bf16.mxu1 %v13639_v5 }
 0x549   : > { %12986 = vmatpush3.bf16.msra.mxu0 %v13640_v0 }
 0x54a   : > { %12660 = vmatpush3.bf16.msra.mxu1 %v13641_v59 }
 0x54c   : > { %v12479_v4 = vpop.f32.mrf.mxu0 }
 0x54e   : > { %v12480_v55 = vpop.f32.mrf.mxu0 }
 0x54f   : > { %v12481_v2 = vadd.f32 %v12480_v55, %v12479_v4 }
 0x550   : > { %v12482_v62 = vpop.f32.mrf.mxu0 }
 0x551   : > { %v7821_v28 = vadd.f32 %v12481_v2, %v7820_v49 }
 0x552   : > { %v12483_v3 = vpop.f32.mrf.mxu0 }
 0x553   : > { %v7826_v44 = vadd.f32 %v7821_v28, %v7523_v57 }
 0x558   : > { %v8123_v12 = vpop.f32.mrf.mxu0 }
 0x559   : > { %v12505_v13 = vpop.f32.mrf.mxu1 }
 0x55a   : > { %v12929_v48 = vpop.f32.mrf.mxu0 }
 0x55b   : > { %v12506_v37 = vpop.f32.mrf.mxu1 }
 0x55c   : > { %v12507_v14 = vadd.f32 %v12506_v37, %v12505_v13  ;;  %v8126_v15 = vpop.f32.mrf.mxu0 }
 0x55d   : > { %v12508_v10 = vpop.f32.mrf.mxu1 }
 0x55e   : > { %v8124_v16 = vadd.f32 %v12507_v14, %v8123_v12  ;;  %v12930_v29 = vpop.f32.mrf.mxu0 }
 0x55f   : > { %v12509_v52 = vpop.f32.mrf.mxu1 }
 0x560   : > { %v8129_v17 = vadd.f32 %v8124_v16, %v7826_v44 }
 0x565   : > { %v8426_v54 = vpop.f32.mrf.mxu1 }
 0x567   : > { %v12939_v51 = vpop.f32.mrf.mxu1 }
 0x569   : > { %v8429_v20 = vpop.f32.mrf.mxu1 }
 0x56b   : > { %v12940_v61 = vpop.f32.mrf.mxu1 }
 0x56c   : > { %v9684_v63 = vpop.permute.xlu1 %9683 }
 0x56d   : > { %v9678_v56 = vpop.permute.xlu0 %9677  ;;  %v9685_v50 = vrot.slane %v9684_v63, 2 }
 0x56e   : > { %v9679_v23 = vrot.slane %v9678_v56, 2 }
 0x56f   : > { %v9686_v25 = vsel %vm277_vm3, %v9684_v63, %v9685_v50 }
 0x570   : > { %v9680_v41 = vsel %vm267_vm1, %v9678_v56, %v9679_v23 }
 0x571   : > { %v9682_v33 = vmax.f32 %v16086_v46, %v9680_v41 }
 0x573   : > { %v9688_v36 = vmax.f32 %v9682_v33, %v9686_v25 }
 0x575   : > { %v9690_v26 = vcombine.high %v9688_v36, %v9688_v36  ;;  %v9697_v7 = vrot.slane %v9688_v36, %v14019_v45 }
 0x577   : > { %v9704_v21 = vrot.slane %v9690_v26, %v14019_v45  ;;  %v9705_v27 = vcombine.high %v9697_v7, %v9697_v7  ;;  %v9709_v11 = vpack.c.bf16 %v9697_v7, %v9697_v7 }
 0x578   : > { %v12531_v18 = vpop.f32.mrf.mxu0 }
 0x579   : > { %v9711_v38 = vpack.c.bf16 %v9704_v21, %v9704_v21  ;;  %v9710_v40 = vpack.c.bf16 %v9705_v27, %v9705_v27  ;;  %v9948_v27 = vld [vmem:[#allocation2] sm:$0x3] }
 0x57a   : > { %v12532_v19 = vpop.f32.mrf.mxu0 }
 0x57b   : > { %9899 = vmatprep.mubr.bf16.mxu1 %v9710_v40  ;;  %12988 = vmatmul.mubr.msk.bf16.vlgmr.msra.gmra.mxu0 %vm573_vm5, %v9711_v38  ;;  %v12533_v42 = vadd.f32 %v12532_v19, %v12531_v18 }
 0x57c   : > { %9900 = vmatmul.mubr.bf16.vlgmr.msra.gmra.mxu1 %v9709_v11  ;;  %v12534_v46 = vpop.f32.mrf.mxu0 }
 0x57d   : > { %v8427_v57 = vadd.f32 %v12533_v42, %v8426_v54 }
 0x57e   : > { %v12535_v43 = vpop.f32.mrf.mxu0 }
 0x57f   : > { %v8432_v8 = vadd.f32 %v8427_v57, %v8129_v17 }
 0x5b4   : > { %v8729_v31 = vpop.f32.mrf.mxu0 }
 0x5b5   : > { %v12557_v47 = vpop.f32.mrf.mxu1 }
 0x5b6   : > { %v12949_v1 = vpop.f32.mrf.mxu0 }
 0x5b7   : > { %v12558_v49 = vpop.f32.mrf.mxu1 }
 0x5b8   : > { %v12559_v45 = vadd.f32 %v12558_v49, %v12557_v47  ;;  %v8732_v32 = vpop.f32.mrf.mxu0 }
 0x5b9   : > { %v12560_v30 = vpop.f32.mrf.mxu1 }
 0x5ba   : > { %v8730_v6 = vadd.f32 %v12559_v45, %v8729_v31  ;;  %v12950_v58 = vpop.f32.mrf.mxu0 }
 0x5bb   : > { %v12561_v22 = vpop.f32.mrf.mxu1 }
 0x5bc   : > { %v8735_v53 = vadd.f32 %v8730_v6, %v8432_v8 }
 0x5c1   : > { %v9032_v34 = vpop.f32.mrf.mxu1 }
 0x5c3   : > { %v12959_v39 = vpop.f32.mrf.mxu1 }
 0x5c5   : > { %v9035_v35 = vpop.f32.mrf.mxu1 }
 0x5c7   : > { %v12960_v60 = vpop.f32.mrf.mxu1 }
 0x5d4   : > { %v12583_v24 = vpop.f32.mrf.mxu0 }
 0x5d6   : > { %v12584_v9 = vpop.f32.mrf.mxu0 }
 0x5d7   : > { %v12585_v5 = vadd.f32 %v12584_v9, %v12583_v24 }
 0x5d8   : > { %v12586_v0 = vpop.f32.mrf.mxu0 }
 0x5d9   : > { %v9033_v59 = vadd.f32 %v12585_v5, %v9032_v34 }
 0x5da   : > { %v12587_v4 = vpop.f32.mrf.mxu0 }
 0x5db   : > { %v9038_v55 = vadd.f32 %v9033_v59, %v8735_v53 }
 0x5e0   : > { %v9335_v2 = vpop.f32.mrf.mxu0 }
 0x5e1   : > { %v12609_v62 = vpop.f32.mrf.mxu1 }
 0x5e2   : > { %v12969_v28 = vpop.f32.mrf.mxu0 }
 0x5e3   : > { %v12610_v3 = vpop.f32.mrf.mxu1 }
 0x5e4   : > { %v12611_v44 = vadd.f32 %v12610_v3, %v12609_v62  ;;  %v9338_v12 = vpop.f32.mrf.mxu0 }
 0x5e5   : > { %v12612_v13 = vpop.f32.mrf.mxu1 }
 0x5e6   : > { %v9336_v48 = vadd.f32 %v12611_v44, %v9335_v2  ;;  %v12970_v37 = vpop.f32.mrf.mxu0 }
 0x5e7   : > { %v12613_v14 = vpop.f32.mrf.mxu1 }
 0x5e8   : > { %v9341_v15 = vadd.f32 %v9336_v48, %v9038_v55 }
 0x5ed   : > { %v9638_v10 = vpop.f32.mrf.mxu1 }
 0x5ef   : > { %v12979_v16 = vpop.f32.mrf.mxu1 }
 0x5f1   : > { %v9641_v29 = vpop.f32.mrf.mxu1 }
 0x5f3   : > { %v12980_v52 = vpop.f32.mrf.mxu1 }
 0x600   : > { %v12635_v17 = vpop.f32.mrf.mxu0 }
 0x602   : > { %v12636_v54 = vpop.f32.mrf.mxu0 }
 0x603   : > { %v12637_v51 = vadd.f32 %v12636_v54, %v12635_v17 }
 0x604   : > { %v12638_v20 = vpop.f32.mrf.mxu0 }
 0x605   : > { %v9639_v61 = vadd.f32 %v12637_v51, %v9638_v10 }
 0x606   : > { %v12639_v63 = vpop.f32.mrf.mxu0 }
 0x607   : > { %v9644_v56 = vadd.f32 %v9639_v61, %v9341_v15 }
 0x63b   : > { %v9941_v50 = vpop.f32.mrf.mxu0 }
 0x63c   : > { %v12661_v23 = vpop.f32.mrf.mxu1 }
 0x63d   : > { %v12989_v41 = vpop.f32.mrf.mxu0 }
 0x63e   : > { %v12662_v33 = vpop.f32.mrf.mxu1 }
 0x63f   : > { %v12663_v25 = vadd.f32 %v12662_v33, %v12661_v23  ;;  %v9944_v36 = vpop.f32.mrf.mxu0 }
 0x640   : > { %v12664_v26 = vpop.f32.mrf.mxu1 }
 0x641   : > { %v9942_v7 = vadd.f32 %v12663_v25, %v9941_v50  ;;  %v12990_v21 = vpop.f32.mrf.mxu0 }
 0x642   : > { %v12665_v38 = vpop.f32.mrf.mxu1 }
 0x643   : > { %v9947_v18 = vadd.f32 %v9942_v7, %v9644_v56  ;;  %9955 = sbr.rel (%p11833_p6) target bundleno = 1618 (0x652), region = 56 }
 0x645   : > { %v9949_v40 = vadd.f32 %v9948_v27, %v9947_v18 }
 0x647   : > { %9951 = vst.msk [vmem:[#allocation2] sm:$0x3] %vm9950_vm6, %v9949_v40 }
 0x648   : > { %v11834_v19 = vld [vmem:[%s16246_s4] ss:$0 sm:$0xff] }
 0x64e   : > { %v9956_v11 = vld [vmem:[#allocation2] sm:$0x3] }
 0x64f   : > { %v9964_v42 = vadd.f32 %v11834_v19, %v9956_v11 }
 0x651   : > { %9965 = vst.msk [vmem:[#allocation8] sm:$0x3] %vm9950_vm6, %v9964_v42 }
 0x652 PF: > { %p13015_p13 = scmp.eq.s32.totalorder %s13768_s19, 1  ;;  %s13731_s10 = smov [#allocation8]  }
 0x653   : > { %s9973_s11 = sshll.u32 %s13731_s10, 4  ;;  %s9974_s11 = int_to_ptr.vmem [resolvable:$true] %s9973_s11 }
 0x654   : > { %s13679_s14 = scalar_lea.vmem %s9974_s11, 32  ;;  %p13686_p7 = scmp.lt.s32.totalorder %s9974_s11, %s9974_s11 }
 0x655   : > { %p13680_p0 = scmp.ne.s32.totalorder %s9974_s11, %s13679_s14  ;;  %p13687_p9 = scmp.lt.s32.totalorder %s13679_s14, %s13679_s14 }
 0x657   : > { %p13681_p1 = pnand %p13680_p0, %p13015_p13  ;;  %p13688_p10 = por %p13687_p9, %p13686_p7 }
 0x659   : > { %p13682_p5 = pneg %p13681_p1 }
 0x65b   : > { %p13689_p11 = pnand %p13688_p10, %p13682_p5 }
 0x65d   : > { %13692 = shalt.err (!%p13689_p11)
}
 0x65e   : > { %13001 = dma.vmem_to_hbm [thread:$0]  (%p13015_p13), %s9974_s11, 32, %s16247_s5, [#allocation4]  }
 0x65f   : > { %13716 = dma.done.wait (%p13015_p13), [#allocation4], 32  }
 0x660   : > { %13718 = vsyncadd (%p13015_p13), [#allocation4], 4294967264 }
 0x661 PF: > { %s18_s18 = sadd.s32 1, %s13721_s18  }
 0x662   : > { %p15_p12 = scmp.ge.s32.totalorder %s18_s18, 4  }
 0x664   :  { %17 = sbr.rel (!%p15_p12) target bundleno = 3 (0x3), region = 115 }
 0x669   :  { %9986 = vsyncpa [#allocation4], 1 }
 0x66a   :  { %9988 = vsyncpa [#allocation4 + $0x1], 1 }
 0x66b   :  { %9989 = vsyncpa [#allocation5], 1 }
 0x66c   :  { %9991 = vsyncpa [#allocation5 + $0x1], 1 }
 0x66d   :  { %9992 = vsyncpa [#allocation7], 1 }

</bundles_post_ra>
